<compile_context>
chip_gen: v5e
topology: v5e:2x2
jax: 0.10.0
libtpu: 0.0.40
codegen_flags: <defaults>
</compile_context>

<pallas_src>
import functools

import jax
import jax.numpy as jnp
import numpy as np
from jax.experimental import pallas as pl
from jax.experimental.pallas import tpu as pltpu

_VMEM = pltpu.MemorySpace.VMEM
_SMEM = pltpu.MemorySpace.SMEM

# "NT" matmul: contract last dim of both operands (no explicit transpose).
_NT_DIMS = (((1,), (1,)), ((), ()))


# ----------------------------- Pallas kernels ------------------------------ #

def _gram_kernel(scal_ref, z_ref, x_ref, kuu_ref, kuf_ref):
    """Fused RBF Gram matrices.

    kuu[i,j] = var * exp(c * ||Z[i]-Z[j]||^2) + jitter * (i==j)
    kuf[i,j] = var * exp(c * ||Z[i]-X[j]||^2)
    with c = -0.5 / lengthscale^2 passed as an SMEM scalar (raw distances
    in-kernel, no wrapper pre-scaling).
    """
    c = scal_ref[0]
    var = scal_ref[1]
    jitter = scal_ref[2]

    Z = z_ref[...]                                            # (M, d)
    X = x_ref[...]                                            # (Np, d)
    m = Z.shape[0]

    zsq = jnp.sum(Z * Z, axis=-1, keepdims=True)              # (M, 1)
    xsq = jnp.sum(X * X, axis=-1, keepdims=True)              # (Np, 1)

    cross_zz = jax.lax.dot_general(Z, Z, _NT_DIMS,
                                   preferred_element_type=jnp.float32)  # (M, M)
    cross_zx = jax.lax.dot_general(Z, X, _NT_DIMS,
                                   preferred_element_type=jnp.float32)  # (M, Np)

    d2_zz = jnp.maximum(zsq + zsq.T - 2.0 * cross_zz, 0.0)
    d2_zx = jnp.maximum(zsq + xsq.T - 2.0 * cross_zx, 0.0)

    rows = jax.lax.broadcasted_iota(jnp.int32, (m, m), 0)
    cols = jax.lax.broadcasted_iota(jnp.int32, (m, m), 1)
    kuu_ref[...] = var * jnp.exp(c * d2_zz) + jnp.where(rows == cols, jitter, 0.0)
    kuf_ref[...] = var * jnp.exp(c * d2_zx)


def _posterior_head_kernel(scal_ref, a_ref, m_ref, w_ref, out_ref):
    """out[0] = m_row @ A ; out[1] = variance + (exp(logvar)-1)_row @ (A*A).

    For RBF, K_ff_diag == variance exactly, so it is an SMEM scalar.
    Single lane-dense (2, N_pad) output slab.
    """
    A = a_ref[...]                                            # (M, Np)
    A2 = A * A
    lhs_dims = (((1,), (0,)), ((), ()))                       # (1,M) @ (M,Np)
    mean = jax.lax.dot_general(m_ref[...], A, lhs_dims,
                               preferred_element_type=jnp.float32)      # (1, Np)
    w_a2 = jax.lax.dot_general(w_ref[...], A2, lhs_dims,
                               preferred_element_type=jnp.float32)      # (1, Np)
    var = scal_ref[0] + w_a2
    out_ref[...] = jnp.concatenate([mean, var], axis=0)       # (2, Np)


# ------------------------------- wrappers ---------------------------------- #

@functools.partial(jax.jit, static_argnames=("return_variance",))
def gp_forward(x_new, params, return_variance=True):
    """Mirrors GaussianProcessPreferences.forward (kernel_type='rbf')."""
    Z = params["inducing_points"].astype(jnp.float32)
    log_l = params["log_lengthscale"].astype(jnp.float32)
    log_v = params["log_variance"].astype(jnp.float32)
    m = params["variational_mean"].astype(jnp.float32)
    logvar = params["variational_logvar"].astype(jnp.float32)

    M, d = Z.shape
    N = x_new.shape[0]
    N_pad = ((N + 127) // 128) * 128                          # lane-dense columns
    x_pad = jnp.pad(x_new.astype(jnp.float32), ((0, N_pad - N), (0, 0)))

    variance = jnp.exp(log_v)
    c = -0.5 * jnp.exp(-2.0 * log_l)                          # = -0.5 / l^2
    gram_scal = jnp.stack([c, variance, jnp.float32(1e-6)])   # SMEM scalars

    K_uu, K_uf = pl.pallas_call(
        _gram_kernel,
        out_shape=(jax.ShapeDtypeStruct((M, M), jnp.float32),
                   jax.ShapeDtypeStruct((M, N_pad), jnp.float32)),
        in_specs=[
            pl.BlockSpec(memory_space=_SMEM),   # [c, variance, jitter]
            pl.BlockSpec(memory_space=_VMEM),   # Z
            pl.BlockSpec(memory_space=_VMEM),   # x_new (padded)
        ],
        out_specs=(pl.BlockSpec(memory_space=_VMEM),
                   pl.BlockSpec(memory_space=_VMEM)),
    )(gram_scal, Z, x_pad)

    # TODO(synk): Cholesky factorization and triangular solve have no clean
    # Pallas TPU equivalent; they stay on the XLA linalg path.
    L_uu = jnp.linalg.cholesky(K_uu)
    A = jax.scipy.linalg.solve_triangular(L_uu, K_uf, lower=True)   # (M, N_pad)

    m_row = m.reshape(1, M)
    w_row = (jnp.exp(logvar) - 1.0).reshape(1, M)
    head_scal = jnp.reshape(variance, (1,))

    out = pl.pallas_call(
        _posterior_head_kernel,
        out_shape=jax.ShapeDtypeStruct((2, N_pad), jnp.float32),
        in_specs=[
            pl.BlockSpec(memory_space=_SMEM),   # [variance] (== K_ff_diag)
            pl.BlockSpec(memory_space=_VMEM),   # A
            pl.BlockSpec(memory_space=_VMEM),   # m_row
            pl.BlockSpec(memory_space=_VMEM),   # w_row
        ],
        out_specs=pl.BlockSpec(memory_space=_VMEM),
    )(head_scal, A, m_row, w_row)

    mean = out[0, :N]
    if return_variance:
        return mean, out[1, :N]
    return mean, None


# ------------------------- pure-JAX reference ------------------------------ #

def gp_forward_ref(x_new, params):
    Z = params["inducing_points"]
    l = jnp.exp(params["log_lengthscale"])
    v = jnp.exp(params["log_variance"])

    def k(a, b):
        a = a / l
        b = b / l
        d2 = (jnp.sum(a * a, -1, keepdims=True) + jnp.sum(b * b, -1)[None, :]
              - 2.0 * a @ b.T)
        return v * jnp.exp(-0.5 * jnp.maximum(d2, 0.0))

    M = Z.shape[0]
    K_uu = k(Z, Z) + jnp.eye(M, dtype=jnp.float32) * 1e-6
    K_uf = k(Z, x_new)
    kdiag = jnp.diagonal(k(x_new, x_new))
    L = jnp.linalg.cholesky(K_uu)
    A = jax.scipy.linalg.solve_triangular(L, K_uf, lower=True)
    mean = A.T @ params["variational_mean"]
    var = (kdiag - jnp.sum(A ** 2, axis=0)
           + jnp.sum(jnp.exp(params["variational_logvar"])[:, None] * A ** 2, axis=0))
    return mean, var


# --------------------------------- main ------------------------------------ #

if __name__ == "__main__":
    feature_dim = 32
    num_inducing = 64
    batch = 16

    key = jax.random.PRNGKey(0)
    k_ind, k_x, k_m, k_lv = jax.random.split(key, 4)

    # Deterministic parameter init (shapes per GaussianProcessPreferences.__init__;
    # variational params given small random values instead of zeros so the
    # posterior-head path is nontrivial).
    params = {
        "inducing_points": (0.1 * jax.random.normal(k_ind, (num_inducing, feature_dim))
                            ).astype(jnp.float32),
        "log_lengthscale": jnp.asarray(jnp.log(1.0), jnp.float32),
        "log_variance": jnp.asarray(jnp.log(1.0), jnp.float32),
        "log_noise_variance": jnp.asarray(jnp.log(0.1), jnp.float32),
        "variational_mean": (0.1 * jax.random.normal(k_m, (num_inducing,))
                             ).astype(jnp.float32),
        "variational_logvar": (0.1 * jax.random.normal(k_lv, (num_inducing,))
                               ).astype(jnp.float32),
    }
    x_new = jax.random.normal(k_x, (batch, feature_dim), dtype=jnp.float32)

    mean, var = gp_forward(x_new, params, return_variance=True)
    mean = jax.block_until_ready(mean)
    var = jax.block_until_ready(var)

    mean_ref, var_ref = gp_forward_ref(x_new, params)
    np.testing.assert_allclose(np.asarray(mean), np.asarray(mean_ref), rtol=1e-4, atol=1e-5)
    np.testing.assert_allclose(np.asarray(var), np.asarray(var_ref), rtol=1e-4, atol=1e-5)

    print("KERNEL_OK")
</pallas_src>

<mosaic_0001>
module attributes {stable_mosaic.version = 11 : i64} {
  func.func @_gram_kernel(%arg0: memref<3xf32, #tpu.memory_space<smem>>, %arg1: memref<64x32xf32, #tpu.memory_space<vmem>>, %arg2: memref<128x32xf32, #tpu.memory_space<vmem>>, %arg3: memref<64x64xf32, #tpu.memory_space<vmem>>, %arg4: memref<64x128xf32, #tpu.memory_space<vmem>>) attributes {dimension_semantics = [], scalar_prefetch = 0 : i64, scratch_operands = 0 : i64, tpu.core_type = #tpu.core_type<tc>} {
    %c0 = arith.constant 0 : index
    %0 = memref.load %arg0[%c0] : memref<3xf32, #tpu.memory_space<smem>>
    %c1 = arith.constant 1 : index
    %1 = memref.load %arg0[%c1] : memref<3xf32, #tpu.memory_space<smem>>
    %c2 = arith.constant 2 : index
    %2 = memref.load %arg0[%c2] : memref<3xf32, #tpu.memory_space<smem>>
    %c0_0 = arith.constant 0 : index
    %c0_1 = arith.constant 0 : index
    %3 = vector.load %arg1[%c0_0, %c0_1] : memref<64x32xf32, #tpu.memory_space<vmem>>, vector<64x32xf32>
    %c0_2 = arith.constant 0 : index
    %c0_3 = arith.constant 0 : index
    %4 = vector.load %arg2[%c0_2, %c0_3] : memref<128x32xf32, #tpu.memory_space<vmem>>, vector<128x32xf32>
    %5 = arith.mulf %3, %3 : vector<64x32xf32>
    %cst = arith.constant dense<0.000000e+00> : vector<64xf32>
    %6 = vector.multi_reduction <add>, %5, %cst [1] : vector<64x32xf32> to vector<64xf32>
    %7 = vector.shape_cast %6 : vector<64xf32> to vector<64x1xf32>
    %8 = arith.mulf %4, %4 : vector<128x32xf32>
    %cst_4 = arith.constant dense<0.000000e+00> : vector<128xf32>
    %9 = vector.multi_reduction <add>, %8, %cst_4 [1] : vector<128x32xf32> to vector<128xf32>
    %10 = vector.shape_cast %9 : vector<128xf32> to vector<128x1xf32>
    %cst_5 = arith.constant dense<0.000000e+00> : vector<64x64xf32>
    %11 = tpu.matmul %3, %3, %cst_5 {dimension_numbers = #tpu.dot_dimension_numbers<[1], [1], [0], [0], [0, 0, 1, 0], [], []>} : vector<64x32xf32>, vector<64x32xf32>, vector<64x64xf32> -> vector<64x64xf32>
    %cst_6 = arith.constant dense<0.000000e+00> : vector<64x128xf32>
    %12 = tpu.matmul %3, %4, %cst_6 {dimension_numbers = #tpu.dot_dimension_numbers<[1], [1], [0], [0], [0, 0, 1, 0], [], []>} : vector<64x32xf32>, vector<128x32xf32>, vector<64x128xf32> -> vector<64x128xf32>
    %13 = tpu.transpose %7, [1, 0] : vector<64x1xf32> -> vector<1x64xf32>
    %14 = vector.broadcast %7 : vector<64x1xf32> to vector<64x64xf32>
    %15 = vector.broadcast %13 : vector<1x64xf32> to vector<64x64xf32>
    %16 = arith.addf %14, %15 : vector<64x64xf32>
    %cst_7 = arith.constant 2.000000e+00 : f32
    %17 = vector.broadcast %cst_7 : f32 to vector<64x64xf32>
    %18 = arith.mulf %17, %11 : vector<64x64xf32>
    %19 = arith.subf %16, %18 : vector<64x64xf32>
    %cst_8 = arith.constant 0.000000e+00 : f32
    %20 = vector.broadcast %cst_8 : f32 to vector<64x64xf32>
    %21 = arith.maximumf %19, %20 : vector<64x64xf32>
    %22 = tpu.transpose %10, [1, 0] : vector<128x1xf32> -> vector<1x128xf32>
    %23 = vector.broadcast %7 : vector<64x1xf32> to vector<64x128xf32>
    %24 = vector.broadcast %22 : vector<1x128xf32> to vector<64x128xf32>
    %25 = arith.addf %23, %24 : vector<64x128xf32>
    %cst_9 = arith.constant 2.000000e+00 : f32
    %26 = vector.broadcast %cst_9 : f32 to vector<64x128xf32>
    %27 = arith.mulf %26, %12 : vector<64x128xf32>
    %28 = arith.subf %25, %27 : vector<64x128xf32>
    %cst_10 = arith.constant 0.000000e+00 : f32
    %29 = vector.broadcast %cst_10 : f32 to vector<64x128xf32>
    %30 = arith.maximumf %28, %29 : vector<64x128xf32>
    %31 = tpu.iota {dimensions = array<i32: 0>} : vector<64x64xi32>
    %32 = tpu.iota {dimensions = array<i32: 1>} : vector<64x64xi32>
    %33 = vector.broadcast %0 : f32 to vector<64x64xf32>
    %34 = arith.mulf %33, %21 : vector<64x64xf32>
    %35 = math.exp %34 : vector<64x64xf32>
    %36 = vector.broadcast %1 : f32 to vector<64x64xf32>
    %37 = arith.mulf %36, %35 : vector<64x64xf32>
    %38 = arith.cmpi eq, %31, %32 : vector<64x64xi32>
    %cst_11 = arith.constant 0.000000e+00 : f32
    %39 = vector.broadcast %2 : f32 to vector<64x64xf32>
    %40 = vector.broadcast %cst_11 : f32 to vector<64x64xf32>
    %41 = arith.select %38, %39, %40 : vector<64x64xi1>, vector<64x64xf32>
    %42 = arith.addf %37, %41 : vector<64x64xf32>
    %c0_12 = arith.constant 0 : index
    %c0_13 = arith.constant 0 : index
    %43 = vector.load %arg3[%c0_12, %c0_13] : memref<64x64xf32, #tpu.memory_space<vmem>>, vector<64x64xf32>
    tpu.vector_store %arg3[%c0_12, %c0_13], %42 {strides = array<i32>} : memref<64x64xf32, #tpu.memory_space<vmem>>, vector<64x64xf32>,
    %44 = vector.broadcast %0 : f32 to vector<64x128xf32>
    %45 = arith.mulf %44, %30 : vector<64x128xf32>
    %46 = math.exp %45 : vector<64x128xf32>
    %47 = vector.broadcast %1 : f32 to vector<64x128xf32>
    %48 = arith.mulf %47, %46 : vector<64x128xf32>
    %c0_14 = arith.constant 0 : index
    %c0_15 = arith.constant 0 : index
    %49 = vector.load %arg4[%c0_14, %c0_15] : memref<64x128xf32, #tpu.memory_space<vmem>>, vector<64x128xf32>
    tpu.vector_store %arg4[%c0_14, %c0_15], %48 {strides = array<i32>} : memref<64x128xf32, #tpu.memory_space<vmem>>, vector<64x128xf32>,
    return
  }
}

module attributes {stable_mosaic.version = 11 : i64} {
  func.func @_posterior_head_kernel(%arg0: memref<1xf32, #tpu.memory_space<smem>>, %arg1: memref<64x128xf32, #tpu.memory_space<vmem>>, %arg2: memref<1x64xf32, #tpu.memory_space<vmem>>, %arg3: memref<1x64xf32, #tpu.memory_space<vmem>>, %arg4: memref<2x128xf32, #tpu.memory_space<vmem>>) attributes {dimension_semantics = [], scalar_prefetch = 0 : i64, scratch_operands = 0 : i64, tpu.core_type = #tpu.core_type<tc>} {
    %c0 = arith.constant 0 : index
    %c0_0 = arith.constant 0 : index
    %0 = vector.load %arg1[%c0, %c0_0] : memref<64x128xf32, #tpu.memory_space<vmem>>, vector<64x128xf32>
    %1 = arith.mulf %0, %0 : vector<64x128xf32>
    %c0_1 = arith.constant 0 : index
    %c0_2 = arith.constant 0 : index
    %2 = vector.load %arg2[%c0_1, %c0_2] : memref<1x64xf32, #tpu.memory_space<vmem>>, vector<1x64xf32>
    %cst = arith.constant dense<0.000000e+00> : vector<1x128xf32>
    %3 = tpu.matmul %2, %0, %cst {dimension_numbers = #tpu.dot_dimension_numbers<[1], [0], [0], [1], [0, 0, 1, 1], [], []>} : vector<1x64xf32>, vector<64x128xf32>, vector<1x128xf32> -> vector<1x128xf32>
    %c0_3 = arith.constant 0 : index
    %c0_4 = arith.constant 0 : index
    %4 = vector.load %arg3[%c0_3, %c0_4] : memref<1x64xf32, #tpu.memory_space<vmem>>, vector<1x64xf32>
    %cst_5 = arith.constant dense<0.000000e+00> : vector<1x128xf32>
    %5 = tpu.matmul %4, %1, %cst_5 {dimension_numbers = #tpu.dot_dimension_numbers<[1], [0], [0], [1], [0, 0, 1, 1], [], []>} : vector<1x64xf32>, vector<64x128xf32>, vector<1x128xf32> -> vector<1x128xf32>
    %c0_6 = arith.constant 0 : index
    %6 = memref.load %arg0[%c0_6] : memref<1xf32, #tpu.memory_space<smem>>
    %7 = vector.broadcast %6 : f32 to vector<1x128xf32>
    %8 = arith.addf %7, %5 : vector<1x128xf32>
    %9 = tpu.concatenate %3, %8 in 0 : vector<1x128xf32>, vector<1x128xf32> -> vector<2x128xf32>
    %c0_7 = arith.constant 0 : index
    %c0_8 = arith.constant 0 : index
    %10 = vector.load %arg4[%c0_7, %c0_8] : memref<2x128xf32, #tpu.memory_space<vmem>>, vector<2x128xf32>
    tpu.vector_store %arg4[%c0_7, %c0_8], %9 {strides = array<i32>} : memref<2x128xf32, #tpu.memory_space<vmem>>, vector<2x128xf32>,
    return
  }
}

</mosaic_0001>

<bundles_post_ra>
// kernel: custom-call.4
= control target key start
LH: loop header
LB: loop body
LE: loop exit
PB: predicated region body
PF: predicated region fallthrough
CT: control target
= control target key end

     0   :  { %v5331_v0 = vmov 0.0   ;;  %vm78_vm3 = vcmask 7168   ;;  %vm196_vm5 = vcmask 15368   ;;  %vm7108_vm6 = vcmask 1047553   ;;  %s7102_s0 = inlined_call_operand.vmem [shape: f32[64,64], index: 0, kind: input, shape index: {}]   ;;  %s7103_s1 = inlined_call_operand.vmem [shape: f32[64,64], index: 1, kind: output, shape index: {}]  }
   0x1   :  { %63 = vst [vmem:[#allocation1] sm:$0xff] %v5331_v0  ;;  %v5349_v4 = vld [vmem:[%s7102_s0] sm:$0xff]  ;;  %v5355_v5 = vld [vmem:[%s7102_s0 + $0x8] sm:$0xff]  ;;  %vm223_vm9 = vmand %vm196_vm5, %vm7108_vm6  ;;  %vm7110_vm11 = vcmask 23568   ;;  %vm7109_vm12 = vcmask 1047554  }
   0x2   :  { %45 = vst [vmem:[#allocation0] sm:$0xff] %v5349_v4  ;;  %vm345_vm15 = vmand %vm7110_vm11, %vm7109_vm12 }
   0x3   :  { %47 = vst [vmem:[#allocation0 + $0x8] sm:$0xff] %v5355_v5 }
   0x8   :  { %v79_v1 = vld [vmem:[#allocation1] ss:$0 sm:$0xff] }
   0x9   :  { %v81_v2 = vmul.f32 %v79_v1, %v79_v1  ;;  %v5342_v3 = vmul.f32 0.0, %v79_v1  ;;  %v80_v6 = vld [vmem:[#allocation0] ss:$0 sm:$0xff]  ;;  %v200_v28 = vld [vmem:[#allocation0 + $0x1] ss:$0 sm:$0xff] }
   0xa   :  { %v322_v52 = vld [vmem:[#allocation0 + $0x2] ss:$0 sm:$0xff] }
   0xb   :  { %82 = vadd.xlane.f32.xlu0 %v81_v2  ;;  %110 = vadd.xlane.f32.xlu2 %v5342_v3 }
  0x13   :  { %98 = vadd.xlane.f32.xlu0 %v5342_v3 }
  0x7e   :  { %v83_v7 = vpop.xlane.xlu0 %82  ;;  %v111_v21 = vpop.xlane.xlu2 %110 }
  0x7f   :  { %v84_v8 = vsub.f32 %v80_v6, %v83_v7  ;;  %v112_v23 = vsub.f32 %v5355_v5, %v111_v21 }
  0x81   :  { %5194 = vrsqrt.f32 %v84_v8  ;;  %vm91_vm1 = vweird.f32 %v84_v8 }
  0x86   :  { %v99_v13 = vpop.xlane.xlu0 %98 }
  0x87   :  { %v5195_v9 = vpop.eup %5194  ;;  %v100_v15 = vsub.f32 %v5349_v4, %v99_v13 }
  0x88   :  { %v86_v10 = vmul.f32 %v5195_v9, %v84_v8  ;;  %vm92_vm0 = vweird.f32 %v5195_v9 }
  0x89   :  { %vm93_vm2 = vmor %vm91_vm1, %vm92_vm0  ;;  %vm440_vm1 = vcmask 31768  }
  0x8a   :  { %v87_v11 = vmul.f32 %v5195_v9, %v86_v10 }
  0x8c   :  { %v88_v12 = vmul.f32 0.5, %v87_v11 }
  0x8e   :  { %v89_v14 = vsub.f32 1.5, %v88_v12 }
  0x90   :  { %v90_v16 = vmul.f32 %v5195_v9, %v89_v14 }
  0x92   :  { %v5359_v17 = vsel %vm93_vm2, %v5195_v9, %v90_v16  ;;  %v444_v16 = vld [vmem:[#allocation0 + $0x3] ss:$0 sm:$0xff]  ;;  %vm7107_vm2 = vcmask 1047555  }
  0x93   :  { %v101_v18 = vmul.f32 %v100_v15, %v5359_v17  ;;  %v113_v24 = vmul.f32 %v112_v23, %v5359_v17  ;;  %v5406_v15 = vld [vmem:[%s7102_s0 + $0x10] sm:$0xff] }
  0x94   :  { %49 = vst [vmem:[#allocation0 + $0x10] sm:$0xff] %v5406_v15 }
  0x95   :  { %v102_v19 = vsel %vm78_vm3, %v101_v18, 0.0  ;;  %v114_v26 = vsel %vm78_vm3, %v113_v24, 0.0 }
  0x96   :  { %104 = vst [vmem:[#allocation1] sm:$0xff] %v102_v19 }
  0x9d   :  { %v5363_v20 = vld [vmem:[#allocation1 + $0x1] ss:$0 sm:$0xff] }
  0x9e   :  { %v201_v22 = vmul.f32 %v5363_v20, %v5363_v20  ;;  %v217_v25 = vmul.f32 %v5363_v20, %v102_v19  ;;  %v231_v27 = vmul.f32 %v5363_v20, %v114_v26 }
  0xa0   :  { %202 = vadd.xlane.f32.xlu1 %v201_v22 }
  0xa8   :  { %218 = vadd.xlane.f32.xlu1 %v217_v25 }
  0xb0   :  { %232 = vadd.xlane.f32.xlu1 %v231_v27 }
 0x113   :  { %v203_v29 = vpop.xlane.xlu1 %202 }
 0x114   :  { %v204_v30 = vsub.f32 %v200_v28, %v203_v29 }
 0x116   :  { %5196 = vrsqrt.f32 %v204_v30  ;;  %vm211_vm7 = vweird.f32 %v204_v30 }
 0x11b   :  { %v219_v33 = vpop.xlane.xlu1 %218 }
 0x11c   :  { %v5197_v31 = vpop.eup %5196  ;;  %v220_v38 = vsub.f32 %v5349_v4, %v219_v33 }
 0x11d   :  { %v206_v32 = vmul.f32 %v5197_v31, %v204_v30  ;;  %vm212_vm4 = vweird.f32 %v5197_v31 }
 0x11e   :  { %vm213_vm8 = vmor %vm211_vm7, %vm212_vm4 }
 0x11f   :  { %v207_v34 = vmul.f32 %v5197_v31, %v206_v32 }
 0x121   :  { %v208_v35 = vmul.f32 0.5, %v207_v34 }
 0x123   :  { %v209_v36 = vsub.f32 1.5, %v208_v35  ;;  %v233_v40 = vpop.xlane.xlu1 %232 }
 0x124   :  { %v234_v43 = vsub.f32 %v5355_v5, %v233_v40 }
 0x125   :  { %v210_v37 = vmul.f32 %v5197_v31, %v209_v36 }
 0x127   :  { %v5373_v39 = vsel %vm213_vm8, %v5197_v31, %v210_v37  ;;  %vm467_vm8 = vmand %vm440_vm1, %vm7107_vm2 }
 0x128   :  { %v221_v41 = vmul.f32 %v220_v38, %v5373_v39  ;;  %v235_v45 = vmul.f32 %v234_v43, %v5373_v39 }
 0x12a   :  { %v224_v42 = vsel %vm223_vm9, %v221_v41, 0.0  ;;  %v236_v46 = vsel %vm196_vm5, %v235_v45, 0.0 }
 0x12b   :  { %v225_v44 = vadd.f32 %v224_v42, %v102_v19  ;;  %v237_v47 = vadd.f32 %v236_v46, %v114_v26 }
 0x12d   :  { %226 = vst [vmem:[#allocation1] sm:$0xff] %v225_v44 }
 0x134   :  { %v5381_v48 = vld [vmem:[#allocation1 + $0x2] ss:$0 sm:$0xff] }
 0x135   :  { %v339_v49 = vmul.f32 %v5381_v48, %v225_v44  ;;  %v323_v50 = vmul.f32 %v5381_v48, %v5381_v48  ;;  %v353_v51 = vmul.f32 %v5381_v48, %v237_v47 }
 0x137   :  { %340 = vadd.xlane.f32.xlu0 %v339_v49  ;;  %324 = vadd.xlane.f32.xlu2 %v323_v50  ;;  %v566_v49 = vld [vmem:[#allocation0 + $0x4] ss:$0 sm:$0xff] }
 0x138   :  { %354 = vadd.xlane.f32.xlu1 %v353_v51 }
 0x1aa   :  { %v325_v53 = vpop.xlane.xlu2 %324  ;;  %v341_v59 = vpop.xlane.xlu0 %340 }
 0x1ab   :  { %v326_v54 = vsub.f32 %v322_v52, %v325_v53  ;;  %v342_v62 = vsub.f32 %v5349_v4, %v341_v59  ;;  %v355_v0 = vpop.xlane.xlu1 %354 }
 0x1ac   :  { %v356_v6 = vsub.f32 %v5355_v5, %v355_v0 }
 0x1ad   :  { %5198 = vrsqrt.f32 %v326_v54  ;;  %vm333_vm13 = vweird.f32 %v326_v54 }
 0x1b3   :  { %v5199_v55 = vpop.eup %5198 }
 0x1b4   :  { %v328_v56 = vmul.f32 %v5199_v55, %v326_v54  ;;  %vm334_vm10 = vweird.f32 %v5199_v55 }
 0x1b5   :  { %vm335_vm14 = vmor %vm333_vm13, %vm334_vm10  ;;  %vm562_vm10 = vcmask 39968   ;;  %vm7106_vm13 = vcmask 1047556  }
 0x1b6   :  { %v329_v57 = vmul.f32 %v5199_v55, %v328_v56 }
 0x1b8   :  { %v330_v58 = vmul.f32 0.5, %v329_v57 }
 0x1ba   :  { %v331_v60 = vsub.f32 1.5, %v330_v58 }
 0x1bc   :  { %v332_v61 = vmul.f32 %v5199_v55, %v331_v60 }
 0x1be   :  { %v5388_v63 = vsel %vm335_vm14, %v5199_v55, %v332_v61 }
 0x1bf   :  { %v343_v1 = vmul.f32 %v342_v62, %v5388_v63  ;;  %v357_v8 = vmul.f32 %v356_v6, %v5388_v63 }
 0x1c1   :  { %v346_v2 = vsel %vm345_vm15, %v343_v1, 0.0  ;;  %v358_v9 = vsel %vm7110_vm11, %v357_v8, 0.0 }
 0x1c2   :  { %v347_v7 = vadd.f32 %v346_v2, %v225_v44  ;;  %v359_v10 = vadd.f32 %v358_v9, %v237_v47 }
 0x1c4   :  { %348 = vst [vmem:[#allocation1] sm:$0xff] %v347_v7 }
 0x1cb   :  { %v5396_v11 = vld [vmem:[#allocation1 + $0x3] ss:$0 sm:$0xff] }
 0x1cc   :  { %v461_v12 = vmul.f32 %v5396_v11, %v347_v7  ;;  %v445_v13 = vmul.f32 %v5396_v11, %v5396_v11  ;;  %v475_v14 = vmul.f32 %v5396_v11, %v359_v10 }
 0x1ce   :  { %462 = vadd.xlane.f32.xlu0 %v461_v12  ;;  %446 = vadd.xlane.f32.xlu2 %v445_v13 }
 0x1cf   :  { %476 = vadd.xlane.f32.xlu1 %v475_v14 }
 0x1d6   :  { %123 = vadd.xlane.f32.xlu2 %v5342_v3 }
 0x241   :  { %v447_v18 = vpop.xlane.xlu2 %446  ;;  %v463_v25 = vpop.xlane.xlu0 %462 }
 0x242   :  { %v448_v19 = vsub.f32 %v444_v16, %v447_v18  ;;  %v464_v28 = vsub.f32 %v5349_v4, %v463_v25  ;;  %v477_v30 = vpop.xlane.xlu1 %476 }
 0x243   :  { %v478_v33 = vsub.f32 %v5355_v5, %v477_v30 }
 0x244   :  { %5200 = vrsqrt.f32 %v448_v19  ;;  %vm455_vm4 = vweird.f32 %v448_v19 }
 0x249   :  { %v124_v35 = vpop.xlane.xlu2 %123 }
 0x24a   :  { %v5201_v21 = vpop.eup %5200  ;;  %v125_v37 = vsub.f32 %v5406_v15, %v124_v35 }
 0x24b   :  { %v450_v22 = vmul.f32 %v5201_v21, %v448_v19  ;;  %vm456_vm0 = vweird.f32 %v5201_v21 }
 0x24c   :  { %vm457_vm7 = vmor %vm455_vm4, %vm456_vm0  ;;  %v126_v40 = vmul.f32 %v125_v37, %v5359_v17 }
 0x24d   :  { %v451_v23 = vmul.f32 %v5201_v21, %v450_v22  ;;  %vm589_vm0 = vmand %vm562_vm10, %vm7106_vm13 }
 0x24e   :  { %v127_v46 = vsel %vm78_vm3, %v126_v40, 0.0 }
 0x24f   :  { %v452_v24 = vmul.f32 0.5, %v451_v23  ;;  %v244_v47 = vmul.f32 %v5363_v20, %v127_v46  ;;  %v5451_v23 = vld [vmem:[%s7102_s0 + $0x18] sm:$0xff] }
 0x250   :  { %51 = vst [vmem:[#allocation0 + $0x18] sm:$0xff] %v5451_v23 }
 0x251   :  { %v453_v26 = vsub.f32 1.5, %v452_v24 }
 0x253   :  { %v454_v27 = vmul.f32 %v5201_v21, %v453_v26 }
 0x255   :  { %v5410_v29 = vsel %vm457_vm7, %v5201_v21, %v454_v27  ;;  %vm684_vm7 = vcmask 48168  }
 0x256   :  { %v465_v31 = vmul.f32 %v464_v28, %v5410_v29  ;;  %v479_v36 = vmul.f32 %v478_v33, %v5410_v29 }
 0x258   :  { %v468_v32 = vsel %vm467_vm8, %v465_v31, 0.0  ;;  %v480_v38 = vsel %vm440_vm1, %v479_v36, 0.0  ;;  %v688_v31 = vld [vmem:[#allocation0 + $0x5] ss:$0 sm:$0xff]  ;;  %vm7104_vm8 = vcmask 1047557  }
 0x259   :  { %v469_v34 = vadd.f32 %v468_v32, %v347_v7  ;;  %v481_v41 = vadd.f32 %v480_v38, %v359_v10 }
 0x25b   :  { %470 = vst [vmem:[#allocation1] sm:$0xff] %v469_v34 }
 0x262   :  { %v5420_v42 = vld [vmem:[#allocation1 + $0x4] ss:$0 sm:$0xff] }
 0x263   :  { %v583_v43 = vmul.f32 %v5420_v42, %v469_v34  ;;  %v567_v44 = vmul.f32 %v5420_v42, %v5420_v42  ;;  %v597_v45 = vmul.f32 %v5420_v42, %v481_v41 }
 0x265   :  { %584 = vadd.xlane.f32.xlu2 %v583_v43  ;;  %568 = vadd.xlane.f32.xlu0 %v567_v44 }
 0x266   :  { %598 = vadd.xlane.f32.xlu1 %v597_v45 }
 0x26d   :  { %245 = vadd.xlane.f32.xlu0 %v244_v47 }
 0x2d8   :  { %v569_v50 = vpop.xlane.xlu0 %568  ;;  %v585_v62 = vpop.xlane.xlu2 %584 }
 0x2d9   :  { %v570_v51 = vsub.f32 %v566_v49, %v569_v50  ;;  %v586_v2 = vsub.f32 %v5349_v4, %v585_v62  ;;  %v599_v10 = vpop.xlane.xlu1 %598 }
 0x2da   :  { %v600_v12 = vsub.f32 %v5355_v5, %v599_v10 }
 0x2db   :  { %5202 = vrsqrt.f32 %v570_v51  ;;  %vm577_vm14 = vweird.f32 %v570_v51 }
 0x2e0   :  { %v246_v52 = vpop.xlane.xlu0 %245 }
 0x2e1   :  { %v5203_v53 = vpop.eup %5202  ;;  %v247_v54 = vsub.f32 %v5406_v15, %v246_v52 }
 0x2e2   :  { %v572_v55 = vmul.f32 %v5203_v53, %v570_v51  ;;  %vm578_vm9 = vweird.f32 %v5203_v53 }
 0x2e3   :  { %v248_v56 = vmul.f32 %v247_v54, %v5373_v39  ;;  %vm579_vm15 = vmor %vm577_vm14, %vm578_vm9 }
 0x2e4   :  { %v573_v57 = vmul.f32 %v5203_v53, %v572_v55 }
 0x2e5   :  { %v249_v58 = vsel %vm196_vm5, %v248_v56, 0.0 }
 0x2e6   :  { %v574_v59 = vmul.f32 0.5, %v573_v57  ;;  %v250_v60 = vadd.f32 %v249_v58, %v127_v46 }
 0x2e8   :  { %v575_v61 = vsub.f32 1.5, %v574_v59  ;;  %v366_v0 = vmul.f32 %v5381_v48, %v250_v60 }
 0x2ea   :  { %v576_v1 = vmul.f32 %v5203_v53, %v575_v61  ;;  %367 = vadd.xlane.f32.xlu1 %v366_v0 }
 0x2ec   :  { %v5433_v6 = vsel %vm579_vm15, %v5203_v53, %v576_v1  ;;  %vm711_vm15 = vmand %vm684_vm7, %vm7104_vm8 }
 0x2ed   :  { %v587_v7 = vmul.f32 %v586_v2, %v5433_v6  ;;  %v601_v13 = vmul.f32 %v600_v12, %v5433_v6 }
 0x2ef   :  { %v590_v8 = vsel %vm589_vm0, %v587_v7, 0.0  ;;  %v602_v19 = vsel %vm562_vm10, %v601_v13, 0.0 }
 0x2f0   :  { %v591_v9 = vadd.f32 %v590_v8, %v469_v34  ;;  %v603_v21 = vadd.f32 %v602_v19, %v481_v41 }
 0x2f2   :  { %592 = vst [vmem:[#allocation1] sm:$0xff] %v591_v9 }
 0x2f9   :  { %v5440_v14 = vld [vmem:[#allocation1 + $0x5] ss:$0 sm:$0xff] }
 0x2fa   :  { %v705_v16 = vmul.f32 %v5440_v14, %v591_v9  ;;  %v689_v18 = vmul.f32 %v5440_v14, %v5440_v14  ;;  %v719_v22 = vmul.f32 %v5440_v14, %v603_v21 }
 0x2fc   :  { %706 = vadd.xlane.f32.xlu0 %v705_v16  ;;  %690 = vadd.xlane.f32.xlu2 %v689_v18 }
 0x304   :  { %136 = vadd.xlane.f32.xlu0 %v5342_v3  ;;  %720 = vadd.xlane.f32.xlu2 %v719_v22 }
 0x35d   :  { %v368_v24 = vpop.xlane.xlu1 %367 }
 0x35e   :  { %v369_v25 = vsub.f32 %v5406_v15, %v368_v24 }
 0x360   :  { %v370_v26 = vmul.f32 %v369_v25, %v5388_v63 }
 0x362   :  { %v371_v27 = vsel %vm7110_vm11, %v370_v26, 0.0 }
 0x363   :  { %v372_v28 = vadd.f32 %v371_v27, %v250_v60 }
 0x365   :  { %v488_v30 = vmul.f32 %v5396_v11, %v372_v28 }
 0x367   :  { %489 = vadd.xlane.f32.xlu2 %v488_v30 }
 0x36f   :  { %v707_v32 = vpop.xlane.xlu0 %706  ;;  %v691_v33 = vpop.xlane.xlu2 %690 }
 0x370   :  { %v692_v34 = vsub.f32 %v688_v31, %v691_v33  ;;  %v708_v49 = vsub.f32 %v5349_v4, %v707_v32 }
 0x372   :  { %5204 = vrsqrt.f32 %v692_v34  ;;  %vm699_vm9 = vweird.f32 %v692_v34 }
 0x377   :  { %v137_v35 = vpop.xlane.xlu0 %136  ;;  %v721_v54 = vpop.xlane.xlu2 %720 }
 0x378   :  { %v5205_v36 = vpop.eup %5204  ;;  %v138_v37 = vsub.f32 %v5451_v23, %v137_v35  ;;  %v722_v55 = vsub.f32 %v5355_v5, %v721_v54 }
 0x379   :  { %v694_v38 = vmul.f32 %v5205_v36, %v692_v34  ;;  %vm700_vm4 = vweird.f32 %v5205_v36 }
 0x37a   :  { %v139_v40 = vmul.f32 %v138_v37, %v5359_v17  ;;  %vm701_vm14 = vmor %vm699_vm9, %vm700_vm4  ;;  %vm7111_vm4 = vcmask 56368   ;;  %vm7105_vm9 = vcmask 1047558  }
 0x37b   :  { %v695_v41 = vmul.f32 %v5205_v36, %v694_v38  ;;  %vm833_vm8 = vmand %vm7111_vm4, %vm7105_vm9  ;;  %vm1050_vm9 = vcmask 72768  }
 0x37c   :  { %v140_v43 = vsel %vm78_vm3, %v139_v40, 0.0 }
 0x37d   :  { %v696_v44 = vmul.f32 0.5, %v695_v41  ;;  %v257_v46 = vmul.f32 %v5363_v20, %v140_v43 }
 0x37f   :  { %v697_v45 = vsub.f32 1.5, %v696_v44  ;;  %258 = vadd.xlane.f32.xlu2 %v257_v46 }
 0x381   :  { %v698_v47 = vmul.f32 %v5205_v36, %v697_v45 }
 0x383   :  { %v5463_v50 = vsel %vm701_vm14, %v5205_v36, %v698_v47 }
 0x384   :  { %v709_v51 = vmul.f32 %v708_v49, %v5463_v50  ;;  %v723_v56 = vmul.f32 %v722_v55, %v5463_v50 }
 0x386   :  { %v712_v52 = vsel %vm711_vm15, %v709_v51, 0.0  ;;  %v724_v60 = vsel %vm684_vm7, %v723_v56, 0.0 }
 0x387   :  { %v713_v53 = vadd.f32 %v712_v52, %v591_v9  ;;  %v725_v61 = vadd.f32 %v724_v60, %v603_v21  ;;  %v810_v21 = vld [vmem:[#allocation0 + $0x6] ss:$0 sm:$0xff] }
 0x389   :  { %714 = vst [vmem:[#allocation1] sm:$0xff] %v713_v53 }
 0x390   :  { %v5470_v57 = vld [vmem:[#allocation1 + $0x6] ss:$0 sm:$0xff] }
 0x391   :  { %v827_v58 = vmul.f32 %v5470_v57, %v713_v53  ;;  %v811_v59 = vmul.f32 %v5470_v57, %v5470_v57  ;;  %v841_v62 = vmul.f32 %v5470_v57, %v725_v61 }
 0x393   :  { %828 = vadd.xlane.f32.xlu0 %v827_v58  ;;  %812 = vadd.xlane.f32.xlu1 %v811_v59 }
 0x39b   :  { %842 = vadd.xlane.f32.xlu1 %v841_v62  ;;  %v5511_v62 = vld [vmem:[%s7102_s0 + $0x20] sm:$0xff] }
 0x39c   :  { %53 = vst [vmem:[#allocation0 + $0x20] sm:$0xff] %v5511_v62 }
 0x3da   :  { %v490_v0 = vpop.xlane.xlu2 %489 }
 0x3db   :  { %v491_v1 = vsub.f32 %v5406_v15, %v490_v0  ;;  %v932_v0 = vld [vmem:[#allocation0 + $0x7] ss:$0 sm:$0xff] }
 0x3dd   :  { %v492_v2 = vmul.f32 %v491_v1, %v5410_v29 }
 0x3df   :  { %v493_v7 = vsel %vm440_vm1, %v492_v2, 0.0 }
 0x3e0   :  { %v494_v8 = vadd.f32 %v493_v7, %v372_v28 }
 0x3e2   :  { %v610_v9 = vmul.f32 %v5420_v42, %v494_v8 }
 0x3e4   :  { %611 = vadd.xlane.f32.xlu0 %v610_v9 }
 0x3f2   :  { %v259_v10 = vpop.xlane.xlu2 %258 }
 0x3f3   :  { %v260_v12 = vsub.f32 %v5451_v23, %v259_v10 }
 0x3f5   :  { %v261_v13 = vmul.f32 %v260_v12, %v5373_v39 }
 0x3f7   :  { %v262_v16 = vsel %vm196_vm5, %v261_v13, 0.0 }
 0x3f8   :  { %v263_v18 = vadd.f32 %v262_v16, %v140_v43 }
 0x3fa   :  { %v379_v19 = vmul.f32 %v5381_v48, %v263_v18 }
 0x3fc   :  { %380 = vadd.xlane.f32.xlu0 %v379_v19 }
 0x406   :  { %v813_v22 = vpop.xlane.xlu1 %812  ;;  %v829_v30 = vpop.xlane.xlu0 %828 }
 0x407   :  { %v814_v24 = vsub.f32 %v810_v21, %v813_v22  ;;  %v830_v33 = vsub.f32 %v5349_v4, %v829_v30 }
 0x409   :  { %5206 = vrsqrt.f32 %v814_v24  ;;  %vm821_vm14 = vweird.f32 %v814_v24 }
 0x40e   :  { %v843_v35 = vpop.xlane.xlu1 %842 }
 0x40f   :  { %v5207_v25 = vpop.eup %5206  ;;  %v844_v38 = vsub.f32 %v5355_v5, %v843_v35 }
 0x410   :  { %v816_v26 = vmul.f32 %v5207_v25, %v814_v24  ;;  %vm822_vm0 = vweird.f32 %v5207_v25 }
 0x411   :  { %vm823_vm15 = vmor %vm821_vm14, %vm822_vm0 }
 0x412   :  { %v817_v27 = vmul.f32 %v5207_v25, %v816_v26 }
 0x414   :  { %v818_v28 = vmul.f32 0.5, %v817_v27 }
 0x416   :  { %v819_v31 = vsub.f32 1.5, %v818_v28 }
 0x418   :  { %v820_v32 = vmul.f32 %v5207_v25, %v819_v31 }
 0x41a   :  { %v5486_v34 = vsel %vm823_vm15, %v5207_v25, %v820_v32  ;;  %vm7112_vm15 = vcmask 64568  }
 0x41b   :  { %v831_v36 = vmul.f32 %v830_v33, %v5486_v34  ;;  %v845_v41 = vmul.f32 %v844_v38, %v5486_v34 }
 0x41d   :  { %v834_v37 = vsel %vm833_vm8, %v831_v36, 0.0  ;;  %v846_v43 = vsel %vm7111_vm4, %v845_v41, 0.0 }
 0x41e   :  { %v835_v40 = vadd.f32 %v834_v37, %v713_v53  ;;  %v847_v44 = vadd.f32 %v846_v43, %v725_v61 }
 0x420   :  { %836 = vst [vmem:[#allocation1] sm:$0xff] %v835_v40 }
 0x427   :  { %v5494_v4 = vld [vmem:[#allocation1 + $0x7] ss:$0 sm:$0xff] }
 0x428   :  { %v933_v45 = vmul.f32 %v5494_v4, %v5494_v4  ;;  %v963_v46 = vmul.f32 %v5494_v4, %v847_v44 }
 0x42a   :  { %934 = vadd.xlane.f32.xlu1 %v933_v45  ;;  %964 = vadd.xlane.f32.xlu2 %v963_v46 }
 0x432   :  { %149 = vadd.xlane.f32.xlu2 %v5342_v3 }
 0x457   :  { %v612_v47 = vpop.xlane.xlu0 %611 }
 0x458   :  { %v613_v49 = vsub.f32 %v5406_v15, %v612_v47 }
 0x45a   :  { %v614_v51 = vmul.f32 %v613_v49, %v5433_v6 }
 0x45c   :  { %v615_v52 = vsel %vm562_vm10, %v614_v51, 0.0 }
 0x45d   :  { %v616_v53 = vadd.f32 %v615_v52, %v494_v8 }
 0x45f   :  { %v732_v54 = vmul.f32 %v5440_v14, %v616_v53 }
 0x461   :  { %733 = vadd.xlane.f32.xlu1 %v732_v54 }
 0x46f   :  { %v381_v55 = vpop.xlane.xlu0 %380 }
 0x470   :  { %v382_v56 = vsub.f32 %v5451_v23, %v381_v55 }
 0x472   :  { %v383_v58 = vmul.f32 %v382_v56, %v5388_v63 }
 0x474   :  { %v384_v59 = vsel %vm7110_vm11, %v383_v58, 0.0  ;;  %v1054_v58 = vld [vmem:[#allocation0 + $0x8] ss:$0 sm:$0xff] }
 0x475   :  { %v385_v60 = vadd.f32 %v384_v59, %v263_v18 }
 0x477   :  { %v501_v61 = vmul.f32 %v5396_v11, %v385_v60 }
 0x479   :  { %502 = vadd.xlane.f32.xlu1 %v501_v61 }
 0x49d   :  { %v965_v1 = vpop.xlane.xlu2 %964  ;;  %v935_v2 = vpop.xlane.xlu1 %934 }
 0x49e   :  { %v936_v7 = vsub.f32 %v932_v0, %v935_v2  ;;  %v966_v25 = vsub.f32 %v5355_v5, %v965_v1 }
 0x4a0   :  { %5208 = vrsqrt.f32 %v936_v7  ;;  %vm943_vm0 = vweird.f32 %v936_v7 }
 0x4a5   :  { %v150_v8 = vpop.xlane.xlu2 %149 }
 0x4a6   :  { %v5209_v9 = vpop.eup %5208  ;;  %v151_v10 = vsub.f32 %v5511_v62, %v150_v8 }
 0x4a7   :  { %v938_v12 = vmul.f32 %v5209_v9, %v936_v7  ;;  %vm944_vm8 = vweird.f32 %v5209_v9 }
 0x4a8   :  { %v152_v13 = vmul.f32 %v151_v10, %v5359_v17  ;;  %vm945_vm14 = vmor %vm943_vm0, %vm944_vm8 }
 0x4a9   :  { %v939_v16 = vmul.f32 %v5209_v9, %v938_v12 }
 0x4aa   :  { %v153_v18 = vsel %vm78_vm3, %v152_v13, 0.0 }
 0x4ab   :  { %v940_v19 = vmul.f32 0.5, %v939_v16  ;;  %v270_v22 = vmul.f32 %v5363_v20, %v153_v18 }
 0x4ad   :  { %v941_v21 = vsub.f32 1.5, %v940_v19  ;;  %271 = vadd.xlane.f32.xlu1 %v270_v22 }
 0x4af   :  { %v942_v24 = vmul.f32 %v5209_v9, %v941_v21 }
 0x4b1   :  { %v5519_v26 = vsel %vm945_vm14, %v5209_v9, %v942_v24 }
 0x4b2   :  { %v967_v27 = vmul.f32 %v966_v25, %v5519_v26 }
 0x4b4   :  { %v968_v28 = vsel %vm7112_vm15, %v967_v27, 0.0 }
 0x4b5   :  { %v969_v30 = vadd.f32 %v968_v28, %v847_v44 }
 0x4b7   :  { %971 = vst [vmem:[#allocation1 + $0x8] sm:$0xff] %v969_v30 }
 0x4be   :  { %v5523_v31 = vld [vmem:[#allocation1 + $0x8] ss:$0 sm:$0xff] }
 0x4bf   :  { %v1073_v32 = vmul.f32 %v5523_v31, %v969_v30  ;;  %v1055_v33 = vmul.f32 %v5523_v31, %v5523_v31 }
 0x4c1   :  { %1074 = vadd.xlane.f32.xlu2 %v1073_v32  ;;  %1056 = vadd.xlane.f32.xlu0 %v1055_v33 }
 0x4d4   :  { %v734_v35 = vpop.xlane.xlu1 %733 }
 0x4d5   :  { %v735_v36 = vsub.f32 %v5406_v15, %v734_v35 }
 0x4d7   :  { %v736_v37 = vmul.f32 %v735_v36, %v5463_v50 }
 0x4d9   :  { %v737_v38 = vsel %vm684_vm7, %v736_v37, 0.0 }
 0x4da   :  { %v738_v40 = vadd.f32 %v737_v38, %v616_v53 }
 0x4dc   :  { %v854_v41 = vmul.f32 %v5470_v57, %v738_v40 }
 0x4de   :  { %855 = vadd.xlane.f32.xlu0 %v854_v41 }
 0x4ec   :  { %v503_v43 = vpop.xlane.xlu1 %502 }
 0x4ed   :  { %v504_v44 = vsub.f32 %v5451_v23, %v503_v43 }
 0x4ef   :  { %v505_v45 = vmul.f32 %v504_v44, %v5410_v29 }
 0x4f1   :  { %v506_v46 = vsel %vm440_vm1, %v505_v45, 0.0 }
 0x4f2   :  { %v507_v47 = vadd.f32 %v506_v46, %v385_v60 }
 0x4f4   :  { %v623_v49 = vmul.f32 %v5420_v42, %v507_v47 }
 0x4f6   :  { %624 = vadd.xlane.f32.xlu2 %v623_v49 }
 0x520   :  { %v272_v51 = vpop.xlane.xlu1 %271 }
 0x521   :  { %v273_v52 = vsub.f32 %v5511_v62, %v272_v51  ;;  %v1164_v51 = vld [vmem:[#allocation0 + $0x9] ss:$0 sm:$0xff] }
 0x523   :  { %v274_v54 = vmul.f32 %v273_v52, %v5373_v39 }
 0x525   :  { %v275_v53 = vsel %vm196_vm5, %v274_v54, 0.0 }
 0x526   :  { %v276_v55 = vadd.f32 %v275_v53, %v153_v18 }
 0x528   :  { %v392_v56 = vmul.f32 %v5381_v48, %v276_v55 }
 0x52a   :  { %393 = vadd.xlane.f32.xlu2 %v392_v56 }
 0x532   :  { %162 = vadd.xlane.f32.xlu2 %v5342_v3 }
 0x534   :  { %v1057_v59 = vpop.xlane.xlu0 %1056  ;;  %v1075_v7 = vpop.xlane.xlu2 %1074 }
 0x535   :  { %v1058_v61 = vsub.f32 %v1054_v58, %v1057_v59  ;;  %v1076_v10 = vsub.f32 %v5355_v5, %v1075_v7 }
 0x537   :  { %5210 = vrsqrt.f32 %v1058_v61  ;;  %vm1065_vm0 = vweird.f32 %v1058_v61 }
 0x53d   :  { %v5211_v60 = vpop.eup %5210 }
 0x53e   :  { %v1060_v0 = vmul.f32 %v5211_v60, %v1058_v61  ;;  %vm1066_vm8 = vweird.f32 %v5211_v60 }
 0x53f   :  { %vm1067_vm14 = vmor %vm1065_vm0, %vm1066_vm8  ;;  %vm1160_vm0 = vcmask 80968  }
 0x540   :  { %v1061_v1 = vmul.f32 %v5211_v60, %v1060_v0  ;;  %vm1189_vm2 = vmand %vm1160_vm0, %vm7108_vm6 }
 0x542   :  { %v1062_v2 = vmul.f32 0.5, %v1061_v1 }
 0x544   :  { %v1063_v8 = vsub.f32 1.5, %v1062_v2 }
 0x546   :  { %v1064_v9 = vmul.f32 %v5211_v60, %v1063_v8 }
 0x548   :  { %v5542_v12 = vsel %vm1067_vm14, %v5211_v60, %v1064_v9 }
 0x549   :  { %v1077_v13 = vmul.f32 %v1076_v10, %v5542_v12 }
 0x54b   :  { %v1078_v16 = vsel %vm1050_vm9, %v1077_v13, 0.0 }
 0x54c   :  { %v1079_v18 = vadd.f32 %v1078_v16, %v969_v30 }
 0x54e   :  { %1081 = vst [vmem:[#allocation1 + $0x8] sm:$0xff] %v1079_v18 }
 0x551   :  { %v856_v19 = vpop.xlane.xlu0 %855 }
 0x552   :  { %v857_v21 = vsub.f32 %v5406_v15, %v856_v19 }
 0x554   :  { %v858_v22 = vmul.f32 %v857_v21, %v5486_v34 }
 0x555   :  { %v5548_v24 = vld [vmem:[#allocation1 + $0x9] ss:$0 sm:$0xff] }
 0x556   :  { %v1165_v25 = vmul.f32 %v5548_v24, %v5548_v24  ;;  %v859_v27 = vsel %vm7111_vm4, %v858_v22, 0.0  ;;  %v1183_v30 = vmul.f32 %v5548_v24, %v1079_v18 }
 0x557   :  { %v860_v28 = vadd.f32 %v859_v27, %v738_v40  ;;  %v5562_v40 = vld [vmem:[%s7102_s0 + $0x28] sm:$0xff] }
 0x558   :  { %1166 = vadd.xlane.f32.xlu0 %v1165_v25  ;;  %55 = vst [vmem:[#allocation0 + $0x28] sm:$0xff] %v5562_v40 }
 0x559   :  { %v976_v32 = vmul.f32 %v5494_v4, %v860_v28 }
 0x55b   :  { %977 = vadd.xlane.f32.xlu1 %v976_v32 }
 0x560   :  { %1184 = vadd.xlane.f32.xlu0 %v1183_v30 }
 0x569   :  { %v625_v33 = vpop.xlane.xlu2 %624 }
 0x56a   :  { %v626_v35 = vsub.f32 %v5451_v23, %v625_v33 }
 0x56c   :  { %v627_v36 = vmul.f32 %v626_v35, %v5433_v6 }
 0x56e   :  { %v628_v37 = vsel %vm562_vm10, %v627_v36, 0.0 }
 0x56f   :  { %v629_v38 = vadd.f32 %v628_v37, %v507_v47 }
 0x571   :  { %v745_v41 = vmul.f32 %v5440_v14, %v629_v38 }
 0x573   :  { %746 = vadd.xlane.f32.xlu1 %v745_v41 }
 0x59d   :  { %v394_v43 = vpop.xlane.xlu2 %393 }
 0x59e   :  { %v395_v44 = vsub.f32 %v5511_v62, %v394_v43 }
 0x5a0   :  { %v396_v45 = vmul.f32 %v395_v44, %v5388_v63 }
 0x5a2   :  { %v397_v46 = vsel %vm7110_vm11, %v396_v45, 0.0 }
 0x5a3   :  { %v398_v49 = vadd.f32 %v397_v46, %v276_v55 }
 0x5a5   :  { %v514_v47 = vmul.f32 %v5396_v11, %v398_v49  ;;  %v163_v21 = vpop.xlane.xlu2 %162 }
 0x5a6   :  { %v164_v25 = vsub.f32 %v5562_v40, %v163_v21 }
 0x5a7   :  { %515 = vadd.xlane.f32.xlu1 %v514_v47 }
 0x5cb   :  { %v1167_v52 = vpop.xlane.xlu0 %1166 }
 0x5cc   :  { %v1168_v54 = vsub.f32 %v1164_v51, %v1167_v52 }
 0x5ce   :  { %5212 = vrsqrt.f32 %v1168_v54  ;;  %v978_v53 = vpop.xlane.xlu1 %977  ;;  %vm1175_vm14 = vweird.f32 %v1168_v54 }
 0x5cf   :  { %v979_v56 = vsub.f32 %v5406_v15, %v978_v53 }
 0x5d1   :  { %v980_v58 = vmul.f32 %v979_v56, %v5519_v26 }
 0x5d3   :  { %v981_v59 = vsel %vm7112_vm15, %v980_v58, 0.0  ;;  %v1185_v8 = vpop.xlane.xlu0 %1184 }
 0x5d4   :  { %v5213_v61 = vpop.eup %5212  ;;  %v982_v60 = vadd.f32 %v981_v59, %v860_v28  ;;  %v1186_v10 = vsub.f32 %v5355_v5, %v1185_v8  ;;  %v165_v5 = vmul.f32 %v164_v25, %v5359_v17 }
 0x5d5   :  { %v1170_v0 = vmul.f32 %v5213_v61, %v1168_v54  ;;  %vm1176_vm8 = vweird.f32 %v5213_v61 }
 0x5d6   :  { %v1086_v1 = vmul.f32 %v5523_v31, %v982_v60  ;;  %vm1177_vm13 = vmor %vm1175_vm14, %vm1176_vm8  ;;  %v166_v36 = vsel %vm78_vm3, %v165_v5, 0.0 }
 0x5d7   :  { %v1171_v55 = vmul.f32 %v5213_v61, %v1170_v0  ;;  %v283_v43 = vmul.f32 %v5363_v20, %v166_v36 }
 0x5d8   :  { %1087 = vadd.xlane.f32.xlu0 %v1086_v1 }
 0x5d9   :  { %v1172_v2 = vmul.f32 0.5, %v1171_v55 }
 0x5db   :  { %v1173_v7 = vsub.f32 1.5, %v1172_v2 }
 0x5dd   :  { %v1174_v9 = vmul.f32 %v5213_v61, %v1173_v7 }
 0x5df   :  { %v5574_v13 = vsel %vm1177_vm13, %v5213_v61, %v1174_v9  ;;  %v1276_v61 = vld [vmem:[#allocation0 + $0xa] ss:$0 sm:$0xff]  ;;  %vm1272_vm13 = vcmask 89168  }
 0x5e0   :  { %v1187_v16 = vmul.f32 %v1186_v10, %v5574_v13  ;;  %vm1301_vm6 = vmand %vm1272_vm13, %vm7109_vm12  ;;  %vm7115_vm12 = vcmask 1047555  }
 0x5e2   :  { %v1190_v19 = vsel %vm1189_vm2, %v1187_v16, 0.0 }
 0x5e3   :  { %v5579_v22 = vadd.f32 %v1190_v19, %v1079_v18 }
 0x5e5   :  { %1193 = vst [vmem:[#allocation1 + $0x8] sm:$0xff] %v5579_v22 }
 0x5e6   :  { %v747_v27 = vpop.xlane.xlu1 %746 }
 0x5e7   :  { %v748_v28 = vsub.f32 %v5451_v23, %v747_v27 }
 0x5e9   :  { %v749_v32 = vmul.f32 %v748_v28, %v5463_v50 }
 0x5eb   :  { %v750_v35 = vsel %vm684_vm7, %v749_v32, 0.0 }
 0x5ec   :  { %v5586_v30 = vld [vmem:[#allocation1 + $0xa] ss:$0 sm:$0xff]  ;;  %v751_v37 = vadd.f32 %v750_v35, %v629_v38 }
 0x5ed   :  { %v1277_v33 = vmul.f32 %v5586_v30, %v5586_v30  ;;  %v1295_v18 = vmul.f32 %v5586_v30, %v5579_v22  ;;  %v5612_v35 = vld [vmem:[#allocation0 + $0x8] sm:$0xff] }
 0x5ee   :  { %v867_v41 = vmul.f32 %v5470_v57, %v751_v37 }
 0x5ef   :  { %1278 = vadd.xlane.f32.xlu2 %v1277_v33  ;;  %1296 = vadd.xlane.f32.xlu0 %v1295_v18 }
 0x5f0   :  { %868 = vadd.xlane.f32.xlu1 %v867_v41 }
 0x5f7   :  { %284 = vadd.xlane.f32.xlu2 %v283_v43 }
 0x61a   :  { %v516_v44 = vpop.xlane.xlu1 %515 }
 0x61b   :  { %v517_v45 = vsub.f32 %v5511_v62, %v516_v44 }
 0x61d   :  { %v518_v46 = vmul.f32 %v517_v45, %v5410_v29 }
 0x61f   :  { %v519_v47 = vsel %vm440_vm1, %v518_v46, 0.0 }
 0x620   :  { %v520_v51 = vadd.f32 %v519_v47, %v398_v49 }
 0x622   :  { %v636_v52 = vmul.f32 %v5420_v42, %v520_v51 }
 0x624   :  { %637 = vadd.xlane.f32.xlu1 %v636_v52 }
 0x64b   :  { %v1088_v38 = vpop.xlane.xlu0 %1087 }
 0x64c   :  { %v1089_v54 = vsub.f32 %v5406_v15, %v1088_v38 }
 0x64e   :  { %v1090_v53 = vmul.f32 %v1089_v54, %v5542_v12 }
 0x650   :  { %v1091_v56 = vsel %vm1050_vm9, %v1090_v53, 0.0 }
 0x651   :  { %v1092_v58 = vadd.f32 %v1091_v56, %v982_v60 }
 0x653   :  { %v1198_v59 = vmul.f32 %v5548_v24, %v1092_v58 }
 0x655   :  { %1199 = vadd.xlane.f32.xlu0 %v1198_v59 }
 0x662   :  { %v1279_v0 = vpop.xlane.xlu2 %1278  ;;  %v1297_v18 = vpop.xlane.xlu0 %1296 }
 0x663   :  { %v1280_v1 = vsub.f32 %v1276_v61, %v1279_v0  ;;  %v869_v55 = vpop.xlane.xlu1 %868  ;;  %v1298_v41 = vsub.f32 %v5612_v35, %v1297_v18 }
 0x664   :  { %v870_v49 = vsub.f32 %v5451_v23, %v869_v55 }
 0x665   :  { %5214 = vrsqrt.f32 %v1280_v1  ;;  %vm1287_vm8 = vweird.f32 %v1280_v1 }
 0x666   :  { %v871_v2 = vmul.f32 %v870_v49, %v5486_v34 }
 0x668   :  { %v872_v8 = vsel %vm7111_vm4, %v871_v2, 0.0 }
 0x669   :  { %v873_v16 = vadd.f32 %v872_v8, %v751_v37 }
 0x66a   :  { %v285_v7 = vpop.xlane.xlu2 %284 }
 0x66b   :  { %v5215_v9 = vpop.eup %5214  ;;  %v286_v10 = vsub.f32 %v5562_v40, %v285_v7  ;;  %v989_v21 = vmul.f32 %v5494_v4, %v873_v16 }
 0x66c   :  { %v1282_v60 = vmul.f32 %v5215_v9, %v1280_v1  ;;  %vm1288_vm2 = vweird.f32 %v5215_v9 }
 0x66d   :  { %v287_v19 = vmul.f32 %v286_v10, %v5373_v39  ;;  %990 = vadd.xlane.f32.xlu0 %v989_v21  ;;  %vm1289_vm14 = vmor %vm1287_vm8, %vm1288_vm2  ;;  %vm1384_vm2 = vcmask 97368  }
 0x66e   :  { %v1283_v25 = vmul.f32 %v5215_v9, %v1282_v60 }
 0x66f   :  { %v288_v27 = vsel %vm196_vm5, %v287_v19, 0.0 }
 0x670   :  { %v1284_v28 = vmul.f32 0.5, %v1283_v25  ;;  %v289_v5 = vadd.f32 %v288_v27, %v166_v36 }
 0x672   :  { %v1285_v32 = vsub.f32 1.5, %v1284_v28  ;;  %v405_v33 = vmul.f32 %v5381_v48, %v289_v5 }
 0x674   :  { %v1286_v37 = vmul.f32 %v5215_v9, %v1285_v32  ;;  %406 = vadd.xlane.f32.xlu1 %v405_v33 }
 0x676   :  { %v5615_v43 = vsel %vm1289_vm14, %v5215_v9, %v1286_v37 }
 0x677   :  { %v1299_v36 = vmul.f32 %v1298_v41, %v5615_v43 }
 0x679   :  { %v1302_v44 = vsel %vm1301_vm6, %v1299_v36, 0.0 }
 0x67a   :  { %v1303_v45 = vadd.f32 %v1302_v44, %v5579_v22 }
 0x67c   :  { %1305 = vst [vmem:[#allocation1 + $0x8] sm:$0xff] %v1303_v45 }
 0x683   :  { %v5621_v46 = vld [vmem:[#allocation1 + $0xb] ss:$0 sm:$0xff] }
 0x684   :  { %v1389_v47 = vmul.f32 %v5621_v46, %v5621_v46  ;;  %v1407_v52 = vmul.f32 %v5621_v46, %v1303_v45 }
 0x686   :  { %1390 = vadd.xlane.f32.xlu2 %v1389_v47 }
 0x68e   :  { %1408 = vadd.xlane.f32.xlu2 %v1407_v52 }
 0x696   :  { %175 = vadd.xlane.f32.xlu2 %v5342_v3 }
 0x697   :  { %v638_v38 = vpop.xlane.xlu1 %637 }
 0x698   :  { %v639_v54 = vsub.f32 %v5511_v62, %v638_v38 }
 0x69a   :  { %v640_v53 = vmul.f32 %v639_v54, %v5433_v6 }
 0x69c   :  { %v641_v56 = vsel %vm562_vm10, %v640_v53, 0.0 }
 0x69d   :  { %v642_v22 = vadd.f32 %v641_v56, %v520_v51 }
 0x69f   :  { %v758_v59 = vmul.f32 %v5440_v14, %v642_v22 }
 0x6a1   :  { %759 = vadd.xlane.f32.xlu1 %v758_v59 }
 0x6c8   :  { %v1200_v61 = vpop.xlane.xlu0 %1199 }
 0x6c9   :  { %v1201_v0 = vsub.f32 %v5406_v15, %v1200_v61 }
 0x6cb   :  { %v1202_v1 = vmul.f32 %v1201_v0, %v5574_v13 }
 0x6cd   :  { %v1203_v55 = vsel %vm1160_vm0, %v1202_v1, 0.0 }
 0x6ce   :  { %v1204_v49 = vadd.f32 %v1203_v55, %v1092_v58  ;;  %v5645_v58 = vld [vmem:[%s7102_s0 + $0x30] sm:$0xff] }
 0x6cf   :  { %57 = vst [vmem:[#allocation0 + $0x30] sm:$0xff] %v5645_v58 }
 0x6d0   :  { %v1310_v2 = vmul.f32 %v5586_v30, %v1204_v49 }
 0x6d2   :  { %1311 = vadd.xlane.f32.xlu0 %v1310_v2 }
 0x6e0   :  { %v991_v7 = vpop.xlane.xlu0 %990 }
 0x6e1   :  { %v992_v8 = vsub.f32 %v5451_v23, %v991_v7 }
 0x6e3   :  { %v993_v9 = vmul.f32 %v992_v8, %v5519_v26 }
 0x6e5   :  { %v994_v10 = vsel %vm7112_vm15, %v993_v9, 0.0 }
 0x6e6   :  { %v5639_v19 = vadd.f32 %v994_v10, %v873_v16  ;;  %v1388_v16 = vld [vmem:[#allocation0 + $0xb] ss:$0 sm:$0xff] }
 0x6e7   :  { %v407_v51 = vpop.xlane.xlu1 %406 }
 0x6e8   :  { %v408_v60 = vsub.f32 %v5562_v40, %v407_v51  ;;  %v1099_v21 = vmul.f32 %v5523_v31, %v5639_v19  ;;  %v5671_v51 = vld [vmem:[#allocation0 + $0x10] sm:$0xff] }
 0x6ea   :  { %v409_v15 = vmul.f32 %v408_v60, %v5388_v63  ;;  %1100 = vadd.xlane.f32.xlu0 %v1099_v21 }
 0x6ec   :  { %v410_v25 = vsel %vm7110_vm11, %v409_v15, 0.0  ;;  %vm1413_vm11 = vmand %vm1384_vm2, %vm7115_vm12  ;;  %vm1496_vm12 = vcmask 105568  }
 0x6ed   :  { %v411_v27 = vadd.f32 %v410_v25, %v289_v5 }
 0x6ef   :  { %v527_v28 = vmul.f32 %v5396_v11, %v411_v27 }
 0x6f1   :  { %528 = vadd.xlane.f32.xlu1 %v527_v28 }
 0x6f9   :  { %v1391_v32 = vpop.xlane.xlu2 %1390 }
 0x6fa   :  { %v1392_v33 = vsub.f32 %v1388_v16, %v1391_v32 }
 0x6fc   :  { %5216 = vrsqrt.f32 %v1392_v33  ;;  %vm1399_vm8 = vweird.f32 %v1392_v33 }
 0x701   :  { %v1409_v47 = vpop.xlane.xlu2 %1408 }
 0x702   :  { %v5217_v18 = vpop.eup %5216  ;;  %v1410_v5 = vsub.f32 %v5612_v35, %v1409_v47 }
 0x703   :  { %v1394_v37 = vmul.f32 %v5217_v18, %v1392_v33  ;;  %vm1400_vm6 = vweird.f32 %v5217_v18 }
 0x704   :  { %vm1401_vm14 = vmor %vm1399_vm8, %vm1400_vm6 }
 0x705   :  { %v1395_v41 = vmul.f32 %v5217_v18, %v1394_v37 }
 0x707   :  { %v1396_v36 = vmul.f32 0.5, %v1395_v41 }
 0x709   :  { %v1397_v44 = vsub.f32 1.5, %v1396_v36  ;;  %v176_v9 = vpop.xlane.xlu2 %175 }
 0x70a   :  { %v177_v60 = vsub.f32 %v5645_v58, %v176_v9 }
 0x70b   :  { %v1398_v52 = vmul.f32 %v5217_v18, %v1397_v44 }
 0x70d   :  { %v5653_v38 = vsel %vm1401_vm14, %v5217_v18, %v1398_v52  ;;  %vm7116_vm14 = vcmask 1047556  }
 0x70e   :  { %v1411_v54 = vmul.f32 %v1410_v5, %v5653_v38 }
 0x710   :  { %v1414_v53 = vsel %vm1413_vm11, %v1411_v54, 0.0 }
 0x711   :  { %v5658_v56 = vadd.f32 %v1414_v53, %v1303_v45 }
 0x713   :  { %1417 = vst [vmem:[#allocation1 + $0x8] sm:$0xff] %v5658_v56 }
 0x714   :  { %v760_v59 = vpop.xlane.xlu1 %759 }
 0x715   :  { %v761_v61 = vsub.f32 %v5511_v62, %v760_v59  ;;  %v1500_v59 = vld [vmem:[#allocation0 + $0xc] ss:$0 sm:$0xff] }
 0x717   :  { %v762_v0 = vmul.f32 %v761_v61, %v5463_v50 }
 0x719   :  { %v763_v2 = vsel %vm684_vm7, %v762_v0, 0.0 }
 0x71a   :  { %v5663_v1 = vld [vmem:[#allocation1 + $0xc] ss:$0 sm:$0xff]  ;;  %v764_v7 = vadd.f32 %v763_v2, %v642_v22  ;;  %v178_v22 = vmul.f32 %v177_v60, %v5359_v17 }
 0x71b   :  { %v1501_v55 = vmul.f32 %v5663_v1, %v5663_v1  ;;  %v1519_v45 = vmul.f32 %v5663_v1, %v5658_v56 }
 0x71c   :  { %v880_v8 = vmul.f32 %v5470_v57, %v764_v7  ;;  %v5680_v32 = vsel %vm78_vm3, %v178_v22, 0.0 }
 0x71d   :  { %1502 = vadd.xlane.f32.xlu2 %v1501_v55  ;;  %v296_v33 = vmul.f32 %v5363_v20, %v5680_v32 }
 0x71e   :  { %881 = vadd.xlane.f32.xlu1 %v880_v8 }
 0x725   :  { %1520 = vadd.xlane.f32.xlu2 %v1519_v45 }
 0x745   :  { %v1312_v10 = vpop.xlane.xlu0 %1311 }
 0x746   :  { %v1313_v15 = vsub.f32 %v5671_v51, %v1312_v10 }
 0x748   :  { %v1314_v21 = vmul.f32 %v1313_v15, %v5615_v43 }
 0x74a   :  { %v1315_v25 = vsel %vm1272_vm13, %v1314_v21, 0.0 }
 0x74b   :  { %v1316_v28 = vadd.f32 %v1315_v25, %v1204_v49 }
 0x74d   :  { %v1422_v16 = vmul.f32 %v5621_v46, %v1316_v28 }
 0x74f   :  { %1423 = vadd.xlane.f32.xlu0 %v1422_v16 }
 0x757   :  { %297 = vadd.xlane.f32.xlu0 %v296_v33 }
 0x75d   :  { %v1101_v18 = vpop.xlane.xlu0 %1100 }
 0x75e   :  { %v1102_v37 = vsub.f32 %v5451_v23, %v1101_v18 }
 0x760   :  { %v1103_v41 = vmul.f32 %v1102_v37, %v5542_v12 }
 0x762   :  { %v1104_v44 = vsel %vm1050_vm9, %v1103_v41, 0.0 }
 0x763   :  { %v5689_v47 = vadd.f32 %v1104_v44, %v5639_v19 }
 0x764   :  { %v529_v36 = vpop.xlane.xlu1 %528 }
 0x765   :  { %v530_v49 = vsub.f32 %v5562_v40, %v529_v36  ;;  %v1211_v5 = vmul.f32 %v5548_v24, %v5689_v47 }
 0x767   :  { %v531_v52 = vmul.f32 %v530_v49, %v5410_v29  ;;  %1212 = vadd.xlane.f32.xlu1 %v1211_v5 }
 0x769   :  { %v532_v54 = vsel %vm440_vm1, %v531_v52, 0.0 }
 0x76a   :  { %v5695_v53 = vadd.f32 %v532_v54, %v411_v27 }
 0x76c   :  { %v649_v23 = vmul.f32 %v5420_v42, %v5695_v53 }
 0x76e   :  { %650 = vadd.xlane.f32.xlu2 %v649_v23 }
 0x790   :  { %v1503_v61 = vpop.xlane.xlu2 %1502 }
 0x791   :  { %v1504_v0 = vsub.f32 %v1500_v59, %v1503_v61  ;;  %v882_v19 = vpop.xlane.xlu1 %881 }
 0x792   :  { %v883_v55 = vsub.f32 %v5511_v62, %v882_v19 }
 0x793   :  { %5218 = vrsqrt.f32 %v1504_v0  ;;  %vm1511_vm6 = vweird.f32 %v1504_v0 }
 0x794   :  { %v884_v2 = vmul.f32 %v883_v55, %v5486_v34  ;;  %v5732_v55 = vld [vmem:[#allocation0 + $0x18] sm:$0xff] }
 0x796   :  { %v885_v8 = vsel %vm7111_vm4, %v884_v2, 0.0  ;;  %vm1525_vm4 = vmand %vm1496_vm12, %vm7116_vm14  ;;  %vm7117_vm14 = vcmask 1047557  }
 0x797   :  { %v886_v9 = vadd.f32 %v885_v8, %v764_v7 }
 0x798   :  { %v1521_v22 = vpop.xlane.xlu2 %1520 }
 0x799   :  { %v5219_v45 = vpop.eup %5218  ;;  %v1002_v27 = vmul.f32 %v5494_v4, %v886_v9  ;;  %v1522_v16 = vsub.f32 %v5612_v35, %v1521_v22 }
 0x79a   :  { %v1506_v10 = vmul.f32 %v5219_v45, %v1504_v0  ;;  %vm1512_vm11 = vweird.f32 %v5219_v45 }
 0x79b   :  { %1003 = vadd.xlane.f32.xlu1 %v1002_v27  ;;  %vm1513_vm8 = vmor %vm1511_vm6, %vm1512_vm11  ;;  %vm1608_vm11 = vcmask 113768  }
 0x79c   :  { %v1507_v60 = vmul.f32 %v5219_v45, %v1506_v10 }
 0x79e   :  { %v1508_v15 = vmul.f32 0.5, %v1507_v60 }
 0x7a0   :  { %v1509_v21 = vsub.f32 1.5, %v1508_v15 }
 0x7a2   :  { %v1510_v25 = vmul.f32 %v5219_v45, %v1509_v21 }
 0x7a4   :  { %v5704_v33 = vsel %vm1513_vm8, %v5219_v45, %v1510_v25 }
 0x7a5   :  { %v1523_v7 = vmul.f32 %v1522_v16, %v5704_v33 }
 0x7a7   :  { %v1526_v4 = vsel %vm1525_vm4, %v1523_v7, 0.0 }
 0x7a8   :  { %v5710_v18 = vadd.f32 %v1526_v4, %v5658_v56 }
 0x7aa   :  { %1529 = vst [vmem:[#allocation1 + $0x8] sm:$0xff] %v5710_v18 }
 0x7b1   :  { %v5713_v37 = vld [vmem:[#allocation1 + $0xd] ss:$0 sm:$0xff] }
 0x7b2   :  { %v1613_v41 = vmul.f32 %v5713_v37, %v5713_v37  ;;  %v1631_v36 = vmul.f32 %v5713_v37, %v5710_v18 }
 0x7b4   :  { %1614 = vadd.xlane.f32.xlu2 %v1613_v41  ;;  %1632 = vadd.xlane.f32.xlu1 %v1631_v36 }
 0x7bc   :  { %188 = vadd.xlane.f32.xlu1 %v5342_v3 }
 0x7c2   :  { %v1424_v44 = vpop.xlane.xlu0 %1423 }
 0x7c3   :  { %v1425_v49 = vsub.f32 %v5671_v51, %v1424_v44  ;;  %v1612_v44 = vld [vmem:[#allocation0 + $0xd] ss:$0 sm:$0xff] }
 0x7c5   :  { %v1426_v56 = vmul.f32 %v1425_v49, %v5653_v38 }
 0x7c7   :  { %v1427_v52 = vsel %vm1384_vm2, %v1426_v56, 0.0 }
 0x7c8   :  { %v1428_v5 = vadd.f32 %v1427_v52, %v1316_v28 }
 0x7ca   :  { %v298_v54 = vpop.xlane.xlu0 %297  ;;  %v1534_v23 = vmul.f32 %v5663_v1, %v1428_v5 }
 0x7cb   :  { %v299_v59 = vsub.f32 %v5645_v58, %v298_v54 }
 0x7cc   :  { %1535 = vadd.xlane.f32.xlu0 %v1534_v23 }
 0x7cd   :  { %v300_v61 = vmul.f32 %v299_v59, %v5373_v39 }
 0x7cf   :  { %v301_v0 = vsel %vm196_vm5, %v300_v61, 0.0 }
 0x7d0   :  { %v5728_v3 = vadd.f32 %v301_v0, %v5680_v32 }
 0x7d2   :  { %v418_v19 = vmul.f32 %v5381_v48, %v5728_v3 }
 0x7d4   :  { %419 = vadd.xlane.f32.xlu0 %v418_v19 }
 0x7da   :  { %v1213_v28 = vpop.xlane.xlu1 %1212 }
 0x7db   :  { %v1214_v2 = vsub.f32 %v5732_v55, %v1213_v28 }
 0x7dd   :  { %v1215_v8 = vmul.f32 %v1214_v2, %v5574_v13 }
 0x7df   :  { %v1216_v10 = vsel %vm1160_vm0, %v1215_v8, 0.0 }
 0x7e0   :  { %v5739_v60 = vadd.f32 %v1216_v10, %v5689_v47  ;;  %v5753_v47 = vld [vmem:[%s7102_s0 + $0x38] sm:$0xff] }
 0x7e1   :  { %v651_v45 = vpop.xlane.xlu2 %650  ;;  %59 = vst [vmem:[#allocation0 + $0x38] sm:$0xff] %v5753_v47 }
 0x7e2   :  { %v652_v27 = vsub.f32 %v5562_v40, %v651_v45  ;;  %v1323_v15 = vmul.f32 %v5586_v30, %v5739_v60 }
 0x7e4   :  { %v653_v32 = vmul.f32 %v652_v27, %v5433_v6  ;;  %1324 = vadd.xlane.f32.xlu2 %v1323_v15 }
 0x7e6   :  { %v654_v21 = vsel %vm562_vm10, %v653_v32, 0.0 }
 0x7e7   :  { %v5746_v22 = vadd.f32 %v654_v21, %v5695_v53 }
 0x7e9   :  { %v771_v25 = vmul.f32 %v5440_v14, %v5746_v22 }
 0x7eb   :  { %772 = vadd.xlane.f32.xlu0 %v771_v25 }
 0x80e   :  { %v1004_v16 = vpop.xlane.xlu1 %1003 }
 0x80f   :  { %v1005_v7 = vsub.f32 %v5511_v62, %v1004_v16 }
 0x811   :  { %v1006_v4 = vmul.f32 %v1005_v7, %v5519_v26 }
 0x813   :  { %v1007_v41 = vsel %vm7112_vm15, %v1006_v4, 0.0  ;;  %vm1637_vm15 = vmand %vm1608_vm11, %vm7117_vm14  ;;  %vm7120_vm14 = vcmask 1047558  }
 0x814   :  { %v5759_v53 = vadd.f32 %v1007_v41, %v886_v9 }
 0x816   :  { %v1112_v36 = vmul.f32 %v5523_v31, %v5759_v53 }
 0x818   :  { %1113 = vadd.xlane.f32.xlu0 %v1112_v36 }
 0x827   :  { %v1615_v49 = vpop.xlane.xlu2 %1614  ;;  %v1633_v61 = vpop.xlane.xlu1 %1632 }
 0x828   :  { %v1616_v56 = vsub.f32 %v1612_v44, %v1615_v49  ;;  %v1634_v9 = vsub.f32 %v5612_v35, %v1633_v61 }
 0x82a   :  { %5220 = vrsqrt.f32 %v1616_v56  ;;  %vm1623_vm6 = vweird.f32 %v1616_v56 }
 0x82f   :  { %v189_v15 = vpop.xlane.xlu1 %188 }
 0x830   :  { %v5221_v52 = vpop.eup %5220  ;;  %v190_v7 = vsub.f32 %v5753_v47, %v189_v15 }
 0x831   :  { %v1618_v54 = vmul.f32 %v5221_v52, %v1616_v56  ;;  %vm1624_vm4 = vweird.f32 %v5221_v52 }
 0x832   :  { %vm1625_vm8 = vmor %vm1623_vm6, %vm1624_vm4  ;;  %v191_v41 = vmul.f32 %v190_v7, %v5359_v17 }
 0x833   :  { %v1619_v23 = vmul.f32 %v5221_v52, %v1618_v54 }
 0x835   :  { %v1620_v62 = vmul.f32 0.5, %v1619_v23 }
 0x837   :  { %v1621_v59 = vsub.f32 1.5, %v1620_v62 }
 0x839   :  { %v1622_v0 = vmul.f32 %v5221_v52, %v1621_v59 }
 0x83b   :  { %v5764_v19 = vsel %vm1625_vm8, %v5221_v52, %v1622_v0  ;;  %v192_v52 = vsel %vm78_vm3, %v191_v41, 0.0  ;;  %vm7119_vm8 = vcmask 56368  }
 0x83c   :  { %v1635_v28 = vmul.f32 %v1634_v9, %v5764_v19  ;;  %v309_v54 = vmul.f32 %v5363_v20, %v192_v52 }
 0x83e   :  { %v1638_v2 = vsel %vm1637_vm15, %v1635_v28, 0.0  ;;  %vm7118_vm15 = vcmask 23568  }
 0x83f   :  { %v5770_v8 = vadd.f32 %v1638_v2, %v5710_v18  ;;  %v1536_v45 = vpop.xlane.xlu0 %1535 }
 0x840   :  { %v1537_v10 = vsub.f32 %v5671_v51, %v1536_v45 }
 0x841   :  { %1641 = vst [vmem:[#allocation1 + $0x8] sm:$0xff] %v5770_v8 }
 0x842   :  { %v1538_v27 = vmul.f32 %v1537_v10, %v5704_v33 }
 0x844   :  { %v1539_v32 = vsel %vm1496_vm12, %v1538_v27, 0.0  ;;  %v5805_v27 = vld [vmem:[#allocation0 + $0x20] sm:$0xff] }
 0x845   :  { %v1540_v21 = vadd.f32 %v1539_v32, %v1428_v5 }
 0x847   :  { %v420_v25 = vpop.xlane.xlu0 %419  ;;  %v1646_v16 = vmul.f32 %v5713_v37, %v1540_v21 }
 0x848   :  { %v421_v4 = vsub.f32 %v5645_v58, %v420_v25  ;;  %v5782_v44 = vld [vmem:[#allocation1 + $0xe] ss:$0 sm:$0xff] }
 0x849   :  { %1647 = vadd.xlane.f32.xlu2 %v1646_v16  ;;  %v1725_v56 = vmul.f32 %v5782_v44, %v5782_v44  ;;  %v1743_v10 = vmul.f32 %v5782_v44, %v5770_v8 }
 0x84a   :  { %v422_v18 = vmul.f32 %v421_v4, %v5388_v63 }
 0x84c   :  { %v423_v36 = vsel %vm7118_vm15, %v422_v18, 0.0 }
 0x84d   :  { %v424_v49 = vadd.f32 %v423_v36, %v5728_v3 }
 0x84f   :  { %v540_v5 = vmul.f32 %v5396_v11, %v424_v49 }
 0x851   :  { %541 = vadd.xlane.f32.xlu1 %v540_v5  ;;  %1726 = vadd.xlane.f32.xlu2 %v1725_v56  ;;  %v1724_v5 = vld [vmem:[#allocation0 + $0xe] ss:$0 sm:$0xff] }
 0x857   :  { %v1325_v23 = vpop.xlane.xlu2 %1324 }
 0x858   :  { %v1326_v17 = vsub.f32 %v5732_v55, %v1325_v23 }
 0x859   :  { %310 = vadd.xlane.f32.xlu2 %v309_v54 }
 0x85a   :  { %v1327_v62 = vmul.f32 %v1326_v17, %v5615_v43 }
 0x85c   :  { %v1328_v3 = vsel %vm1272_vm13, %v1327_v62, 0.0 }
 0x85d   :  { %v1329_v0 = vadd.f32 %v1328_v3, %v5739_v60 }
 0x85e   :  { %v773_v59 = vpop.xlane.xlu0 %772 }
 0x85f   :  { %v774_v61 = vsub.f32 %v5562_v40, %v773_v59  ;;  %v1435_v28 = vmul.f32 %v5621_v46, %v1329_v0 }
 0x861   :  { %v775_v9 = vmul.f32 %v774_v61, %v5463_v50  ;;  %1436 = vadd.xlane.f32.xlu0 %v1435_v28 }
 0x863   :  { %v776_v2 = vsel %vm684_vm7, %v775_v9, 0.0 }
 0x864   :  { %v5799_v20 = vadd.f32 %v776_v2, %v5746_v22 }
 0x866   :  { %v893_v45 = vmul.f32 %v5470_v57, %v5799_v20 }
 0x868   :  { %894 = vadd.xlane.f32.xlu1 %v893_v45 }
 0x869   :  { %1744 = vadd.xlane.f32.xlu0 %v1743_v10 }
 0x88b   :  { %v1114_v60 = vpop.xlane.xlu0 %1113 }
 0x88c   :  { %v1115_v32 = vsub.f32 %v5805_v27, %v1114_v60 }
 0x88e   :  { %v1116_v15 = vmul.f32 %v1115_v32, %v5542_v12 }
 0x890   :  { %v1117_v25 = vsel %vm1050_vm9, %v1116_v15, 0.0 }
 0x891   :  { %v5811_v22 = vadd.f32 %v1117_v25, %v5759_v53 }
 0x893   :  { %v1224_v16 = vmul.f32 %v5548_v24, %v5811_v22 }
 0x895   :  { %1225 = vadd.xlane.f32.xlu2 %v1224_v16 }
 0x8bc   :  { %v1648_v7 = vpop.xlane.xlu2 %1647 }
 0x8bd   :  { %v1649_v4 = vsub.f32 %v5671_v51, %v1648_v7 }
 0x8bf   :  { %v1650_v18 = vmul.f32 %v1649_v4, %v5764_v19 }
 0x8c1   :  { %v1651_v41 = vsel %vm1608_vm11, %v1650_v18, 0.0 }
 0x8c2   :  { %v5818_v36 = vadd.f32 %v1651_v41, %v1540_v21 }
 0x8c4   :  { %v1727_v56 = vpop.xlane.xlu2 %1726  ;;  %v542_v54 = vpop.xlane.xlu1 %541  ;;  %v1758_v53 = vmul.f32 %v5782_v44, %v5818_v36 }
 0x8c5   :  { %v1728_v23 = vsub.f32 %v1724_v5, %v1727_v56  ;;  %v543_v17 = vsub.f32 %v5645_v58, %v542_v54 }
 0x8c6   :  { %1759 = vadd.xlane.f32.xlu1 %v1758_v53 }
 0x8c7   :  { %5222 = vrsqrt.f32 %v1728_v23  ;;  %v544_v62 = vmul.f32 %v543_v17, %v5410_v29  ;;  %vm1735_vm4 = vweird.f32 %v1728_v23 }
 0x8c9   :  { %v545_v59 = vsel %vm440_vm1, %v544_v62, 0.0 }
 0x8ca   :  { %v5825_v3 = vadd.f32 %v545_v59, %v424_v49  ;;  %v5847_v59 = vld [vmem:[#allocation1 + $0x7] ss:$0 sm:$0xff] }
 0x8cc   :  { %v311_v61 = vpop.xlane.xlu2 %310  ;;  %v662_v21 = vmul.f32 %v5420_v42, %v5825_v3 }
 0x8cd   :  { %v5223_v9 = vpop.eup %5222  ;;  %v312_v28 = vsub.f32 %v5753_v47, %v311_v61 }
 0x8ce   :  { %v1730_v2 = vmul.f32 %v5223_v9, %v1728_v23  ;;  %663 = vadd.xlane.f32.xlu0 %v662_v21  ;;  %vm1736_vm3 = vweird.f32 %v5223_v9 }
 0x8cf   :  { %v313_v45 = vmul.f32 %v312_v28, %v5373_v39  ;;  %vm1737_vm6 = vmor %vm1735_vm4, %vm1736_vm3  ;;  %vm7121_vm3 = vcmask 23568   ;;  %vm7122_vm4 = vcmask 64568  }
 0x8d0   :  { %v1731_v10 = vmul.f32 %v5223_v9, %v1730_v2 }
 0x8d1   :  { %v314_v60 = vsel %vm196_vm5, %v313_v45, 0.0  ;;  %vm1720_vm5 = vcmask 121968  }
 0x8d2   :  { %v315_v32 = vadd.f32 %v314_v60, %v192_v52  ;;  %v1732_v15 = vmul.f32 0.5, %v1731_v10  ;;  %vm1749_vm15 = vmand %vm1720_vm5, %vm7120_vm14 }
 0x8d4   :  { %v431_v25 = vmul.f32 %v5381_v48, %v315_v32  ;;  %v1437_v49 = vpop.xlane.xlu0 %1436  ;;  %v1733_v7 = vsub.f32 1.5, %v1732_v15 }
 0x8d5   :  { %v1438_v16 = vsub.f32 %v5732_v55, %v1437_v49 }
 0x8d6   :  { %432 = vadd.xlane.f32.xlu0 %v431_v25  ;;  %v1734_v5 = vmul.f32 %v5223_v9, %v1733_v7 }
 0x8d7   :  { %v1439_v4 = vmul.f32 %v1438_v16, %v5653_v38 }
 0x8d8   :  { %v5840_v17 = vsel %vm1737_vm6, %v5223_v9, %v1734_v5 }
 0x8d9   :  { %v1440_v41 = vsel %vm1384_vm2, %v1439_v4, 0.0 }
 0x8da   :  { %v1441_v56 = vadd.f32 %v1440_v41, %v1329_v0 }
 0x8db   :  { %v895_v18 = vpop.xlane.xlu1 %894 }
 0x8dc   :  { %v896_v39 = vsub.f32 %v5562_v40, %v895_v18  ;;  %v1745_v48 = vpop.xlane.xlu0 %1744  ;;  %v1547_v54 = vmul.f32 %v5663_v1, %v1441_v56 }
 0x8dd   :  { %v1746_v53 = vsub.f32 %v5612_v35, %v1745_v48 }
 0x8de   :  { %v897_v52 = vmul.f32 %v896_v39, %v5486_v34  ;;  %1548 = vadd.xlane.f32.xlu1 %v1547_v54 }
 0x8df   :  { %v1747_v0 = vmul.f32 %v1746_v53, %v5840_v17 }
 0x8e0   :  { %v898_v62 = vsel %vm7119_vm8, %v897_v52, 0.0 }
 0x8e1   :  { %v899_v40 = vadd.f32 %v898_v62, %v5799_v20  ;;  %v1750_v23 = vsel %vm1749_vm15, %v1747_v0, 0.0  ;;  %vm7113_vm15 = vcmask 130168  }
 0x8e2   :  { %v1751_v21 = vadd.f32 %v1750_v23, %v5770_v8 }
 0x8e3   :  { %v1015_v61 = vmul.f32 %v5847_v59, %v899_v40 }
 0x8e4   :  { %1753 = vst [vmem:[#allocation1 + $0x8] sm:$0xff] %v1751_v21 }
 0x8e5   :  { %1016 = vadd.xlane.f32.xlu2 %v1015_v61 }
 0x8eb   :  { %v5851_v35 = vld [vmem:[#allocation1 + $0xf] ss:$0 sm:$0xff] }
 0x8ec   :  { %v1837_v9 = vmul.f32 %v5851_v35, %v5851_v35 }
 0x8ee   :  { %1838 = vadd.xlane.f32.xlu1 %v1837_v9 }
 0x908   :  { %v1226_v28 = vpop.xlane.xlu2 %1225 }
 0x909   :  { %v1227_v20 = vsub.f32 %v5805_v27, %v1226_v28 }
 0x90b   :  { %v1228_v2 = vmul.f32 %v1227_v20, %v5574_v13 }
 0x90d   :  { %v1229_v45 = vsel %vm1160_vm0, %v1228_v2, 0.0 }
 0x90e   :  { %v1230_v10 = vadd.f32 %v1229_v45, %v5811_v22 }
 0x910   :  { %v1336_v60 = vmul.f32 %v5586_v30, %v1230_v10 }
 0x912   :  { %1337 = vadd.xlane.f32.xlu0 %v1336_v60 }
 0x939   :  { %v1760_v8 = vpop.xlane.xlu1 %1759 }
 0x93a   :  { %v1761_v15 = vsub.f32 %v5671_v51, %v1760_v8 }
 0x93c   :  { %v1762_v25 = vmul.f32 %v1761_v15, %v5840_v17 }
 0x93e   :  { %v1763_v49 = vsel %vm1720_vm5, %v1762_v25, 0.0 }
 0x93f   :  { %v1764_v16 = vadd.f32 %v1763_v49, %v5818_v36 }
 0x941   :  { %v664_v7 = vpop.xlane.xlu0 %663  ;;  %v1870_v4 = vmul.f32 %v5851_v35, %v1764_v16 }
 0x942   :  { %v665_v18 = vsub.f32 %v5645_v58, %v664_v7  ;;  %v1836_v7 = vld [vmem:[#allocation0 + $0xf] ss:$0 sm:$0xff] }
 0x943   :  { %1871 = vadd.xlane.f32.xlu2 %v1870_v4 }
 0x944   :  { %v666_v22 = vmul.f32 %v665_v18, %v5433_v6 }
 0x946   :  { %v667_v41 = vsel %vm562_vm10, %v666_v22, 0.0 }
 0x947   :  { %v668_v5 = vadd.f32 %v667_v41, %v5825_v3  ;;  %v5878_v3 = vld [vmem:[#allocation0 + $0x28] sm:$0xff] }
 0x949   :  { %v433_v39 = vpop.xlane.xlu0 %432  ;;  %v784_v52 = vmul.f32 %v5440_v14, %v668_v5 }
 0x94a   :  { %v434_v48 = vsub.f32 %v5753_v47, %v433_v39 }
 0x94b   :  { %785 = vadd.xlane.f32.xlu1 %v784_v52 }
 0x94c   :  { %v435_v36 = vmul.f32 %v434_v48, %v5388_v63 }
 0x94e   :  { %v436_v54 = vsel %vm7121_vm3, %v435_v36, 0.0 }
 0x94f   :  { %v5873_v53 = vadd.f32 %v436_v54, %v315_v32 }
 0x951   :  { %v553_v62 = vmul.f32 %v5396_v11, %v5873_v53  ;;  %v1549_v0 = vpop.xlane.xlu1 %1548 }
 0x952   :  { %v1550_v23 = vsub.f32 %v5732_v55, %v1549_v0 }
 0x953   :  { %554 = vadd.xlane.f32.xlu1 %v553_v62 }
 0x954   :  { %v1551_v61 = vmul.f32 %v1550_v23, %v5704_v33 }
 0x956   :  { %v1552_v9 = vsel %vm1496_vm12, %v1551_v61, 0.0 }
 0x957   :  { %v1553_v28 = vadd.f32 %v1552_v9, %v1441_v56 }
 0x958   :  { %v1017_v21 = vpop.xlane.xlu2 %1016 }
 0x959   :  { %v1018_v63 = vsub.f32 %v5878_v3, %v1017_v21  ;;  %v1659_v20 = vmul.f32 %v5713_v37, %v1553_v28 }
 0x95b   :  { %v1019_v32 = vmul.f32 %v1018_v63, %v5519_v26  ;;  %1660 = vadd.xlane.f32.xlu2 %v1659_v20 }
 0x95d   :  { %v1020_v11 = vsel %vm7122_vm4, %v1019_v32, 0.0 }
 0x95e   :  { %v1021_v2 = vadd.f32 %v1020_v11, %v899_v40 }
 0x960   :  { %v1125_v45 = vmul.f32 %v5523_v31, %v1021_v2 }
 0x961   :  { %v1839_v4 = vpop.xlane.xlu1 %1838 }
 0x962   :  { %1126 = vadd.xlane.f32.xlu0 %v1125_v45  ;;  %v1840_v18 = vsub.f32 %v1836_v7, %v1839_v4 }
 0x964   :  { %5224 = vrsqrt.f32 %v1840_v18  ;;  %vm1847_vm8 = vweird.f32 %v1840_v18 }
 0x96a   :  { %v5225_v22 = vpop.eup %5224 }
 0x96b   :  { %v1842_v40 = vmul.f32 %v5225_v22, %v1840_v18  ;;  %vm1848_vm6 = vweird.f32 %v5225_v22 }
 0x96c   :  { %vm1849_vm14 = vmor %vm1847_vm8, %vm1848_vm6  ;;  %vm1944_vm8 = vcmask 138368  }
 0x96d   :  { %v1843_v41 = vmul.f32 %v5225_v22, %v1842_v40 }
 0x96f   :  { %v1844_v39 = vmul.f32 0.5, %v1843_v41 }
 0x971   :  { %v1845_v52 = vsub.f32 1.5, %v1844_v39 }
 0x973   :  { %v1846_v48 = vmul.f32 %v5225_v22, %v1845_v52 }
 0x985   :  { %v1338_v60 = vpop.xlane.xlu0 %1337 }
 0x986   :  { %v1339_v8 = vsub.f32 %v5805_v27, %v1338_v60 }
 0x988   :  { %v1340_v15 = vmul.f32 %v1339_v8, %v5615_v43 }
 0x98a   :  { %v1341_v25 = vsel %vm1272_vm13, %v1340_v15, 0.0 }
 0x98b   :  { %v1342_v49 = vadd.f32 %v1341_v25, %v1230_v10  ;;  %v5892_v10 = vsel %vm1849_vm14, %v5225_v22, %v1846_v48 }
 0x98d   :  { %v1448_v56 = vmul.f32 %v5621_v46, %v1342_v49 }
 0x98f   :  { %1449 = vadd.xlane.f32.xlu0 %v1448_v56 }
 0x9b6   :  { %v1872_v36 = vpop.xlane.xlu2 %1871 }
 0x9b7   :  { %v1873_v54 = vsub.f32 %v5671_v51, %v1872_v36 }
 0x9b9   :  { %v1874_v62 = vmul.f32 %v1873_v54, %v5892_v10 }
 0x9bb   :  { %v1875_v0 = vsel %vm7113_vm15, %v1874_v62, 0.0 }
 0x9bc   :  { %v5896_v23 = vadd.f32 %v1875_v0, %v1764_v16 }
 0x9be   :  { %1878 = vst [vmem:[#allocation1 + $0x10] sm:$0xff] %v5896_v23  ;;  %v786_v61 = vpop.xlane.xlu1 %785 }
 0x9bf   :  { %v787_v21 = vsub.f32 %v5645_v58, %v786_v61 }
 0x9c1   :  { %v788_v9 = vmul.f32 %v787_v21, %v5463_v50  ;;  %v1948_v21 = vld [vmem:[#allocation0 + $0x10] ss:$0 sm:$0xff] }
 0x9c3   :  { %v789_v63 = vsel %vm684_vm7, %v788_v9, 0.0 }
 0x9c4   :  { %v790_v32 = vadd.f32 %v789_v63, %v668_v5 }
 0x9c5   :  { %v5902_v20 = vld [vmem:[#allocation1 + $0x10] ss:$0 sm:$0xff] }
 0x9c6   :  { %v555_v11 = vpop.xlane.xlu1 %554  ;;  %v1949_v45 = vmul.f32 %v5902_v20, %v5902_v20  ;;  %v906_v60 = vmul.f32 %v5470_v57, %v790_v32  ;;  %v1967_v15 = vmul.f32 %v5902_v20, %v5896_v23 }
 0x9c7   :  { %v556_v16 = vsub.f32 %v5753_v47, %v555_v11 }
 0x9c8   :  { %1950 = vadd.xlane.f32.xlu2 %v1949_v45  ;;  %907 = vadd.xlane.f32.xlu1 %v906_v60 }
 0x9c9   :  { %v557_v8 = vmul.f32 %v556_v16, %v5410_v29 }
 0x9cb   :  { %v558_v25 = vsel %vm440_vm1, %v557_v8, 0.0  ;;  %vm7123_vm1 = vcmask 56368  }
 0x9cc   :  { %v5914_v7 = vadd.f32 %v558_v25, %v5873_v53 }
 0x9ce   :  { %v1661_v5 = vpop.xlane.xlu2 %1660  ;;  %v675_v41 = vmul.f32 %v5420_v42, %v5914_v7 }
 0x9cf   :  { %v1662_v56 = vsub.f32 %v5732_v55, %v1661_v5 }
 0x9d0   :  { %1968 = vadd.xlane.f32.xlu2 %v1967_v15 }
 0x9d1   :  { %v1663_v4 = vmul.f32 %v1662_v56, %v5764_v19 }
 0x9d3   :  { %v1664_v22 = vsel %vm1608_vm11, %v1663_v4, 0.0 }
 0x9d4   :  { %v1665_v29 = vadd.f32 %v1664_v22, %v1553_v28 }
 0x9d5   :  { %v1127_v18 = vpop.xlane.xlu0 %1126 }
 0x9d6   :  { %v1128_v40 = vsub.f32 %v5878_v3, %v1127_v18  ;;  %v1771_v52 = vmul.f32 %v5782_v44, %v1665_v29 }
 0x9d8   :  { %v1129_v39 = vmul.f32 %v1128_v40, %v5542_v12  ;;  %676 = vadd.xlane.f32.xlu2 %v675_v41  ;;  %1772 = vadd.xlane.f32.xlu0 %v1771_v52 }
 0x9da   :  { %v1130_v48 = vsel %vm1050_vm9, %v1129_v39, 0.0 }
 0x9db   :  { %v1131_v53 = vadd.f32 %v1130_v48, %v1021_v2 }
 0x9dd   :  { %v1237_v36 = vmul.f32 %v5548_v24, %v1131_v53 }
 0x9df   :  { %1238 = vadd.xlane.f32.xlu1 %v1237_v36 }
 0xa02   :  { %v1450_v54 = vpop.xlane.xlu0 %1449 }
 0xa03   :  { %v1451_v62 = vsub.f32 %v5805_v27, %v1450_v54 }
 0xa05   :  { %v1452_v28 = vmul.f32 %v1451_v62, %v5653_v38 }
 0xa07   :  { %v1453_v0 = vsel %vm1384_vm2, %v1452_v28, 0.0 }
 0xa08   :  { %v1454_v42 = vadd.f32 %v1453_v0, %v1342_v49 }
 0xa0a   :  { %v1560_v61 = vmul.f32 %v5663_v1, %v1454_v42 }
 0xa0c   :  { %1561 = vadd.xlane.f32.xlu0 %v1560_v61 }
 0xa3b   :  { %v1951_v9 = vpop.xlane.xlu2 %1950  ;;  %v908_v63 = vpop.xlane.xlu1 %907 }
 0xa3c   :  { %v1952_v11 = vsub.f32 %v1948_v21, %v1951_v9  ;;  %v909_v2 = vsub.f32 %v5645_v58, %v908_v63 }
 0xa3e   :  { %5226 = vrsqrt.f32 %v1952_v11  ;;  %v910_v45 = vmul.f32 %v909_v2, %v5486_v34  ;;  %vm1959_vm4 = vweird.f32 %v1952_v11 }
 0xa40   :  { %v911_v60 = vsel %vm7123_vm1, %v910_v45, 0.0  ;;  %vm2041_vm1 = vcmask 146568  }
 0xa41   :  { %v912_v16 = vadd.f32 %v911_v60, %v790_v32 }
 0xa43   :  { %v1028_v8 = vmul.f32 %v5847_v59, %v912_v16  ;;  %v1969_v56 = vpop.xlane.xlu2 %1968 }
 0xa44   :  { %v5227_v15 = vpop.eup %5226  ;;  %v1970_v58 = vsub.f32 %v5671_v51, %v1969_v56 }
 0xa45   :  { %v1954_v25 = vmul.f32 %v5227_v15, %v1952_v11  ;;  %1029 = vadd.xlane.f32.xlu1 %v1028_v8  ;;  %vm1960_vm3 = vweird.f32 %v5227_v15 }
 0xa46   :  { %vm1961_vm6 = vmor %vm1959_vm4, %vm1960_vm3 }
 0xa47   :  { %v1955_v49 = vmul.f32 %v5227_v15, %v1954_v25 }
 0xa49   :  { %v1956_v5 = vmul.f32 0.5, %v1955_v49 }
 0xa4b   :  { %v1957_v4 = vsub.f32 1.5, %v1956_v5  ;;  %v1773_v22 = vpop.xlane.xlu0 %1772  ;;  %v677_v62 = vpop.xlane.xlu2 %676 }
 0xa4c   :  { %v1774_v40 = vsub.f32 %v5732_v55, %v1773_v22  ;;  %v678_v21 = vsub.f32 %v5753_v47, %v677_v62 }
 0xa4d   :  { %v1958_v18 = vmul.f32 %v5227_v15, %v1957_v4  ;;  %v5968_v4 = vld [vmem:[#allocation0 + $0x30] sm:$0xff] }
 0xa4e   :  { %v1775_v39 = vmul.f32 %v1774_v40, %v5840_v17  ;;  %v679_v11 = vmul.f32 %v678_v21, %v5433_v6 }
 0xa4f   :  { %v5935_v41 = vsel %vm1961_vm6, %v5227_v15, %v1958_v18  ;;  %vm7125_vm6 = vcmask 1047553  }
 0xa50   :  { %v1971_v32 = vmul.f32 %v1970_v58, %v5935_v41  ;;  %v1776_v36 = vsel %vm1720_vm5, %v1775_v39, 0.0  ;;  %v680_v60 = vsel %vm562_vm10, %v679_v11, 0.0  ;;  %vm7124_vm10 = vcmask 64568  }
 0xa51   :  { %v1777_v28 = vadd.f32 %v1776_v36, %v1665_v29  ;;  %v681_v8 = vadd.f32 %v680_v60, %v5914_v7 }
 0xa52   :  { %v1972_v52 = vsel %vm1944_vm8, %v1971_v32, 0.0  ;;  %v1239_v48 = vpop.xlane.xlu1 %1238 }
 0xa53   :  { %v5942_v54 = vadd.f32 %v1972_v52, %v5896_v23  ;;  %v1240_v51 = vsub.f32 %v5878_v3, %v1239_v48  ;;  %v1883_v61 = vmul.f32 %v5851_v35, %v1777_v28 }
 0xa55   :  { %1975 = vst [vmem:[#allocation1 + $0x10] sm:$0xff] %v5942_v54  ;;  %v1241_v0 = vmul.f32 %v1240_v51, %v5574_v13  ;;  %1884 = vadd.xlane.f32.xlu0 %v1883_v61  ;;  %v2045_v51 = vld [vmem:[#allocation0 + $0x11] ss:$0 sm:$0xff] }
 0xa57   :  { %v1242_v9 = vsel %vm1160_vm0, %v1241_v0, 0.0 }
 0xa58   :  { %v1243_v63 = vadd.f32 %v1242_v9, %v1131_v53  ;;  %v797_v53 = vmul.f32 %v5440_v14, %v681_v8 }
 0xa5a   :  { %v1349_v23 = vmul.f32 %v5586_v30, %v1243_v63 }
 0xa5c   :  { %v5952_v2 = vld [vmem:[#allocation1 + $0x11] ss:$0 sm:$0xff]  ;;  %1350 = vadd.xlane.f32.xlu1 %v1349_v23 }
 0xa5d   :  { %v2046_v29 = vmul.f32 %v5952_v2, %v5952_v2  ;;  %v2064_v45 = vmul.f32 %v5952_v2, %v5942_v54 }
 0xa5f   :  { %2047 = vadd.xlane.f32.xlu2 %v2046_v29  ;;  %2065 = vadd.xlane.f32.xlu0 %v2064_v45 }
 0xa67   :  { %798 = vadd.xlane.f32.xlu2 %v797_v53 }
 0xa7f   :  { %v1562_v6 = vpop.xlane.xlu0 %1561 }
 0xa80   :  { %v1563_v15 = vsub.f32 %v5805_v27, %v1562_v6 }
 0xa82   :  { %v1564_v25 = vmul.f32 %v1563_v15, %v5704_v33 }
 0xa84   :  { %v1565_v49 = vsel %vm1496_vm12, %v1564_v25, 0.0 }
 0xa85   :  { %v5964_v5 = vadd.f32 %v1565_v49, %v1454_v42 }
 0xa87   :  { %v1672_v56 = vmul.f32 %v5713_v37, %v5964_v5 }
 0xa89   :  { %1673 = vadd.xlane.f32.xlu1 %v1672_v56 }
 0xab8   :  { %v1030_v18 = vpop.xlane.xlu1 %1029 }
 0xab9   :  { %v1031_v7 = vsub.f32 %v5968_v4, %v1030_v18  ;;  %v5991_v18 = vld [vmem:[#allocation0 + $0x10] sm:$0xff] }
 0xabb   :  { %v1032_v14 = vmul.f32 %v1031_v7, %v5519_v26 }
 0xabd   :  { %v1033_v22 = vsel %vm7124_vm10, %v1032_v14, 0.0  ;;  %vm7126_vm10 = vcmask 56368  }
 0xabe   :  { %v5973_v58 = vadd.f32 %v1033_v22, %v912_v16 }
 0xac0   :  { %v1138_v40 = vmul.f32 %v5523_v31, %v5973_v58 }
 0xac2   :  { %1139 = vadd.xlane.f32.xlu2 %v1138_v40 }
 0xac8   :  { %v1885_v42 = vpop.xlane.xlu0 %1884 }
 0xac9   :  { %v1886_v32 = vsub.f32 %v5732_v55, %v1885_v42 }
 0xacb   :  { %v1887_v39 = vmul.f32 %v1886_v32, %v5892_v10 }
 0xacd   :  { %v1888_v48 = vsel %vm7113_vm15, %v1887_v39, 0.0 }
 0xace   :  { %v5981_v62 = vadd.f32 %v1888_v48, %v1777_v28 }
 0xacf   :  { %v1351_v52 = vpop.xlane.xlu1 %1350 }
 0xad0   :  { %v1352_v36 = vsub.f32 %v5878_v3, %v1351_v52  ;;  %v1980_v61 = vmul.f32 %v5902_v20, %v5981_v62 }
 0xad2   :  { %v1353_v16 = vmul.f32 %v1352_v36, %v5615_v43  ;;  %v2048_v0 = vpop.xlane.xlu2 %2047  ;;  %1981 = vadd.xlane.f32.xlu0 %v1980_v61 }
 0xad3   :  { %v2049_v21 = vsub.f32 %v2045_v51, %v2048_v0 }
 0xad4   :  { %v1354_v9 = vsel %vm1272_vm13, %v1353_v16, 0.0 }
 0xad5   :  { %v1355_v11 = vadd.f32 %v1354_v9, %v1243_v63  ;;  %5228 = vrsqrt.f32 %v2049_v21  ;;  %v2066_v63 = vpop.xlane.xlu0 %2065  ;;  %vm2056_vm3 = vweird.f32 %v2049_v21 }
 0xad6   :  { %v2067_v22 = vsub.f32 %v5991_v18, %v2066_v63 }
 0xad7   :  { %v1461_v23 = vmul.f32 %v5621_v46, %v1355_v11 }
 0xad9   :  { %1462 = vadd.xlane.f32.xlu1 %v1461_v23 }
 0xada   :  { %v799_v29 = vpop.xlane.xlu2 %798 }
 0xadb   :  { %v5229_v45 = vpop.eup %5228  ;;  %v800_v28 = vsub.f32 %v5753_v47, %v799_v29 }
 0xadc   :  { %v2051_v60 = vmul.f32 %v5229_v45, %v2049_v21  ;;  %vm2057_vm14 = vweird.f32 %v5229_v45 }
 0xadd   :  { %v801_v53 = vmul.f32 %v800_v28, %v5463_v50  ;;  %vm2058_vm4 = vmor %vm2056_vm3, %vm2057_vm14  ;;  %vm2140_vm3 = vcmask 154768  }
 0xade   :  { %v2052_v6 = vmul.f32 %v5229_v45, %v2051_v60 }
 0xadf   :  { %v802_v15 = vsel %vm684_vm7, %v801_v53, 0.0  ;;  %vm2070_vm7 = vmand %vm2041_vm1, %vm7125_vm6 }
 0xae0   :  { %v2053_v25 = vmul.f32 0.5, %v2052_v6  ;;  %v803_v49 = vadd.f32 %v802_v15, %v681_v8 }
 0xae2   :  { %v2054_v56 = vsub.f32 1.5, %v2053_v25  ;;  %v919_v7 = vmul.f32 %v5470_v57, %v803_v49 }
 0xae4   :  { %v2055_v14 = vmul.f32 %v5229_v45, %v2054_v56  ;;  %920 = vadd.xlane.f32.xlu2 %v919_v7 }
 0xae6   :  { %v5995_v50 = vsel %vm2058_vm4, %v5229_v45, %v2055_v14 }
 0xae7   :  { %v2068_v8 = vmul.f32 %v2067_v22, %v5995_v50 }
 0xae9   :  { %v2071_v40 = vsel %vm2070_vm7, %v2068_v8, 0.0  ;;  %vm7127_vm7 = vcmask 1047554  }
 0xaea   :  { %v6001_v42 = vadd.f32 %v2071_v40, %v5942_v54 }
 0xaec   :  { %2074 = vst [vmem:[#allocation1 + $0x10] sm:$0xff] %v6001_v42 }
 0xaf3   :  { %v6004_v57 = vld [vmem:[#allocation1 + $0x12] ss:$0 sm:$0xff] }
 0xaf4   :  { %v2145_v32 = vmul.f32 %v6004_v57, %v6004_v57  ;;  %v2163_v39 = vmul.f32 %v6004_v57, %v6001_v42 }
 0xaf6   :  { %2146 = vadd.xlane.f32.xlu0 %v2145_v32  ;;  %2164 = vadd.xlane.f32.xlu1 %v2163_v39  ;;  %v2144_v32 = vld [vmem:[#allocation0 + $0x12] ss:$0 sm:$0xff] }
 0xafc   :  { %v1674_v52 = vpop.xlane.xlu1 %1673 }
 0xafd   :  { %v1675_v48 = vsub.f32 %v5805_v27, %v1674_v52 }
 0xaff   :  { %v1676_v36 = vmul.f32 %v1675_v48, %v5764_v19 }
 0xb01   :  { %v1677_v54 = vsel %vm1608_vm11, %v1676_v36, 0.0 }
 0xb02   :  { %v1678_v51 = vadd.f32 %v1677_v54, %v5964_v5 }
 0xb04   :  { %v1784_v16 = vmul.f32 %v5782_v44, %v1678_v51 }
 0xb06   :  { %1785 = vadd.xlane.f32.xlu2 %v1784_v16 }
 0xb35   :  { %v1140_v0 = vpop.xlane.xlu2 %1139 }
 0xb36   :  { %v1141_v61 = vsub.f32 %v5968_v4, %v1140_v0 }
 0xb38   :  { %v1142_v21 = vmul.f32 %v1141_v61, %v5542_v12 }
 0xb3a   :  { %v1143_v9 = vsel %vm1050_vm9, %v1142_v21, 0.0 }
 0xb3b   :  { %v1144_v23 = vadd.f32 %v1143_v9, %v5973_v58 }
 0xb3d   :  { %v1250_v29 = vmul.f32 %v5548_v24, %v1144_v23 }
 0xb3f   :  { %1251 = vadd.xlane.f32.xlu0 %v1250_v29 }
 0xb45   :  { %v1982_v45 = vpop.xlane.xlu0 %1981 }
 0xb46   :  { %v1983_v28 = vsub.f32 %v5732_v55, %v1982_v45 }
 0xb48   :  { %v1984_v5 = vmul.f32 %v1983_v28, %v5935_v41 }
 0xb4a   :  { %v1985_v53 = vsel %vm1944_vm8, %v1984_v5, 0.0 }
 0xb4b   :  { %v6025_v15 = vadd.f32 %v1985_v53, %v5981_v62 }
 0xb4c   :  { %v1463_v60 = vpop.xlane.xlu1 %1462 }
 0xb4d   :  { %v1464_v6 = vsub.f32 %v5878_v3, %v1463_v60  ;;  %v2079_v58 = vmul.f32 %v5952_v2, %v6025_v15 }
 0xb4f   :  { %v1465_v25 = vmul.f32 %v1464_v6, %v5653_v38  ;;  %2080 = vadd.xlane.f32.xlu1 %v2079_v58 }
 0xb51   :  { %v1466_v56 = vsel %vm1384_vm2, %v1465_v25, 0.0 }
 0xb52   :  { %v6031_v63 = vadd.f32 %v1466_v56, %v1355_v11 }
 0xb54   :  { %v1573_v55 = vmul.f32 %v5663_v1, %v6031_v63 }
 0xb56   :  { %1574 = vadd.xlane.f32.xlu2 %v1573_v55 }
 0xb57   :  { %v921_v7 = vpop.xlane.xlu2 %920 }
 0xb58   :  { %v922_v14 = vsub.f32 %v5753_v47, %v921_v7 }
 0xb5a   :  { %v923_v62 = vmul.f32 %v922_v14, %v5486_v34  ;;  %v6069_v14 = vld [vmem:[#allocation0 + $0x18] sm:$0xff] }
 0xb5c   :  { %v924_v22 = vsel %vm7126_vm10, %v923_v62, 0.0  ;;  %vm2169_vm10 = vmand %vm2140_vm3, %vm7127_vm7 }
 0xb5d   :  { %v6038_v8 = vadd.f32 %v924_v22, %v803_v49 }
 0xb5f   :  { %v1041_v40 = vmul.f32 %v5847_v59, %v6038_v8 }
 0xb61   :  { %1042 = vadd.xlane.f32.xlu0 %v1041_v40 }
 0xb69   :  { %v2147_v11 = vpop.xlane.xlu0 %2146  ;;  %v2165_v47 = vpop.xlane.xlu1 %2164 }
 0xb6a   :  { %v2148_v39 = vsub.f32 %v2144_v32, %v2147_v11  ;;  %v2166_v0 = vsub.f32 %v5991_v18, %v2165_v47  ;;  %v6087_v47 = vld [vmem:[#allocation0 + $0x38] sm:$0xff] }
 0xb6c   :  { %5230 = vrsqrt.f32 %v2148_v39  ;;  %vm2155_vm4 = vweird.f32 %v2148_v39 }
 0xb72   :  { %v5231_v52 = vpop.eup %5230 }
 0xb73   :  { %v2150_v48 = vmul.f32 %v5231_v52, %v2148_v39  ;;  %vm2156_vm14 = vweird.f32 %v5231_v52 }
 0xb74   :  { %vm2157_vm6 = vmor %vm2155_vm4, %vm2156_vm14  ;;  %vm7128_vm14 = vcmask 64568  }
 0xb75   :  { %v2151_v36 = vmul.f32 %v5231_v52, %v2150_v48 }
 0xb77   :  { %v2152_v54 = vmul.f32 0.5, %v2151_v36 }
 0xb79   :  { %v2153_v16 = vsub.f32 1.5, %v2152_v54  ;;  %v1786_v49 = vpop.xlane.xlu2 %1785 }
 0xb7a   :  { %v1787_v59 = vsub.f32 %v5805_v27, %v1786_v49 }
 0xb7b   :  { %v2154_v34 = vmul.f32 %v5231_v52, %v2153_v16 }
 0xb7c   :  { %v1788_v9 = vmul.f32 %v1787_v59, %v5840_v17 }
 0xb7d   :  { %v6044_v61 = vsel %vm2157_vm6, %v5231_v52, %v2154_v34  ;;  %vm2239_vm6 = vcmask 162968  }
 0xb7e   :  { %v2167_v21 = vmul.f32 %v2166_v0, %v6044_v61  ;;  %v1789_v45 = vsel %vm1720_vm5, %v1788_v9, 0.0 }
 0xb7f   :  { %v1790_v5 = vadd.f32 %v1789_v45, %v1678_v51 }
 0xb80   :  { %v2170_v29 = vsel %vm2169_vm10, %v2167_v21, 0.0 }
 0xb81   :  { %v6052_v28 = vadd.f32 %v2170_v29, %v6001_v42  ;;  %v1896_v60 = vmul.f32 %v5851_v35, %v1790_v5 }
 0xb83   :  { %2173 = vst [vmem:[#allocation1 + $0x10] sm:$0xff] %v6052_v28  ;;  %1897 = vadd.xlane.f32.xlu2 %v1896_v60 }
 0xb8a   :  { %v6056_v53 = vld [vmem:[#allocation1 + $0x13] ss:$0 sm:$0xff] }
 0xb8b   :  { %v2244_v6 = vmul.f32 %v6056_v53, %v6056_v53  ;;  %v2262_v25 = vmul.f32 %v6056_v53, %v6052_v28 }
 0xb8d   :  { %2245 = vadd.xlane.f32.xlu1 %v2244_v6  ;;  %v2243_v6 = vld [vmem:[#allocation0 + $0x13] ss:$0 sm:$0xff] }
 0xb95   :  { %2263 = vadd.xlane.f32.xlu1 %v2262_v25 }
 0xbb2   :  { %v1252_v58 = vpop.xlane.xlu0 %1251 }
 0xbb3   :  { %v1253_v42 = vsub.f32 %v5968_v4, %v1252_v58 }
 0xbb5   :  { %v1254_v51 = vmul.f32 %v1253_v42, %v5574_v13 }
 0xbb7   :  { %v1255_v56 = vsel %vm1160_vm0, %v1254_v51, 0.0 }
 0xbb8   :  { %v6065_v55 = vadd.f32 %v1255_v56, %v1144_v23 }
 0xbba   :  { %v1362_v7 = vmul.f32 %v5586_v30, %v6065_v55 }
 0xbbc   :  { %1363 = vadd.xlane.f32.xlu0 %v1362_v7 }
 0xbc2   :  { %v2081_v62 = vpop.xlane.xlu1 %2080 }
 0xbc3   :  { %v2082_v22 = vsub.f32 %v6069_v14, %v2081_v62 }
 0xbc5   :  { %v2083_v40 = vmul.f32 %v2082_v22, %v5995_v50 }
 0xbc7   :  { %v2084_v11 = vsel %vm2041_vm1, %v2083_v40, 0.0 }
 0xbc8   :  { %v6076_v52 = vadd.f32 %v2084_v11, %v6025_v15 }
 0xbc9   :  { %v1575_v32 = vpop.xlane.xlu2 %1574 }
 0xbca   :  { %v1576_v39 = vsub.f32 %v5878_v3, %v1575_v32  ;;  %v2178_v48 = vmul.f32 %v6004_v57, %v6076_v52 }
 0xbcc   :  { %v1577_v23 = vmul.f32 %v1576_v39, %v5704_v33  ;;  %2179 = vadd.xlane.f32.xlu2 %v2178_v48 }
 0xbce   :  { %v1578_v36 = vsel %vm1496_vm12, %v1577_v23, 0.0 }
 0xbcf   :  { %v6083_v54 = vadd.f32 %v1578_v36, %v6031_v63 }
 0xbd1   :  { %v1685_v16 = vmul.f32 %v5713_v37, %v6083_v54 }
 0xbd3   :  { %1686 = vadd.xlane.f32.xlu0 %v1685_v16 }
 0xbd4   :  { %v1043_v34 = vpop.xlane.xlu0 %1042 }
 0xbd5   :  { %v1044_v15 = vsub.f32 %v6087_v47, %v1043_v34 }
 0xbd7   :  { %v1045_v49 = vmul.f32 %v1044_v15, %v5519_v26 }
 0xbd9   :  { %v1046_v0 = vsel %vm7128_vm14, %v1045_v49, 0.0  ;;  %vm7129_vm14 = vcmask 1047555  }
 0xbda   :  { %v1047_v59 = vadd.f32 %v1046_v0, %v6038_v8 }
 0xbdc   :  { %v1151_v21 = vmul.f32 %v5523_v31, %v1047_v59 }
 0xbde   :  { %1152 = vadd.xlane.f32.xlu1 %v1151_v21 }
 0xbf6   :  { %v1898_v63 = vpop.xlane.xlu2 %1897 }
 0xbf7   :  { %v1899_v9 = vsub.f32 %v5805_v27, %v1898_v63 }
 0xbf9   :  { %v1900_v29 = vmul.f32 %v1899_v9, %v5892_v10 }
 0xbfb   :  { %v1901_v45 = vsel %vm7113_vm15, %v1900_v29, 0.0  ;;  %vm2268_vm15 = vmand %vm2239_vm6, %vm7129_vm14 }
 0xbfc   :  { %v6097_v60 = vadd.f32 %v1901_v45, %v1790_v5 }
 0xbfe   :  { %v1993_v58 = vmul.f32 %v5902_v20, %v6097_v60 }
 0xc00   :  { %v2246_v25 = vpop.xlane.xlu1 %2245  ;;  %1994 = vadd.xlane.f32.xlu2 %v1993_v58 }
 0xc01   :  { %v2247_v42 = vsub.f32 %v2243_v6, %v2246_v25 }
 0xc03   :  { %5232 = vrsqrt.f32 %v2247_v42  ;;  %vm2254_vm7 = vweird.f32 %v2247_v42 }
 0xc08   :  { %v2264_v27 = vpop.xlane.xlu1 %2263 }
 0xc09   :  { %v5233_v8 = vpop.eup %5232  ;;  %v2265_v5 = vsub.f32 %v5991_v18, %v2264_v27 }
 0xc0a   :  { %v2249_v31 = vmul.f32 %v5233_v8, %v2247_v42  ;;  %vm2255_vm4 = vweird.f32 %v5233_v8 }
 0xc0b   :  { %vm2256_vm10 = vmor %vm2254_vm7, %vm2255_vm4 }
 0xc0c   :  { %v2250_v51 = vmul.f32 %v5233_v8, %v2249_v31 }
 0xc0e   :  { %v2251_v56 = vmul.f32 0.5, %v2250_v51 }
 0xc10   :  { %v2252_v7 = vsub.f32 1.5, %v2251_v56 }
 0xc12   :  { %v2253_v62 = vmul.f32 %v5233_v8, %v2252_v7 }
 0xc14   :  { %v6102_v22 = vsel %vm2256_vm10, %v5233_v8, %v2253_v62  ;;  %v6136_v62 = vld [vmem:[#allocation0 + $0x20] sm:$0xff]  ;;  %vm7130_vm10 = vcmask 1047556  }
 0xc15   :  { %v2266_v40 = vmul.f32 %v2265_v5, %v6102_v22 }
 0xc17   :  { %v2269_v32 = vsel %vm2268_vm15, %v2266_v40, 0.0  ;;  %vm7114_vm15 = vcmask 171168  }
 0xc18   :  { %v6108_v11 = vadd.f32 %v2269_v32, %v6052_v28  ;;  %vm2367_vm14 = vmand %vm7114_vm15, %vm7130_vm10 }
 0xc1a   :  { %2272 = vst [vmem:[#allocation1 + $0x10] sm:$0xff] %v6108_v11 }
 0xc21   :  { %v6111_v39 = vld [vmem:[#allocation1 + $0x14] ss:$0 sm:$0xff] }
 0xc22   :  { %v2343_v23 = vmul.f32 %v6111_v39, %v6111_v39  ;;  %v2361_v48 = vmul.f32 %v6111_v39, %v6108_v11 }
 0xc24   :  { %2344 = vadd.xlane.f32.xlu1 %v2343_v23 }
 0xc2c   :  { %2362 = vadd.xlane.f32.xlu1 %v2361_v48 }
 0xc2f   :  { %v1364_v36 = vpop.xlane.xlu0 %1363 }
 0xc30   :  { %v1365_v16 = vsub.f32 %v5968_v4, %v1364_v36 }
 0xc32   :  { %v1366_v34 = vmul.f32 %v1365_v16, %v5615_v43 }
 0xc34   :  { %v1367_v28 = vsel %vm1272_vm13, %v1366_v34, 0.0 }
 0xc35   :  { %v1368_v15 = vadd.f32 %v1367_v28, %v6065_v55 }
 0xc37   :  { %v1474_v49 = vmul.f32 %v5621_v46, %v1368_v15 }
 0xc39   :  { %1475 = vadd.xlane.f32.xlu0 %v1474_v49 }
 0xc3f   :  { %v2180_v0 = vpop.xlane.xlu2 %2179 }
 0xc40   :  { %v2181_v21 = vsub.f32 %v6069_v14, %v2180_v0 }
 0xc42   :  { %v2182_v63 = vmul.f32 %v2181_v21, %v6044_v61 }
 0xc44   :  { %v2183_v29 = vsel %vm2140_vm3, %v2182_v63, 0.0 }
 0xc45   :  { %v2184_v6 = vadd.f32 %v2183_v29, %v6076_v52 }
 0xc46   :  { %v1687_v9 = vpop.xlane.xlu0 %1686 }
 0xc47   :  { %v1688_v45 = vsub.f32 %v5878_v3, %v1687_v9  ;;  %v2277_v58 = vmul.f32 %v6056_v53, %v2184_v6 }
 0xc49   :  { %v1689_v25 = vmul.f32 %v1688_v45, %v5764_v19  ;;  %2278 = vadd.xlane.f32.xlu2 %v2277_v58 }
 0xc4b   :  { %v1690_v55 = vsel %vm1608_vm11, %v1689_v25, 0.0 }
 0xc4c   :  { %v1691_v42 = vadd.f32 %v1690_v55, %v6083_v54 }
 0xc4e   :  { %v1797_v8 = vmul.f32 %v5782_v44, %v1691_v42 }
 0xc50   :  { %1798 = vadd.xlane.f32.xlu0 %v1797_v8 }
 0xc51   :  { %v1153_v31 = vpop.xlane.xlu1 %1152 }
 0xc52   :  { %v1154_v51 = vsub.f32 %v6087_v47, %v1153_v31 }
 0xc54   :  { %v1155_v56 = vmul.f32 %v1154_v51, %v5542_v12  ;;  %v2342_v12 = vld [vmem:[#allocation0 + $0x14] ss:$0 sm:$0xff] }
 0xc56   :  { %v1156_v7 = vsel %vm1050_vm9, %v1155_v56, 0.0 }
 0xc57   :  { %v1157_v52 = vadd.f32 %v1156_v7, %v1047_v59 }
 0xc59   :  { %v1263_v27 = vmul.f32 %v5548_v24, %v1157_v52 }
 0xc5b   :  { %1264 = vadd.xlane.f32.xlu2 %v1263_v27 }
 0xc73   :  { %v1995_v5 = vpop.xlane.xlu2 %1994 }
 0xc74   :  { %v1996_v40 = vsub.f32 %v6136_v62, %v1995_v5 }
 0xc76   :  { %v1997_v54 = vmul.f32 %v1996_v40, %v5935_v41 }
 0xc78   :  { %v1998_v32 = vsel %vm1944_vm8, %v1997_v54, 0.0 }
 0xc79   :  { %v1999_v23 = vadd.f32 %v1998_v32, %v6097_v60 }
 0xc7b   :  { %v2092_v48 = vmul.f32 %v5952_v2, %v1999_v23 }
 0xc7d   :  { %2093 = vadd.xlane.f32.xlu0 %v2092_v48 }
 0xc97   :  { %v2345_v36 = vpop.xlane.xlu1 %2344 }
 0xc98   :  { %v2346_v59 = vsub.f32 %v2342_v12, %v2345_v36 }
 0xc9a   :  { %5234 = vrsqrt.f32 %v2346_v59  ;;  %vm2353_vm4 = vweird.f32 %v2346_v59 }
 0xc9f   :  { %v2363_v0 = vpop.xlane.xlu1 %2362 }
 0xca0   :  { %v5235_v24 = vpop.eup %5234  ;;  %v2364_v60 = vsub.f32 %v5991_v18, %v2363_v0 }
 0xca1   :  { %v2348_v16 = vmul.f32 %v5235_v24, %v2346_v59  ;;  %vm2354_vm9 = vweird.f32 %v5235_v24 }
 0xca2   :  { %vm2355_vm7 = vmor %vm2353_vm4, %vm2354_vm9  ;;  %vm2437_vm4 = vcmask 179368  }
 0xca3   :  { %v2349_v34 = vmul.f32 %v5235_v24, %v2348_v16 }
 0xca5   :  { %v2350_v28 = vmul.f32 0.5, %v2349_v34 }
 0xca7   :  { %v2351_v49 = vsub.f32 1.5, %v2350_v28 }
 0xca9   :  { %v2352_v21 = vmul.f32 %v5235_v24, %v2351_v49 }
 0xcab   :  { %v6144_v63 = vsel %vm2355_vm7, %v5235_v24, %v2352_v21 }
 0xcac   :  { %v2365_v9 = vmul.f32 %v2364_v60, %v6144_v63  ;;  %v1476_v29 = vpop.xlane.xlu0 %1475 }
 0xcad   :  { %v1477_v45 = vsub.f32 %v5968_v4, %v1476_v29 }
 0xcae   :  { %v2368_v25 = vsel %vm2367_vm14, %v2365_v9, 0.0  ;;  %vm7132_vm14 = vcmask 1047557  }
 0xcaf   :  { %v6151_v58 = vadd.f32 %v2368_v25, %v6108_v11  ;;  %v1478_v55 = vmul.f32 %v1477_v45, %v5653_v38 }
 0xcb1   :  { %2371 = vst [vmem:[#allocation1 + $0x10] sm:$0xff] %v6151_v58  ;;  %v1479_v8 = vsel %vm1384_vm2, %v1478_v55, 0.0  ;;  %v2441_v55 = vld [vmem:[#allocation0 + $0x15] ss:$0 sm:$0xff] }
 0xcb2   :  { %v1480_v31 = vadd.f32 %v1479_v8, %v1368_v15 }
 0xcb4   :  { %v1586_v51 = vmul.f32 %v5663_v1, %v1480_v31 }
 0xcb6   :  { %1587 = vadd.xlane.f32.xlu1 %v1586_v51 }
 0xcb8   :  { %v6157_v56 = vld [vmem:[#allocation1 + $0x15] ss:$0 sm:$0xff] }
 0xcb9   :  { %v2442_v7 = vmul.f32 %v6157_v56, %v6157_v56 }
 0xcbc   :  { %v2279_v27 = vpop.xlane.xlu2 %2278 }
 0xcbd   :  { %v2280_v11 = vsub.f32 %v6069_v14, %v2279_v27 }
 0xcbe   :  { %2443 = vadd.xlane.f32.xlu1 %v2442_v7 }
 0xcbf   :  { %v2281_v5 = vmul.f32 %v2280_v11, %v6102_v22 }
 0xcc1   :  { %v2282_v54 = vsel %vm2239_vm6, %v2281_v5, 0.0 }
 0xcc2   :  { %v2283_v15 = vadd.f32 %v2282_v54, %v2184_v6  ;;  %v6190_v54 = vld [vmem:[#allocation0 + $0x28] sm:$0xff] }
 0xcc3   :  { %v1799_v40 = vpop.xlane.xlu0 %1798 }
 0xcc4   :  { %v1800_v32 = vsub.f32 %v5878_v3, %v1799_v40  ;;  %v2376_v12 = vmul.f32 %v6111_v39, %v2283_v15  ;;  %v2460_v3 = vmul.f32 %v6157_v56, %v6151_v58 }
 0xcc6   :  { %v1801_v48 = vmul.f32 %v1800_v32, %v5840_v17  ;;  %2377 = vadd.xlane.f32.xlu2 %v2376_v12 }
 0xcc8   :  { %v1802_v36 = vsel %vm1720_vm5, %v1801_v48, 0.0 }
 0xcc9   :  { %v1803_v59 = vadd.f32 %v1802_v36, %v1691_v42 }
 0xccb   :  { %v1909_v24 = vmul.f32 %v5851_v35, %v1803_v59 }
 0xccd   :  { %1910 = vadd.xlane.f32.xlu0 %v1909_v24 }
 0xcce   :  { %v1265_v16 = vpop.xlane.xlu2 %1264 }
 0xccf   :  { %v1266_v34 = vsub.f32 %v6087_v47, %v1265_v16 }
 0xcd1   :  { %v1267_v28 = vmul.f32 %v1266_v34, %v5574_v13 }
 0xcd3   :  { %v1268_v49 = vsel %vm1160_vm0, %v1267_v28, 0.0  ;;  %vm7131_vm0 = vcmask 130168  }
 0xcd4   :  { %v1269_v6 = vadd.f32 %v1268_v49, %v1157_v52 }
 0xcd5   :  { %2461 = vadd.xlane.f32.xlu0 %v2460_v3 }
 0xcd6   :  { %v1375_v0 = vmul.f32 %v5586_v30, %v1269_v6 }
 0xcd8   :  { %1376 = vadd.xlane.f32.xlu2 %v1375_v0 }
 0xcf0   :  { %v2094_v21 = vpop.xlane.xlu0 %2093 }
 0xcf1   :  { %v2095_v42 = vsub.f32 %v6136_v62, %v2094_v21 }
 0xcf3   :  { %v2096_v35 = vmul.f32 %v2095_v42, %v5995_v50 }
 0xcf5   :  { %v2097_v60 = vsel %vm2041_vm1, %v2096_v35, 0.0 }
 0xcf6   :  { %v6178_v9 = vadd.f32 %v2097_v60, %v1999_v23 }
 0xcf8   :  { %v2191_v13 = vmul.f32 %v6004_v57, %v6178_v9 }
 0xcfa   :  { %2192 = vadd.xlane.f32.xlu1 %v2191_v13 }
 0xd29   :  { %v1588_v29 = vpop.xlane.xlu1 %1587 }
 0xd2a   :  { %v1589_v52 = vsub.f32 %v5968_v4, %v1588_v29 }
 0xd2c   :  { %v1590_v45 = vmul.f32 %v1589_v52, %v5704_v33 }
 0xd2e   :  { %v1591_v30 = vsel %vm1496_vm12, %v1590_v45, 0.0 }
 0xd2f   :  { %v6185_v25 = vadd.f32 %v1591_v30, %v1480_v31 }
 0xd31   :  { %v2444_v8 = vpop.xlane.xlu1 %2443  ;;  %v1698_v51 = vmul.f32 %v5713_v37, %v6185_v25 }
 0xd32   :  { %v2445_v23 = vsub.f32 %v2441_v55, %v2444_v8 }
 0xd33   :  { %1699 = vadd.xlane.f32.xlu2 %v1698_v51 }
 0xd34   :  { %5236 = vrsqrt.f32 %v2445_v23  ;;  %vm2452_vm7 = vweird.f32 %v2445_v23 }
 0xd39   :  { %v2378_v11 = vpop.xlane.xlu2 %2377 }
 0xd3a   :  { %v5237_v7 = vpop.eup %5236  ;;  %v2379_v5 = vsub.f32 %v6069_v14, %v2378_v11 }
 0xd3b   :  { %v2447_v27 = vmul.f32 %v5237_v7, %v2445_v23  ;;  %vm2453_vm9 = vweird.f32 %v5237_v7 }
 0xd3c   :  { %v2380_v32 = vmul.f32 %v2379_v5, %v6144_v63  ;;  %vm2454_vm10 = vmor %vm2452_vm7, %vm2453_vm9 }
 0xd3d   :  { %v2448_v40 = vmul.f32 %v5237_v7, %v2447_v27 }
 0xd3e   :  { %v2381_v12 = vsel %vm7114_vm15, %v2380_v32, 0.0  ;;  %vm2466_vm15 = vmand %vm2437_vm4, %vm7132_vm14 }
 0xd3f   :  { %v2449_v31 = vmul.f32 0.5, %v2448_v40  ;;  %v2382_v24 = vadd.f32 %v2381_v12, %v2283_v15 }
 0xd40   :  { %v1911_v48 = vpop.xlane.xlu0 %1910 }
 0xd41   :  { %v1912_v36 = vsub.f32 %v6190_v54, %v1911_v48  ;;  %v2450_v16 = vsub.f32 1.5, %v2449_v31  ;;  %v2475_v28 = vmul.f32 %v6157_v56, %v2382_v24 }
 0xd43   :  { %v1913_v34 = vmul.f32 %v1912_v36, %v5892_v10  ;;  %2476 = vadd.xlane.f32.xlu0 %v2475_v28  ;;  %v2451_v0 = vmul.f32 %v5237_v7, %v2450_v16 }
 0xd45   :  { %v1914_v49 = vsel %vm7131_vm0, %v1913_v34, 0.0  ;;  %v6200_v15 = vsel %vm2454_vm10, %v5237_v7, %v2451_v0  ;;  %vm7134_vm10 = vcmask 171168  }
 0xd46   :  { %v1915_v3 = vadd.f32 %v1914_v49, %v1803_v59 }
 0xd48   :  { %v2462_v21 = vpop.xlane.xlu0 %2461  ;;  %v2006_v42 = vmul.f32 %v5902_v20, %v1915_v3 }
 0xd49   :  { %v2463_v35 = vsub.f32 %v5991_v18, %v2462_v21 }
 0xd4a   :  { %2007 = vadd.xlane.f32.xlu1 %v2006_v42 }
 0xd4b   :  { %v2464_v60 = vmul.f32 %v2463_v35, %v6200_v15  ;;  %v1377_v13 = vpop.xlane.xlu2 %1376 }
 0xd4c   :  { %v1378_v59 = vsub.f32 %v6087_v47, %v1377_v13 }
 0xd4d   :  { %v2467_v29 = vsel %vm2466_vm15, %v2464_v60, 0.0  ;;  %vm2536_vm15 = vcmask 187568  }
 0xd4e   :  { %v6207_v52 = vadd.f32 %v2467_v29, %v6151_v58  ;;  %v1379_v45 = vmul.f32 %v1378_v59, %v5615_v43  ;;  %v2540_v29 = vld [vmem:[#allocation0 + $0x16] ss:$0 sm:$0xff] }
 0xd50   :  { %2470 = vst [vmem:[#allocation1 + $0x10] sm:$0xff] %v6207_v52  ;;  %v1380_v30 = vsel %vm1272_vm13, %v1379_v45, 0.0 }
 0xd51   :  { %v1381_v55 = vadd.f32 %v1380_v30, %v1269_v6 }
 0xd53   :  { %v1487_v8 = vmul.f32 %v5621_v46, %v1381_v55 }
 0xd55   :  { %1488 = vadd.xlane.f32.xlu2 %v1487_v8 }
 0xd57   :  { %v6213_v51 = vld [vmem:[#allocation1 + $0x16] ss:$0 sm:$0xff] }
 0xd58   :  { %v2541_v23 = vmul.f32 %v6213_v51, %v6213_v51  ;;  %v2559_v58 = vmul.f32 %v6213_v51, %v6207_v52 }
 0xd5a   :  { %2542 = vadd.xlane.f32.xlu0 %v2541_v23 }
 0xd62   :  { %2560 = vadd.xlane.f32.xlu0 %v2559_v58 }
 0xd6d   :  { %v2193_v7 = vpop.xlane.xlu1 %2192 }
 0xd6e   :  { %v2194_v43 = vsub.f32 %v6136_v62, %v2193_v7 }
 0xd70   :  { %v2195_v27 = vmul.f32 %v2194_v43, %v6044_v61 }
 0xd72   :  { %v2196_v6 = vsel %vm2140_vm3, %v2195_v27, 0.0 }
 0xd73   :  { %v2197_v46 = vadd.f32 %v2196_v6, %v6178_v9 }
 0xd75   :  { %v2290_v11 = vmul.f32 %v6056_v53, %v2197_v46 }
 0xd77   :  { %2291 = vadd.xlane.f32.xlu1 %v2290_v11 }
 0xda6   :  { %v1700_v5 = vpop.xlane.xlu2 %1699 }
 0xda7   :  { %v1701_v40 = vsub.f32 %v5968_v4, %v1700_v5 }
 0xda9   :  { %v1702_v32 = vmul.f32 %v1701_v40, %v5764_v19 }
 0xdab   :  { %v1703_v31 = vsel %vm1608_vm11, %v1702_v32, 0.0 }
 0xdac   :  { %v1704_v48 = vadd.f32 %v1703_v31, %v6185_v25 }
 0xdae   :  { %v1810_v12 = vmul.f32 %v5782_v44, %v1704_v48 }
 0xdb0   :  { %1811 = vadd.xlane.f32.xlu2 %v1810_v12 }
 0xdb6   :  { %v2477_v36 = vpop.xlane.xlu0 %2476 }
 0xdb7   :  { %v2478_v16 = vsub.f32 %v6069_v14, %v2477_v36 }
 0xdb9   :  { %v2479_v9 = vmul.f32 %v2478_v16, %v6200_v15 }
 0xdbb   :  { %v2480_v28 = vsel %vm2437_vm4, %v2479_v9, 0.0 }
 0xdbc   :  { %v2481_v4 = vadd.f32 %v2480_v28, %v2382_v24  ;;  %v6256_v28 = vld [vmem:[#allocation0 + $0x30] sm:$0xff] }
 0xdbd   :  { %v2008_v34 = vpop.xlane.xlu1 %2007 }
 0xdbe   :  { %v2009_v49 = vsub.f32 %v6190_v54, %v2008_v34  ;;  %v2574_v21 = vmul.f32 %v6213_v51, %v2481_v4 }
 0xdc0   :  { %v2010_v0 = vmul.f32 %v2009_v49, %v5935_v41  ;;  %2575 = vadd.xlane.f32.xlu1 %v2574_v21 }
 0xdc2   :  { %v2011_v25 = vsel %vm1944_vm8, %v2010_v0, 0.0 }
 0xdc3   :  { %v2012_v42 = vadd.f32 %v2011_v25, %v1915_v3 }
 0xdc5   :  { %v2105_v35 = vmul.f32 %v5952_v2, %v2012_v42 }
 0xdc7   :  { %2106 = vadd.xlane.f32.xlu2 %v2105_v35  ;;  %v6261_v35 = vld [vmem:[#allocation1 + $0xf] ss:$0 sm:$0xff] }
 0xdc8   :  { %v1489_v60 = vpop.xlane.xlu2 %1488 }
 0xdc9   :  { %v1490_v13 = vsub.f32 %v6087_v47, %v1489_v60 }
 0xdcb   :  { %v1491_v59 = vmul.f32 %v1490_v13, %v5653_v38 }
 0xdcd   :  { %v1492_v45 = vsel %vm1384_vm2, %v1491_v59, 0.0  ;;  %v2543_v24 = vpop.xlane.xlu0 %2542  ;;  %vm7133_vm2 = vcmask 1047558  }
 0xdce   :  { %v1493_v30 = vadd.f32 %v1492_v45, %v1381_v55  ;;  %v2544_v8 = vsub.f32 %v2540_v29, %v2543_v24  ;;  %vm2565_vm7 = vmand %vm2536_vm15, %vm7133_vm2 }
 0xdd0   :  { %5238 = vrsqrt.f32 %v2544_v8  ;;  %v1599_v23 = vmul.f32 %v5663_v1, %v1493_v30  ;;  %vm2551_vm0 = vweird.f32 %v2544_v8 }
 0xdd2   :  { %1600 = vadd.xlane.f32.xlu0 %v1599_v23 }
 0xdd5   :  { %v2561_v6 = vpop.xlane.xlu0 %2560 }
 0xdd6   :  { %v5239_v58 = vpop.eup %5238  ;;  %v2562_v38 = vsub.f32 %v5991_v18, %v2561_v6 }
 0xdd7   :  { %v2546_v3 = vmul.f32 %v5239_v58, %v2544_v8  ;;  %vm2552_vm13 = vweird.f32 %v5239_v58 }
 0xdd8   :  { %vm2553_vm9 = vmor %vm2551_vm0, %vm2552_vm13 }
 0xdd9   :  { %v2547_v7 = vmul.f32 %v5239_v58, %v2546_v3 }
 0xddb   :  { %v2548_v43 = vmul.f32 0.5, %v2547_v7 }
 0xddd   :  { %v2549_v27 = vsub.f32 1.5, %v2548_v43 }
 0xddf   :  { %v2550_v11 = vmul.f32 %v5239_v58, %v2549_v27 }
 0xde1   :  { %v6242_v5 = vsel %vm2553_vm9, %v5239_v58, %v2550_v11  ;;  %vm2635_vm9 = vcmask 195768  }
 0xde2   :  { %v2563_v1 = vmul.f32 %v2562_v38, %v6242_v5 }
 0xde4   :  { %v2566_v55 = vsel %vm2565_vm7, %v2563_v1, 0.0 }
 0xde5   :  { %v2567_v40 = vadd.f32 %v2566_v55, %v6207_v52 }
 0xde7   :  { %2569 = vst [vmem:[#allocation1 + $0x10] sm:$0xff] %v2567_v40 }
 0xdea   :  { %v2292_v32 = vpop.xlane.xlu1 %2291 }
 0xdeb   :  { %v2293_v31 = vsub.f32 %v6136_v62, %v2292_v32 }
 0xded   :  { %v2294_v36 = vmul.f32 %v2293_v31, %v6102_v22 }
 0xdee   :  { %v6249_v12 = vld [vmem:[#allocation1 + $0x17] ss:$0 sm:$0xff] }
 0xdef   :  { %v2640_v18 = vmul.f32 %v6249_v12, %v6249_v12  ;;  %v2295_v16 = vsel %vm2239_vm6, %v2294_v36, 0.0  ;;  %v2639_v36 = vld [vmem:[#allocation0 + $0x17] ss:$0 sm:$0xff] }
 0xdf0   :  { %v2296_v9 = vadd.f32 %v2295_v16, %v2197_v46 }
 0xdf1   :  { %2641 = vadd.xlane.f32.xlu0 %v2640_v18 }
 0xdf2   :  { %v2389_v34 = vmul.f32 %v6111_v39, %v2296_v9 }
 0xdf4   :  { %2390 = vadd.xlane.f32.xlu1 %v2389_v34 }
 0xe23   :  { %v1812_v52 = vpop.xlane.xlu2 %1811 }
 0xe24   :  { %v1813_v49 = vsub.f32 %v6256_v28, %v1812_v52 }
 0xe26   :  { %v1814_v0 = vmul.f32 %v1813_v49, %v5840_v17 }
 0xe28   :  { %v1815_v21 = vsel %vm1720_vm5, %v1814_v0, 0.0 }
 0xe29   :  { %v1816_v25 = vadd.f32 %v1815_v21, %v1704_v48 }
 0xe2b   :  { %v1922_v60 = vmul.f32 %v6261_v35, %v1816_v25 }
 0xe2d   :  { %1923 = vadd.xlane.f32.xlu2 %v1922_v60 }
 0xe33   :  { %v2576_v13 = vpop.xlane.xlu1 %2575 }
 0xe34   :  { %v2577_v46 = vsub.f32 %v6069_v14, %v2576_v13 }
 0xe36   :  { %v2578_v59 = vmul.f32 %v2577_v46, %v6242_v5 }
 0xe38   :  { %v2579_v45 = vsel %vm2536_vm15, %v2578_v59, 0.0 }
 0xe39   :  { %v2580_v8 = vadd.f32 %v2579_v45, %v2481_v4 }
 0xe3a   :  { %v2107_v29 = vpop.xlane.xlu2 %2106 }
 0xe3b   :  { %v2108_v24 = vsub.f32 %v6190_v54, %v2107_v29  ;;  %v2673_v48 = vmul.f32 %v6249_v12, %v2580_v8 }
 0xe3d   :  { %v2109_v23 = vmul.f32 %v2108_v24, %v5995_v50  ;;  %2674 = vadd.xlane.f32.xlu1 %v2673_v48 }
 0xe3f   :  { %v2110_v58 = vsel %vm2041_vm1, %v2109_v23, 0.0 }
 0xe40   :  { %v2111_v3 = vadd.f32 %v2110_v58, %v2012_v42 }
 0xe42   :  { %v2204_v7 = vmul.f32 %v6004_v57, %v2111_v3 }
 0xe44   :  { %2205 = vadd.xlane.f32.xlu2 %v2204_v7 }
 0xe45   :  { %v1601_v43 = vpop.xlane.xlu0 %1600 }
 0xe46   :  { %v1602_v27 = vsub.f32 %v6087_v47, %v1601_v43 }
 0xe48   :  { %v1603_v6 = vmul.f32 %v1602_v27, %v5704_v33 }
 0xe4a   :  { %v1604_v11 = vsel %vm1496_vm12, %v1603_v6, 0.0  ;;  %vm7135_vm12 = vcmask 130168  }
 0xe4b   :  { %v1605_v38 = vadd.f32 %v1604_v11, %v1493_v30 }
 0xe4d   :  { %v1711_v4 = vmul.f32 %v5713_v37, %v1605_v38 }
 0xe4f   :  { %1712 = vadd.xlane.f32.xlu0 %v1711_v4 }
 0xe64   :  { %v2642_v18 = vpop.xlane.xlu0 %2641 }
 0xe65   :  { %v2643_v33 = vsub.f32 %v2639_v36, %v2642_v18 }
 0xe67   :  { %v2391_v1 = vpop.xlane.xlu1 %2390  ;;  %5240 = vrsqrt.f32 %v2643_v33  ;;  %vm2650_vm13 = vweird.f32 %v2643_v33 }
 0xe68   :  { %v2392_v55 = vsub.f32 %v6136_v62, %v2391_v1 }
 0xe6a   :  { %v2393_v40 = vmul.f32 %v2392_v55, %v6144_v63 }
 0xe6c   :  { %v2394_v42 = vsel %vm7134_vm10, %v2393_v40, 0.0  ;;  %vm2734_vm10 = vcmask 203968  }
 0xe6d   :  { %v2395_v32 = vadd.f32 %v2394_v42, %v2296_v9  ;;  %v5241_v16 = vpop.eup %5240 }
 0xe6e   :  { %v2645_v30 = vmul.f32 %v5241_v16, %v2643_v33  ;;  %vm2651_vm14 = vweird.f32 %v5241_v16 }
 0xe6f   :  { %v2488_v31 = vmul.f32 %v6157_v56, %v2395_v32  ;;  %vm2652_vm0 = vmor %vm2650_vm13, %vm2651_vm14  ;;  %vm2818_vm13 = vcmask 212168  }
 0xe70   :  { %v2646_v49 = vmul.f32 %v5241_v16, %v2645_v30 }
 0xe71   :  { %2489 = vadd.xlane.f32.xlu1 %v2488_v31 }
 0xe72   :  { %v2647_v60 = vmul.f32 0.5, %v2646_v49 }
 0xe74   :  { %v2648_v13 = vsub.f32 1.5, %v2647_v60 }
 0xe76   :  { %v2649_v46 = vmul.f32 %v5241_v16, %v2648_v13 }
 0xe78   :  { %v6285_v45 = vsel %vm2652_vm0, %v5241_v16, %v2649_v46 }
 0xea0   :  { %v1924_v34 = vpop.xlane.xlu2 %1923 }
 0xea1   :  { %v1925_v37 = vsub.f32 %v6256_v28, %v1924_v34 }
 0xea3   :  { %v1926_v52 = vmul.f32 %v1925_v37, %v5892_v10 }
 0xea5   :  { %v1927_v0 = vsel %vm7135_vm12, %v1926_v52, 0.0 }
 0xea6   :  { %v1928_v21 = vadd.f32 %v1927_v0, %v1816_v25 }
 0xea8   :  { %v2019_v9 = vmul.f32 %v5902_v20, %v1928_v21 }
 0xeaa   :  { %2020 = vadd.xlane.f32.xlu2 %v2019_v9  ;;  %v2738_v9 = vld [vmem:[#allocation0 + $0x18] ss:$0 sm:$0xff] }
 0xeb0   :  { %v2675_v59 = vpop.xlane.xlu1 %2674 }
 0xeb1   :  { %v2676_v29 = vsub.f32 %v6069_v14, %v2675_v59 }
 0xeb3   :  { %v2677_v24 = vmul.f32 %v2676_v29, %v6285_v45 }
 0xeb5   :  { %v2678_v25 = vsel %vm2635_vm9, %v2677_v24, 0.0 }
 0xeb6   :  { %v6290_v58 = vadd.f32 %v2678_v25, %v2580_v8 }
 0xeb7   :  { %v2206_v23 = vpop.xlane.xlu2 %2205 }
 0xeb8   :  { %v2207_v48 = vsub.f32 %v6190_v54, %v2206_v23  ;;  %2681 = vst [vmem:[#allocation1 + $0x18] sm:$0xff] %v6290_v58 }
 0xeba   :  { %v2208_v7 = vmul.f32 %v2207_v48, %v6044_v61 }
 0xebc   :  { %v2209_v43 = vsel %vm2140_vm3, %v2208_v7, 0.0 }
 0xebd   :  { %v2210_v27 = vadd.f32 %v2209_v43, %v2111_v3 }
 0xebf   :  { %v2303_v6 = vmul.f32 %v6056_v53, %v2210_v27  ;;  %v6296_v11 = vld [vmem:[#allocation1 + $0x18] ss:$0 sm:$0xff] }
 0xec0   :  { %v2739_v1 = vmul.f32 %v6296_v11, %v6296_v11  ;;  %v2757_v3 = vmul.f32 %v6296_v11, %v6290_v58 }
 0xec1   :  { %2304 = vadd.xlane.f32.xlu1 %v2303_v6 }
 0xec2   :  { %v1713_v4 = vpop.xlane.xlu0 %1712  ;;  %2740 = vadd.xlane.f32.xlu0 %v2739_v1 }
 0xec3   :  { %v1714_v55 = vsub.f32 %v6087_v47, %v1713_v4 }
 0xec5   :  { %v1715_v8 = vmul.f32 %v1714_v55, %v5764_v19 }
 0xec7   :  { %v1716_v40 = vsel %vm1608_vm11, %v1715_v8, 0.0 }
 0xec8   :  { %v1717_v42 = vadd.f32 %v1716_v40, %v1605_v38 }
 0xeca   :  { %v1823_v31 = vmul.f32 %v5782_v44, %v1717_v42  ;;  %2758 = vadd.xlane.f32.xlu0 %v2757_v3 }
 0xecc   :  { %1824 = vadd.xlane.f32.xlu2 %v1823_v31 }
 0xee4   :  { %v2490_v36 = vpop.xlane.xlu1 %2489 }
 0xee5   :  { %v2491_v18 = vsub.f32 %v6136_v62, %v2490_v36 }
 0xee7   :  { %v2492_v33 = vmul.f32 %v2491_v18, %v6200_v15 }
 0xee9   :  { %v2493_v16 = vsel %vm2437_vm4, %v2492_v33, 0.0 }
 0xeea   :  { %v2494_v30 = vadd.f32 %v2493_v16, %v2395_v32 }
 0xeec   :  { %v2587_v19 = vmul.f32 %v6213_v51, %v2494_v30 }
 0xeee   :  { %2588 = vadd.xlane.f32.xlu1 %v2587_v19 }
 0xf1d   :  { %v2021_v34 = vpop.xlane.xlu2 %2020 }
 0xf1e   :  { %v2022_v38 = vsub.f32 %v6256_v28, %v2021_v34 }
 0xf20   :  { %v2023_v44 = vmul.f32 %v2022_v38, %v5935_v41 }
 0xf22   :  { %v2024_v37 = vsel %vm1944_vm8, %v2023_v44, 0.0 }
 0xf23   :  { %v2025_v52 = vadd.f32 %v2024_v37, %v1928_v21 }
 0xf25   :  { %v2118_v49 = vmul.f32 %v5952_v2, %v2025_v52 }
 0xf27   :  { %2119 = vadd.xlane.f32.xlu2 %v2118_v49 }
 0xf34   :  { %v2305_v0 = vpop.xlane.xlu1 %2304 }
 0xf35   :  { %v2306_v60 = vsub.f32 %v6190_v54, %v2305_v0  ;;  %v2741_v13 = vpop.xlane.xlu0 %2740 }
 0xf36   :  { %v2742_v46 = vsub.f32 %v2738_v9, %v2741_v13 }
 0xf37   :  { %v2307_v32 = vmul.f32 %v2306_v60, %v6102_v22 }
 0xf38   :  { %5242 = vrsqrt.f32 %v2742_v46  ;;  %vm2749_vm2 = vweird.f32 %v2742_v46 }
 0xf39   :  { %v2308_v59 = vsel %vm2239_vm6, %v2307_v32, 0.0 }
 0xf3a   :  { %v2309_v29 = vadd.f32 %v2308_v59, %v2210_v27 }
 0xf3c   :  { %v2402_v24 = vmul.f32 %v6111_v39, %v2309_v29 }
 0xf3d   :  { %v2759_v8 = vpop.xlane.xlu0 %2758 }
 0xf3e   :  { %2403 = vadd.xlane.f32.xlu0 %v2402_v24  ;;  %v5243_v21 = vpop.eup %5242  ;;  %v2760_v31 = vsub.f32 %v6069_v14, %v2759_v8  ;;  %v6345_v24 = vld [vmem:[#allocation0 + $0x38] sm:$0xff] }
 0xf3f   :  { %v1825_v23 = vpop.xlane.xlu2 %1824  ;;  %v2744_v48 = vmul.f32 %v5243_v21, %v2742_v46  ;;  %vm2750_vm11 = vweird.f32 %v5243_v21 }
 0xf40   :  { %v1826_v25 = vsub.f32 %v6087_v47, %v1825_v23  ;;  %vm2751_vm7 = vmor %vm2749_vm2, %vm2750_vm11  ;;  %vm7137_vm2 = vcmask 1047553  }
 0xf41   :  { %v2745_v43 = vmul.f32 %v5243_v21, %v2744_v48 }
 0xf42   :  { %v1827_v7 = vmul.f32 %v1826_v25, %v5840_v17 }
 0xf43   :  { %v2746_v4 = vmul.f32 0.5, %v2745_v43  ;;  %v2822_v43 = vld [vmem:[#allocation0 + $0x19] ss:$0 sm:$0xff] }
 0xf44   :  { %v1828_v6 = vsel %vm1720_vm5, %v1827_v7, 0.0  ;;  %vm7136_vm5 = vcmask 171168  }
 0xf45   :  { %v1829_v1 = vadd.f32 %v1828_v6, %v1717_v42  ;;  %v2747_v55 = vsub.f32 1.5, %v2746_v4 }
 0xf47   :  { %v1935_v27 = vmul.f32 %v6261_v35, %v1829_v1  ;;  %v2748_v40 = vmul.f32 %v5243_v21, %v2747_v55 }
 0xf49   :  { %1936 = vadd.xlane.f32.xlu1 %v1935_v27  ;;  %v6323_v47 = vsel %vm2751_vm7, %v5243_v21, %v2748_v40  ;;  %vm2847_vm7 = vmand %vm2818_vm13, %vm7137_vm2  ;;  %vm2990_vm2 = vcmask 228568  }
 0xf4a   :  { %v2761_v17 = vmul.f32 %v2760_v31, %v6323_v47  ;;  %v6351_v31 = vld [vmem:[#allocation0 + $0x18] sm:$0xff] }
 0xf4c   :  { %v2762_v3 = vsel %vm2734_vm10, %v2761_v17, 0.0 }
 0xf4d   :  { %v2763_v42 = vadd.f32 %v2762_v3, %v6290_v58 }
 0xf4f   :  { %2765 = vst [vmem:[#allocation1 + $0x18] sm:$0xff] %v2763_v42 }
 0xf56   :  { %v6328_v36 = vld [vmem:[#allocation1 + $0x19] ss:$0 sm:$0xff] }
 0xf57   :  { %v2823_v35 = vmul.f32 %v6328_v36, %v6328_v36  ;;  %v2841_v18 = vmul.f32 %v6328_v36, %v2763_v42 }
 0xf59   :  { %2824 = vadd.xlane.f32.xlu2 %v2823_v35 }
 0xf61   :  { %v2589_v33 = vpop.xlane.xlu1 %2588  ;;  %2842 = vadd.xlane.f32.xlu2 %v2841_v18 }
 0xf62   :  { %v2590_v14 = vsub.f32 %v6136_v62, %v2589_v33 }
 0xf64   :  { %v2591_v16 = vmul.f32 %v2590_v14, %v6242_v5 }
 0xf66   :  { %v2592_v19 = vsel %vm2536_vm15, %v2591_v16, 0.0 }
 0xf67   :  { %v2593_v34 = vadd.f32 %v2592_v19, %v2494_v30 }
 0xf69   :  { %v2686_v58 = vmul.f32 %v6249_v12, %v2593_v34 }
 0xf6b   :  { %2687 = vadd.xlane.f32.xlu0 %v2686_v58 }
 0xf9a   :  { %v2120_v38 = vpop.xlane.xlu2 %2119 }
 0xf9b   :  { %v2121_v44 = vsub.f32 %v6256_v28, %v2120_v38 }
 0xf9d   :  { %v2122_v37 = vmul.f32 %v2121_v44, %v5995_v50 }
 0xf9f   :  { %v2123_v49 = vsel %vm2041_vm1, %v2122_v37, 0.0 }
 0xfa0   :  { %v2124_v0 = vadd.f32 %v2123_v49, %v2025_v52 }
 0xfa2   :  { %v2217_v60 = vmul.f32 %v6004_v57, %v2124_v0 }
 0xfa4   :  { %2218 = vadd.xlane.f32.xlu1 %v2217_v60 }
 0xfb1   :  { %v2404_v9 = vpop.xlane.xlu0 %2403 }
 0xfb2   :  { %v2405_v32 = vsub.f32 %v6190_v54, %v2404_v9 }
 0xfb4   :  { %v2406_v13 = vmul.f32 %v2405_v32, %v6144_v63 }
 0xfb6   :  { %v2407_v30 = vsel %vm7136_vm5, %v2406_v13, 0.0  ;;  %vm2904_vm5 = vcmask 220368  }
 0xfb7   :  { %v2408_v46 = vadd.f32 %v2407_v30, %v2309_v29 }
 0xfb9   :  { %v2501_v59 = vmul.f32 %v6157_v56, %v2408_v46 }
 0xfbb   :  { %2502 = vadd.xlane.f32.xlu0 %v2501_v59 }
 0xfbc   :  { %v1937_v23 = vpop.xlane.xlu1 %1936 }
 0xfbd   :  { %v1938_v21 = vsub.f32 %v6345_v24, %v1937_v23 }
 0xfbf   :  { %v1939_v52 = vmul.f32 %v1938_v21, %v5892_v10 }
 0xfc1   :  { %v1940_v25 = vsel %vm7135_vm12, %v1939_v52, 0.0 }
 0xfc2   :  { %v1941_v48 = vadd.f32 %v1940_v25, %v1829_v1 }
 0xfc4   :  { %v2032_v7 = vmul.f32 %v5902_v20, %v1941_v48 }
 0xfc6   :  { %2033 = vadd.xlane.f32.xlu1 %v2032_v7 }
 0xfcc   :  { %v2825_v6 = vpop.xlane.xlu2 %2824 }
 0xfcd   :  { %v2826_v4 = vsub.f32 %v2822_v43, %v2825_v6 }
 0xfcf   :  { %5244 = vrsqrt.f32 %v2826_v4  ;;  %vm2833_vm0 = vweird.f32 %v2826_v4 }
 0xfd4   :  { %v2843_v17 = vpop.xlane.xlu2 %2842 }
 0xfd5   :  { %v5245_v29 = vpop.eup %5244  ;;  %v2844_v20 = vsub.f32 %v6351_v31, %v2843_v17 }
 0xfd6   :  { %v2828_v55 = vmul.f32 %v5245_v29, %v2826_v4  ;;  %vm2834_vm14 = vweird.f32 %v5245_v29 }
 0xfd7   :  { %vm2835_vm11 = vmor %vm2833_vm0, %vm2834_vm14  ;;  %vm7138_vm0 = vcmask 1047554  }
 0xfd8   :  { %v2829_v8 = vmul.f32 %v5245_v29, %v2828_v55  ;;  %v6380_v55 = vld [vmem:[#allocation0 + $0x20] sm:$0xff] }
 0xfda   :  { %v2830_v27 = vmul.f32 0.5, %v2829_v8 }
 0xfdc   :  { %v2831_v40 = vsub.f32 1.5, %v2830_v27 }
 0xfde   :  { %v2832_v3 = vmul.f32 %v5245_v29, %v2831_v40  ;;  %v2688_v1 = vpop.xlane.xlu0 %2687 }
 0xfdf   :  { %v2689_v35 = vsub.f32 %v6136_v62, %v2688_v1 }
 0xfe0   :  { %v6355_v18 = vsel %vm2835_vm11, %v5245_v29, %v2832_v3  ;;  %v2908_v3 = vld [vmem:[#allocation0 + $0x1a] ss:$0 sm:$0xff]  ;;  %vm2933_vm11 = vmand %vm2904_vm5, %vm7138_vm0  ;;  %vm7140_vm0 = vcmask 171168  }
 0xfe1   :  { %v2845_v33 = vmul.f32 %v2844_v20, %v6355_v18  ;;  %v2690_v14 = vmul.f32 %v2689_v35, %v6285_v45 }
 0xfe3   :  { %v2848_v16 = vsel %vm2847_vm7, %v2845_v33, 0.0  ;;  %v2691_v19 = vsel %vm2635_vm9, %v2690_v14, 0.0 }
 0xfe4   :  { %v2849_v58 = vadd.f32 %v2848_v16, %v2763_v42  ;;  %v2692_v38 = vadd.f32 %v2691_v19, %v2593_v34 }
 0xfe6   :  { %2851 = vst [vmem:[#allocation1 + $0x18] sm:$0xff] %v2849_v58  ;;  %v2770_v44 = vmul.f32 %v6296_v11, %v2692_v38 }
 0xfe8   :  { %2771 = vadd.xlane.f32.xlu2 %v2770_v44 }
 0xfed   :  { %v6363_v37 = vld [vmem:[#allocation1 + $0x1a] ss:$0 sm:$0xff] }
 0xfee   :  { %v2909_v62 = vmul.f32 %v6363_v37, %v6363_v37  ;;  %v2927_v49 = vmul.f32 %v6363_v37, %v2849_v58 }
 0xff0   :  { %2910 = vadd.xlane.f32.xlu1 %v2909_v62  ;;  %2928 = vadd.xlane.f32.xlu2 %v2927_v49 }
0x1017   :  { %v2219_v60 = vpop.xlane.xlu1 %2218 }
0x1018   :  { %v2220_v9 = vsub.f32 %v6256_v28, %v2219_v60 }
0x101a   :  { %v2221_v32 = vmul.f32 %v2220_v9, %v6044_v61 }
0x101c   :  { %v2222_v42 = vsel %vm2140_vm3, %v2221_v32, 0.0 }
0x101d   :  { %v2223_v34 = vadd.f32 %v2222_v42, %v2124_v0 }
0x101f   :  { %v2316_v13 = vmul.f32 %v6056_v53, %v2223_v34 }
0x1021   :  { %2317 = vadd.xlane.f32.xlu0 %v2316_v13 }
0x102e   :  { %v2503_v30 = vpop.xlane.xlu0 %2502 }
0x102f   :  { %v2504_v59 = vsub.f32 %v6190_v54, %v2503_v30 }
0x1031   :  { %v2505_v23 = vmul.f32 %v2504_v59, %v6200_v15 }
0x1033   :  { %v2506_v21 = vsel %vm2437_vm4, %v2505_v23, 0.0 }
0x1034   :  { %v2507_v52 = vadd.f32 %v2506_v21, %v2408_v46 }
0x1036   :  { %v2600_v25 = vmul.f32 %v6213_v51, %v2507_v52 }
0x1038   :  { %2601 = vadd.xlane.f32.xlu0 %v2600_v25 }
0x1039   :  { %v2034_v7 = vpop.xlane.xlu1 %2033 }
0x103a   :  { %v2035_v43 = vsub.f32 %v6345_v24, %v2034_v7 }
0x103c   :  { %v2036_v6 = vmul.f32 %v2035_v43, %v5935_v41 }
0x103e   :  { %v2037_v0 = vsel %vm1944_vm8, %v2036_v6, 0.0 }
0x103f   :  { %v2038_v4 = vadd.f32 %v2037_v0, %v1941_v48 }
0x1041   :  { %v2131_v29 = vmul.f32 %v5952_v2, %v2038_v4 }
0x1043   :  { %2132 = vadd.xlane.f32.xlu1 %v2131_v29 }
0x105b   :  { %v2772_v8 = vpop.xlane.xlu2 %2771 }
0x105c   :  { %v2773_v27 = vsub.f32 %v6380_v55, %v2772_v8 }
0x105e   :  { %v2774_v46 = vmul.f32 %v2773_v27, %v6323_v47 }
0x1060   :  { %v2775_v40 = vsel %vm2734_vm10, %v2774_v46, 0.0 }
0x1061   :  { %v2776_v17 = vadd.f32 %v2775_v40, %v2692_v38 }
0x1063   :  { %v2911_v1 = vpop.xlane.xlu1 %2910  ;;  %v2856_v41 = vmul.f32 %v6328_v36, %v2776_v17  ;;  %v2929_v16 = vpop.xlane.xlu2 %2928 }
0x1064   :  { %v2912_v20 = vsub.f32 %v2908_v3, %v2911_v1  ;;  %v2930_v38 = vsub.f32 %v6351_v31, %v2929_v16 }
0x1065   :  { %2857 = vadd.xlane.f32.xlu2 %v2856_v41 }
0x1066   :  { %5246 = vrsqrt.f32 %v2912_v20  ;;  %vm2919_vm12 = vweird.f32 %v2912_v20 }
0x106c   :  { %v5247_v48 = vpop.eup %5246 }
0x106d   :  { %v2914_v2 = vmul.f32 %v5247_v48, %v2912_v20  ;;  %vm2920_vm8 = vweird.f32 %v5247_v48 }
0x106e   :  { %vm2921_vm14 = vmor %vm2919_vm12, %vm2920_vm8  ;;  %vm7139_vm12 = vcmask 1047555  }
0x106f   :  { %v2915_v35 = vmul.f32 %v5247_v48, %v2914_v2  ;;  %v2994_v2 = vld [vmem:[#allocation0 + $0x1b] ss:$0 sm:$0xff] }
0x1071   :  { %v2916_v33 = vmul.f32 0.5, %v2915_v35 }
0x1073   :  { %v2917_v14 = vsub.f32 1.5, %v2916_v33 }
0x1075   :  { %v2918_v19 = vmul.f32 %v5247_v48, %v2917_v14 }
0x1077   :  { %v6387_v44 = vsel %vm2921_vm14, %v5247_v48, %v2918_v19  ;;  %vm3019_vm14 = vmand %vm2990_vm2, %vm7139_vm12 }
0x1078   :  { %v2931_v62 = vmul.f32 %v2930_v38, %v6387_v44 }
0x107a   :  { %v2934_v49 = vsel %vm2933_vm11, %v2931_v62, 0.0  ;;  %vm3076_vm11 = vcmask 236768  }
0x107b   :  { %v2935_v60 = vadd.f32 %v2934_v49, %v2849_v58 }
0x107d   :  { %2937 = vst [vmem:[#allocation1 + $0x18] sm:$0xff] %v2935_v60 }
0x1084   :  { %v6392_v9 = vld [vmem:[#allocation1 + $0x1b] ss:$0 sm:$0xff] }
0x1085   :  { %v2995_v32 = vmul.f32 %v6392_v9, %v6392_v9  ;;  %v3013_v42 = vmul.f32 %v6392_v9, %v2935_v60 }
0x1087   :  { %2996 = vadd.xlane.f32.xlu1 %v2995_v32 }
0x108f   :  { %3014 = vadd.xlane.f32.xlu1 %v3013_v42 }
0x1094   :  { %v2318_v13 = vpop.xlane.xlu0 %2317 }
0x1095   :  { %v2319_v30 = vsub.f32 %v6256_v28, %v2318_v13 }
0x1097   :  { %v2320_v59 = vmul.f32 %v2319_v30, %v6102_v22 }
0x1099   :  { %v2321_v23 = vsel %vm2239_vm6, %v2320_v59, 0.0 }
0x109a   :  { %v2322_v21 = vadd.f32 %v2321_v23, %v2223_v34 }
0x109c   :  { %v2415_v58 = vmul.f32 %v6111_v39, %v2322_v21 }
0x109e   :  { %2416 = vadd.xlane.f32.xlu0 %v2415_v58 }
0x10ab   :  { %v2602_v25 = vpop.xlane.xlu0 %2601 }
0x10ac   :  { %v2603_v7 = vsub.f32 %v6190_v54, %v2602_v25 }
0x10ae   :  { %v2604_v43 = vmul.f32 %v2603_v7, %v6242_v5 }
0x10b0   :  { %v2605_v6 = vsel %vm2536_vm15, %v2604_v43, 0.0 }
0x10b1   :  { %v2606_v0 = vadd.f32 %v2605_v6, %v2507_v52  ;;  %v6430_v6 = vld [vmem:[#allocation0 + $0x28] sm:$0xff] }
0x10b3   :  { %v2699_v29 = vmul.f32 %v6249_v12, %v2606_v0 }
0x10b5   :  { %2700 = vadd.xlane.f32.xlu2 %v2699_v29 }
0x10b6   :  { %v2133_v8 = vpop.xlane.xlu1 %2132 }
0x10b7   :  { %v2134_v27 = vsub.f32 %v6345_v24, %v2133_v8 }
0x10b9   :  { %v2135_v46 = vmul.f32 %v2134_v27, %v5995_v50 }
0x10bb   :  { %v2136_v34 = vsel %vm2041_vm1, %v2135_v46, 0.0 }
0x10bc   :  { %v2137_v40 = vadd.f32 %v2136_v34, %v2038_v4 }
0x10be   :  { %v2230_v3 = vmul.f32 %v6004_v57, %v2137_v40 }
0x10c0   :  { %2231 = vadd.xlane.f32.xlu0 %v2230_v3 }
0x10d8   :  { %v2858_v54 = vpop.xlane.xlu2 %2857 }
0x10d9   :  { %v2859_v1 = vsub.f32 %v6380_v55, %v2858_v54 }
0x10db   :  { %v2860_v41 = vmul.f32 %v2859_v1, %v6355_v18 }
0x10dd   :  { %v2861_v52 = vsel %vm2818_vm13, %v2860_v41, 0.0 }
0x10de   :  { %v2862_v20 = vadd.f32 %v2861_v52, %v2776_v17 }
0x10e0   :  { %v2942_v48 = vmul.f32 %v6363_v37, %v2862_v20 }
0x10e2   :  { %2943 = vadd.xlane.f32.xlu2 %v2942_v48 }
0x10fa   :  { %v2997_v35 = vpop.xlane.xlu1 %2996 }
0x10fb   :  { %v2998_v50 = vsub.f32 %v2994_v2, %v2997_v35 }
0x10fd   :  { %5248 = vrsqrt.f32 %v2998_v50  ;;  %vm3005_vm7 = vweird.f32 %v2998_v50 }
0x1102   :  { %v3015_v19 = vpop.xlane.xlu1 %3014 }
0x1103   :  { %v5249_v33 = vpop.eup %5248  ;;  %v3016_v17 = vsub.f32 %v6351_v31, %v3015_v19 }
0x1104   :  { %v3000_v4 = vmul.f32 %v5249_v33, %v2998_v50  ;;  %vm3006_vm1 = vweird.f32 %v5249_v33 }
0x1105   :  { %vm3007_vm8 = vmor %vm3005_vm7, %vm3006_vm1 }
0x1106   :  { %v3001_v14 = vmul.f32 %v5249_v33, %v3000_v4 }
0x1108   :  { %v3002_v57 = vmul.f32 0.5, %v3001_v14 }
0x110a   :  { %v3003_v16 = vsub.f32 1.5, %v3002_v57 }
0x110c   :  { %v3004_v38 = vmul.f32 %v5249_v33, %v3003_v16  ;;  %v3080_v16 = vld [vmem:[#allocation0 + $0x1c] ss:$0 sm:$0xff] }
0x110e   :  { %v6414_v62 = vsel %vm3007_vm8, %v5249_v33, %v3004_v38  ;;  %vm7141_vm8 = vcmask 1047556  }
0x110f   :  { %v3017_v49 = vmul.f32 %v3016_v17, %v6414_v62  ;;  %vm3105_vm12 = vmand %vm3076_vm11, %vm7141_vm8 }
0x1111   :  { %v2417_v32 = vpop.xlane.xlu0 %2416  ;;  %v3020_v13 = vsel %vm3019_vm14, %v3017_v49, 0.0 }
0x1112   :  { %v2418_v42 = vsub.f32 %v6256_v28, %v2417_v32  ;;  %v6420_v30 = vadd.f32 %v3020_v13, %v2935_v60 }
0x1114   :  { %v2419_v59 = vmul.f32 %v2418_v42, %v6144_v63  ;;  %3023 = vst [vmem:[#allocation1 + $0x18] sm:$0xff] %v6420_v30 }
0x1116   :  { %v2420_v23 = vsel %vm7140_vm0, %v2419_v59, 0.0 }
0x1117   :  { %v2421_v58 = vadd.f32 %v2420_v23, %v2322_v21 }
0x1119   :  { %v2514_v25 = vmul.f32 %v6157_v56, %v2421_v58 }
0x111b   :  { %2515 = vadd.xlane.f32.xlu0 %v2514_v25  ;;  %v6426_v7 = vld [vmem:[#allocation1 + $0x1c] ss:$0 sm:$0xff] }
0x111c   :  { %v3081_v43 = vmul.f32 %v6426_v7, %v6426_v7  ;;  %v3099_v8 = vmul.f32 %v6426_v7, %v6420_v30 }
0x1123   :  { %3082 = vadd.xlane.f32.xlu0 %v3081_v43 }
0x1128   :  { %v2701_v60 = vpop.xlane.xlu2 %2700 }
0x1129   :  { %v2702_v29 = vsub.f32 %v6430_v6, %v2701_v60 }
0x112b   :  { %v2703_v27 = vmul.f32 %v2702_v29, %v6285_v45  ;;  %3100 = vadd.xlane.f32.xlu0 %v3099_v8 }
0x112d   :  { %v2704_v21 = vsel %vm2635_vm9, %v2703_v27, 0.0 }
0x112e   :  { %v2705_v46 = vadd.f32 %v2704_v21, %v2606_v0 }
0x1130   :  { %v2783_v34 = vmul.f32 %v6296_v11, %v2705_v46 }
0x1132   :  { %2784 = vadd.xlane.f32.xlu1 %v2783_v34 }
0x1133   :  { %v2232_v3 = vpop.xlane.xlu0 %2231 }
0x1134   :  { %v2233_v54 = vsub.f32 %v6345_v24, %v2232_v3 }
0x1136   :  { %v2234_v1 = vmul.f32 %v2233_v54, %v6044_v61 }
0x1138   :  { %v2235_v41 = vsel %vm2140_vm3, %v2234_v1, 0.0 }
0x1139   :  { %v2236_v52 = vadd.f32 %v2235_v41, %v2137_v40 }
0x113b   :  { %v2329_v48 = vmul.f32 %v6056_v53, %v2236_v52 }
0x113d   :  { %2330 = vadd.xlane.f32.xlu2 %v2329_v48 }
0x1155   :  { %v2944_v2 = vpop.xlane.xlu2 %2943 }
0x1156   :  { %v2945_v35 = vsub.f32 %v6380_v55, %v2944_v2 }
0x1158   :  { %v2946_v50 = vmul.f32 %v2945_v35, %v6387_v44 }
0x115a   :  { %v2947_v0 = vsel %vm2904_vm5, %v2946_v50, 0.0 }
0x115b   :  { %v2948_v33 = vadd.f32 %v2947_v0, %v2862_v20 }
0x115d   :  { %v3028_v4 = vmul.f32 %v6392_v9, %v2948_v33 }
0x115f   :  { %3029 = vadd.xlane.f32.xlu1 %v3028_v4 }
0x118e   :  { %v2516_v14 = vpop.xlane.xlu0 %2515 }
0x118f   :  { %v2517_v61 = vsub.f32 %v6256_v28, %v2516_v14 }
0x1191   :  { %v2518_v57 = vmul.f32 %v2517_v61, %v6200_v15 }
0x1193   :  { %v2519_v40 = vsel %vm2437_vm4, %v2518_v57, 0.0 }
0x1194   :  { %v2520_v53 = vadd.f32 %v2519_v40, %v2421_v58 }
0x1196   :  { %v3083_v19 = vpop.xlane.xlu0 %3082  ;;  %v2613_v38 = vmul.f32 %v6213_v51, %v2520_v53 }
0x1197   :  { %v3084_v17 = vsub.f32 %v3080_v16, %v3083_v19 }
0x1198   :  { %2614 = vadd.xlane.f32.xlu2 %v2613_v38 }
0x1199   :  { %5250 = vrsqrt.f32 %v3084_v17  ;;  %vm3091_vm1 = vweird.f32 %v3084_v17 }
0x119e   :  { %v3101_v25 = vpop.xlane.xlu0 %3100 }
0x119f   :  { %v5251_v49 = vpop.eup %5250  ;;  %v3102_v60 = vsub.f32 %v6351_v31, %v3101_v25 }
0x11a0   :  { %v3086_v20 = vmul.f32 %v5251_v49, %v3084_v17  ;;  %vm3092_vm3 = vweird.f32 %v5251_v49 }
0x11a1   :  { %vm3093_vm7 = vmor %vm3091_vm1, %vm3092_vm3 }
0x11a2   :  { %v3087_v32 = vmul.f32 %v5251_v49, %v3086_v20 }
0x11a4   :  { %v3088_v42 = vmul.f32 0.5, %v3087_v32 }
0x11a5   :  { %v2785_v13 = vpop.xlane.xlu1 %2784 }
0x11a6   :  { %v3089_v59 = vsub.f32 1.5, %v3088_v42  ;;  %v2786_v23 = vsub.f32 %v6430_v6, %v2785_v13 }
0x11a8   :  { %v3090_v43 = vmul.f32 %v5251_v49, %v3089_v59  ;;  %v2787_v58 = vmul.f32 %v2786_v23, %v6323_v47 }
0x11aa   :  { %v6453_v29 = vsel %vm3093_vm7, %v5251_v49, %v3090_v43  ;;  %v2788_v8 = vsel %vm2734_vm10, %v2787_v58, 0.0  ;;  %v3166_v43 = vld [vmem:[#allocation0 + $0x1d] ss:$0 sm:$0xff]  ;;  %vm7143_vm7 = vcmask 1047557  }
0x11ab   :  { %v2789_v27 = vadd.f32 %v2788_v8, %v2705_v46  ;;  %v3103_v21 = vmul.f32 %v3102_v60, %v6453_v29 }
0x11ad   :  { %v3106_v34 = vsel %vm3105_vm12, %v3103_v21, 0.0  ;;  %v2869_v3 = vmul.f32 %v6328_v36, %v2789_v27  ;;  %vm3248_vm12 = vcmask 253168  }
0x11ae   :  { %v6461_v54 = vadd.f32 %v3106_v34, %v6420_v30 }
0x11af   :  { %2870 = vadd.xlane.f32.xlu1 %v2869_v3 }
0x11b0   :  { %3109 = vst [vmem:[#allocation1 + $0x18] sm:$0xff] %v6461_v54  ;;  %v2331_v1 = vpop.xlane.xlu2 %2330 }
0x11b1   :  { %v2332_v41 = vsub.f32 %v6345_v24, %v2331_v1 }
0x11b3   :  { %v2333_v48 = vmul.f32 %v2332_v41, %v6102_v22 }
0x11b5   :  { %v2334_v2 = vsel %vm2239_vm6, %v2333_v48, 0.0  ;;  %vm7142_vm6 = vmmov %vm7140_vm0  ;;  %vm3162_vm0 = vcmask 244968  }
0x11b6   :  { %v2335_v35 = vadd.f32 %v2334_v2, %v2236_v52  ;;  %vm3191_vm8 = vmand %vm3162_vm0, %vm7143_vm7 }
0x11b7   :  { %v6468_v50 = vld [vmem:[#allocation1 + $0x1d] ss:$0 sm:$0xff] }
0x11b8   :  { %v2428_v46 = vmul.f32 %v6111_v39, %v2335_v35  ;;  %v3167_v30 = vmul.f32 %v6468_v50, %v6468_v50  ;;  %v3185_v39 = vmul.f32 %v6468_v50, %v6461_v54 }
0x11ba   :  { %2429 = vadd.xlane.f32.xlu2 %v2428_v46 }
0x11c2   :  { %3168 = vadd.xlane.f32.xlu2 %v3167_v30 }
0x11d2   :  { %v3030_v0 = vpop.xlane.xlu1 %3029 }
0x11d3   :  { %v3031_v4 = vsub.f32 %v6380_v55, %v3030_v0 }
0x11d5   :  { %v3032_v14 = vmul.f32 %v3031_v4, %v6414_v62 }
0x11d7   :  { %v3033_v61 = vsel %vm2990_vm2, %v3032_v14, 0.0 }
0x11d8   :  { %v3034_v22 = vadd.f32 %v3033_v61, %v2948_v33 }
0x11da   :  { %v3114_v57 = vmul.f32 %v6426_v7, %v3034_v22 }
0x11dc   :  { %3115 = vadd.xlane.f32.xlu0 %v3114_v57 }
0x11e4   :  { %3186 = vadd.xlane.f32.xlu0 %v3185_v39 }
0x120b   :  { %v2615_v52 = vpop.xlane.xlu2 %2614 }
0x120c   :  { %v2616_v40 = vsub.f32 %v6256_v28, %v2615_v52  ;;  %v6506_v52 = vld [vmem:[#allocation0 + $0x30] sm:$0xff] }
0x120e   :  { %v2617_v16 = vmul.f32 %v2616_v40, %v6242_v5 }
0x1210   :  { %v2618_v19 = vsel %vm2536_vm15, %v2617_v16, 0.0 }
0x1211   :  { %v2619_v38 = vadd.f32 %v2618_v19, %v2520_v53 }
0x1213   :  { %v2712_v17 = vmul.f32 %v6249_v12, %v2619_v38 }
0x1215   :  { %2713 = vadd.xlane.f32.xlu1 %v2712_v17 }
0x1222   :  { %v2871_v49 = vpop.xlane.xlu1 %2870 }
0x1223   :  { %v2872_v33 = vsub.f32 %v6430_v6, %v2871_v49 }
0x1225   :  { %v2873_v20 = vmul.f32 %v2872_v33, %v6355_v18 }
0x1227   :  { %v2874_v32 = vsel %vm2818_vm13, %v2873_v20, 0.0 }
0x1228   :  { %v2875_v42 = vadd.f32 %v2874_v32, %v2789_v27 }
0x122a   :  { %v2955_v13 = vmul.f32 %v6363_v37, %v2875_v42 }
0x122c   :  { %2956 = vadd.xlane.f32.xlu1 %v2955_v13 }
0x122d   :  { %v2430_v28 = vpop.xlane.xlu2 %2429 }
0x122e   :  { %v2431_v59 = vsub.f32 %v6345_v24, %v2430_v28 }
0x1230   :  { %v2432_v23 = vmul.f32 %v2431_v59, %v6144_v63 }
0x1232   :  { %v2433_v53 = vsel %vm7142_vm6, %v2432_v23, 0.0 }
0x1233   :  { %v2434_v12 = vadd.f32 %v2433_v53, %v2335_v35 }
0x1235   :  { %v2527_v25 = vmul.f32 %v6157_v56, %v2434_v12  ;;  %v3169_v58 = vpop.xlane.xlu2 %3168 }
0x1236   :  { %v3170_v60 = vsub.f32 %v3166_v43, %v3169_v58 }
0x1237   :  { %2528 = vadd.xlane.f32.xlu2 %v2527_v25 }
0x1238   :  { %5252 = vrsqrt.f32 %v3170_v60  ;;  %vm3177_vm3 = vweird.f32 %v3170_v60 }
0x123e   :  { %v5253_v8 = vpop.eup %5252 }
0x123f   :  { %v3172_v27 = vmul.f32 %v5253_v8, %v3170_v60  ;;  %vm3178_vm14 = vweird.f32 %v5253_v8 }
0x1240   :  { %vm3179_vm1 = vmor %vm3177_vm3, %vm3178_vm14  ;;  %vm7144_vm3 = vcmask 1047558  }
0x1241   :  { %v3173_v21 = vmul.f32 %v5253_v8, %v3172_v27 }
0x1243   :  { %v3174_v34 = vmul.f32 0.5, %v3173_v21 }
0x1245   :  { %v3175_v41 = vsub.f32 1.5, %v3174_v34 }
0x1247   :  { %v3176_v2 = vmul.f32 %v5253_v8, %v3175_v41 }
0x1249   :  { %v6495_v0 = vsel %vm3179_vm1, %v5253_v8, %v3176_v2  ;;  %vm3277_vm1 = vmand %vm3248_vm12, %vm7144_vm3  ;;  %vm3420_vm3 = vcmask 269568  }
0x124f   :  { %v3116_v3 = vpop.xlane.xlu0 %3115 }
0x1250   :  { %v3117_v1 = vsub.f32 %v6380_v55, %v3116_v3  ;;  %v3252_v3 = vld [vmem:[#allocation0 + $0x1e] ss:$0 sm:$0xff] }
0x1252   :  { %v3118_v63 = vmul.f32 %v3117_v1, %v6453_v29 }
0x1254   :  { %v3119_v48 = vsel %vm3076_vm11, %v3118_v63, 0.0 }
0x1255   :  { %v3120_v56 = vadd.f32 %v3119_v48, %v3034_v22 }
0x1257   :  { %v3187_v35 = vpop.xlane.xlu0 %3186  ;;  %v3200_v46 = vmul.f32 %v6468_v50, %v3120_v56 }
0x1258   :  { %v3188_v30 = vsub.f32 %v6351_v31, %v3187_v35 }
0x1259   :  { %3201 = vadd.xlane.f32.xlu0 %v3200_v46 }
0x125a   :  { %v3189_v4 = vmul.f32 %v3188_v30, %v6495_v0 }
0x125c   :  { %v3192_v14 = vsel %vm3191_vm8, %v3189_v4, 0.0 }
0x125d   :  { %v3193_v61 = vadd.f32 %v3192_v14, %v6461_v54 }
0x125f   :  { %3195 = vst [vmem:[#allocation1 + $0x18] sm:$0xff] %v3193_v61 }
0x1266   :  { %v6501_v22 = vld [vmem:[#allocation1 + $0x1e] ss:$0 sm:$0xff] }
0x1267   :  { %v3253_v57 = vmul.f32 %v6501_v22, %v6501_v22  ;;  %v3271_v39 = vmul.f32 %v6501_v22, %v3193_v61 }
0x1269   :  { %3254 = vadd.xlane.f32.xlu2 %v3253_v57 }
0x1271   :  { %3272 = vadd.xlane.f32.xlu2 %v3271_v39 }
0x1288   :  { %v2714_v40 = vpop.xlane.xlu1 %2713 }
0x1289   :  { %v2715_v16 = vsub.f32 %v6506_v52, %v2714_v40 }
0x128b   :  { %v2716_v19 = vmul.f32 %v2715_v16, %v6285_v45 }
0x128d   :  { %v2717_v17 = vsel %vm2635_vm9, %v2716_v19, 0.0 }
0x128e   :  { %v2718_v54 = vadd.f32 %v2717_v17, %v2619_v38 }
0x1290   :  { %v2796_v49 = vmul.f32 %v6296_v11, %v2718_v54 }
0x1292   :  { %2797 = vadd.xlane.f32.xlu1 %v2796_v49 }
0x129f   :  { %v2957_v33 = vpop.xlane.xlu1 %2956 }
0x12a0   :  { %v2958_v20 = vsub.f32 %v6430_v6, %v2957_v33 }
0x12a2   :  { %v2959_v32 = vmul.f32 %v2958_v20, %v6387_v44 }
0x12a4   :  { %v2960_v13 = vsel %vm2904_vm5, %v2959_v32, 0.0 }
0x12a5   :  { %v2961_v28 = vadd.f32 %v2960_v13, %v2875_v42 }
0x12a7   :  { %v3041_v59 = vmul.f32 %v6392_v9, %v2961_v28 }
0x12a9   :  { %3042 = vadd.xlane.f32.xlu0 %v3041_v59 }
0x12aa   :  { %v2529_v23 = vpop.xlane.xlu2 %2528 }
0x12ab   :  { %v2530_v53 = vsub.f32 %v6345_v24, %v2529_v23 }
0x12ad   :  { %v2531_v25 = vmul.f32 %v2530_v53, %v6200_v15 }
0x12af   :  { %v2532_v38 = vsel %vm2437_vm4, %v2531_v25, 0.0 }
0x12b0   :  { %v2533_v43 = vadd.f32 %v2532_v38, %v2434_v12 }
0x12b2   :  { %v2626_v58 = vmul.f32 %v6213_v51, %v2533_v43 }
0x12b4   :  { %2627 = vadd.xlane.f32.xlu1 %v2626_v58  ;;  %v5324_v58 = vld [vmem:[#allocation1 + $0x17] ss:$0 sm:$0xff] }
0x12cc   :  { %v3202_v60 = vpop.xlane.xlu0 %3201 }
0x12cd   :  { %v3203_v8 = vsub.f32 %v6380_v55, %v3202_v60 }
0x12cf   :  { %v3204_v27 = vmul.f32 %v3203_v8, %v6495_v0 }
0x12d1   :  { %v3205_v42 = vsel %vm3162_vm0, %v3204_v27, 0.0 }
0x12d2   :  { %v3206_v21 = vadd.f32 %v3205_v42, %v3120_v56 }
0x12d4   :  { %v3286_v34 = vmul.f32 %v6501_v22, %v3206_v21 }
0x12d6   :  { %3287 = vadd.xlane.f32.xlu0 %v3286_v34 }
0x12dc   :  { %v3255_v1 = vpop.xlane.xlu2 %3254 }
0x12dd   :  { %v3256_v15 = vsub.f32 %v3252_v3, %v3255_v1 }
0x12df   :  { %5254 = vrsqrt.f32 %v3256_v15  ;;  %vm3263_vm6 = vweird.f32 %v3256_v15 }
0x12e4   :  { %v3273_v2 = vpop.xlane.xlu2 %3272 }
0x12e5   :  { %v5255_v41 = vpop.eup %5254  ;;  %v3274_v56 = vsub.f32 %v6351_v31, %v3273_v2 }
0x12e6   :  { %v3258_v12 = vmul.f32 %v5255_v41, %v3256_v15  ;;  %vm3264_vm4 = vweird.f32 %v5255_v41 }
0x12e7   :  { %vm3265_vm14 = vmor %vm3263_vm6, %vm3264_vm4  ;;  %vm3334_vm4 = vcmask 261368  }
0x12e8   :  { %v3259_v63 = vmul.f32 %v5255_v41, %v3258_v12 }
0x12ea   :  { %v3260_v51 = vmul.f32 0.5, %v3259_v63 }
0x12ec   :  { %v3261_v48 = vsub.f32 1.5, %v3260_v51 }
0x12ee   :  { %v3262_v35 = vmul.f32 %v5255_v41, %v3261_v48 }
0x12f0   :  { %v6525_v46 = vsel %vm3265_vm14, %v5255_v41, %v3262_v35 }
0x12f1   :  { %v3275_v30 = vmul.f32 %v3274_v56, %v6525_v46 }
0x12f3   :  { %v3278_v4 = vsel %vm3277_vm1, %v3275_v30, 0.0 }
0x12f4   :  { %v3279_v14 = vadd.f32 %v3278_v4, %v3193_v61  ;;  %v3338_v4 = vld [vmem:[#allocation0 + $0x1f] ss:$0 sm:$0xff] }
0x12f6   :  { %3281 = vst [vmem:[#allocation1 + $0x18] sm:$0xff] %v3279_v14 }
0x12fd   :  { %v6534_v17 = vld [vmem:[#allocation1 + $0x1f] ss:$0 sm:$0xff] }
0x12fe   :  { %v3339_v49 = vmul.f32 %v6534_v17, %v6534_v17 }
0x1305   :  { %v2798_v57 = vpop.xlane.xlu1 %2797 }
0x1306   :  { %v2799_v39 = vsub.f32 %v6506_v52, %v2798_v57 }
0x1308   :  { %v2800_v40 = vmul.f32 %v2799_v39, %v6323_v47 }
0x130a   :  { %v2801_v16 = vsel %vm2734_vm10, %v2800_v40, 0.0 }
0x130b   :  { %v2802_v19 = vadd.f32 %v2801_v16, %v2718_v54 }
0x130d   :  { %v2882_v31 = vmul.f32 %v6328_v36, %v2802_v19 }
0x130f   :  { %2883 = vadd.xlane.f32.xlu1 %v2882_v31 }
0x1317   :  { %3340 = vadd.xlane.f32.xlu1 %v3339_v49 }
0x131c   :  { %v3043_v33 = vpop.xlane.xlu0 %3042 }
0x131d   :  { %v3044_v61 = vsub.f32 %v6430_v6, %v3043_v33 }
0x131f   :  { %v3045_v20 = vmul.f32 %v3044_v61, %v6414_v62 }
0x1321   :  { %v3046_v32 = vsel %vm2990_vm2, %v3045_v20, 0.0 }
0x1322   :  { %v3047_v13 = vadd.f32 %v3046_v32, %v2961_v28 }
0x1324   :  { %v3127_v59 = vmul.f32 %v6426_v7, %v3047_v13 }
0x1326   :  { %3128 = vadd.xlane.f32.xlu2 %v3127_v59 }
0x1327   :  { %v2628_v54 = vpop.xlane.xlu1 %2627 }
0x1328   :  { %v2629_v23 = vsub.f32 %v6345_v24, %v2628_v54 }
0x132a   :  { %v2630_v53 = vmul.f32 %v2629_v23, %v6242_v5 }
0x132c   :  { %v2631_v25 = vsel %vm2536_vm15, %v2630_v53, 0.0 }
0x132d   :  { %v2632_v38 = vadd.f32 %v2631_v25, %v2533_v43 }
0x132f   :  { %v2725_v60 = vmul.f32 %v5324_v58, %v2632_v38 }
0x1331   :  { %2726 = vadd.xlane.f32.xlu0 %v2725_v60 }
0x1349   :  { %v3288_v8 = vpop.xlane.xlu0 %3287 }
0x134a   :  { %v3289_v27 = vsub.f32 %v6380_v55, %v3288_v8 }
0x134c   :  { %v3290_v42 = vmul.f32 %v3289_v27, %v6525_v46 }
0x134e   :  { %v3291_v28 = vsel %vm3248_vm12, %v3290_v42, 0.0 }
0x134f   :  { %v3292_v34 = vadd.f32 %v3291_v28, %v3206_v21 }
0x1351   :  { %v3372_v3 = vmul.f32 %v6534_v17, %v3292_v34 }
0x1353   :  { %3373 = vadd.xlane.f32.xlu2 %v3372_v3 }
0x1382   :  { %v2884_v1 = vpop.xlane.xlu1 %2883 }
0x1383   :  { %v2885_v5 = vsub.f32 %v6506_v52, %v2884_v1 }
0x1385   :  { %v2886_v15 = vmul.f32 %v2885_v5, %v6355_v18 }
0x1387   :  { %v2887_v43 = vsel %vm2818_vm13, %v2886_v15, 0.0 }
0x1388   :  { %v2888_v41 = vadd.f32 %v2887_v43, %v2802_v19 }
0x138a   :  { %v2968_v12 = vmul.f32 %v6363_v37, %v2888_v41  ;;  %v3341_v14 = vpop.xlane.xlu1 %3340 }
0x138b   :  { %v3342_v39 = vsub.f32 %v3338_v4, %v3341_v14 }
0x138c   :  { %2969 = vadd.xlane.f32.xlu0 %v2968_v12  ;;  %v6579_v12 = vld [vmem:[#allocation0 + $0x38] sm:$0xff] }
0x138d   :  { %5256 = vrsqrt.f32 %v3342_v39  ;;  %vm3349_vm7 = vweird.f32 %v3342_v39 }
0x1393   :  { %v5257_v31 = vpop.eup %5256 }
0x1394   :  { %v3344_v49 = vmul.f32 %v5257_v31, %v3342_v39  ;;  %vm3350_vm15 = vweird.f32 %v5257_v31 }
0x1395   :  { %vm3351_vm8 = vmor %vm3349_vm7, %vm3350_vm15  ;;  %vm3491_vm15 = vcmask 277768  }
0x1396   :  { %v3345_v33 = vmul.f32 %v5257_v31, %v3344_v49 }
0x1398   :  { %v3346_v61 = vmul.f32 0.5, %v3345_v33 }
0x1399   :  { %v3129_v63 = vpop.xlane.xlu2 %3128 }
0x139a   :  { %v3130_v51 = vsub.f32 %v6430_v6, %v3129_v63  ;;  %v3347_v20 = vsub.f32 1.5, %v3346_v61 }
0x139c   :  { %v3131_v48 = vmul.f32 %v3130_v51, %v6453_v29  ;;  %v3348_v32 = vmul.f32 %v5257_v31, %v3347_v20 }
0x139e   :  { %v3132_v21 = vsel %vm3076_vm11, %v3131_v48, 0.0  ;;  %v6562_v59 = vsel %vm3351_vm8, %v5257_v31, %v3348_v32  ;;  %vm7145_vm8 = vcmask 1047553  }
0x139f   :  { %v3133_v2 = vadd.f32 %v3132_v21, %v3047_v13 }
0x13a1   :  { %v3213_v35 = vmul.f32 %v6468_v50, %v3133_v2 }
0x13a3   :  { %3214 = vadd.xlane.f32.xlu1 %v3213_v35 }
0x13a4   :  { %v2727_v56 = vpop.xlane.xlu0 %2726 }
0x13a5   :  { %v2728_v30 = vsub.f32 %v6345_v24, %v2727_v56  ;;  %v3424_v56 = vld [vmem:[#allocation0 + $0x20] ss:$0 sm:$0xff] }
0x13a7   :  { %v2729_v57 = vmul.f32 %v2728_v30, %v6285_v45 }
0x13a9   :  { %v2730_v40 = vsel %vm2635_vm9, %v2729_v57, 0.0 }
0x13aa   :  { %v2731_v16 = vadd.f32 %v2730_v40, %v2632_v38 }
0x13ac   :  { %v2809_v19 = vmul.f32 %v6296_v11, %v2731_v16 }
0x13ae   :  { %2810 = vadd.xlane.f32.xlu2 %v2809_v19 }
0x13c6   :  { %v3374_v24 = vpop.xlane.xlu2 %3373 }
0x13c7   :  { %v3375_v13 = vsub.f32 %v6380_v55, %v3374_v24 }
0x13c9   :  { %v3376_v54 = vmul.f32 %v3375_v13, %v6562_v59 }
0x13cb   :  { %v3377_v11 = vsel %vm3334_vm4, %v3376_v54, 0.0 }
0x13cc   :  { %v3378_v23 = vadd.f32 %v3377_v11, %v3292_v34 }
0x13ce   :  { %3380 = vst [vmem:[#allocation1 + $0x20] sm:$0xff] %v3378_v23 }
0x13d5   :  { %v6566_v53 = vld [vmem:[#allocation1 + $0x20] ss:$0 sm:$0xff] }
0x13d6   :  { %v3443_v25 = vmul.f32 %v6566_v53, %v3378_v23  ;;  %v3425_v38 = vmul.f32 %v6566_v53, %v6566_v53 }
0x13d8   :  { %3444 = vadd.xlane.f32.xlu2 %v3443_v25  ;;  %3426 = vadd.xlane.f32.xlu0 %v3425_v38 }
0x13ff   :  { %v2970_v58 = vpop.xlane.xlu0 %2969 }
0x1400   :  { %v2971_v60 = vsub.f32 %v6506_v52, %v2970_v58 }
0x1402   :  { %v2972_v8 = vmul.f32 %v2971_v60, %v6387_v44 }
0x1404   :  { %v2973_v27 = vsel %vm2904_vm5, %v2972_v8, 0.0 }
0x1405   :  { %v2974_v42 = vadd.f32 %v2973_v27, %v2888_v41 }
0x1407   :  { %v3054_v28 = vmul.f32 %v6392_v9, %v2974_v42 }
0x1409   :  { %3055 = vadd.xlane.f32.xlu1 %v3054_v28 }
0x1416   :  { %v3215_v34 = vpop.xlane.xlu1 %3214 }
0x1417   :  { %v3216_v3 = vsub.f32 %v6430_v6, %v3215_v34 }
0x1419   :  { %v3217_v1 = vmul.f32 %v3216_v3, %v6495_v0 }
0x141b   :  { %v3218_v5 = vsel %vm3162_vm0, %v3217_v1, 0.0 }
0x141c   :  { %v3219_v15 = vadd.f32 %v3218_v5, %v3133_v2 }
0x141e   :  { %v3299_v43 = vmul.f32 %v6501_v22, %v3219_v15 }
0x1420   :  { %3300 = vadd.xlane.f32.xlu0 %v3299_v43  ;;  %v3495_v43 = vld [vmem:[#allocation0 + $0x21] ss:$0 sm:$0xff] }
0x1421   :  { %v2811_v63 = vpop.xlane.xlu2 %2810 }
0x1422   :  { %v2812_v51 = vsub.f32 %v6579_v12, %v2811_v63 }
0x1424   :  { %v2813_v41 = vmul.f32 %v2812_v51, %v6323_v47 }
0x1426   :  { %v2814_v48 = vsel %vm2734_vm10, %v2813_v41, 0.0 }
0x1427   :  { %v2815_v21 = vadd.f32 %v2814_v48, %v2731_v16 }
0x1429   :  { %v2895_v35 = vmul.f32 %v6328_v36, %v2815_v21 }
0x142b   :  { %2896 = vadd.xlane.f32.xlu1 %v2895_v35 }
0x144b   :  { %v3427_v30 = vpop.xlane.xlu0 %3426  ;;  %v3445_v40 = vpop.xlane.xlu2 %3444 }
0x144c   :  { %v3428_v4 = vsub.f32 %v3424_v56, %v3427_v30  ;;  %v3446_v47 = vsub.f32 %v6380_v55, %v3445_v40  ;;  %v6607_v30 = vld [vmem:[#allocation0 + $0x20] sm:$0xff] }
0x144e   :  { %5258 = vrsqrt.f32 %v3428_v4  ;;  %vm3435_vm14 = vweird.f32 %v3428_v4 }
0x1454   :  { %v5259_v2 = vpop.eup %5258 }
0x1455   :  { %v3430_v14 = vmul.f32 %v5259_v2, %v3428_v4  ;;  %vm3436_vm6 = vweird.f32 %v5259_v2 }
0x1456   :  { %vm3437_vm10 = vmor %vm3435_vm14, %vm3436_vm6  ;;  %vm3564_vm14 = vcmask 285968  }
0x1457   :  { %v3431_v57 = vmul.f32 %v5259_v2, %v3430_v14  ;;  %vm3520_vm6 = vmand %vm3491_vm15, %vm7145_vm8  ;;  %vm3637_vm8 = vcmask 294168  }
0x1459   :  { %v3432_v39 = vmul.f32 0.5, %v3431_v57 }
0x145b   :  { %v3433_v19 = vsub.f32 1.5, %v3432_v39 }
0x145d   :  { %v3434_v31 = vmul.f32 %v5259_v2, %v3433_v19 }
0x145f   :  { %v6586_v16 = vsel %vm3437_vm10, %v5259_v2, %v3434_v31 }
0x1460   :  { %v3447_v36 = vmul.f32 %v3446_v47, %v6586_v16 }
0x1462   :  { %v3448_v49 = vsel %vm3420_vm3, %v3447_v36, 0.0 }
0x1463   :  { %v3449_v33 = vadd.f32 %v3448_v49, %v3378_v23 }
0x1465   :  { %3451 = vst [vmem:[#allocation1 + $0x20] sm:$0xff] %v3449_v33 }
0x146c   :  { %v6590_v61 = vld [vmem:[#allocation1 + $0x21] ss:$0 sm:$0xff] }
0x146d   :  { %v3496_v20 = vmul.f32 %v6590_v61, %v6590_v61  ;;  %v3514_v32 = vmul.f32 %v6590_v61, %v3449_v33 }
0x146f   :  { %3497 = vadd.xlane.f32.xlu0 %v3496_v20 }
0x1477   :  { %3515 = vadd.xlane.f32.xlu0 %v3514_v32 }
0x147c   :  { %v3056_v55 = vpop.xlane.xlu1 %3055 }
0x147d   :  { %v3057_v24 = vsub.f32 %v6506_v52, %v3056_v55 }
0x147f   :  { %v3058_v13 = vmul.f32 %v3057_v24, %v6414_v62 }
0x1481   :  { %v3059_v54 = vsel %vm2990_vm2, %v3058_v13, 0.0 }
0x1482   :  { %v3060_v11 = vadd.f32 %v3059_v54, %v2974_v42 }
0x1484   :  { %v3140_v23 = vmul.f32 %v6426_v7, %v3060_v11 }
0x1486   :  { %3141 = vadd.xlane.f32.xlu2 %v3140_v23 }
0x1493   :  { %v3301_v25 = vpop.xlane.xlu0 %3300 }
0x1494   :  { %v3302_v38 = vsub.f32 %v6430_v6, %v3301_v25 }
0x1496   :  { %v3303_v58 = vmul.f32 %v3302_v38, %v6525_v46 }
0x1498   :  { %v3304_v60 = vsel %vm3248_vm12, %v3303_v58, 0.0 }
0x1499   :  { %v3305_v8 = vadd.f32 %v3304_v60, %v3219_v15 }
0x149b   :  { %v3385_v27 = vmul.f32 %v6534_v17, %v3305_v8 }
0x149d   :  { %3386 = vadd.xlane.f32.xlu1 %v3385_v27 }
0x149e   :  { %v2897_v28 = vpop.xlane.xlu1 %2896 }
0x149f   :  { %v2898_v34 = vsub.f32 %v6579_v12, %v2897_v28 }
0x14a1   :  { %v2899_v3 = vmul.f32 %v2898_v34, %v6355_v18 }
0x14a3   :  { %v2900_v42 = vsel %vm2818_vm13, %v2899_v3, 0.0 }
0x14a4   :  { %v2901_v1 = vadd.f32 %v2900_v42, %v2815_v21 }
0x14a6   :  { %v2981_v5 = vmul.f32 %v6363_v37, %v2901_v1 }
0x14a8   :  { %2982 = vadd.xlane.f32.xlu2 %v2981_v5  ;;  %v3568_v5 = vld [vmem:[#allocation0 + $0x22] ss:$0 sm:$0xff] }
0x14e2   :  { %v3498_v63 = vpop.xlane.xlu0 %3497 }
0x14e3   :  { %v3499_v51 = vsub.f32 %v3495_v43, %v3498_v63 }
0x14e5   :  { %5260 = vrsqrt.f32 %v3499_v51  ;;  %vm3506_vm13 = vweird.f32 %v3499_v51 }
0x14ea   :  { %v3516_v4 = vpop.xlane.xlu0 %3515 }
0x14eb   :  { %v5261_v41 = vpop.eup %5260  ;;  %v3517_v37 = vsub.f32 %v6607_v30, %v3516_v4 }
0x14ec   :  { %v3501_v15 = vmul.f32 %v5261_v41, %v3499_v51  ;;  %vm3507_vm1 = vweird.f32 %v5261_v41 }
0x14ed   :  { %vm3508_vm7 = vmor %vm3506_vm13, %vm3507_vm1  ;;  %vm7146_vm13 = vcmask 1047554  }
0x14ee   :  { %v3502_v48 = vmul.f32 %v5261_v41, %v3501_v15 }
0x14f0   :  { %v3503_v35 = vmul.f32 0.5, %v3502_v48 }
0x14f2   :  { %v3504_v56 = vsub.f32 1.5, %v3503_v35 }
0x14f4   :  { %v3505_v18 = vmul.f32 %v5261_v41, %v3504_v56 }
0x14f6   :  { %v6610_v21 = vsel %vm3508_vm7, %v5261_v41, %v3505_v18  ;;  %vm3593_vm7 = vmand %vm3564_vm14, %vm7146_vm13  ;;  %vm3710_vm13 = vcmask 302368  }
0x14f7   :  { %v3518_v2 = vmul.f32 %v3517_v37, %v6610_v21 }
0x14f9   :  { %v3142_v14 = vpop.xlane.xlu2 %3141  ;;  %v3521_v39 = vsel %vm3520_vm6, %v3518_v2, 0.0 }
0x14fa   :  { %v3143_v57 = vsub.f32 %v6506_v52, %v3142_v14  ;;  %v3522_v40 = vadd.f32 %v3521_v39, %v3449_v33 }
0x14fc   :  { %v3144_v19 = vmul.f32 %v3143_v57, %v6453_v29  ;;  %3524 = vst [vmem:[#allocation1 + $0x20] sm:$0xff] %v3522_v40 }
0x14fe   :  { %v3145_v31 = vsel %vm3076_vm11, %v3144_v19, 0.0 }
0x14ff   :  { %v3146_v47 = vadd.f32 %v3145_v31, %v3060_v11 }
0x1501   :  { %v3226_v36 = vmul.f32 %v6468_v50, %v3146_v47 }
0x1503   :  { %3227 = vadd.xlane.f32.xlu1 %v3226_v36  ;;  %v6619_v49 = vld [vmem:[#allocation1 + $0x22] ss:$0 sm:$0xff] }
0x1504   :  { %v3569_v20 = vmul.f32 %v6619_v49, %v6619_v49  ;;  %v3587_v58 = vmul.f32 %v6619_v49, %v3522_v40 }
0x150b   :  { %3570 = vadd.xlane.f32.xlu1 %v3569_v20 }
0x1510   :  { %v3387_v32 = vpop.xlane.xlu1 %3386 }
0x1511   :  { %v3388_v55 = vsub.f32 %v6430_v6, %v3387_v32 }
0x1513   :  { %v3389_v33 = vmul.f32 %v3388_v55, %v6562_v59 }
0x1515   :  { %v3390_v24 = vsel %vm3334_vm4, %v3389_v33, 0.0 }
0x1516   :  { %v3391_v13 = vadd.f32 %v3390_v24, %v3305_v8 }
0x1518   :  { %v3456_v54 = vmul.f32 %v6566_v53, %v3391_v13 }
0x151a   :  { %3457 = vadd.xlane.f32.xlu2 %v3456_v54 }
0x151b   :  { %v2983_v11 = vpop.xlane.xlu2 %2982 }
0x151c   :  { %v2984_v23 = vsub.f32 %v6579_v12, %v2983_v11 }
0x151e   :  { %v2985_v25 = vmul.f32 %v2984_v23, %v6387_v44 }
0x1520   :  { %v2986_v38 = vsel %vm2904_vm5, %v2985_v25, 0.0 }
0x1521   :  { %v2987_v60 = vadd.f32 %v2986_v38, %v2901_v1  ;;  %v6659_v38 = vld [vmem:[#allocation0 + $0x28] sm:$0xff] }
0x1522   :  { %3588 = vadd.xlane.f32.xlu2 %v3587_v58 }
0x1523   :  { %v3067_v27 = vmul.f32 %v6392_v9, %v2987_v60 }
0x1525   :  { %3068 = vadd.xlane.f32.xlu0 %v3067_v27 }
0x1576   :  { %v3228_v28 = vpop.xlane.xlu1 %3227 }
0x1577   :  { %v3229_v8 = vsub.f32 %v6506_v52, %v3228_v28 }
0x1579   :  { %v3230_v34 = vmul.f32 %v3229_v8, %v6495_v0 }
0x157b   :  { %v3231_v3 = vsel %vm3162_vm0, %v3230_v34, 0.0 }
0x157c   :  { %v3232_v42 = vadd.f32 %v3231_v3, %v3146_v47 }
0x157e   :  { %v3571_v43 = vpop.xlane.xlu1 %3570  ;;  %v3312_v44 = vmul.f32 %v6501_v22, %v3232_v42 }
0x157f   :  { %v3572_v63 = vsub.f32 %v3568_v5, %v3571_v43  ;;  %v3641_v43 = vld [vmem:[#allocation0 + $0x23] ss:$0 sm:$0xff] }
0x1580   :  { %3313 = vadd.xlane.f32.xlu0 %v3312_v44 }
0x1581   :  { %5262 = vrsqrt.f32 %v3572_v63  ;;  %vm3579_vm10 = vweird.f32 %v3572_v63 }
0x1587   :  { %v5263_v1 = vpop.eup %5262 }
0x1588   :  { %v3574_v51 = vmul.f32 %v5263_v1, %v3572_v63  ;;  %vm3580_vm5 = vweird.f32 %v5263_v1 }
0x1589   :  { %vm3581_vm1 = vmor %vm3579_vm10, %vm3580_vm5  ;;  %vm7147_vm5 = vcmask 1047555  }
0x158a   :  { %v3575_v41 = vmul.f32 %v5263_v1, %v3574_v51  ;;  %vm3666_vm10 = vmand %vm3637_vm8, %vm7147_vm5 }
0x158c   :  { %v3576_v9 = vmul.f32 0.5, %v3575_v41 }
0x158d   :  { %v3458_v15 = vpop.xlane.xlu2 %3457 }
0x158e   :  { %v3459_v48 = vsub.f32 %v6430_v6, %v3458_v15  ;;  %v3577_v35 = vsub.f32 1.5, %v3576_v9 }
0x1590   :  { %v3460_v56 = vmul.f32 %v3459_v48, %v6586_v16  ;;  %v3578_v37 = vmul.f32 %v5263_v1, %v3577_v35 }
0x1592   :  { %v3461_v4 = vsel %vm3420_vm3, %v3460_v56, 0.0  ;;  %v6643_v6 = vsel %vm3581_vm1, %v5263_v1, %v3578_v37 }
0x1593   :  { %v3462_v18 = vadd.f32 %v3461_v4, %v3391_v13 }
0x1595   :  { %v3589_v2 = vpop.xlane.xlu2 %3588  ;;  %v3529_v14 = vmul.f32 %v6590_v61, %v3462_v18 }
0x1596   :  { %v3590_v57 = vsub.f32 %v6607_v30, %v3589_v2 }
0x1597   :  { %3530 = vadd.xlane.f32.xlu1 %v3529_v14 }
0x1598   :  { %v3591_v39 = vmul.f32 %v3590_v57, %v6643_v6  ;;  %v3069_v19 = vpop.xlane.xlu0 %3068 }
0x1599   :  { %v3070_v31 = vsub.f32 %v6579_v12, %v3069_v19 }
0x159a   :  { %v3594_v47 = vsel %vm3593_vm7, %v3591_v39, 0.0 }
0x159b   :  { %v3595_v36 = vadd.f32 %v3594_v47, %v3522_v40  ;;  %v3071_v20 = vmul.f32 %v3070_v31, %v6414_v62 }
0x159d   :  { %3597 = vst [vmem:[#allocation1 + $0x20] sm:$0xff] %v3595_v36  ;;  %v3072_v32 = vsel %vm2990_vm2, %v3071_v20, 0.0 }
0x159e   :  { %v3073_v55 = vadd.f32 %v3072_v32, %v2987_v60 }
0x15a0   :  { %v3153_v33 = vmul.f32 %v6426_v7, %v3073_v55 }
0x15a2   :  { %3154 = vadd.xlane.f32.xlu2 %v3153_v33 }
0x15a4   :  { %v6650_v24 = vld [vmem:[#allocation1 + $0x23] ss:$0 sm:$0xff] }
0x15a5   :  { %v3642_v13 = vmul.f32 %v6650_v24, %v6650_v24  ;;  %v3660_v54 = vmul.f32 %v6650_v24, %v3595_v36 }
0x15a7   :  { %3643 = vadd.xlane.f32.xlu0 %v3642_v13 }
0x15aa   :  { %3661 = vadd.xlane.f32.xlu2 %v3660_v54 }
0x15f3   :  { %v3314_v11 = vpop.xlane.xlu0 %3313 }
0x15f4   :  { %v3315_v40 = vsub.f32 %v6506_v52, %v3314_v11 }
0x15f6   :  { %v3316_v62 = vmul.f32 %v3315_v40, %v6525_v46 }
0x15f8   :  { %v3317_v23 = vsel %vm3248_vm12, %v3316_v62, 0.0 }
0x15f9   :  { %v3318_v25 = vadd.f32 %v3317_v23, %v3232_v42 }
0x15fb   :  { %v3398_v7 = vmul.f32 %v6534_v17, %v3318_v25 }
0x15fd   :  { %3399 = vadd.xlane.f32.xlu1 %v3398_v7 }
0x160a   :  { %v3531_v58 = vpop.xlane.xlu1 %3530 }
0x160b   :  { %v3532_v60 = vsub.f32 %v6659_v38, %v3531_v58 }
0x160d   :  { %v3533_v27 = vmul.f32 %v3532_v60, %v6610_v21 }
0x160f   :  { %v3534_v28 = vsel %vm3491_vm15, %v3533_v27, 0.0 }
0x1610   :  { %v3535_v8 = vadd.f32 %v3534_v28, %v3462_v18  ;;  %v3714_v28 = vld [vmem:[#allocation0 + $0x24] ss:$0 sm:$0xff] }
0x1612   :  { %v3602_v34 = vmul.f32 %v6619_v49, %v3535_v8 }
0x1614   :  { %3603 = vadd.xlane.f32.xlu0 %v3602_v34 }
0x1615   :  { %v3155_v3 = vpop.xlane.xlu2 %3154 }
0x1616   :  { %v3156_v5 = vsub.f32 %v6579_v12, %v3155_v3 }
0x1618   :  { %v3157_v42 = vmul.f32 %v3156_v5, %v6453_v29 }
0x161a   :  { %v3158_v44 = vsel %vm3076_vm11, %v3157_v42, 0.0  ;;  %v3644_v63 = vpop.xlane.xlu0 %3643 }
0x161b   :  { %v3159_v1 = vadd.f32 %v3158_v44, %v3073_v55  ;;  %v3645_v51 = vsub.f32 %v3641_v43, %v3644_v63 }
0x161d   :  { %5264 = vrsqrt.f32 %v3645_v51  ;;  %v3239_v41 = vmul.f32 %v6468_v50, %v3159_v1  ;;  %v3662_v56 = vpop.xlane.xlu2 %3661  ;;  %vm3652_vm6 = vweird.f32 %v3645_v51 }
0x161e   :  { %v3663_v29 = vsub.f32 %v6607_v30, %v3662_v56 }
0x161f   :  { %3240 = vadd.xlane.f32.xlu1 %v3239_v41 }
0x1623   :  { %v5265_v9 = vpop.eup %5264 }
0x1624   :  { %v3647_v15 = vmul.f32 %v5265_v9, %v3645_v51  ;;  %vm3653_vm2 = vweird.f32 %v5265_v9 }
0x1625   :  { %vm3654_vm11 = vmor %vm3652_vm6, %vm3653_vm2 }
0x1626   :  { %v3648_v48 = vmul.f32 %v5265_v9, %v3647_v15 }
0x1628   :  { %v3649_v35 = vmul.f32 0.5, %v3648_v48 }
0x162a   :  { %v3650_v4 = vsub.f32 1.5, %v3649_v35 }
0x162c   :  { %v3651_v18 = vmul.f32 %v5265_v9, %v3650_v4 }
0x162e   :  { %v6672_v37 = vsel %vm3654_vm11, %v5265_v9, %v3651_v18  ;;  %vm3783_vm11 = vcmask 310568  }
0x162f   :  { %v3664_v50 = vmul.f32 %v3663_v29, %v6672_v37 }
0x1631   :  { %v3667_v2 = vsel %vm3666_vm10, %v3664_v50, 0.0 }
0x1632   :  { %v3668_v14 = vadd.f32 %v3667_v2, %v3595_v36 }
0x1634   :  { %3670 = vst [vmem:[#allocation1 + $0x20] sm:$0xff] %v3668_v14 }
0x163b   :  { %v6675_v57 = vld [vmem:[#allocation1 + $0x24] ss:$0 sm:$0xff] }
0x163c   :  { %v3715_v39 = vmul.f32 %v6675_v57, %v6675_v57  ;;  %v3733_v19 = vmul.f32 %v6675_v57, %v3668_v14 }
0x163e   :  { %3716 = vadd.xlane.f32.xlu0 %v3715_v39 }
0x1646   :  { %3734 = vadd.xlane.f32.xlu0 %v3733_v19 }
0x1670   :  { %v3400_v31 = vpop.xlane.xlu1 %3399 }
0x1671   :  { %v3401_v47 = vsub.f32 %v6506_v52, %v3400_v31 }
0x1673   :  { %v3402_v20 = vmul.f32 %v3401_v47, %v6562_v59 }
0x1675   :  { %v3403_v32 = vsel %vm3334_vm4, %v3402_v20, 0.0 }
0x1676   :  { %v3404_v55 = vadd.f32 %v3403_v32, %v3318_v25 }
0x1678   :  { %v3469_v36 = vmul.f32 %v6566_v53, %v3404_v55 }
0x167a   :  { %3470 = vadd.xlane.f32.xlu2 %v3469_v36 }
0x1687   :  { %v3604_v33 = vpop.xlane.xlu0 %3603 }
0x1688   :  { %v3605_v13 = vsub.f32 %v6659_v38, %v3604_v33 }
0x168a   :  { %v3606_v54 = vmul.f32 %v3605_v13, %v6643_v6 }
0x168c   :  { %v3607_v11 = vsel %vm3564_vm14, %v3606_v54, 0.0 }
0x168d   :  { %v3608_v40 = vadd.f32 %v3607_v11, %v3535_v8 }
0x168f   :  { %v3675_v62 = vmul.f32 %v6650_v24, %v3608_v40 }
0x1691   :  { %3676 = vadd.xlane.f32.xlu1 %v3675_v62 }
0x1692   :  { %v3241_v23 = vpop.xlane.xlu1 %3240 }
0x1693   :  { %v3242_v7 = vsub.f32 %v6579_v12, %v3241_v23 }
0x1695   :  { %v3243_v58 = vmul.f32 %v3242_v7, %v6495_v0 }
0x1697   :  { %v3244_v25 = vsel %vm3162_vm0, %v3243_v58, 0.0  ;;  %vm7148_vm0 = vcmask 1047556   ;;  %v3787_v58 = vld [vmem:[#allocation0 + $0x25] ss:$0 sm:$0xff] }
0x1698   :  { %v3245_v60 = vadd.f32 %v3244_v25, %v3159_v1  ;;  %vm3739_vm6 = vmand %vm3710_vm13, %vm7148_vm0  ;;  %vm3856_vm0 = vcmask 318768  }
0x169a   :  { %v3325_v27 = vmul.f32 %v6501_v22, %v3245_v60 }
0x169c   :  { %3326 = vadd.xlane.f32.xlu2 %v3325_v27 }
0x16b1   :  { %v3717_v34 = vpop.xlane.xlu0 %3716 }
0x16b2   :  { %v3718_v3 = vsub.f32 %v3714_v28, %v3717_v34 }
0x16b4   :  { %5266 = vrsqrt.f32 %v3718_v3  ;;  %vm3725_vm7 = vweird.f32 %v3718_v3 }
0x16b9   :  { %v3735_v63 = vpop.xlane.xlu0 %3734 }
0x16ba   :  { %v5267_v5 = vpop.eup %5266  ;;  %v3736_v0 = vsub.f32 %v6607_v30, %v3735_v63 }
0x16bb   :  { %v3720_v8 = vmul.f32 %v5267_v5, %v3718_v3  ;;  %vm3726_vm1 = vweird.f32 %v5267_v5 }
0x16bc   :  { %vm3727_vm2 = vmor %vm3725_vm7, %vm3726_vm1  ;;  %vm7149_vm1 = vcmask 1047557  }
0x16bd   :  { %v3721_v42 = vmul.f32 %v5267_v5, %v3720_v8  ;;  %vm3812_vm7 = vmand %vm3783_vm11, %vm7149_vm1 }
0x16bf   :  { %v3722_v43 = vmul.f32 0.5, %v3721_v42 }
0x16c1   :  { %v3723_v44 = vsub.f32 1.5, %v3722_v43 }
0x16c3   :  { %v3724_v51 = vmul.f32 %v5267_v5, %v3723_v44 }
0x16c5   :  { %v6693_v1 = vsel %vm3727_vm2, %v5267_v5, %v3724_v51 }
0x16c6   :  { %v3737_v22 = vmul.f32 %v3736_v0, %v6693_v1 }
0x16c8   :  { %v3740_v41 = vsel %vm3739_vm6, %v3737_v22, 0.0 }
0x16c9   :  { %v6698_v9 = vadd.f32 %v3740_v41, %v3668_v14 }
0x16cb   :  { %3743 = vst [vmem:[#allocation1 + $0x20] sm:$0xff] %v6698_v9 }
0x16d2   :  { %v6705_v29 = vld [vmem:[#allocation1 + $0x25] ss:$0 sm:$0xff] }
0x16d3   :  { %v3788_v50 = vmul.f32 %v6705_v29, %v6705_v29  ;;  %v3806_v33 = vmul.f32 %v6705_v29, %v6698_v9 }
0x16ed   :  { %v3471_v15 = vpop.xlane.xlu2 %3470 }
0x16ee   :  { %v3472_v48 = vsub.f32 %v6506_v52, %v3471_v15 }
0x16f0   :  { %v3473_v35 = vmul.f32 %v3472_v48, %v6586_v16 }
0x16f2   :  { %v3474_v56 = vsel %vm3420_vm3, %v3473_v35, 0.0 }
0x16f3   :  { %v3475_v4 = vadd.f32 %v3474_v56, %v3404_v55 }
0x16f5   :  { %v3542_v18 = vmul.f32 %v6590_v61, %v3475_v4 }
0x16f7   :  { %3543 = vadd.xlane.f32.xlu1 %v3542_v18 }
0x16ff   :  { %3789 = vadd.xlane.f32.xlu1 %v3788_v50 }
0x1704   :  { %v3677_v2 = vpop.xlane.xlu1 %3676 }
0x1705   :  { %v3678_v14 = vsub.f32 %v6659_v38, %v3677_v2 }
0x1707   :  { %v3679_v39 = vmul.f32 %v3678_v14, %v6672_v37 }
0x1709   :  { %v3680_v19 = vsel %vm3637_vm8, %v3679_v39, 0.0 }
0x170a   :  { %v3681_v31 = vadd.f32 %v3680_v19, %v3608_v40 }
0x170c   :  { %v3748_v47 = vmul.f32 %v6675_v57, %v3681_v31 }
0x170e   :  { %3749 = vadd.xlane.f32.xlu2 %v3748_v47 }
0x170f   :  { %v3327_v20 = vpop.xlane.xlu2 %3326 }
0x1710   :  { %v3328_v32 = vsub.f32 %v6579_v12, %v3327_v20 }
0x1712   :  { %v3329_v55 = vmul.f32 %v3328_v32, %v6525_v46 }
0x1714   :  { %v3330_v36 = vsel %vm3248_vm12, %v3329_v55, 0.0 }
0x1715   :  { %v3331_v13 = vadd.f32 %v3330_v36, %v3245_v60 }
0x1716   :  { %3807 = vadd.xlane.f32.xlu2 %v3806_v33 }
0x1717   :  { %v3411_v54 = vmul.f32 %v6534_v17, %v3331_v13 }
0x1719   :  { %3412 = vadd.xlane.f32.xlu0 %v3411_v54 }
0x176a   :  { %v3544_v11 = vpop.xlane.xlu1 %3543 }
0x176b   :  { %v3545_v40 = vsub.f32 %v6506_v52, %v3544_v11 }
0x176d   :  { %v3546_v62 = vmul.f32 %v3545_v40, %v6610_v21 }
0x176f   :  { %v3547_v23 = vsel %vm3491_vm15, %v3546_v62, 0.0 }
0x1770   :  { %v3548_v7 = vadd.f32 %v3547_v23, %v3475_v4 }
0x1772   :  { %v3790_v46 = vpop.xlane.xlu1 %3789  ;;  %v3615_v25 = vmul.f32 %v6619_v49, %v3548_v7 }
0x1773   :  { %v3791_v27 = vsub.f32 %v3787_v58, %v3790_v46 }
0x1774   :  { %3616 = vadd.xlane.f32.xlu0 %v3615_v25 }
0x1775   :  { %5268 = vrsqrt.f32 %v3791_v27  ;;  %vm3798_vm5 = vweird.f32 %v3791_v27 }
0x177b   :  { %v5269_v60 = vpop.eup %5268 }
0x177c   :  { %v3793_v28 = vmul.f32 %v5269_v60, %v3791_v27  ;;  %vm3799_vm12 = vweird.f32 %v5269_v60 }
0x177d   :  { %vm3800_vm10 = vmor %vm3798_vm5, %vm3799_vm12  ;;  %vm7150_vm12 = vcmask 1047558  }
0x177e   :  { %v3794_v34 = vmul.f32 %v5269_v60, %v3793_v28  ;;  %vm3885_vm5 = vmand %vm3856_vm0, %vm7150_vm12  ;;  %vm4060_vm12 = vcmask 343368  }
0x1780   :  { %v3795_v17 = vmul.f32 0.5, %v3794_v34 }
0x1781   :  { %v3750_v3 = vpop.xlane.xlu2 %3749 }
0x1782   :  { %v3751_v5 = vsub.f32 %v6659_v38, %v3750_v3  ;;  %v3796_v52 = vsub.f32 1.5, %v3795_v17 }
0x1784   :  { %v3752_v8 = vmul.f32 %v3751_v5, %v6693_v1  ;;  %v3797_v44 = vmul.f32 %v5269_v60, %v3796_v52 }
0x1786   :  { %v3753_v42 = vsel %vm3710_vm13, %v3752_v8, 0.0  ;;  %v6730_v22 = vsel %vm3800_vm10, %v5269_v60, %v3797_v44 }
0x1787   :  { %v3754_v43 = vadd.f32 %v3753_v42, %v3681_v31  ;;  %v6743_v31 = vld [vmem:[#allocation0 + $0x30] sm:$0xff] }
0x1789   :  { %v3808_v63 = vpop.xlane.xlu2 %3807  ;;  %v3821_v51 = vmul.f32 %v6705_v29, %v3754_v43 }
0x178a   :  { %v3809_v0 = vsub.f32 %v6607_v30, %v3808_v63 }
0x178b   :  { %3822 = vadd.xlane.f32.xlu1 %v3821_v51 }
0x178c   :  { %v3810_v41 = vmul.f32 %v3809_v0, %v6730_v22  ;;  %v3413_v15 = vpop.xlane.xlu0 %3412 }
0x178d   :  { %v3414_v48 = vsub.f32 %v6579_v12, %v3413_v15 }
0x178e   :  { %v3813_v35 = vsel %vm3812_vm7, %v3810_v41, 0.0  ;;  %vm3929_vm7 = vcmask 326968  }
0x178f   :  { %v3814_v56 = vadd.f32 %v3813_v35, %v6698_v9  ;;  %v3415_v4 = vmul.f32 %v3414_v48, %v6562_v59 }
0x1791   :  { %3816 = vst [vmem:[#allocation1 + $0x20] sm:$0xff] %v3814_v56  ;;  %v3416_v18 = vsel %vm3334_vm4, %v3415_v4, 0.0 }
0x1792   :  { %v3417_v50 = vadd.f32 %v3416_v18, %v3331_v13 }
0x1794   :  { %v3482_v2 = vmul.f32 %v6566_v53, %v3417_v50 }
0x1796   :  { %3483 = vadd.xlane.f32.xlu2 %v3482_v2 }
0x1798   :  { %v6738_v14 = vld [vmem:[#allocation1 + $0x26] ss:$0 sm:$0xff] }
0x1799   :  { %v3861_v39 = vmul.f32 %v6738_v14, %v6738_v14  ;;  %v3879_v19 = vmul.f32 %v6738_v14, %v3814_v56 }
0x179b   :  { %3862 = vadd.xlane.f32.xlu0 %v3861_v39 }
0x179e   :  { %3880 = vadd.xlane.f32.xlu2 %v3879_v19 }
0x17e7   :  { %v3617_v9 = vpop.xlane.xlu0 %3616 }
0x17e8   :  { %v3618_v47 = vsub.f32 %v6743_v31, %v3617_v9 }
0x17ea   :  { %v3619_v20 = vmul.f32 %v3618_v47, %v6643_v6 }
0x17ec   :  { %v3620_v32 = vsel %vm3564_vm14, %v3619_v20, 0.0 }
0x17ed   :  { %v3621_v53 = vadd.f32 %v3620_v32, %v3548_v7  ;;  %v3860_v7 = vld [vmem:[#allocation0 + $0x26] ss:$0 sm:$0xff] }
0x17ef   :  { %v3688_v55 = vmul.f32 %v6650_v24, %v3621_v53 }
0x17f1   :  { %3689 = vadd.xlane.f32.xlu1 %v3688_v55 }
0x17fe   :  { %v3823_v36 = vpop.xlane.xlu1 %3822 }
0x17ff   :  { %v3824_v33 = vsub.f32 %v6659_v38, %v3823_v36  ;;  %v3933_v36 = vld [vmem:[#allocation0 + $0x27] ss:$0 sm:$0xff] }
0x1801   :  { %v3825_v13 = vmul.f32 %v3824_v33, %v6730_v22 }
0x1803   :  { %v3826_v54 = vsel %vm3783_vm11, %v3825_v13, 0.0 }
0x1804   :  { %v3827_v11 = vadd.f32 %v3826_v54, %v3754_v43 }
0x1806   :  { %v3894_v40 = vmul.f32 %v6738_v14, %v3827_v11 }
0x1808   :  { %3895 = vadd.xlane.f32.xlu0 %v3894_v40 }
0x1809   :  { %v3484_v62 = vpop.xlane.xlu2 %3483 }
0x180a   :  { %v3485_v23 = vsub.f32 %v6579_v12, %v3484_v62 }
0x180c   :  { %v3486_v58 = vmul.f32 %v3485_v23, %v6586_v16 }
0x180e   :  { %v3487_v46 = vsel %vm3420_vm3, %v3486_v58, 0.0  ;;  %v3863_v25 = vpop.xlane.xlu0 %3862 }
0x180f   :  { %v3488_v27 = vadd.f32 %v3487_v46, %v3417_v50  ;;  %v3864_v60 = vsub.f32 %v3860_v7, %v3863_v25 }
0x1811   :  { %5270 = vrsqrt.f32 %v3864_v60  ;;  %v3555_v28 = vmul.f32 %v6590_v61, %v3488_v27  ;;  %v3881_v52 = vpop.xlane.xlu2 %3880  ;;  %vm3871_vm6 = vweird.f32 %v3864_v60 }
0x1812   :  { %v3882_v16 = vsub.f32 %v6607_v30, %v3881_v52 }
0x1813   :  { %3556 = vadd.xlane.f32.xlu1 %v3555_v28 }
0x1817   :  { %v5271_v34 = vpop.eup %5270 }
0x1818   :  { %v3866_v17 = vmul.f32 %v5271_v34, %v3864_v60  ;;  %vm3872_vm2 = vweird.f32 %v5271_v34 }
0x1819   :  { %vm3873_vm3 = vmor %vm3871_vm6, %vm3872_vm2 }
0x181a   :  { %v3867_v3 = vmul.f32 %v5271_v34, %v3866_v17 }
0x181c   :  { %v3868_v5 = vmul.f32 0.5, %v3867_v3 }
0x181e   :  { %v3869_v8 = vsub.f32 1.5, %v3868_v5 }
0x1820   :  { %v3870_v42 = vmul.f32 %v5271_v34, %v3869_v8 }
0x1822   :  { %v6760_v43 = vsel %vm3873_vm3, %v5271_v34, %v3870_v42  ;;  %vm4002_vm3 = vcmask 335168  }
0x1823   :  { %v3883_v61 = vmul.f32 %v3882_v16, %v6760_v43 }
0x1825   :  { %v3886_v44 = vsel %vm3885_vm5, %v3883_v61, 0.0 }
0x1826   :  { %v3887_v63 = vadd.f32 %v3886_v44, %v3814_v56 }
0x1828   :  { %3889 = vst [vmem:[#allocation1 + $0x20] sm:$0xff] %v3887_v63 }
0x182f   :  { %v6763_v51 = vld [vmem:[#allocation1 + $0x27] ss:$0 sm:$0xff] }
0x1830   :  { %v3934_v0 = vmul.f32 %v6763_v51, %v6763_v51 }
0x1832   :  { %3935 = vadd.xlane.f32.xlu0 %v3934_v0 }
0x1864   :  { %v3690_v41 = vpop.xlane.xlu1 %3689 }
0x1865   :  { %v3691_v30 = vsub.f32 %v6743_v31, %v3690_v41 }
0x1867   :  { %v3692_v15 = vmul.f32 %v3691_v30, %v6672_v37 }
0x1869   :  { %v3693_v48 = vsel %vm3637_vm8, %v3692_v15, 0.0 }
0x186a   :  { %v3694_v35 = vadd.f32 %v3693_v48, %v3621_v53 }
0x186c   :  { %v3761_v4 = vmul.f32 %v6675_v57, %v3694_v35 }
0x186e   :  { %3762 = vadd.xlane.f32.xlu2 %v3761_v4  ;;  %v4006_v4 = vld [vmem:[#allocation0 + $0x28] ss:$0 sm:$0xff] }
0x187b   :  { %v3896_v18 = vpop.xlane.xlu0 %3895 }
0x187c   :  { %v3897_v56 = vsub.f32 %v6659_v38, %v3896_v18 }
0x187e   :  { %v3898_v50 = vmul.f32 %v3897_v56, %v6760_v43 }
0x1880   :  { %v3899_v2 = vsel %vm3856_vm0, %v3898_v50, 0.0  ;;  %v6801_v50 = vld [vmem:[#allocation0 + $0x38] sm:$0xff] }
0x1881   :  { %v3900_v39 = vadd.f32 %v3899_v2, %v3827_v11 }
0x1883   :  { %v3967_v19 = vmul.f32 %v6763_v51, %v3900_v39 }
0x1885   :  { %3968 = vadd.xlane.f32.xlu1 %v3967_v19 }
0x1886   :  { %v3557_v9 = vpop.xlane.xlu1 %3556 }
0x1887   :  { %v3558_v47 = vsub.f32 %v6579_v12, %v3557_v9 }
0x1889   :  { %v3559_v20 = vmul.f32 %v3558_v47, %v6610_v21 }
0x188b   :  { %v3560_v32 = vsel %vm3491_vm15, %v3559_v20, 0.0 }
0x188c   :  { %v3561_v53 = vadd.f32 %v3560_v32, %v3488_v27 }
0x188e   :  { %v3628_v55 = vmul.f32 %v6619_v49, %v3561_v53 }
0x1890   :  { %3629 = vadd.xlane.f32.xlu2 %v3628_v55 }
0x18a5   :  { %v3936_v33 = vpop.xlane.xlu0 %3935 }
0x18a6   :  { %v3937_v13 = vsub.f32 %v3933_v36, %v3936_v33 }
0x18a8   :  { %5272 = vrsqrt.f32 %v3937_v13  ;;  %vm3944_vm10 = vweird.f32 %v3937_v13 }
0x18ae   :  { %v5273_v40 = vpop.eup %5272 }
0x18af   :  { %v3939_v23 = vmul.f32 %v5273_v40, %v3937_v13  ;;  %vm3945_vm15 = vweird.f32 %v5273_v40 }
0x18b0   :  { %vm3946_vm1 = vmor %vm3944_vm10, %vm3945_vm15  ;;  %vm7151_vm15 = vcmask 1047553  }
0x18b1   :  { %v3940_v46 = vmul.f32 %v5273_v40, %v3939_v23  ;;  %vm4089_vm10 = vmand %vm4060_vm12, %vm7151_vm15 }
0x18b3   :  { %v3941_v49 = vmul.f32 0.5, %v3940_v46 }
0x18b5   :  { %v3942_v25 = vsub.f32 1.5, %v3941_v49 }
0x18b7   :  { %v3943_v27 = vmul.f32 %v5273_v40, %v3942_v25 }
0x18b9   :  { %v6784_v34 = vsel %vm3946_vm1, %v5273_v40, %v3943_v27 }
0x18e1   :  { %v3763_v54 = vpop.xlane.xlu2 %3762 }
0x18e2   :  { %v3764_v11 = vsub.f32 %v6743_v31, %v3763_v54 }
0x18e4   :  { %v3765_v62 = vmul.f32 %v3764_v11, %v6693_v1 }
0x18e6   :  { %v3766_v58 = vsel %vm3710_vm13, %v3765_v62, 0.0 }
0x18e7   :  { %v3767_v21 = vadd.f32 %v3766_v58, %v3694_v35 }
0x18e9   :  { %v3834_v7 = vmul.f32 %v6705_v29, %v3767_v21 }
0x18eb   :  { %3835 = vadd.xlane.f32.xlu0 %v3834_v7 }
0x18f8   :  { %v3969_v60 = vpop.xlane.xlu1 %3968 }
0x18f9   :  { %v3970_v28 = vsub.f32 %v6659_v38, %v3969_v60 }
0x18fb   :  { %v3971_v17 = vmul.f32 %v3970_v28, %v6784_v34 }
0x18fd   :  { %v3972_v3 = vsel %vm3929_vm7, %v3971_v17, 0.0 }
0x18fe   :  { %v3973_v5 = vadd.f32 %v3972_v3, %v3900_v39 }
0x1900   :  { %3975 = vst [vmem:[#allocation1 + $0x28] sm:$0xff] %v3973_v5 }
0x1903   :  { %v3630_v52 = vpop.xlane.xlu2 %3629 }
0x1904   :  { %v3631_v8 = vsub.f32 %v6579_v12, %v3630_v52 }
0x1906   :  { %v3632_v42 = vmul.f32 %v3631_v8, %v6643_v6  ;;  %v4064_v8 = vld [vmem:[#allocation0 + $0x29] ss:$0 sm:$0xff] }
0x1907   :  { %v6790_v16 = vld [vmem:[#allocation1 + $0x28] ss:$0 sm:$0xff] }
0x1908   :  { %v3633_v61 = vsel %vm3564_vm14, %v3632_v42, 0.0  ;;  %v4025_v44 = vmul.f32 %v6790_v16, %v3973_v5  ;;  %v4007_v63 = vmul.f32 %v6790_v16, %v6790_v16 }
0x1909   :  { %v3634_v0 = vadd.f32 %v3633_v61, %v3561_v53 }
0x190a   :  { %4026 = vadd.xlane.f32.xlu0 %v4025_v44  ;;  %4008 = vadd.xlane.f32.xlu1 %v4007_v63 }
0x190b   :  { %v3701_v41 = vmul.f32 %v6650_v24, %v3634_v0 }
0x190d   :  { %3702 = vadd.xlane.f32.xlu2 %v3701_v41 }
0x195e   :  { %v3836_v30 = vpop.xlane.xlu0 %3835 }
0x195f   :  { %v3837_v12 = vsub.f32 %v6743_v31, %v3836_v30 }
0x1961   :  { %v3838_v6 = vmul.f32 %v3837_v12, %v6730_v22 }
0x1963   :  { %v3839_v15 = vsel %vm3783_vm11, %v3838_v6, 0.0 }
0x1964   :  { %v3840_v48 = vadd.f32 %v3839_v15, %v3767_v21 }
0x1966   :  { %v3907_v35 = vmul.f32 %v6738_v14, %v3840_v48 }
0x1968   :  { %3908 = vadd.xlane.f32.xlu1 %v3907_v35 }
0x197d   :  { %v4009_v18 = vpop.xlane.xlu1 %4008  ;;  %v4027_v36 = vpop.xlane.xlu0 %4026 }
0x197e   :  { %v4010_v56 = vsub.f32 %v4006_v4, %v4009_v18  ;;  %v4028_v54 = vsub.f32 %v6659_v38, %v4027_v36 }
0x1980   :  { %5274 = vrsqrt.f32 %v4010_v56  ;;  %v3703_v2 = vpop.xlane.xlu2 %3702  ;;  %vm4017_vm2 = vweird.f32 %v4010_v56 }
0x1981   :  { %v3704_v24 = vsub.f32 %v6801_v50, %v3703_v2 }
0x1983   :  { %v3705_v39 = vmul.f32 %v3704_v24, %v6672_v37 }
0x1985   :  { %v3706_v19 = vsel %vm3637_vm8, %v3705_v39, 0.0 }
0x1986   :  { %v5275_v9 = vpop.eup %5274  ;;  %v3707_v47 = vadd.f32 %v3706_v19, %v3634_v0 }
0x1987   :  { %v4012_v20 = vmul.f32 %v5275_v9, %v4010_v56  ;;  %vm4018_vm14 = vweird.f32 %v5275_v9 }
0x1988   :  { %v3774_v32 = vmul.f32 %v6675_v57, %v3707_v47  ;;  %vm4019_vm6 = vmor %vm4017_vm2, %vm4018_vm14  ;;  %vm4120_vm14 = vcmask 351568  }
0x1989   :  { %v4013_v53 = vmul.f32 %v5275_v9, %v4012_v20 }
0x198a   :  { %3775 = vadd.xlane.f32.xlu2 %v3774_v32 }
0x198b   :  { %v4014_v55 = vmul.f32 0.5, %v4013_v53 }
0x198d   :  { %v4015_v33 = vsub.f32 1.5, %v4014_v55 }
0x198f   :  { %v4016_v13 = vmul.f32 %v5275_v9, %v4015_v33 }
0x1991   :  { %v6808_v37 = vsel %vm4019_vm6, %v5275_v9, %v4016_v13  ;;  %v4124_v13 = vld [vmem:[#allocation0 + $0x2a] ss:$0 sm:$0xff] }
0x1992   :  { %v4029_v11 = vmul.f32 %v4028_v54, %v6808_v37 }
0x1994   :  { %v4030_v40 = vsel %vm4002_vm3, %v4029_v11, 0.0 }
0x1995   :  { %v4031_v62 = vadd.f32 %v4030_v40, %v3973_v5 }
0x1997   :  { %4033 = vst [vmem:[#allocation1 + $0x28] sm:$0xff] %v4031_v62 }
0x199e   :  { %v6812_v57 = vld [vmem:[#allocation1 + $0x29] ss:$0 sm:$0xff] }
0x199f   :  { %v4083_v23 = vmul.f32 %v6812_v57, %v4031_v62  ;;  %v4065_v58 = vmul.f32 %v6812_v57, %v6812_v57 }
0x19a1   :  { %4084 = vadd.xlane.f32.xlu2 %v4083_v23  ;;  %4066 = vadd.xlane.f32.xlu0 %v4065_v58 }
0x19db   :  { %v3909_v21 = vpop.xlane.xlu1 %3908 }
0x19dc   :  { %v3910_v7 = vsub.f32 %v6743_v31, %v3909_v21 }
0x19de   :  { %v3911_v46 = vmul.f32 %v3910_v7, %v6760_v43 }
0x19e0   :  { %v3912_v49 = vsel %vm3856_vm0, %v3911_v46, 0.0 }
0x19e1   :  { %v3913_v25 = vadd.f32 %v3912_v49, %v3840_v48 }
0x19e3   :  { %v3980_v27 = vmul.f32 %v6763_v51, %v3913_v25 }
0x19e5   :  { %3981 = vadd.xlane.f32.xlu1 %v3980_v27 }
0x19fd   :  { %v3776_v60 = vpop.xlane.xlu2 %3775 }
0x19fe   :  { %v3777_v28 = vsub.f32 %v6801_v50, %v3776_v60 }
0x1a00   :  { %v3778_v17 = vmul.f32 %v3777_v28, %v6693_v1 }
0x1a02   :  { %v3779_v3 = vsel %vm3710_vm13, %v3778_v17, 0.0 }
0x1a03   :  { %v3780_v5 = vadd.f32 %v3779_v3, %v3707_v47 }
0x1a05   :  { %v3847_v52 = vmul.f32 %v6705_v29, %v3780_v5 }
0x1a07   :  { %3848 = vadd.xlane.f32.xlu0 %v3847_v52 }
0x1a14   :  { %v4067_v42 = vpop.xlane.xlu0 %4066  ;;  %v4085_v30 = vpop.xlane.xlu2 %4084 }
0x1a15   :  { %v4068_v61 = vsub.f32 %v4064_v8, %v4067_v42  ;;  %v4086_v1 = vsub.f32 %v6659_v38, %v4085_v30 }
0x1a17   :  { %5276 = vrsqrt.f32 %v4068_v61  ;;  %vm4075_vm5 = vweird.f32 %v4068_v61 }
0x1a1d   :  { %v5277_v44 = vpop.eup %5276 }
0x1a1e   :  { %v4070_v63 = vmul.f32 %v5277_v44, %v4068_v61  ;;  %vm4076_vm8 = vweird.f32 %v5277_v44 }
0x1a1f   :  { %vm4077_vm13 = vmor %vm4075_vm5, %vm4076_vm8  ;;  %vm4180_vm5 = vcmask 359768  }
0x1a20   :  { %v4071_v0 = vmul.f32 %v5277_v44, %v4070_v63 }
0x1a22   :  { %v4072_v41 = vmul.f32 0.5, %v4071_v0 }
0x1a24   :  { %v4073_v12 = vsub.f32 1.5, %v4072_v41 }
0x1a26   :  { %v4074_v6 = vmul.f32 %v5277_v44, %v4073_v12  ;;  %v4184_v12 = vld [vmem:[#allocation0 + $0x2b] ss:$0 sm:$0xff] }
0x1a28   :  { %v6828_v29 = vsel %vm4077_vm13, %v5277_v44, %v4074_v6 }
0x1a29   :  { %v4087_v15 = vmul.f32 %v4086_v1, %v6828_v29 }
0x1a2b   :  { %v4090_v48 = vsel %vm4089_vm10, %v4087_v15, 0.0  ;;  %vm7153_vm10 = vcmask 1047555  }
0x1a2c   :  { %v4091_v35 = vadd.f32 %v4090_v48, %v4031_v62 }
0x1a2e   :  { %4093 = vst [vmem:[#allocation1 + $0x28] sm:$0xff] %v4091_v35 }
0x1a35   :  { %v6831_v4 = vld [vmem:[#allocation1 + $0x2a] ss:$0 sm:$0xff] }
0x1a36   :  { %v4143_v18 = vmul.f32 %v6831_v4, %v4091_v35  ;;  %v4125_v56 = vmul.f32 %v6831_v4, %v6831_v4 }
0x1a38   :  { %4144 = vadd.xlane.f32.xlu0 %v4143_v18  ;;  %4126 = vadd.xlane.f32.xlu2 %v4125_v56 }
0x1a58   :  { %v3982_v2 = vpop.xlane.xlu1 %3981 }
0x1a59   :  { %v3983_v24 = vsub.f32 %v6743_v31, %v3982_v2 }
0x1a5b   :  { %v3984_v39 = vmul.f32 %v3983_v24, %v6784_v34 }
0x1a5d   :  { %v3985_v19 = vsel %vm3929_vm7, %v3984_v39, 0.0 }
0x1a5e   :  { %v3986_v9 = vadd.f32 %v3985_v19, %v3913_v25 }
0x1a60   :  { %v4038_v47 = vmul.f32 %v6790_v16, %v3986_v9 }
0x1a62   :  { %4039 = vadd.xlane.f32.xlu1 %v4038_v47 }
0x1a7a   :  { %v3849_v20 = vpop.xlane.xlu0 %3848 }
0x1a7b   :  { %v3850_v32 = vsub.f32 %v6801_v50, %v3849_v20 }
0x1a7d   :  { %v3851_v53 = vmul.f32 %v3850_v32, %v6730_v22 }
0x1a7f   :  { %v3852_v55 = vsel %vm3783_vm11, %v3851_v53, 0.0  ;;  %vm7152_vm11 = vcmask 1047554  }
0x1a80   :  { %v3853_v36 = vadd.f32 %v3852_v55, %v3780_v5  ;;  %vm4149_vm8 = vmand %vm4120_vm14, %vm7152_vm11 }
0x1a82   :  { %v3920_v33 = vmul.f32 %v6738_v14, %v3853_v36 }
0x1a84   :  { %3921 = vadd.xlane.f32.xlu1 %v3920_v33 }
0x1aab   :  { %v4127_v54 = vpop.xlane.xlu2 %4126  ;;  %v4145_v7 = vpop.xlane.xlu0 %4144 }
0x1aac   :  { %v4128_v11 = vsub.f32 %v4124_v13, %v4127_v54  ;;  %v4146_v46 = vsub.f32 %v6659_v38, %v4145_v7 }
0x1aae   :  { %5278 = vrsqrt.f32 %v4128_v11  ;;  %vm4135_vm2 = vweird.f32 %v4128_v11 }
0x1ab4   :  { %v5279_v40 = vpop.eup %5278 }
0x1ab5   :  { %v4130_v62 = vmul.f32 %v5279_v40, %v4128_v11  ;;  %vm4136_vm1 = vweird.f32 %v5279_v40 }
0x1ab6   :  { %vm4137_vm6 = vmor %vm4135_vm2, %vm4136_vm1 }
0x1ab7   :  { %v4131_v23 = vmul.f32 %v5279_v40, %v4130_v62  ;;  %vm4209_vm1 = vmand %vm4180_vm5, %vm7153_vm10 }
0x1ab9   :  { %v4132_v58 = vmul.f32 0.5, %v4131_v23 }
0x1abb   :  { %v4133_v21 = vsub.f32 1.5, %v4132_v58 }
0x1abd   :  { %v4134_v22 = vmul.f32 %v5279_v40, %v4133_v21 }
0x1abf   :  { %v6845_v49 = vsel %vm4137_vm6, %v5279_v40, %v4134_v22  ;;  %vm4240_vm6 = vcmask 367968  }
0x1ac0   :  { %v4147_v14 = vmul.f32 %v4146_v46, %v6845_v49 }
0x1ac2   :  { %v4150_v25 = vsel %vm4149_vm8, %v4147_v14, 0.0 }
0x1ac3   :  { %v4151_v27 = vadd.f32 %v4150_v25, %v4091_v35 }
0x1ac5   :  { %4153 = vst [vmem:[#allocation1 + $0x28] sm:$0xff] %v4151_v27 }
0x1acc   :  { %v6850_v60 = vld [vmem:[#allocation1 + $0x2b] ss:$0 sm:$0xff] }
0x1acd   :  { %v4185_v28 = vmul.f32 %v6850_v60, %v6850_v60  ;;  %v4203_v42 = vmul.f32 %v6850_v60, %v4151_v27 }
0x1acf   :  { %4186 = vadd.xlane.f32.xlu0 %v4185_v28 }
0x1ad5   :  { %v4040_v17 = vpop.xlane.xlu1 %4039 }
0x1ad6   :  { %v4041_v3 = vsub.f32 %v6743_v31, %v4040_v17  ;;  %v4244_v17 = vld [vmem:[#allocation0 + $0x2c] ss:$0 sm:$0xff] }
0x1ad8   :  { %v4042_v38 = vmul.f32 %v4041_v3, %v6808_v37 }
0x1ada   :  { %v4043_v5 = vsel %vm4002_vm3, %v4042_v38, 0.0 }
0x1adb   :  { %v4044_v52 = vadd.f32 %v4043_v5, %v3986_v9  ;;  %v6866_v9 = vld [vmem:[#allocation0 + $0x28] sm:$0xff] }
0x1add   :  { %v4098_v8 = vmul.f32 %v6812_v57, %v4044_v52 }
0x1adf   :  { %4099 = vadd.xlane.f32.xlu2 %v4098_v8 }
0x1ae7   :  { %4204 = vadd.xlane.f32.xlu2 %v4203_v42 }
0x1af7   :  { %v3922_v61 = vpop.xlane.xlu1 %3921 }
0x1af8   :  { %v3923_v44 = vsub.f32 %v6801_v50, %v3922_v61 }
0x1afa   :  { %v3924_v63 = vmul.f32 %v3923_v44, %v6760_v43 }
0x1afc   :  { %v3925_v0 = vsel %vm3856_vm0, %v3924_v63, 0.0 }
0x1afd   :  { %v3926_v41 = vadd.f32 %v3925_v0, %v3853_v36 }
0x1aff   :  { %v3993_v30 = vmul.f32 %v6763_v51, %v3926_v41 }
0x1b01   :  { %3994 = vadd.xlane.f32.xlu1 %v3993_v30 }
0x1b42   :  { %v4187_v6 = vpop.xlane.xlu0 %4186 }
0x1b43   :  { %v4188_v1 = vsub.f32 %v4184_v12, %v4187_v6 }
0x1b45   :  { %5280 = vrsqrt.f32 %v4188_v1  ;;  %vm4195_vm13 = vweird.f32 %v4188_v1 }
0x1b4b   :  { %v5281_v15 = vpop.eup %5280 }
0x1b4c   :  { %v4190_v48 = vmul.f32 %v5281_v15, %v4188_v1  ;;  %vm4196_vm0 = vweird.f32 %v5281_v15 }
0x1b4d   :  { %vm4197_vm15 = vmor %vm4195_vm13, %vm4196_vm0  ;;  %vm7154_vm0 = vcmask 1047556  }
0x1b4e   :  { %v4191_v35 = vmul.f32 %v5281_v15, %v4190_v48  ;;  %vm4269_vm13 = vmand %vm4240_vm6, %vm7154_vm0 }
0x1b50   :  { %v4192_v18 = vmul.f32 0.5, %v4191_v35 }
0x1b52   :  { %v4100_v56 = vpop.xlane.xlu2 %4099  ;;  %v4193_v24 = vsub.f32 1.5, %v4192_v18 }
0x1b53   :  { %v4101_v2 = vsub.f32 %v6743_v31, %v4100_v56 }
0x1b54   :  { %v4194_v51 = vmul.f32 %v5281_v15, %v4193_v24 }
0x1b55   :  { %v4102_v43 = vmul.f32 %v4101_v2, %v6828_v29 }
0x1b56   :  { %v6870_v53 = vsel %vm4197_vm15, %v5281_v15, %v4194_v51  ;;  %vm4300_vm15 = vcmask 376168  }
0x1b57   :  { %v4103_v39 = vsel %vm4060_vm12, %v4102_v43, 0.0 }
0x1b58   :  { %v4104_v19 = vadd.f32 %v4103_v39, %v4044_v52 }
0x1b5a   :  { %v4205_v47 = vpop.xlane.xlu2 %4204  ;;  %v4158_v20 = vmul.f32 %v6831_v4, %v4104_v19 }
0x1b5b   :  { %v4206_v32 = vsub.f32 %v6866_v9, %v4205_v47 }
0x1b5c   :  { %4159 = vadd.xlane.f32.xlu0 %v4158_v20 }
0x1b5d   :  { %v4207_v55 = vmul.f32 %v4206_v32, %v6870_v53 }
0x1b5f   :  { %v4210_v36 = vsel %vm4209_vm1, %v4207_v55, 0.0  ;;  %vm7155_vm1 = vcmask 1047557  }
0x1b60   :  { %v4211_v33 = vadd.f32 %v4210_v36, %v4151_v27 }
0x1b62   :  { %4213 = vst [vmem:[#allocation1 + $0x28] sm:$0xff] %v4211_v33 }
0x1b69   :  { %v6875_v13 = vld [vmem:[#allocation1 + $0x2c] ss:$0 sm:$0xff] }
0x1b6a   :  { %v4245_v54 = vmul.f32 %v6875_v13, %v6875_v13  ;;  %v4263_v7 = vmul.f32 %v6875_v13, %v4211_v33 }
0x1b6c   :  { %4246 = vadd.xlane.f32.xlu2 %v4245_v54  ;;  %v4304_v54 = vld [vmem:[#allocation0 + $0x2d] ss:$0 sm:$0xff] }
0x1b74   :  { %v3995_v11 = vpop.xlane.xlu1 %3994 }
0x1b75   :  { %v3996_v40 = vsub.f32 %v6801_v50, %v3995_v11 }
0x1b77   :  { %v3997_v62 = vmul.f32 %v3996_v40, %v6784_v34 }
0x1b79   :  { %v3998_v23 = vsel %vm3929_vm7, %v3997_v62, 0.0 }
0x1b7a   :  { %v3999_v58 = vadd.f32 %v3998_v23, %v3926_v41 }
0x1b7c   :  { %v4051_v21 = vmul.f32 %v6790_v16, %v3999_v58 }
0x1b7e   :  { %4052 = vadd.xlane.f32.xlu1 %v4051_v21 }
0x1b86   :  { %4264 = vadd.xlane.f32.xlu1 %v4263_v7 }
0x1bcf   :  { %v4160_v22 = vpop.xlane.xlu0 %4159 }
0x1bd0   :  { %v4161_v46 = vsub.f32 %v6743_v31, %v4160_v22 }
0x1bd2   :  { %v4162_v14 = vmul.f32 %v4161_v46, %v6845_v49 }
0x1bd4   :  { %v4163_v25 = vsel %vm4120_vm14, %v4162_v14, 0.0 }
0x1bd5   :  { %v4164_v27 = vadd.f32 %v4163_v25, %v4104_v19 }
0x1bd7   :  { %v4218_v28 = vmul.f32 %v6850_v60, %v4164_v27 }
0x1bd9   :  { %4219 = vadd.xlane.f32.xlu0 %v4218_v28 }
0x1bdf   :  { %v4247_v3 = vpop.xlane.xlu2 %4246 }
0x1be0   :  { %v4248_v38 = vsub.f32 %v4244_v17, %v4247_v3 }
0x1be2   :  { %5282 = vrsqrt.f32 %v4248_v38  ;;  %vm4255_vm11 = vweird.f32 %v4248_v38 }
0x1be8   :  { %v5283_v16 = vpop.eup %5282 }
0x1be9   :  { %v4250_v5 = vmul.f32 %v5283_v16, %v4248_v38  ;;  %vm4256_vm2 = vweird.f32 %v5283_v16 }
0x1bea   :  { %vm4257_vm8 = vmor %vm4255_vm11, %vm4256_vm2  ;;  %vm4360_vm11 = vcmask 384368  }
0x1beb   :  { %v4251_v52 = vmul.f32 %v5283_v16, %v4250_v5  ;;  %vm4329_vm2 = vmand %vm4300_vm15, %vm7155_vm1 }
0x1bed   :  { %v4252_v8 = vmul.f32 0.5, %v4251_v52 }
0x1bef   :  { %v4253_v44 = vsub.f32 1.5, %v4252_v8 }
0x1bf1   :  { %v4053_v42 = vpop.xlane.xlu1 %4052  ;;  %v4254_v30 = vmul.f32 %v5283_v16, %v4253_v44 }
0x1bf2   :  { %v4054_v61 = vsub.f32 %v6801_v50, %v4053_v42 }
0x1bf3   :  { %v6893_v15 = vsel %vm4257_vm8, %v5283_v16, %v4254_v30 }
0x1bf4   :  { %v4055_v63 = vmul.f32 %v4054_v61, %v6808_v37 }
0x1bf6   :  { %v4056_v0 = vsel %vm4002_vm3, %v4055_v63, 0.0 }
0x1bf7   :  { %v4057_v41 = vadd.f32 %v4056_v0, %v3999_v58 }
0x1bf9   :  { %v4265_v12 = vpop.xlane.xlu1 %4264  ;;  %v4111_v6 = vmul.f32 %v6812_v57, %v4057_v41 }
0x1bfa   :  { %v4266_v1 = vsub.f32 %v6866_v9, %v4265_v12  ;;  %v4364_v12 = vld [vmem:[#allocation0 + $0x2e] ss:$0 sm:$0xff] }
0x1bfb   :  { %4112 = vadd.xlane.f32.xlu2 %v4111_v6 }
0x1bfc   :  { %v4267_v37 = vmul.f32 %v4266_v1, %v6893_v15 }
0x1bfe   :  { %v4270_v48 = vsel %vm4269_vm13, %v4267_v37, 0.0  ;;  %vm7156_vm13 = vcmask 1047558  }
0x1bff   :  { %v4271_v35 = vadd.f32 %v4270_v48, %v4211_v33 }
0x1c01   :  { %4273 = vst [vmem:[#allocation1 + $0x28] sm:$0xff] %v4271_v35 }
0x1c08   :  { %v6898_v18 = vld [vmem:[#allocation1 + $0x2d] ss:$0 sm:$0xff] }
0x1c09   :  { %v4323_v56 = vmul.f32 %v6898_v18, %v4271_v35  ;;  %v4305_v57 = vmul.f32 %v6898_v18, %v6898_v18 }
0x1c0b   :  { %4324 = vadd.xlane.f32.xlu2 %v4323_v56  ;;  %4306 = vadd.xlane.f32.xlu1 %v4305_v57 }
0x1c4c   :  { %v4220_v2 = vpop.xlane.xlu0 %4219 }
0x1c4d   :  { %v4221_v24 = vsub.f32 %v6743_v31, %v4220_v2 }
0x1c4f   :  { %v4222_v43 = vmul.f32 %v4221_v24, %v6870_v53 }
0x1c51   :  { %v4223_v39 = vsel %vm4180_vm5, %v4222_v43, 0.0 }
0x1c52   :  { %v4224_v19 = vadd.f32 %v4223_v39, %v4164_v27 }
0x1c54   :  { %v4278_v51 = vmul.f32 %v6875_v13, %v4224_v19 }
0x1c56   :  { %4279 = vadd.xlane.f32.xlu0 %v4278_v51 }
0x1c6e   :  { %v4113_v47 = vpop.xlane.xlu2 %4112 }
0x1c6f   :  { %v4114_v20 = vsub.f32 %v6801_v50, %v4113_v47 }
0x1c71   :  { %v4115_v32 = vmul.f32 %v4114_v20, %v6828_v29 }
0x1c73   :  { %v4116_v55 = vsel %vm4060_vm12, %v4115_v32, 0.0 }
0x1c74   :  { %v4117_v36 = vadd.f32 %v4116_v55, %v4057_v41 }
0x1c76   :  { %v4171_v33 = vmul.f32 %v6831_v4, %v4117_v36 }
0x1c78   :  { %4172 = vadd.xlane.f32.xlu0 %v4171_v33 }
0x1c7e   :  { %v4307_v11 = vpop.xlane.xlu1 %4306  ;;  %v4325_v7 = vpop.xlane.xlu2 %4324 }
0x1c7f   :  { %v4308_v40 = vsub.f32 %v4304_v54, %v4307_v11  ;;  %v4326_v29 = vsub.f32 %v6866_v9, %v4325_v7 }
0x1c81   :  { %5284 = vrsqrt.f32 %v4308_v40  ;;  %vm4315_vm10 = vweird.f32 %v4308_v40 }
0x1c87   :  { %v5285_v62 = vpop.eup %5284 }
0x1c88   :  { %v4310_v23 = vmul.f32 %v5285_v62, %v4308_v40  ;;  %vm4316_vm3 = vweird.f32 %v5285_v62 }
0x1c89   :  { %vm4317_vm12 = vmor %vm4315_vm10, %vm4316_vm3 }
0x1c8a   :  { %v4311_v58 = vmul.f32 %v5285_v62, %v4310_v23  ;;  %vm4389_vm3 = vmand %vm4360_vm11, %vm7156_vm13 }
0x1c8c   :  { %v4312_v21 = vmul.f32 0.5, %v4311_v58 }
0x1c8e   :  { %v4313_v22 = vsub.f32 1.5, %v4312_v21 }
0x1c90   :  { %v4314_v46 = vmul.f32 %v5285_v62, %v4313_v22 }
0x1c92   :  { %v6914_v4 = vsel %vm4317_vm12, %v5285_v62, %v4314_v46  ;;  %vm4420_vm12 = vcmask 392568  }
0x1c93   :  { %v4327_v14 = vmul.f32 %v4326_v29, %v6914_v4 }
0x1c95   :  { %v4330_v25 = vsel %vm4329_vm2, %v4327_v14, 0.0 }
0x1c96   :  { %v4331_v27 = vadd.f32 %v4330_v25, %v4271_v35 }
0x1c98   :  { %4333 = vst [vmem:[#allocation1 + $0x28] sm:$0xff] %v4331_v27 }
0x1c9f   :  { %v6917_v28 = vld [vmem:[#allocation1 + $0x2e] ss:$0 sm:$0xff] }
0x1ca0   :  { %v4365_v17 = vmul.f32 %v6917_v28, %v6917_v28  ;;  %v4383_v42 = vmul.f32 %v6917_v28, %v4331_v27 }
0x1ca2   :  { %4366 = vadd.xlane.f32.xlu2 %v4365_v17 }
0x1cc9   :  { %v4280_v3 = vpop.xlane.xlu0 %4279 }
0x1cca   :  { %v4281_v38 = vsub.f32 %v6743_v31, %v4280_v3 }
0x1ccc   :  { %v4282_v16 = vmul.f32 %v4281_v38, %v6893_v15 }
0x1cce   :  { %v4283_v5 = vsel %vm4240_vm6, %v4282_v16, 0.0 }
0x1ccf   :  { %v4284_v52 = vadd.f32 %v4283_v5, %v4224_v19 }
0x1cd1   :  { %v4338_v8 = vmul.f32 %v6898_v18, %v4284_v52 }
0x1cd3   :  { %4339 = vadd.xlane.f32.xlu1 %v4338_v8 }
0x1cdb   :  { %4384 = vadd.xlane.f32.xlu1 %v4383_v42 }
0x1ceb   :  { %v4173_v61 = vpop.xlane.xlu0 %4172 }
0x1cec   :  { %v4174_v44 = vsub.f32 %v6801_v50, %v4173_v61 }
0x1cee   :  { %v4175_v63 = vmul.f32 %v4174_v44, %v6845_v49  ;;  %v6956_v44 = vld [vmem:[#allocation0 + $0x30] sm:$0xff] }
0x1cf0   :  { %v4176_v0 = vsel %vm4120_vm14, %v4175_v63, 0.0 }
0x1cf1   :  { %v4177_v41 = vadd.f32 %v4176_v0, %v4117_v36 }
0x1cf3   :  { %v4231_v30 = vmul.f32 %v6850_v60, %v4177_v41 }
0x1cf5   :  { %4232 = vadd.xlane.f32.xlu0 %v4231_v30 }
0x1d15   :  { %v4367_v6 = vpop.xlane.xlu2 %4366 }
0x1d16   :  { %v4368_v1 = vsub.f32 %v4364_v12, %v4367_v6 }
0x1d18   :  { %5286 = vrsqrt.f32 %v4368_v1  ;;  %vm4375_vm8 = vweird.f32 %v4368_v1 }
0x1d1e   :  { %v5287_v37 = vpop.eup %5286 }
0x1d1f   :  { %v4370_v48 = vmul.f32 %v5287_v37, %v4368_v1  ;;  %vm4376_vm14 = vweird.f32 %v5287_v37 }
0x1d20   :  { %vm4377_vm0 = vmor %vm4375_vm8, %vm4376_vm14  ;;  %vm4480_vm14 = vcmask 400768   ;;  %vm4525_vm8 = vcmask 408968  }
0x1d21   :  { %v4371_v35 = vmul.f32 %v5287_v37, %v4370_v48 }
0x1d23   :  { %v4372_v56 = vmul.f32 0.5, %v4371_v35 }
0x1d25   :  { %v4373_v24 = vsub.f32 1.5, %v4372_v56 }
0x1d27   :  { %v4374_v60 = vmul.f32 %v5287_v37, %v4373_v24 }
0x1d29   :  { %v6935_v20 = vsel %vm4377_vm0, %v5287_v37, %v4374_v60 }
0x1d46   :  { %v4340_v57 = vpop.xlane.xlu1 %4339 }
0x1d47   :  { %v4341_v2 = vsub.f32 %v6743_v31, %v4340_v57 }
0x1d49   :  { %v4342_v49 = vmul.f32 %v4341_v2, %v6914_v4 }
0x1d4b   :  { %v4343_v43 = vsel %vm4300_vm15, %v4342_v49, 0.0  ;;  %v4484_v49 = vld [vmem:[#allocation0 + $0x30] ss:$0 sm:$0xff] }
0x1d4c   :  { %v4344_v39 = vadd.f32 %v4343_v43, %v4284_v52 }
0x1d4e   :  { %v4385_v19 = vpop.xlane.xlu1 %4384  ;;  %v4398_v51 = vmul.f32 %v6917_v28, %v4344_v39 }
0x1d4f   :  { %v4386_v47 = vsub.f32 %v6866_v9, %v4385_v19 }
0x1d50   :  { %4399 = vadd.xlane.f32.xlu2 %v4398_v51 }
0x1d51   :  { %v4387_v32 = vmul.f32 %v4386_v47, %v6935_v20 }
0x1d53   :  { %v4390_v55 = vsel %vm4389_vm3, %v4387_v32, 0.0  ;;  %vm7157_vm3 = vcmask 1047553  }
0x1d54   :  { %v4391_v36 = vadd.f32 %v4390_v55, %v4331_v27 }
0x1d56   :  { %4393 = vst [vmem:[#allocation1 + $0x28] sm:$0xff] %v4391_v36 }
0x1d5d   :  { %v6940_v33 = vld [vmem:[#allocation1 + $0x2f] ss:$0 sm:$0xff] }
0x1d5e   :  { %v4425_v54 = vmul.f32 %v6940_v33, %v6940_v33 }
0x1d60   :  { %4426 = vadd.xlane.f32.xlu1 %v4425_v54 }
0x1d68   :  { %v4233_v11 = vpop.xlane.xlu0 %4232 }
0x1d69   :  { %v4234_v9 = vsub.f32 %v6801_v50, %v4233_v11 }
0x1d6b   :  { %v4235_v40 = vmul.f32 %v4234_v9, %v6870_v53 }
0x1d6d   :  { %v4236_v62 = vsel %vm4180_vm5, %v4235_v40, 0.0 }
0x1d6e   :  { %v4237_v23 = vadd.f32 %v4236_v62, %v4177_v41 }
0x1d70   :  { %v4291_v58 = vmul.f32 %v6875_v13, %v4237_v23 }
0x1d72   :  { %4292 = vadd.xlane.f32.xlu0 %v4291_v58 }
0x1dc3   :  { %v4400_v21 = vpop.xlane.xlu2 %4399 }
0x1dc4   :  { %v4401_v7 = vsub.f32 %v6743_v31, %v4400_v21  ;;  %v4424_v31 = vld [vmem:[#allocation0 + $0x2f] ss:$0 sm:$0xff] }
0x1dc6   :  { %v4402_v22 = vmul.f32 %v4401_v7, %v6935_v20 }
0x1dc8   :  { %v4403_v46 = vsel %vm4360_vm11, %v4402_v22, 0.0 }
0x1dc9   :  { %v4404_v29 = vadd.f32 %v4403_v46, %v4344_v39 }
0x1dcb   :  { %v4458_v14 = vmul.f32 %v6940_v33, %v4404_v29 }
0x1dcd   :  { %4459 = vadd.xlane.f32.xlu2 %v4458_v14  ;;  %v4529_v14 = vld [vmem:[#allocation0 + $0x31] ss:$0 sm:$0xff] }
0x1dd3   :  { %v4427_v38 = vpop.xlane.xlu1 %4426 }
0x1dd4   :  { %v4428_v16 = vsub.f32 %v4424_v31, %v4427_v38 }
0x1dd6   :  { %5288 = vrsqrt.f32 %v4428_v16  ;;  %vm4435_vm10 = vweird.f32 %v4428_v16 }
0x1ddc   :  { %v5289_v5 = vpop.eup %5288 }
0x1ddd   :  { %v4430_v52 = vmul.f32 %v5289_v5, %v4428_v16  ;;  %vm4436_vm5 = vweird.f32 %v5289_v5 }
0x1ddf   :  { %v4431_v8 = vmul.f32 %v5289_v5, %v4430_v52 }
0x1de1   :  { %v4432_v42 = vmul.f32 0.5, %v4431_v8 }
0x1de3   :  { %v4433_v61 = vsub.f32 1.5, %v4432_v42 }
0x1de5   :  { %v4293_v25 = vpop.xlane.xlu0 %4292  ;;  %v4434_v63 = vmul.f32 %v5289_v5, %v4433_v61 }
0x1de6   :  { %v4294_v53 = vsub.f32 %v6801_v50, %v4293_v25 }
0x1de8   :  { %v4295_v27 = vmul.f32 %v4294_v53, %v6893_v15 }
0x1dea   :  { %v4296_v17 = vsel %vm4240_vm6, %v4295_v27, 0.0  ;;  %vm4437_vm6 = vmor %vm4435_vm10, %vm4436_vm5 }
0x1deb   :  { %v4297_v13 = vadd.f32 %v4296_v17, %v4237_v23  ;;  %vm4554_vm5 = vmand %vm4525_vm8, %vm7157_vm3  ;;  %vm7159_vm3 = vcmask 1047555  }
0x1ded   :  { %v4351_v3 = vmul.f32 %v6898_v18, %v4297_v13  ;;  %v6959_v18 = vsel %vm4437_vm6, %v5289_v5, %v4434_v63  ;;  %vm4572_vm6 = vcmask 417168  }
0x1def   :  { %4352 = vadd.xlane.f32.xlu0 %v4351_v3 }
0x1e40   :  { %v4460_v15 = vpop.xlane.xlu2 %4459 }
0x1e41   :  { %v4461_v0 = vsub.f32 %v6956_v44, %v4460_v15 }
0x1e43   :  { %v4462_v41 = vmul.f32 %v4461_v0, %v6959_v18 }
0x1e45   :  { %v4463_v30 = vsel %vm4420_vm12, %v4462_v41, 0.0 }
0x1e46   :  { %v4464_v12 = vadd.f32 %v4463_v30, %v4404_v29 }
0x1e48   :  { %4466 = vst [vmem:[#allocation1 + $0x30] sm:$0xff] %v4464_v12 }
0x1e4f   :  { %v4482_v6 = vld [vmem:[#allocation1 + $0x30] ss:$0 sm:$0xff] }
0x1e50   :  { %v4503_v1 = vmul.f32 %v4482_v6, %v4464_v12  ;;  %v4485_v37 = vmul.f32 %v4482_v6, %v4482_v6 }
0x1e52   :  { %4504 = vadd.xlane.f32.xlu2 %v4503_v1  ;;  %4486 = vadd.xlane.f32.xlu1 %v4485_v37 }
0x1e62   :  { %v4353_v48 = vpop.xlane.xlu0 %4352 }
0x1e63   :  { %v4354_v35 = vsub.f32 %v6801_v50, %v4353_v48 }
0x1e65   :  { %v4355_v56 = vmul.f32 %v4354_v35, %v6914_v4 }
0x1e67   :  { %v4356_v57 = vsel %vm4300_vm15, %v4355_v56, 0.0 }
0x1e68   :  { %v4357_v2 = vadd.f32 %v4356_v57, %v4297_v13 }
0x1e6a   :  { %v4411_v24 = vmul.f32 %v6917_v28, %v4357_v2 }
0x1e6c   :  { %4412 = vadd.xlane.f32.xlu0 %v4411_v24 }
0x1ec5   :  { %v4487_v43 = vpop.xlane.xlu1 %4486  ;;  %v4505_v32 = vpop.xlane.xlu2 %4504 }
0x1ec6   :  { %v4488_v39 = vsub.f32 %v4484_v49, %v4487_v43  ;;  %v4506_v4 = vsub.f32 %v6956_v44, %v4505_v32 }
0x1ec8   :  { %5290 = vrsqrt.f32 %v4488_v39  ;;  %vm4495_vm2 = vweird.f32 %v4488_v39 }
0x1ece   :  { %v5291_v60 = vpop.eup %5290 }
0x1ecf   :  { %v4490_v19 = vmul.f32 %v5291_v60, %v4488_v39  ;;  %vm4496_vm1 = vweird.f32 %v5291_v60 }
0x1ed0   :  { %vm4497_vm15 = vmor %vm4495_vm2, %vm4496_vm1 }
0x1ed1   :  { %v4491_v51 = vmul.f32 %v5291_v60, %v4490_v19 }
0x1ed3   :  { %v4492_v47 = vmul.f32 0.5, %v4491_v51 }
0x1ed5   :  { %v4493_v55 = vsub.f32 1.5, %v4492_v47 }
0x1ed7   :  { %v4494_v36 = vmul.f32 %v5291_v60, %v4493_v55 }
0x1ed9   :  { %v4498_v54 = vsel %vm4497_vm15, %v5291_v60, %v4494_v36  ;;  %vm7158_vm15 = vcmask 1047554  }
0x1eda   :  { %v4507_v28 = vmul.f32 %v4506_v4, %v4498_v54 }
0x1edc   :  { %v4508_v11 = vsel %vm4480_vm14, %v4507_v28, 0.0 }
0x1edd   :  { %v4509_v9 = vadd.f32 %v4508_v11, %v4464_v12 }
0x1edf   :  { %4511 = vst [vmem:[#allocation1 + $0x30] sm:$0xff] %v4509_v9  ;;  %v4413_v40 = vpop.xlane.xlu0 %4412 }
0x1ee0   :  { %v4414_v62 = vsub.f32 %v6801_v50, %v4413_v40  ;;  %v6984_v40 = vld [vmem:[#allocation0 + $0x38] sm:$0xff] }
0x1ee2   :  { %v4415_v23 = vmul.f32 %v4414_v62, %v6935_v20 }
0x1ee4   :  { %v4416_v58 = vsel %vm4360_vm11, %v4415_v23, 0.0 }
0x1ee5   :  { %v4417_v21 = vadd.f32 %v4416_v58, %v4357_v2  ;;  %v4576_v2 = vld [vmem:[#allocation0 + $0x32] ss:$0 sm:$0xff] }
0x1ee6   :  { %v4527_v7 = vld [vmem:[#allocation1 + $0x31] ss:$0 sm:$0xff] }
0x1ee7   :  { %v4471_v22 = vmul.f32 %v6940_v33, %v4417_v21  ;;  %v4548_v46 = vmul.f32 %v4527_v7, %v4509_v9  ;;  %v4530_v29 = vmul.f32 %v4527_v7, %v4527_v7 }
0x1ee9   :  { %4472 = vadd.xlane.f32.xlu2 %v4471_v22  ;;  %4549 = vadd.xlane.f32.xlu0 %v4548_v46  ;;  %v4623_v46 = vld [vmem:[#allocation0 + $0x33] ss:$0 sm:$0xff] }
0x1eea   :  { %4531 = vadd.xlane.f32.xlu1 %v4530_v29 }
0x1f5c   :  { %v4473_v25 = vpop.xlane.xlu2 %4472  ;;  %v4550_v52 = vpop.xlane.xlu0 %4549 }
0x1f5d   :  { %v4474_v53 = vsub.f32 %v6801_v50, %v4473_v25  ;;  %v4532_v27 = vpop.xlane.xlu1 %4531  ;;  %v4551_v61 = vsub.f32 %v6956_v44, %v4550_v52 }
0x1f5e   :  { %v4533_v17 = vsub.f32 %v4529_v14, %v4532_v27 }
0x1f5f   :  { %v4475_v13 = vmul.f32 %v4474_v53, %v6959_v18 }
0x1f60   :  { %5292 = vrsqrt.f32 %v4533_v17  ;;  %vm4540_vm0 = vweird.f32 %v4533_v17 }
0x1f61   :  { %v4476_v20 = vsel %vm4420_vm12, %v4475_v13, 0.0 }
0x1f62   :  { %v4477_v3 = vadd.f32 %v4476_v20, %v4417_v21 }
0x1f64   :  { %v4516_v31 = vmul.f32 %v4482_v6, %v4477_v3 }
0x1f66   :  { %v5293_v38 = vpop.eup %5292  ;;  %4517 = vadd.xlane.f32.xlu1 %v4516_v31 }
0x1f67   :  { %v4535_v33 = vmul.f32 %v5293_v38, %v4533_v17  ;;  %vm4541_vm11 = vweird.f32 %v5293_v38 }
0x1f68   :  { %vm4542_vm13 = vmor %vm4540_vm0, %vm4541_vm11  ;;  %vm4619_vm0 = vcmask 425368  }
0x1f69   :  { %v4536_v16 = vmul.f32 %v5293_v38, %v4535_v33 }
0x1f6b   :  { %v4537_v5 = vmul.f32 0.5, %v4536_v16 }
0x1f6d   :  { %v4538_v8 = vsub.f32 1.5, %v4537_v5 }
0x1f6f   :  { %v4539_v42 = vmul.f32 %v5293_v38, %v4538_v8 }
0x1f71   :  { %v4543_v63 = vsel %vm4542_vm13, %v5293_v38, %v4539_v42 }
0x1f72   :  { %v4552_v15 = vmul.f32 %v4551_v61, %v4543_v63 }
0x1f74   :  { %v4555_v0 = vsel %vm4554_vm5, %v4552_v15, 0.0  ;;  %vm4648_vm5 = vmand %vm4619_vm0, %vm7159_vm3  ;;  %vm7161_vm3 = vcmask 1047557  }
0x1f75   :  { %v4556_v41 = vadd.f32 %v4555_v0, %v4509_v9 }
0x1f77   :  { %4558 = vst [vmem:[#allocation1 + $0x30] sm:$0xff] %v4556_v41 }
0x1f7e   :  { %v4574_v30 = vld [vmem:[#allocation1 + $0x32] ss:$0 sm:$0xff] }
0x1f7f   :  { %v4595_v12 = vmul.f32 %v4574_v30, %v4556_v41  ;;  %v4577_v6 = vmul.f32 %v4574_v30, %v4574_v30 }
0x1f81   :  { %4596 = vadd.xlane.f32.xlu0 %v4595_v12  ;;  %4578 = vadd.xlane.f32.xlu2 %v4577_v6  ;;  %v4670_v12 = vld [vmem:[#allocation0 + $0x34] ss:$0 sm:$0xff] }
0x1fd9   :  { %v4518_v1 = vpop.xlane.xlu1 %4517 }
0x1fda   :  { %v4519_v37 = vsub.f32 %v6801_v50, %v4518_v1 }
0x1fdc   :  { %v4520_v48 = vmul.f32 %v4519_v37, %v4498_v54 }
0x1fde   :  { %v4521_v35 = vsel %vm4480_vm14, %v4520_v48, 0.0  ;;  %vm4601_vm14 = vmand %vm4572_vm6, %vm7158_vm15 }
0x1fdf   :  { %v4522_v56 = vadd.f32 %v4521_v35, %v4477_v3 }
0x1fe1   :  { %v4563_v57 = vmul.f32 %v4527_v7, %v4522_v56 }
0x1fe3   :  { %4564 = vadd.xlane.f32.xlu1 %v4563_v57 }
0x1ff4   :  { %v4579_v24 = vpop.xlane.xlu2 %4578  ;;  %v4597_v51 = vpop.xlane.xlu0 %4596 }
0x1ff5   :  { %v4580_v49 = vsub.f32 %v4576_v2, %v4579_v24  ;;  %v4598_v50 = vsub.f32 %v6956_v44, %v4597_v51 }
0x1ff7   :  { %5294 = vrsqrt.f32 %v4580_v49  ;;  %vm4587_vm1 = vweird.f32 %v4580_v49 }
0x1ffd   :  { %v5295_v43 = vpop.eup %5294 }
0x1ffe   :  { %v4582_v39 = vmul.f32 %v5295_v43, %v4580_v49  ;;  %vm4588_vm10 = vweird.f32 %v5295_v43 }
0x1fff   :  { %vm4589_vm2 = vmor %vm4587_vm1, %vm4588_vm10  ;;  %vm4666_vm1 = vcmask 433568  }
0x2000   :  { %v4583_v60 = vmul.f32 %v5295_v43, %v4582_v39 }
0x2002   :  { %v4584_v19 = vmul.f32 0.5, %v4583_v60 }
0x2004   :  { %v4585_v47 = vsub.f32 1.5, %v4584_v19 }
0x2006   :  { %v4586_v32 = vmul.f32 %v5295_v43, %v4585_v47 }
0x2008   :  { %v4590_v55 = vsel %vm4589_vm2, %v5295_v43, %v4586_v32 }
0x2009   :  { %v4599_v36 = vmul.f32 %v4598_v50, %v4590_v55 }
0x200b   :  { %v4602_v4 = vsel %vm4601_vm14, %v4599_v36, 0.0 }
0x200c   :  { %v4603_v54 = vadd.f32 %v4602_v4, %v4556_v41 }
0x200e   :  { %4605 = vst [vmem:[#allocation1 + $0x30] sm:$0xff] %v4603_v54 }
0x2015   :  { %v4621_v28 = vld [vmem:[#allocation1 + $0x33] ss:$0 sm:$0xff] }
0x2016   :  { %v4642_v11 = vmul.f32 %v4621_v28, %v4603_v54  ;;  %v4624_v9 = vmul.f32 %v4621_v28, %v4621_v28 }
0x2018   :  { %4643 = vadd.xlane.f32.xlu0 %v4642_v11  ;;  %4625 = vadd.xlane.f32.xlu2 %v4624_v9  ;;  %v4717_v11 = vld [vmem:[#allocation0 + $0x35] ss:$0 sm:$0xff] }
0x2056   :  { %v4565_v62 = vpop.xlane.xlu1 %4564 }
0x2057   :  { %v4566_v23 = vsub.f32 %v6984_v40, %v4565_v62 }
0x2059   :  { %v4567_v58 = vmul.f32 %v4566_v23, %v4543_v63 }
0x205b   :  { %v4568_v21 = vsel %vm4525_vm8, %v4567_v58, 0.0 }
0x205c   :  { %v4569_v7 = vadd.f32 %v4568_v21, %v4522_v56 }
0x205e   :  { %v4610_v22 = vmul.f32 %v4574_v30, %v4569_v7 }
0x2060   :  { %4611 = vadd.xlane.f32.xlu1 %v4610_v22 }
0x208b   :  { %v4626_v29 = vpop.xlane.xlu2 %4625  ;;  %v4644_v13 = vpop.xlane.xlu0 %4643 }
0x208c   :  { %v4627_v14 = vsub.f32 %v4623_v46, %v4626_v29  ;;  %v4645_v31 = vsub.f32 %v6956_v44, %v4644_v13 }
0x208e   :  { %5296 = vrsqrt.f32 %v4627_v14  ;;  %vm4634_vm13 = vweird.f32 %v4627_v14 }
0x2094   :  { %v5297_v25 = vpop.eup %5296 }
0x2095   :  { %v4629_v53 = vmul.f32 %v5297_v25, %v4627_v14  ;;  %vm4635_vm11 = vweird.f32 %v5297_v25 }
0x2096   :  { %vm4636_vm8 = vmor %vm4634_vm13, %vm4635_vm11  ;;  %vm4713_vm13 = vcmask 441768  }
0x2097   :  { %v4630_v27 = vmul.f32 %v5297_v25, %v4629_v53 }
0x2099   :  { %v4631_v17 = vmul.f32 0.5, %v4630_v27 }
0x209b   :  { %v4632_v20 = vsub.f32 1.5, %v4631_v17 }
0x209d   :  { %v4633_v3 = vmul.f32 %v5297_v25, %v4632_v20 }
0x209f   :  { %v4637_v38 = vsel %vm4636_vm8, %v5297_v25, %v4633_v3 }
0x20a0   :  { %v4646_v33 = vmul.f32 %v4645_v31, %v4637_v38 }
0x20a2   :  { %v4649_v16 = vsel %vm4648_vm5, %v4646_v33, 0.0  ;;  %vm4742_vm5 = vmand %vm4713_vm13, %vm7161_vm3 }
0x20a3   :  { %v4650_v5 = vadd.f32 %v4649_v16, %v4603_v54 }
0x20a5   :  { %4652 = vst [vmem:[#allocation1 + $0x30] sm:$0xff] %v4650_v5 }
0x20ac   :  { %v4668_v52 = vld [vmem:[#allocation1 + $0x34] ss:$0 sm:$0xff] }
0x20ad   :  { %v4671_v8 = vmul.f32 %v4668_v52, %v4668_v52  ;;  %v4689_v42 = vmul.f32 %v4668_v52, %v4650_v5 }
0x20af   :  { %4672 = vadd.xlane.f32.xlu2 %v4671_v8  ;;  %4690 = vadd.xlane.f32.xlu1 %v4689_v42 }
0x20d3   :  { %v4612_v61 = vpop.xlane.xlu1 %4611 }
0x20d4   :  { %v4613_v63 = vsub.f32 %v6984_v40, %v4612_v61 }
0x20d6   :  { %v4614_v15 = vmul.f32 %v4613_v63, %v4590_v55  ;;  %v4764_v63 = vld [vmem:[#allocation0 + $0x36] ss:$0 sm:$0xff] }
0x20d8   :  { %v4615_v0 = vsel %vm4572_vm6, %v4614_v15, 0.0  ;;  %vm7160_vm6 = vcmask 1047556  }
0x20d9   :  { %v4616_v41 = vadd.f32 %v4615_v0, %v4569_v7  ;;  %vm4695_vm14 = vmand %vm4666_vm1, %vm7160_vm6  ;;  %vm7162_vm6 = vcmask 1047558  }
0x20db   :  { %v4657_v30 = vmul.f32 %v4621_v28, %v4616_v41 }
0x20dd   :  { %4658 = vadd.xlane.f32.xlu0 %v4657_v30 }
0x2122   :  { %v4673_v6 = vpop.xlane.xlu2 %4672  ;;  %v4691_v2 = vpop.xlane.xlu1 %4690 }
0x2123   :  { %v4674_v1 = vsub.f32 %v4670_v12, %v4673_v6  ;;  %v4692_v49 = vsub.f32 %v6956_v44, %v4691_v2 }
0x2125   :  { %5298 = vrsqrt.f32 %v4674_v1  ;;  %vm4681_vm2 = vweird.f32 %v4674_v1 }
0x212b   :  { %v5299_v37 = vpop.eup %5298 }
0x212c   :  { %v4676_v48 = vmul.f32 %v5299_v37, %v4674_v1  ;;  %vm4682_vm10 = vweird.f32 %v5299_v37 }
0x212d   :  { %vm4683_vm15 = vmor %vm4681_vm2, %vm4682_vm10 }
0x212e   :  { %v4677_v35 = vmul.f32 %v5299_v37, %v4676_v48 }
0x2130   :  { %v4678_v56 = vmul.f32 0.5, %v4677_v35 }
0x2132   :  { %v4679_v57 = vsub.f32 1.5, %v4678_v56 }
0x2134   :  { %v4680_v24 = vmul.f32 %v5299_v37, %v4679_v57 }
0x2136   :  { %v4684_v43 = vsel %vm4683_vm15, %v5299_v37, %v4680_v24 }
0x2137   :  { %v4693_v39 = vmul.f32 %v4692_v49, %v4684_v43 }
0x2139   :  { %v4696_v60 = vsel %vm4695_vm14, %v4693_v39, 0.0 }
0x213a   :  { %v4697_v19 = vadd.f32 %v4696_v60, %v4650_v5 }
0x213c   :  { %4699 = vst [vmem:[#allocation1 + $0x30] sm:$0xff] %v4697_v19 }
0x2143   :  { %v4715_v51 = vld [vmem:[#allocation1 + $0x35] ss:$0 sm:$0xff] }
0x2144   :  { %v4736_v47 = vmul.f32 %v4715_v51, %v4697_v19  ;;  %v4718_v32 = vmul.f32 %v4715_v51, %v4715_v51 }
0x2146   :  { %4737 = vadd.xlane.f32.xlu1 %v4736_v47  ;;  %4719 = vadd.xlane.f32.xlu0 %v4718_v32 }
0x2150   :  { %v4659_v50 = vpop.xlane.xlu0 %4658 }
0x2151   :  { %v4660_v55 = vsub.f32 %v6984_v40, %v4659_v50 }
0x2153   :  { %v4661_v36 = vmul.f32 %v4660_v55, %v4637_v38 }
0x2155   :  { %v4662_v4 = vsel %vm4619_vm0, %v4661_v36, 0.0  ;;  %v4811_v36 = vld [vmem:[#allocation0 + $0x37] ss:$0 sm:$0xff] }
0x2156   :  { %v4663_v54 = vadd.f32 %v4662_v4, %v4616_v41 }
0x2158   :  { %v4704_v28 = vmul.f32 %v4668_v52, %v4663_v54 }
0x215a   :  { %4705 = vadd.xlane.f32.xlu2 %v4704_v28 }
0x21b9   :  { %v4720_v9 = vpop.xlane.xlu0 %4719  ;;  %v4738_v22 = vpop.xlane.xlu1 %4737 }
0x21ba   :  { %v4721_v62 = vsub.f32 %v4717_v11, %v4720_v9  ;;  %v4739_v14 = vsub.f32 %v6956_v44, %v4738_v22 }
0x21bc   :  { %5300 = vrsqrt.f32 %v4721_v62  ;;  %vm4728_vm8 = vweird.f32 %v4721_v62 }
0x21c2   :  { %v5301_v23 = vpop.eup %5300 }
0x21c3   :  { %v4723_v58 = vmul.f32 %v5301_v23, %v4721_v62  ;;  %vm4729_vm11 = vweird.f32 %v5301_v23 }
0x21c4   :  { %vm4730_vm0 = vmor %vm4728_vm8, %vm4729_vm11 }
0x21c5   :  { %v4724_v21 = vmul.f32 %v5301_v23, %v4723_v58 }
0x21c7   :  { %v4725_v7 = vmul.f32 0.5, %v4724_v21 }
0x21c9   :  { %v4726_v46 = vsub.f32 1.5, %v4725_v7 }
0x21cb   :  { %v4727_v29 = vmul.f32 %v5301_v23, %v4726_v46 }
0x21cd   :  { %v4731_v25 = vsel %vm4730_vm0, %v5301_v23, %v4727_v29  ;;  %v4706_v53 = vpop.xlane.xlu2 %4705  ;;  %vm4807_vm0 = vcmask 458168  }
0x21ce   :  { %v4740_v27 = vmul.f32 %v4739_v14, %v4731_v25  ;;  %v4707_v17 = vsub.f32 %v6984_v40, %v4706_v53 }
0x21d0   :  { %v4743_v13 = vsel %vm4742_vm5, %v4740_v27, 0.0  ;;  %v4708_v20 = vmul.f32 %v4707_v17, %v4684_v43  ;;  %v4858_v17 = vld [vmem:[#allocation0 + $0x38] ss:$0 sm:$0xff] }
0x21d1   :  { %v4744_v3 = vadd.f32 %v4743_v13, %v4697_v19 }
0x21d2   :  { %v4709_v31 = vsel %vm4666_vm1, %v4708_v20, 0.0  ;;  %vm4760_vm1 = vcmask 449968  }
0x21d3   :  { %4746 = vst [vmem:[#allocation1 + $0x30] sm:$0xff] %v4744_v3  ;;  %v4710_v38 = vadd.f32 %v4709_v31, %v4663_v54  ;;  %vm4789_vm14 = vmand %vm4760_vm1, %vm7162_vm6 }
0x21d5   :  { %v4751_v33 = vmul.f32 %v4715_v51, %v4710_v38 }
0x21d7   :  { %4752 = vadd.xlane.f32.xlu2 %v4751_v33 }
0x21da   :  { %v4762_v16 = vld [vmem:[#allocation1 + $0x36] ss:$0 sm:$0xff] }
0x21db   :  { %v4783_v5 = vmul.f32 %v4762_v16, %v4744_v3  ;;  %v4765_v52 = vmul.f32 %v4762_v16, %v4762_v16 }
0x21dd   :  { %4784 = vadd.xlane.f32.xlu1 %v4783_v5  ;;  %4766 = vadd.xlane.f32.xlu0 %v4765_v52 }
0x224a   :  { %v4753_v8 = vpop.xlane.xlu2 %4752 }
0x224b   :  { %v4754_v42 = vsub.f32 %v6984_v40, %v4753_v8 }
0x224d   :  { %v4755_v61 = vmul.f32 %v4754_v42, %v4731_v25 }
0x224f   :  { %v4756_v15 = vsel %vm4713_vm13, %v4755_v61, 0.0 }
0x2250   :  { %v4767_v0 = vpop.xlane.xlu0 %4766  ;;  %v4757_v41 = vadd.f32 %v4756_v15, %v4710_v38  ;;  %v4785_v35 = vpop.xlane.xlu1 %4784 }
0x2251   :  { %v4768_v30 = vsub.f32 %v4764_v63, %v4767_v0  ;;  %v4786_v2 = vsub.f32 %v6956_v44, %v4785_v35 }
0x2252   :  { %v4798_v12 = vmul.f32 %v4762_v16, %v4757_v41 }
0x2253   :  { %5302 = vrsqrt.f32 %v4768_v30  ;;  %vm4775_vm2 = vweird.f32 %v4768_v30 }
0x2254   :  { %4799 = vadd.xlane.f32.xlu2 %v4798_v12  ;;  %v4890_v12 = vld [vmem:[#allocation0 + $0x39] ss:$0 sm:$0xff] }
0x2259   :  { %v5303_v6 = vpop.eup %5302 }
0x225a   :  { %v4770_v1 = vmul.f32 %v5303_v6, %v4768_v30  ;;  %vm4776_vm10 = vweird.f32 %v5303_v6 }
0x225b   :  { %vm4777_vm15 = vmor %vm4775_vm2, %vm4776_vm10 }
0x225c   :  { %v4771_v37 = vmul.f32 %v5303_v6, %v4770_v1 }
0x225e   :  { %v4772_v48 = vmul.f32 0.5, %v4771_v37 }
0x2260   :  { %v4773_v56 = vsub.f32 1.5, %v4772_v48 }
0x2262   :  { %v4774_v57 = vmul.f32 %v5303_v6, %v4773_v56 }
0x2264   :  { %v4778_v24 = vsel %vm4777_vm15, %v5303_v6, %v4774_v57  ;;  %vm4886_vm15 = vcmask 474568  }
0x2265   :  { %v4787_v49 = vmul.f32 %v4786_v2, %v4778_v24 }
0x2267   :  { %v4790_v43 = vsel %vm4789_vm14, %v4787_v49, 0.0 }
0x2268   :  { %v7008_v39 = vadd.f32 %v4790_v43, %v4744_v3 }
0x226a   :  { %4793 = vst [vmem:[#allocation1 + $0x30] sm:$0xff] %v7008_v39 }
0x2271   :  { %v7011_v60 = vld [vmem:[#allocation1 + $0x37] ss:$0 sm:$0xff] }
0x2272   :  { %v4812_v19 = vmul.f32 %v7011_v60, %v7011_v60 }
0x2274   :  { %4813 = vadd.xlane.f32.xlu0 %v4812_v19 }
0x22c7   :  { %v4800_v51 = vpop.xlane.xlu2 %4799 }
0x22c8   :  { %v4801_v44 = vsub.f32 %v6984_v40, %v4800_v51 }
0x22ca   :  { %v4802_v47 = vmul.f32 %v4801_v44, %v4778_v24 }
0x22cc   :  { %v4803_v32 = vsel %vm4760_vm1, %v4802_v47, 0.0  ;;  %vm4854_vm1 = vcmask 466368  }
0x22cd   :  { %v4804_v50 = vadd.f32 %v4803_v32, %v4757_v41 }
0x22cf   :  { %v4845_v55 = vmul.f32 %v7011_v60, %v4804_v50 }
0x22d1   :  { %4846 = vadd.xlane.f32.xlu1 %v4845_v55  ;;  %v4924_v55 = vld [vmem:[#allocation0 + $0x3a] ss:$0 sm:$0xff] }
0x22e7   :  { %v4814_v4 = vpop.xlane.xlu0 %4813 }
0x22e8   :  { %v4815_v54 = vsub.f32 %v4811_v36, %v4814_v4 }
0x22ea   :  { %5304 = vrsqrt.f32 %v4815_v54  ;;  %vm4822_vm13 = vweird.f32 %v4815_v54 }
0x22f0   :  { %v5305_v28 = vpop.eup %5304 }
0x22f1   :  { %v4817_v11 = vmul.f32 %v5305_v28, %v4815_v54  ;;  %vm4823_vm11 = vweird.f32 %v5305_v28 }
0x22f2   :  { %vm4824_vm8 = vmor %vm4822_vm13, %vm4823_vm11  ;;  %vm7163_vm11 = vcmask 1047553  }
0x22f3   :  { %v4818_v9 = vmul.f32 %v5305_v28, %v4817_v11  ;;  %vm4915_vm13 = vmand %vm4886_vm15, %vm7163_vm11 }
0x22f5   :  { %v4819_v62 = vmul.f32 0.5, %v4818_v9 }
0x22f7   :  { %v4820_v23 = vsub.f32 1.5, %v4819_v62 }
0x22f9   :  { %v4821_v58 = vmul.f32 %v5305_v28, %v4820_v23 }
0x22fb   :  { %v7019_v22 = vsel %vm4824_vm8, %v5305_v28, %v4821_v58 }
0x2344   :  { %v4847_v21 = vpop.xlane.xlu1 %4846 }
0x2345   :  { %v4848_v7 = vsub.f32 %v6984_v40, %v4847_v21 }
0x2347   :  { %v4849_v46 = vmul.f32 %v4848_v7, %v7019_v22 }
0x2349   :  { %v4850_v29 = vsel %vm4807_vm0, %v4849_v46, 0.0 }
0x234a   :  { %v4851_v14 = vadd.f32 %v4850_v29, %v4804_v50 }
0x234c   :  { %4853 = vst [vmem:[#allocation1 + $0x38] sm:$0xff] %v4851_v14 }
0x2353   :  { %v4856_v25 = vld [vmem:[#allocation1 + $0x38] ss:$0 sm:$0xff] }
0x2354   :  { %v4877_v53 = vmul.f32 %v4856_v25, %v4851_v14  ;;  %v4859_v27 = vmul.f32 %v4856_v25, %v4856_v25 }
0x2356   :  { %4878 = vadd.xlane.f32.xlu0 %v4877_v53  ;;  %4860 = vadd.xlane.f32.xlu2 %v4859_v27 }
0x23c9   :  { %v4861_v13 = vpop.xlane.xlu2 %4860  ;;  %v4879_v16 = vpop.xlane.xlu0 %4878 }
0x23ca   :  { %v4862_v20 = vsub.f32 %v4858_v17, %v4861_v13  ;;  %v4880_v8 = vsub.f32 %v6984_v40, %v4879_v16  ;;  %v4958_v17 = vld [vmem:[#allocation0 + $0x3b] ss:$0 sm:$0xff] }
0x23cc   :  { %5306 = vrsqrt.f32 %v4862_v20  ;;  %vm4869_vm5 = vweird.f32 %v4862_v20 }
0x23d2   :  { %v5307_v3 = vpop.eup %5306 }
0x23d3   :  { %v4864_v31 = vmul.f32 %v5307_v3, %v4862_v20  ;;  %vm4870_vm3 = vweird.f32 %v5307_v3 }
0x23d4   :  { %vm4871_vm10 = vmor %vm4869_vm5, %vm4870_vm3  ;;  %vm4920_vm3 = vcmask 482768  }
0x23d5   :  { %v4865_v38 = vmul.f32 %v5307_v3, %v4864_v31 }
0x23d7   :  { %v4866_v33 = vmul.f32 0.5, %v4865_v38 }
0x23d9   :  { %v4867_v5 = vsub.f32 1.5, %v4866_v33 }
0x23db   :  { %v4868_v52 = vmul.f32 %v5307_v3, %v4867_v5 }
0x23dd   :  { %v4872_v42 = vsel %vm4871_vm10, %v5307_v3, %v4868_v52 }
0x23de   :  { %v4881_v61 = vmul.f32 %v4880_v8, %v4872_v42 }
0x23e0   :  { %v4882_v63 = vsel %vm4854_vm1, %v4881_v61, 0.0  ;;  %vm7164_vm1 = vcmask 1047554  }
0x23e1   :  { %v4883_v15 = vadd.f32 %v4882_v63, %v4851_v14 }
0x23e3   :  { %4885 = vst [vmem:[#allocation1 + $0x38] sm:$0xff] %v4883_v15 }
0x23ea   :  { %v4888_v0 = vld [vmem:[#allocation1 + $0x39] ss:$0 sm:$0xff] }
0x23eb   :  { %v4909_v41 = vmul.f32 %v4888_v0, %v4883_v15  ;;  %v4891_v30 = vmul.f32 %v4888_v0, %v4888_v0 }
0x23ed   :  { %4910 = vadd.xlane.f32.xlu2 %v4909_v41  ;;  %4892 = vadd.xlane.f32.xlu1 %v4891_v30 }
0x2460   :  { %v4893_v6 = vpop.xlane.xlu1 %4892  ;;  %v4911_v57 = vpop.xlane.xlu2 %4910 }
0x2461   :  { %v4894_v1 = vsub.f32 %v4890_v12, %v4893_v6  ;;  %v4912_v49 = vsub.f32 %v6984_v40, %v4911_v57  ;;  %v4992_v12 = vld [vmem:[#allocation0 + $0x3c] ss:$0 sm:$0xff] }
0x2463   :  { %5308 = vrsqrt.f32 %v4894_v1  ;;  %vm4901_vm6 = vweird.f32 %v4894_v1 }
0x2469   :  { %v5309_v37 = vpop.eup %5308 }
0x246a   :  { %v4896_v48 = vmul.f32 %v5309_v37, %v4894_v1  ;;  %vm4902_vm2 = vweird.f32 %v5309_v37 }
0x246b   :  { %vm4903_vm14 = vmor %vm4901_vm6, %vm4902_vm2  ;;  %vm4954_vm6 = vcmask 490968  }
0x246c   :  { %v4897_v35 = vmul.f32 %v5309_v37, %v4896_v48  ;;  %vm4949_vm2 = vmand %vm4920_vm3, %vm7164_vm1 }
0x246e   :  { %v4898_v56 = vmul.f32 0.5, %v4897_v35 }
0x2470   :  { %v4899_v2 = vsub.f32 1.5, %v4898_v56 }
0x2472   :  { %v4900_v24 = vmul.f32 %v5309_v37, %v4899_v2 }
0x2474   :  { %v4904_v43 = vsel %vm4903_vm14, %v5309_v37, %v4900_v24 }
0x2475   :  { %v4913_v19 = vmul.f32 %v4912_v49, %v4904_v43 }
0x2477   :  { %v4916_v51 = vsel %vm4915_vm13, %v4913_v19, 0.0  ;;  %vm7165_vm13 = vcmask 1047555  }
0x2478   :  { %v4917_v44 = vadd.f32 %v4916_v51, %v4883_v15 }
0x247a   :  { %4919 = vst [vmem:[#allocation1 + $0x38] sm:$0xff] %v4917_v44 }
0x2481   :  { %v4922_v47 = vld [vmem:[#allocation1 + $0x3a] ss:$0 sm:$0xff] }
0x2482   :  { %v4943_v32 = vmul.f32 %v4922_v47, %v4917_v44  ;;  %v4925_v50 = vmul.f32 %v4922_v47, %v4922_v47 }
0x2484   :  { %4944 = vadd.xlane.f32.xlu1 %v4943_v32  ;;  %4926 = vadd.xlane.f32.xlu0 %v4925_v50 }
0x24f7   :  { %v4927_v36 = vpop.xlane.xlu0 %4926  ;;  %v4945_v62 = vpop.xlane.xlu1 %4944 }
0x24f8   :  { %v4928_v4 = vsub.f32 %v4924_v55, %v4927_v36  ;;  %v4946_v21 = vsub.f32 %v6984_v40, %v4945_v62  ;;  %v5026_v55 = vld [vmem:[#allocation0 + $0x3d] ss:$0 sm:$0xff] }
0x24fa   :  { %5310 = vrsqrt.f32 %v4928_v4  ;;  %vm4935_vm5 = vweird.f32 %v4928_v4 }
0x2500   :  { %v5311_v54 = vpop.eup %5310 }
0x2501   :  { %v4930_v28 = vmul.f32 %v5311_v54, %v4928_v4  ;;  %vm4936_vm8 = vweird.f32 %v5311_v54 }
0x2502   :  { %vm4937_vm10 = vmor %vm4935_vm5, %vm4936_vm8  ;;  %vm4988_vm5 = vcmask 499168  }
0x2503   :  { %v4931_v11 = vmul.f32 %v5311_v54, %v4930_v28  ;;  %vm4983_vm8 = vmand %vm4954_vm6, %vm7165_vm13 }
0x2505   :  { %v4932_v9 = vmul.f32 0.5, %v4931_v11 }
0x2507   :  { %v4933_v23 = vsub.f32 1.5, %v4932_v9 }
0x2509   :  { %v4934_v58 = vmul.f32 %v5311_v54, %v4933_v23 }
0x250b   :  { %v4938_v7 = vsel %vm4937_vm10, %v5311_v54, %v4934_v58 }
0x250c   :  { %v4947_v46 = vmul.f32 %v4946_v21, %v4938_v7 }
0x250e   :  { %v4950_v29 = vsel %vm4949_vm2, %v4947_v46, 0.0  ;;  %vm7166_vm2 = vcmask 1047556  }
0x250f   :  { %v4951_v14 = vadd.f32 %v4950_v29, %v4917_v44 }
0x2511   :  { %4953 = vst [vmem:[#allocation1 + $0x38] sm:$0xff] %v4951_v14 }
0x2518   :  { %v4956_v25 = vld [vmem:[#allocation1 + $0x3b] ss:$0 sm:$0xff] }
0x2519   :  { %v4977_v53 = vmul.f32 %v4956_v25, %v4951_v14  ;;  %v4959_v27 = vmul.f32 %v4956_v25, %v4956_v25 }
0x251b   :  { %4978 = vadd.xlane.f32.xlu0 %v4977_v53  ;;  %4960 = vadd.xlane.f32.xlu2 %v4959_v27 }
0x258e   :  { %v4961_v13 = vpop.xlane.xlu2 %4960  ;;  %v4979_v16 = vpop.xlane.xlu0 %4978 }
0x258f   :  { %v4962_v20 = vsub.f32 %v4958_v17, %v4961_v13  ;;  %v4980_v8 = vsub.f32 %v6984_v40, %v4979_v16  ;;  %v1854_v17 = vld [vmem:[#allocation1 + $0x8] sm:$0xff]  ;;  %v948_v13 = vld [vmem:[#allocation1] sm:$0xff]  ;;  %v3356_v16 = vld [vmem:[#allocation1 + $0x18] sm:$0xff] }
0x2591   :  { %5312 = vrsqrt.f32 %v4962_v20  ;;  %vm4969_vm14 = vweird.f32 %v4962_v20 }
0x2597   :  { %v5313_v3 = vpop.eup %5312 }
0x2598   :  { %v4964_v31 = vmul.f32 %v5313_v3, %v4962_v20  ;;  %vm4970_vm15 = vweird.f32 %v5313_v3  ;;  %v5325_v20 = vld [vmem:[#allocation1 + $0xf] ss:$0 sm:$0xff] }
0x2599   :  { %vm4971_vm11 = vmor %vm4969_vm14, %vm4970_vm15  ;;  %vm5022_vm14 = vcmask 507368  }
0x259a   :  { %v4965_v38 = vmul.f32 %v5313_v3, %v4964_v31  ;;  %vm5017_vm15 = vmand %vm4988_vm5, %vm7166_vm2  ;;  %v5326_v31 = vld [vmem:[#allocation1 + $0x7] ss:$0 sm:$0xff]  ;;  %vm954_vm5 = vcmask 1047559   ;;  %vm7169_vm2 = vcmask 64568  }
0x259c   :  { %v4966_v33 = vmul.f32 0.5, %v4965_v38  ;;  %v949_v38 = vmul.f32 %v5326_v31, %v948_v13 }
0x259e   :  { %v4967_v5 = vsub.f32 1.5, %v4966_v33  ;;  %v3951_v33 = vld [vmem:[#allocation1 + $0x20] sm:$0xff] }
0x25a0   :  { %v4968_v52 = vmul.f32 %v5313_v3, %v4967_v5  ;;  %v5327_v5 = vld [vmem:[#allocation1 + $0x27] ss:$0 sm:$0xff] }
0x25a2   :  { %v4972_v42 = vsel %vm4971_vm11, %v5313_v3, %v4968_v52  ;;  %v1855_v3 = vmul.f32 %v5325_v20, %v1854_v17  ;;  %v3952_v52 = vmul.f32 %v5327_v5, %v3951_v33 }
0x25a3   :  { %v4981_v61 = vmul.f32 %v4980_v8, %v4972_v42  ;;  %v5328_v8 = vld [vmem:[#allocation1 + $0x1f] ss:$0 sm:$0xff] }
0x25a4   :  { %v3357_v42 = vmul.f32 %v5328_v8, %v3356_v16  ;;  %v2655_v8 = vld [vmem:[#allocation0 + $0x10] sm:$0xff] }
0x25a5   :  { %v4984_v63 = vsel %vm4983_vm8, %v4981_v61, 0.0  ;;  %vm7167_vm8 = vcmask 1047557   ;;  %v4830_v61 = vmul.f32 %v7011_v60, %v7008_v39 }
0x25a6   :  { %v4985_v15 = vadd.f32 %v4984_v63, %v4951_v14  ;;  %v5060_v63 = vld [vmem:[#allocation0 + $0x3e] ss:$0 sm:$0xff] }
0x25a8   :  { %4987 = vst [vmem:[#allocation1 + $0x38] sm:$0xff] %v4985_v15 }
0x25af   :  { %v4990_v0 = vld [vmem:[#allocation1 + $0x3c] ss:$0 sm:$0xff] }
0x25b0   :  { %v5011_v41 = vmul.f32 %v4990_v0, %v4985_v15  ;;  %v4993_v30 = vmul.f32 %v4990_v0, %v4990_v0 }
0x25b2   :  { %5012 = vadd.xlane.f32.xlu2 %v5011_v41  ;;  %4994 = vadd.xlane.f32.xlu1 %v4993_v30  ;;  %v1852_v30 = vld [vmem:[#allocation0 + $0x8] sm:$0xff] }
0x2625   :  { %v4995_v6 = vpop.xlane.xlu1 %4994  ;;  %v5013_v57 = vpop.xlane.xlu2 %5012 }
0x2626   :  { %v4996_v1 = vsub.f32 %v4992_v12, %v4995_v6  ;;  %v5014_v49 = vsub.f32 %v6984_v40, %v5013_v57  ;;  %v947_v12 = vld [vmem:[#allocation0] sm:$0xff] }
0x2628   :  { %5314 = vrsqrt.f32 %v4996_v1  ;;  %vm5003_vm10 = vweird.f32 %v4996_v1 }
0x262e   :  { %v5315_v37 = vpop.eup %5314 }
0x262f   :  { %v4998_v48 = vmul.f32 %v5315_v37, %v4996_v1  ;;  %vm5004_vm3 = vweird.f32 %v5315_v37 }
0x2630   :  { %vm5005_vm1 = vmor %vm5003_vm10, %vm5004_vm3  ;;  %vm7168_vm10 = vcmask 130168  }
0x2631   :  { %v4999_v35 = vmul.f32 %v5315_v37, %v4998_v48  ;;  %vm5051_vm3 = vmand %vm5022_vm14, %vm7167_vm8  ;;  %vm5056_vm14 = vcmask 515568  }
0x2632   :  { %vm3363_vm8 = vmand %vm3334_vm4, %vm954_vm5 }
0x2633   :  { %v5000_v56 = vmul.f32 0.5, %v4999_v35  ;;  %vm4836_vm4 = vmand %vm4807_vm0, %vm954_vm5 }
0x2634   :  { %vm2664_vm0 = vmand %vm2635_vm9, %vm954_vm5 }
0x2635   :  { %v5001_v2 = vsub.f32 1.5, %v5000_v56 }
0x2637   :  { %v5002_v24 = vmul.f32 %v5315_v37, %v5001_v2 }
0x2639   :  { %v5006_v43 = vsel %vm5005_vm1, %v5315_v37, %v5002_v24  ;;  %vm1861_vm1 = vmand %vm7168_vm10, %vm954_vm5 }
0x263a   :  { %v5015_v19 = vmul.f32 %v5014_v49, %v5006_v43 }
0x263c   :  { %v5018_v51 = vsel %vm5017_vm15, %v5015_v19, 0.0  ;;  %vm955_vm15 = vmand %vm7169_vm2, %vm954_vm5  ;;  %vm5090_vm2 = vcmask 523768  }
0x263d   :  { %v5019_v44 = vadd.f32 %v5018_v51, %v4985_v15 }
0x263f   :  { %5021 = vst [vmem:[#allocation1 + $0x38] sm:$0xff] %v5019_v44 }
0x2646   :  { %v5024_v47 = vld [vmem:[#allocation1 + $0x3d] ss:$0 sm:$0xff] }
0x2647   :  { %v5045_v32 = vmul.f32 %v5024_v47, %v5019_v44  ;;  %v5027_v50 = vmul.f32 %v5024_v47, %v5024_v47  ;;  %v3354_v47 = vld [vmem:[#allocation0 + $0x18] sm:$0xff] }
0x2649   :  { %5046 = vadd.xlane.f32.xlu1 %v5045_v32  ;;  %5028 = vadd.xlane.f32.xlu0 %v5027_v50 }
0x26bc   :  { %v5029_v36 = vpop.xlane.xlu0 %5028  ;;  %v5047_v62 = vpop.xlane.xlu1 %5046 }
0x26bd   :  { %v5030_v4 = vsub.f32 %v5026_v55, %v5029_v36  ;;  %v5048_v21 = vsub.f32 %v6984_v40, %v5047_v62 }
0x26bf   :  { %5316 = vrsqrt.f32 %v5030_v4  ;;  %vm5037_vm11 = vweird.f32 %v5030_v4 }
0x26c5   :  { %v5317_v54 = vpop.eup %5316 }
0x26c6   :  { %v5032_v28 = vmul.f32 %v5317_v54, %v5030_v4  ;;  %vm5038_vm6 = vweird.f32 %v5317_v54 }
0x26c7   :  { %vm5039_vm13 = vmor %vm5037_vm11, %vm5038_vm6 }
0x26c8   :  { %v5033_v11 = vmul.f32 %v5317_v54, %v5032_v28  ;;  %vm7051_vm11 = vmand %vm3929_vm7, %vm954_vm5  ;;  %vm7172_vm7 = vcmask 1047558  }
0x26c9   :  { %vm5085_vm10 = vmand %vm5056_vm14, %vm7172_vm7 }
0x26ca   :  { %v5034_v9 = vmul.f32 0.5, %v5033_v11  ;;  %vm5119_vm14 = vmand %vm5090_vm2, %vm954_vm5 }
0x26cc   :  { %v5035_v23 = vsub.f32 1.5, %v5034_v9 }
0x26ce   :  { %v5036_v58 = vmul.f32 %v5317_v54, %v5035_v23 }
0x26d0   :  { %v5040_v7 = vsel %vm5039_vm13, %v5317_v54, %v5036_v58 }
0x26d1   :  { %v5049_v46 = vmul.f32 %v5048_v21, %v5040_v7  ;;  %v4827_v7 = vld [vmem:[#allocation0 + $0x30] sm:$0xff] }
0x26d3   :  { %v5052_v29 = vsel %vm5051_vm3, %v5049_v46, 0.0 }
0x26d4   :  { %v7034_v14 = vadd.f32 %v5052_v29, %v5019_v44  ;;  %v3949_v44 = vld [vmem:[#allocation0 + $0x20] sm:$0xff] }
0x26d6   :  { %5055 = vst [vmem:[#allocation1 + $0x38] sm:$0xff] %v7034_v14 }
0x26dd   :  { %v5058_v25 = vld [vmem:[#allocation1 + $0x3e] ss:$0 sm:$0xff] }
0x26de   :  { %v5079_v53 = vmul.f32 %v5058_v25, %v7034_v14  ;;  %v5061_v27 = vmul.f32 %v5058_v25, %v5058_v25 }
0x26e0   :  { %5080 = vadd.xlane.f32.xlu0 %v5079_v53  ;;  %5062 = vadd.xlane.f32.xlu2 %v5061_v27 }
0x26e8   :  { %1856 = vadd.xlane.f32.xlu0 %v1855_v3  ;;  %950 = vadd.xlane.f32.xlu2 %v949_v38  ;;  %v2657_v3 = vld [vmem:[#allocation1 + $0x10] sm:$0xff]  ;;  %v4442_v38 = vld [vmem:[#allocation1 + $0x28] sm:$0xff] }
0x26f0   :  { %3953 = vadd.xlane.f32.xlu0 %v3952_v52  ;;  %3358 = vadd.xlane.f32.xlu2 %v3357_v42 }
0x26f8   :  { %4831 = vadd.xlane.f32.xlu2 %v4830_v61 }
0x2753   :  { %v5081_v15 = vpop.xlane.xlu0 %5080  ;;  %v5063_v0 = vpop.xlane.xlu2 %5062 }
0x2754   :  { %v5064_v41 = vsub.f32 %v5060_v63, %v5063_v0  ;;  %v5082_v54 = vsub.f32 %v6984_v40, %v5081_v15 }
0x2756   :  { %5318 = vrsqrt.f32 %v5064_v41  ;;  %vm5071_vm13 = vweird.f32 %v5064_v41 }
0x275b   :  { %v1857_v6 = vpop.xlane.xlu0 %1856  ;;  %v951_v1 = vpop.xlane.xlu2 %950 }
0x275c   :  { %v5319_v37 = vpop.eup %5318  ;;  %v1858_v48 = vsub.f32 %v1852_v30, %v1857_v6  ;;  %v952_v35 = vsub.f32 %v947_v12, %v951_v1  ;;  %v4440_v1 = vld [vmem:[#allocation0 + $0x28] sm:$0xff] }
0x275d   :  { %v5066_v56 = vmul.f32 %v5319_v37, %v5064_v41  ;;  %vm5072_vm6 = vweird.f32 %v5319_v37 }
0x275e   :  { %v1859_v60 = vmul.f32 %v1858_v48, %v5892_v10  ;;  %v953_v57 = vmul.f32 %v952_v35, %v5519_v26  ;;  %vm5073_vm3 = vmor %vm5071_vm13, %vm5072_vm6 }
0x275f   :  { %v5067_v2 = vmul.f32 %v5319_v37, %v5066_v56 }
0x2760   :  { %v1862_v24 = vsel %vm1861_vm1, %v1859_v60, 0.0  ;;  %v956_v49 = vsel %vm955_vm15, %v953_v57, 0.0  ;;  %vm4449_vm15 = vmand %vm4420_vm12, %vm954_vm5 }
0x2761   :  { %v5068_v43 = vmul.f32 0.5, %v5067_v2  ;;  %v1863_v19 = vadd.f32 %v1862_v24, %v1854_v17  ;;  %v957_v51 = vadd.f32 %v956_v49, %v948_v13 }
0x2763   :  { %v5069_v32 = vsub.f32 1.5, %v5068_v43  ;;  %1865 = vst [vmem:[#allocation1 + $0x8] sm:$0xff] %v1863_v19  ;;  %v3954_v50 = vpop.xlane.xlu0 %3953  ;;  %v3359_v55 = vpop.xlane.xlu2 %3358 }
0x2764   :  { %5169 = vst [vmem:[%s7103_s1 + $0x8] sm:$0xff] %v1863_v19  ;;  %v3955_v10 = vsub.f32 %v3949_v44, %v3954_v50  ;;  %v3360_v36 = vsub.f32 %v3354_v47, %v3359_v55 }
0x2765   :  { %v5070_v4 = vmul.f32 %v5319_v37, %v5069_v32  ;;  %958 = vst [vmem:[#allocation1] sm:$0xff] %v957_v51 }
0x2766   :  { %5167 = vst [vmem:[%s7103_s1] sm:$0xff] %v957_v51  ;;  %v3956_v28 = vmul.f32 %v3955_v10, %v6784_v34  ;;  %v3361_v11 = vmul.f32 %v3360_v36, %v6562_v59 }
0x2767   :  { %v5074_v9 = vsel %vm5073_vm3, %v5319_v37, %v5070_v4 }
0x2768   :  { %v5083_v62 = vmul.f32 %v5082_v54, %v5074_v9  ;;  %v3959_v23 = vsel %vm7051_vm11, %v3956_v28, 0.0  ;;  %v3364_v58 = vsel %vm3363_vm8, %v3361_v11, 0.0 }
0x2769   :  { %v3960_v21 = vadd.f32 %v3959_v23, %v3951_v33  ;;  %v3365_v29 = vadd.f32 %v3364_v58, %v3356_v16  ;;  %v5330_v33 = vld [vmem:[#allocation1 + $0x2f] ss:$0 sm:$0xff] }
0x276a   :  { %v5086_v46 = vsel %vm5085_vm10, %v5083_v62, 0.0  ;;  %v4443_v16 = vmul.f32 %v5330_v33, %v4442_v38 }
0x276b   :  { %v7067_v25 = vadd.f32 %v5086_v46, %v7034_v14  ;;  %3962 = vst [vmem:[#allocation1 + $0x20] sm:$0xff] %v3960_v21  ;;  %v4832_v53 = vpop.xlane.xlu2 %4831 }
0x276c   :  { %5175 = vst [vmem:[%s7103_s1 + $0x20] sm:$0xff] %v3960_v21  ;;  %v4833_v59 = vsub.f32 %v4827_v7, %v4832_v53 }
0x276d   :  { %5089 = vst [vmem:[#allocation1 + $0x38] sm:$0xff] %v7067_v25 }
0x276e   :  { %3367 = vst [vmem:[#allocation1 + $0x18] sm:$0xff] %v3365_v29  ;;  %v4834_v34 = vmul.f32 %v4833_v59, %v7019_v22  ;;  %v5329_v22 = vld [vmem:[#allocation1 + $0x17] ss:$0 sm:$0xff] }
0x276f   :  { %5173 = vst [vmem:[%s7103_s1 + $0x18] sm:$0xff] %v3365_v29  ;;  %v2658_v31 = vmul.f32 %v5329_v22, %v2657_v3 }
0x2770   :  { %v4837_v14 = vsel %vm4836_vm4, %v4834_v34, 0.0 }
0x2771   :  { %v4838_v27 = vadd.f32 %v4837_v14, %v7008_v39  ;;  %v5094_v39 = vld [vmem:[#allocation0 + $0x3f] ss:$0 sm:$0xff] }
0x2773   :  { %4840 = vst [vmem:[#allocation1 + $0x30] sm:$0xff] %v4838_v27 }
0x2774   :  { %5179 = vst [vmem:[%s7103_s1 + $0x30] sm:$0xff] %v4838_v27  ;;  %v5092_v17 = vld [vmem:[#allocation1 + $0x3f] ss:$0 sm:$0xff] }
0x2775   :  { %v5113_v13 = vmul.f32 %v5092_v17, %v7067_v25  ;;  %v5095_v20 = vmul.f32 %v5092_v17, %v5092_v17 }
0x2777   :  { %5114 = vadd.xlane.f32.xlu0 %v5113_v13  ;;  %5096 = vadd.xlane.f32.xlu1 %v5095_v20 }
0x277f   :  { %2659 = vadd.xlane.f32.xlu1 %v2658_v31 }
0x2787   :  { %4444 = vadd.xlane.f32.xlu1 %v4443_v16 }
0x27ea   :  { %v5097_v5 = vpop.xlane.xlu1 %5096  ;;  %v5115_v37 = vpop.xlane.xlu0 %5114 }
0x27eb   :  { %v5098_v52 = vsub.f32 %v5094_v39, %v5097_v5 }
0x27ed   :  { %5320 = vrsqrt.f32 %v5098_v52  ;;  %vm5105_vm9 = vweird.f32 %v5098_v52 }
0x27f2   :  { %v2660_v42 = vpop.xlane.xlu1 %2659 }
0x27f3   :  { %v5321_v61 = vpop.eup %5320  ;;  %v2661_v63 = vsub.f32 %v2655_v8, %v2660_v42 }
0x27f4   :  { %v5100_v15 = vmul.f32 %v5321_v61, %v5098_v52  ;;  %vm5106_vm1 = vweird.f32 %v5321_v61 }
0x27f5   :  { %v2662_v0 = vmul.f32 %v2661_v63, %v6285_v45  ;;  %v5116_v45 = vsub.f32 %v6984_v40, %v5115_v37  ;;  %vm5107_vm6 = vmor %vm5105_vm9, %vm5106_vm1 }
0x27f6   :  { %v5101_v41 = vmul.f32 %v5321_v61, %v5100_v15 }
0x27f7   :  { %v2665_v30 = vsel %vm2664_vm0, %v2662_v0, 0.0 }
0x27f8   :  { %v5102_v12 = vmul.f32 0.5, %v5101_v41  ;;  %v2666_v6 = vadd.f32 %v2665_v30, %v2657_v3 }
0x27fa   :  { %v5103_v48 = vsub.f32 1.5, %v5102_v12  ;;  %2668 = vst [vmem:[#allocation1 + $0x10] sm:$0xff] %v2666_v6  ;;  %v4445_v35 = vpop.xlane.xlu1 %4444 }
0x27fb   :  { %5171 = vst [vmem:[%s7103_s1 + $0x10] sm:$0xff] %v2666_v6  ;;  %v4446_v56 = vsub.f32 %v4440_v1, %v4445_v35 }
0x27fc   :  { %v5104_v60 = vmul.f32 %v5321_v61, %v5103_v48 }
0x27fd   :  { %v4447_v57 = vmul.f32 %v4446_v56, %v6959_v18 }
0x27fe   :  { %v5108_v2 = vsel %vm5107_vm6, %v5321_v61, %v5104_v60 }
0x27ff   :  { %v5117_v24 = vmul.f32 %v5116_v45, %v5108_v2  ;;  %v4450_v49 = vsel %vm4449_vm15, %v4447_v57, 0.0 }
0x2800   :  { %v4451_v43 = vadd.f32 %v4450_v49, %v4442_v38 }
0x2801   :  { %v5120_v19 = vsel %vm5119_vm14, %v5117_v24, 0.0 }
0x2802   :  { %v5121_v51 = vadd.f32 %v5120_v19, %v7067_v25  ;;  %4453 = vst [vmem:[#allocation1 + $0x28] sm:$0xff] %v4451_v43 }
0x2803   :  { %5177 = vst [vmem:[%s7103_s1 + $0x28] sm:$0xff] %v4451_v43 }
0x2804   :  { %5123 = vst [vmem:[#allocation1 + $0x38] sm:$0xff] %v5121_v51 }
0x2805   :  { %5181 = vst [vmem:[%s7103_s1 + $0x38] sm:$0xff] %v5121_v51 }

// kernel: custom-call.5
= control target key start
LH: loop header
LB: loop body
LE: loop exit
PB: predicated region body
PF: predicated region fallthrough
CT: control target
= control target key end

     0   :  { %v63_v0 = vlaneseq  ;;  %v2120_v18 = vmov -1.0   ;;  %v2121_v61 = vmov 0.0   ;;  %s2920_s0 = inlined_call_operand.vmem [shape: f32[1,64,64], index: 0, kind: input, shape index: {}]   ;;  %s2921_s1 = inlined_call_operand.vmem [shape: f32[1,64,64], index: 1, kind: output, shape index: {}]  }
   0x1   :  { %v44_v1 = vld [vmem:[%s2920_s0] sm:$0xff]  ;;  %v46_v39 = vld [vmem:[%s2920_s0 + $0x8] sm:$0xff] }
   0x2   :  { %v2135_v2 = vand.u32 127, %v63_v0  ;;  %v2137_v3 = vshrl.u32 %v63_v0, 7 }
   0x4   :  { %vm69_vm0 = vcmp.eq.s32.totalorder %v2137_v3, %v2135_v2  ;;  %vm65_vm1 = vcmp.lt.s32.totalorder %v2135_v2, 64  ;;  %vm74_vm2 = vcmp.ge.s32.totalorder %v2137_v3, %v2135_v2  ;;  %vm304_vm8 = vcmp.eq.s32.totalorder %v2135_v2, 0 }
   0x5   :  { %v71_v4 = vsel %vm69_vm0, %v44_v1, 0.0  ;;  %vm75_vm3 = vmand %vm74_vm2, %vm65_vm1  ;;  %vm301_vm9 = vcmp.eq.s32.totalorder %v2135_v2, %v2137_v3  ;;  %v305_v19 = vsel %vm304_vm8, 1.0, %v2120_v18  ;;  %vm361_vm10 = vcmp.eq.s32.totalorder %v2135_v2, 1 }
   0x6   :  { %72 = vadd.xlane.f32.xlu0 %v71_v4  ;;  %v76_v13 = vsel %vm75_vm3, %v44_v1, 0.0  ;;  %v306_v20 = vsel %vm301_vm9, %v305_v19, 0.0  ;;  %vm371_vm11 = vcmp.eq.s32.totalorder %v2135_v2, 2  ;;  %vm381_vm12 = vcmp.eq.s32.totalorder %v2135_v2, 3 }
   0x7   :  { %v97_v40 = vadd.s32 8, %v2137_v3  ;;  %vm391_vm14 = vcmp.eq.s32.totalorder %v2135_v2, 4  ;;  %vm401_vm8 = vcmp.eq.s32.totalorder %v2135_v2, 5  ;;  %vm411_vm9 = vcmp.eq.s32.totalorder %v2135_v2, 6 }
   0x9   :  { %vm98_vm13 = vcmp.eq.s32.totalorder %v97_v40, %v2135_v2  ;;  %vm103_vm15 = vcmp.ge.s32.totalorder %v97_v40, %v2135_v2 }
   0xa   :  { %v100_v41 = vsel %vm98_vm13, %v46_v39, 0.0  ;;  %vm104_vm3 = vmand %vm103_vm15, %vm65_vm1  ;;  %vm459_vm13 = vcmp.eq.s32.totalorder %v2135_v2, 10  ;;  %vm487_vm15 = vcmp.eq.s32.totalorder %v2135_v2, 12 }
   0xb   :  { %v105_v56 = vsel %vm104_vm3, %v46_v39, 0.0  ;;  %vm501_vm3 = vcmp.eq.s32.totalorder %v2135_v2, 13 }
  0x79   :  { %v2141_v5 = vpop.xlane.xlu0 %72 }
  0x7a   :  { %2104 = vrcp.f32 %v2141_v5  ;;  %v88_v9 = vand.u32 2147483648, %v2141_v5  ;;  %v86_v11 = vand.u32 2147483647, %v2141_v5  ;;  %vm82_vm5 = vweird.f32 %v2141_v5 }
  0x7c   :  { %v89_v14 = vor.u32 1.1754944e-38, %v88_v9  ;;  %vm87_vm7 = vcmp.eq.f32.partialorder %v86_v11, 8.507059e+37 }
  0x80   :  { %v2105_v6 = vpop.eup %2104 }
  0x81   :  { %v78_v7 = vmul.f32 %v2105_v6, %v2141_v5  ;;  %vm83_vm4 = vweird.f32 %v2105_v6 }
  0x82   :  { %vm84_vm6 = vmor %vm82_vm5, %vm83_vm4 }
  0x83   :  { %v79_v8 = vsub.f32 1.0, %v78_v7 }
  0x85   :  { %v80_v10 = vmul.f32 %v2105_v6, %v79_v8 }
  0x87   :  { %v81_v12 = vadd.f32 %v2105_v6, %v80_v10 }
  0x89   :  { %v85_v15 = vsel %vm84_vm6, %v2105_v6, %v81_v12 }
  0x8a   :  { %v2155_v16 = vsel %vm87_vm7, %v89_v14, %v85_v15  ;;  %vm312_vm7 = vcmp.eq.s32.totalorder %v2135_v2, %v97_v40 }
  0x8b   :  { %v91_v17 = vmul.f32 %v2155_v16, %v76_v13  ;;  %v313_v62 = vsel %vm312_vm7, -1.0, %v2121_v61 }
  0x8d   :  { %92 = vst [vmem:[#allocation2] sm:$0xff] %v91_v17 }
  0x94   :  { %v357_v21 = vld [vmem:[#allocation2 + $0x1] ss:$0 sm:$0xff]  ;;  %v367_v24 = vld [vmem:[#allocation2 + $0x2] ss:$0 sm:$0xff]  ;;  %v377_v29 = vld [vmem:[#allocation2 + $0x3] ss:$0 sm:$0xff] }
  0x95   :  { %v358_v22 = vxor.u32 2147483648, %v357_v21  ;;  %v368_v26 = vxor.u32 2147483648, %v367_v24  ;;  %v378_v31 = vxor.u32 2147483648, %v377_v29  ;;  %v387_v34 = vld [vmem:[#allocation2 + $0x4] ss:$0 sm:$0xff] }
  0x96   :  { %v388_v36 = vxor.u32 2147483648, %v387_v34  ;;  %v397_v42 = vld [vmem:[#allocation2 + $0x5] ss:$0 sm:$0xff]  ;;  %v407_v60 = vld [vmem:[#allocation2 + $0x6] ss:$0 sm:$0xff] }
  0x97   :  { %v362_v23 = vmul.f32 %v358_v22, %v306_v20  ;;  %v398_v44 = vxor.u32 2147483648, %v397_v42  ;;  %v408_v1 = vxor.u32 2147483648, %v407_v60  ;;  %v417_v9 = vld [vmem:[#allocation2 + $0x7] ss:$0 sm:$0xff] }
  0x98   :  { %v418_v11 = vxor.u32 2147483648, %v417_v9 }
  0x99   :  { %363 = vadd.xlane.f32.xlu0 %v362_v23 }
 0x10c   :  { %v364_v25 = vpop.xlane.xlu0 %363 }
 0x10d   :  { %v365_v27 = vsel %vm361_vm10, %v364_v25, %v306_v20  ;;  %vm421_vm10 = vcmp.eq.s32.totalorder %v2135_v2, 7 }
 0x10e   :  { %v372_v28 = vmul.f32 %v368_v26, %v365_v27 }
 0x110   :  { %373 = vadd.xlane.f32.xlu1 %v372_v28 }
 0x183   :  { %v374_v30 = vpop.xlane.xlu1 %373 }
 0x184   :  { %v375_v32 = vsel %vm371_vm11, %v374_v30, %v365_v27  ;;  %vm431_vm11 = vcmp.eq.s32.totalorder %v2135_v2, 8 }
 0x185   :  { %v382_v33 = vmul.f32 %v378_v31, %v375_v32 }
 0x187   :  { %383 = vadd.xlane.f32.xlu1 %v382_v33 }
 0x18f   :  { %101 = vadd.xlane.f32.xlu1 %v100_v41 }
 0x1fa   :  { %v384_v35 = vpop.xlane.xlu1 %383 }
 0x1fb   :  { %v385_v37 = vsel %vm381_vm12, %v384_v35, %v375_v32  ;;  %vm445_vm12 = vcmp.eq.s32.totalorder %v2135_v2, 9 }
 0x1fc   :  { %v392_v38 = vmul.f32 %v388_v36, %v385_v37 }
 0x1fe   :  { %393 = vadd.xlane.f32.xlu2 %v392_v38 }
 0x202   :  { %v2170_v47 = vpop.xlane.xlu1 %101 }
 0x203   :  { %2106 = vrcp.f32 %v2170_v47  ;;  %v117_v50 = vand.u32 2147483648, %v2170_v47  ;;  %vm111_vm0 = vweird.f32 %v2170_v47  ;;  %v115_v52 = vand.u32 2147483647, %v2170_v47 }
 0x205   :  { %v118_v54 = vor.u32 1.1754944e-38, %v117_v50  ;;  %vm116_vm6 = vcmp.eq.f32.partialorder %v115_v52, 8.507059e+37 }
 0x209   :  { %v2107_v48 = vpop.eup %2106 }
 0x20a   :  { %v107_v49 = vmul.f32 %v2107_v48, %v2170_v47  ;;  %vm112_vm2 = vweird.f32 %v2107_v48 }
 0x20b   :  { %vm113_vm4 = vmor %vm111_vm0, %vm112_vm2 }
 0x20c   :  { %v108_v51 = vsub.f32 1.0, %v107_v49 }
 0x20e   :  { %v109_v53 = vmul.f32 %v2107_v48, %v108_v51 }
 0x210   :  { %v110_v55 = vadd.f32 %v2107_v48, %v109_v53 }
 0x212   :  { %v114_v57 = vsel %vm113_vm4, %v2107_v48, %v110_v55 }
 0x213   :  { %v2182_v58 = vsel %vm116_vm6, %v118_v54, %v114_v57  ;;  %v48_v57 = vld [vmem:[%s2920_s0 + $0x10] sm:$0xff] }
 0x214   :  { %v120_v59 = vmul.f32 %v2182_v58, %v105_v56  ;;  %v126_v56 = vadd.s32 16, %v2137_v3 }
 0x216   :  { %121 = vst [vmem:[#allocation2 + $0x8] sm:$0xff] %v120_v59  ;;  %vm127_vm2 = vcmp.eq.s32.totalorder %v126_v56, %v2135_v2  ;;  %vm132_vm4 = vcmp.ge.s32.totalorder %v126_v56, %v2135_v2 }
 0x217   :  { %v129_v59 = vsel %vm127_vm2, %v48_v57, 0.0  ;;  %vm579_vm2 = vcmp.eq.s32.totalorder %v2135_v2, 18 }
 0x21d   :  { %v427_v63 = vld [vmem:[#allocation2 + $0x8] ss:$0 sm:$0xff]  ;;  %v441_v18 = vld [vmem:[#allocation2 + $0x9] ss:$0 sm:$0xff]  ;;  %v455_v26 = vld [vmem:[#allocation2 + $0xa] ss:$0 sm:$0xff] }
 0x21e   :  { %v428_v4 = vxor.u32 2147483648, %v427_v63  ;;  %v442_v20 = vxor.u32 2147483648, %v441_v18  ;;  %v456_v28 = vxor.u32 2147483648, %v455_v26  ;;  %v469_v34 = vld [vmem:[#allocation2 + $0xb] ss:$0 sm:$0xff] }
 0x21f   :  { %v470_v36 = vxor.u32 2147483648, %v469_v34  ;;  %v483_v42 = vld [vmem:[#allocation2 + $0xc] ss:$0 sm:$0xff]  ;;  %v497_v51 = vld [vmem:[#allocation2 + $0xd] ss:$0 sm:$0xff] }
 0x220   :  { %v436_v8 = vmul.f32 %v428_v4, %v313_v62  ;;  %v498_v53 = vxor.u32 2147483648, %v497_v51 }
 0x222   :  { %437 = vadd.xlane.f32.xlu1 %v436_v8 }
 0x271   :  { %v394_v43 = vpop.xlane.xlu2 %393 }
 0x272   :  { %v395_v45 = vsel %vm391_vm14, %v394_v43, %v385_v37  ;;  %vm473_vm14 = vcmp.eq.s32.totalorder %v2135_v2, 11 }
 0x273   :  { %v402_v46 = vmul.f32 %v398_v44, %v395_v45  ;;  %v484_v44 = vxor.u32 2147483648, %v483_v42 }
 0x275   :  { %403 = vadd.xlane.f32.xlu2 %v402_v46 }
 0x295   :  { %v438_v19 = vpop.xlane.xlu1 %437 }
 0x296   :  { %v439_v21 = vsel %vm431_vm11, %v438_v19, %v313_v62 }
 0x297   :  { %v450_v22 = vmul.f32 %v442_v20, %v439_v21 }
 0x2e8   :  { %v404_v0 = vpop.xlane.xlu2 %403 }
 0x2e9   :  { %v405_v6 = vsel %vm401_vm8, %v404_v0, %v395_v45  ;;  %v511_v0 = vld [vmem:[#allocation2 + $0xe] ss:$0 sm:$0xff]  ;;  %vm133_vm8 = vmand %vm132_vm4, %vm65_vm1  ;;  %vm615_vm4 = vcmp.eq.s32.totalorder %v2135_v2, 20 }
 0x2ea   :  { %v412_v7 = vmul.f32 %v408_v1, %v405_v6  ;;  %v134_v18 = vsel %vm133_vm8, %v48_v57, 0.0 }
 0x2ec   :  { %413 = vadd.xlane.f32.xlu0 %v412_v7 }
 0x35f   :  { %v414_v10 = vpop.xlane.xlu0 %413 }
 0x360   :  { %v415_v12 = vsel %vm411_vm9, %v414_v10, %v405_v6 }
 0x361   :  { %v422_v13 = vmul.f32 %v418_v11, %v415_v12 }
 0x363   :  { %423 = vadd.xlane.f32.xlu2 %v422_v13 }
 0x3d6   :  { %v424_v14 = vpop.xlane.xlu2 %423 }
 0x3d7   :  { %v425_v15 = vsel %vm421_vm10, %v424_v14, %v415_v12 }
 0x3d8   :  { %v432_v17 = vmul.f32 %v428_v4, %v425_v15  ;;  %v512_v4 = vxor.u32 2147483648, %v511_v0 }
 0x3da   :  { %433 = vadd.xlane.f32.xlu0 %v432_v17 }
 0x3e2   :  { %451 = vadd.xlane.f32.xlu0 %v450_v22 }
 0x44d   :  { %v434_v23 = vpop.xlane.xlu0 %433 }
 0x44e   :  { %v435_v24 = vsel %vm431_vm11, %v434_v23, %v425_v15  ;;  %vm515_vm11 = vcmp.eq.s32.totalorder %v2135_v2, 14 }
 0x44f   :  { %v446_v25 = vmul.f32 %v442_v20, %v435_v24 }
 0x451   :  { %447 = vadd.xlane.f32.xlu2 %v446_v25  ;;  %v525_v25 = vld [vmem:[#allocation2 + $0xf] ss:$0 sm:$0xff] }
 0x455   :  { %v452_v27 = vpop.xlane.xlu0 %451 }
 0x456   :  { %v453_v29 = vsel %vm445_vm12, %v452_v27, %v439_v21  ;;  %v526_v27 = vxor.u32 2147483648, %v525_v25 }
 0x457   :  { %v464_v30 = vmul.f32 %v456_v28, %v453_v29 }
 0x459   :  { %465 = vadd.xlane.f32.xlu2 %v464_v30 }
 0x4c4   :  { %v448_v31 = vpop.xlane.xlu2 %447 }
 0x4c5   :  { %v449_v32 = vsel %vm445_vm12, %v448_v31, %v435_v24  ;;  %vm319_vm12 = vcmp.eq.s32.totalorder %v2135_v2, %v126_v56 }
 0x4c6   :  { %v460_v33 = vmul.f32 %v456_v28, %v449_v32 }
 0x4c8   :  { %461 = vadd.xlane.f32.xlu1 %v460_v33 }
 0x4cc   :  { %v466_v35 = vpop.xlane.xlu2 %465 }
 0x4cd   :  { %v467_v37 = vsel %vm459_vm13, %v466_v35, %v453_v29 }
 0x4ce   :  { %v478_v38 = vmul.f32 %v470_v36, %v467_v37 }
 0x4d0   :  { %479 = vadd.xlane.f32.xlu1 %v478_v38 }
 0x53b   :  { %v462_v39 = vpop.xlane.xlu1 %461 }
 0x53c   :  { %v463_v40 = vsel %vm459_vm13, %v462_v39, %v449_v32  ;;  %v320_v32 = vsel %vm319_vm12, -1.0, %v2121_v61  ;;  %vm529_vm13 = vcmp.eq.s32.totalorder %v2135_v2, 15 }
 0x53d   :  { %v474_v41 = vmul.f32 %v470_v36, %v463_v40 }
 0x53f   :  { %475 = vadd.xlane.f32.xlu0 %v474_v41 }
 0x543   :  { %v480_v43 = vpop.xlane.xlu1 %479 }
 0x544   :  { %v481_v45 = vsel %vm473_vm14, %v480_v43, %v467_v37 }
 0x545   :  { %v492_v46 = vmul.f32 %v484_v44, %v481_v45 }
 0x547   :  { %493 = vadd.xlane.f32.xlu0 %v492_v46 }
 0x5b2   :  { %v476_v48 = vpop.xlane.xlu0 %475 }
 0x5b3   :  { %v477_v49 = vsel %vm473_vm14, %v476_v48, %v463_v40  ;;  %vm543_vm14 = vcmp.eq.s32.totalorder %v2135_v2, 16 }
 0x5b4   :  { %v488_v50 = vmul.f32 %v484_v44, %v477_v49 }
 0x5b6   :  { %489 = vadd.xlane.f32.xlu2 %v488_v50 }
 0x5ba   :  { %v494_v52 = vpop.xlane.xlu0 %493 }
 0x5bb   :  { %v495_v54 = vsel %vm487_vm15, %v494_v52, %v481_v45 }
 0x5bc   :  { %v506_v55 = vmul.f32 %v498_v53, %v495_v54 }
 0x5be   :  { %507 = vadd.xlane.f32.xlu2 %v506_v55 }
 0x5c6   :  { %130 = vadd.xlane.f32.xlu2 %v129_v59 }
 0x629   :  { %v490_v60 = vpop.xlane.xlu2 %489 }
 0x62a   :  { %v491_v62 = vsel %vm487_vm15, %v490_v60, %v477_v49  ;;  %vm561_vm15 = vcmp.eq.s32.totalorder %v2135_v2, 17 }
 0x62b   :  { %v502_v63 = vmul.f32 %v498_v53, %v491_v62 }
 0x62d   :  { %503 = vadd.xlane.f32.xlu1 %v502_v63 }
 0x631   :  { %v508_v1 = vpop.xlane.xlu2 %507 }
 0x632   :  { %v509_v6 = vsel %vm501_vm3, %v508_v1, %v495_v54 }
 0x633   :  { %v520_v7 = vmul.f32 %v512_v4, %v509_v6 }
 0x635   :  { %521 = vadd.xlane.f32.xlu1 %v520_v7 }
 0x639   :  { %v2203_v8 = vpop.xlane.xlu2 %130 }
 0x63a   :  { %2108 = vrcp.f32 %v2203_v8  ;;  %v146_v11 = vand.u32 2147483648, %v2203_v8  ;;  %vm140_vm6 = vweird.f32 %v2203_v8  ;;  %v144_v13 = vand.u32 2147483647, %v2203_v8 }
 0x63c   :  { %v147_v15 = vor.u32 1.1754944e-38, %v146_v11  ;;  %vm145_vm10 = vcmp.eq.f32.partialorder %v144_v13, 8.507059e+37 }
 0x640   :  { %v2109_v9 = vpop.eup %2108 }
 0x641   :  { %v136_v10 = vmul.f32 %v2109_v9, %v2203_v8  ;;  %vm141_vm7 = vweird.f32 %v2109_v9 }
 0x642   :  { %vm142_vm9 = vmor %vm140_vm6, %vm141_vm7  ;;  %vm633_vm7 = vcmp.eq.s32.totalorder %v2135_v2, 21 }
 0x643   :  { %v137_v12 = vsub.f32 1.0, %v136_v10 }
 0x645   :  { %v138_v14 = vmul.f32 %v2109_v9, %v137_v12 }
 0x647   :  { %v139_v17 = vadd.f32 %v2109_v9, %v138_v14 }
 0x649   :  { %v143_v19 = vsel %vm142_vm9, %v2109_v9, %v139_v17  ;;  %vm651_vm9 = vcmp.eq.s32.totalorder %v2135_v2, 22 }
 0x64a   :  { %v2215_v20 = vsel %vm145_vm10, %v147_v15, %v143_v19 }
 0x64b   :  { %v149_v21 = vmul.f32 %v2215_v20, %v134_v18 }
 0x64d   :  { %150 = vst [vmem:[#allocation2 + $0x10] sm:$0xff] %v149_v21 }
 0x654   :  { %v539_v29 = vld [vmem:[#allocation2 + $0x10] ss:$0 sm:$0xff]  ;;  %v557_v40 = vld [vmem:[#allocation2 + $0x11] ss:$0 sm:$0xff]  ;;  %v575_v52 = vld [vmem:[#allocation2 + $0x12] ss:$0 sm:$0xff] }
 0x655   :  { %v540_v31 = vxor.u32 2147483648, %v539_v29  ;;  %v558_v41 = vxor.u32 2147483648, %v557_v40  ;;  %v576_v54 = vxor.u32 2147483648, %v575_v52  ;;  %v593_v1 = vld [vmem:[#allocation2 + $0x13] ss:$0 sm:$0xff] }
 0x656   :  { %v611_v17 = vld [vmem:[#allocation2 + $0x14] ss:$0 sm:$0xff]  ;;  %v629_v29 = vld [vmem:[#allocation2 + $0x15] ss:$0 sm:$0xff]  ;;  %v647_v40 = vld [vmem:[#allocation2 + $0x16] ss:$0 sm:$0xff] }
 0x657   :  { %v552_v33 = vmul.f32 %v540_v31, %v320_v32  ;;  %v612_v19 = vxor.u32 2147483648, %v611_v17 }
 0x6a0   :  { %v504_v22 = vpop.xlane.xlu1 %503 }
 0x6a1   :  { %v505_v23 = vsel %vm501_vm3, %v504_v22, %v491_v62  ;;  %vm597_vm3 = vcmp.eq.s32.totalorder %v2135_v2, 19 }
 0x6a2   :  { %v516_v24 = vmul.f32 %v512_v4, %v505_v23 }
 0x6a4   :  { %517 = vadd.xlane.f32.xlu0 %v516_v24 }
 0x6a8   :  { %v522_v26 = vpop.xlane.xlu1 %521 }
 0x6a9   :  { %v523_v28 = vsel %vm515_vm11, %v522_v26, %v509_v6  ;;  %v594_v6 = vxor.u32 2147483648, %v593_v1 }
 0x6aa   :  { %v534_v30 = vmul.f32 %v526_v27, %v523_v28 }
 0x6ac   :  { %535 = vadd.xlane.f32.xlu1 %v534_v30 }
 0x6b4   :  { %553 = vadd.xlane.f32.xlu1 %v552_v33 }
 0x717   :  { %v518_v34 = vpop.xlane.xlu0 %517 }
 0x718   :  { %v519_v35 = vsel %vm515_vm11, %v518_v34, %v505_v23 }
 0x719   :  { %v530_v36 = vmul.f32 %v526_v27, %v519_v35 }
 0x71b   :  { %531 = vadd.xlane.f32.xlu0 %v530_v36 }
 0x71f   :  { %v536_v37 = vpop.xlane.xlu1 %535 }
 0x720   :  { %v537_v38 = vsel %vm529_vm13, %v536_v37, %v523_v28 }
 0x721   :  { %v548_v39 = vmul.f32 %v540_v31, %v537_v38 }
 0x723   :  { %549 = vadd.xlane.f32.xlu0 %v548_v39 }
 0x727   :  { %v554_v42 = vpop.xlane.xlu1 %553 }
 0x728   :  { %v555_v43 = vsel %vm543_vm14, %v554_v42, %v320_v32  ;;  %v648_v42 = vxor.u32 2147483648, %v647_v40 }
 0x729   :  { %v570_v44 = vmul.f32 %v558_v41, %v555_v43 }
 0x72b   :  { %571 = vadd.xlane.f32.xlu1 %v570_v44 }
 0x78e   :  { %v532_v45 = vpop.xlane.xlu0 %531 }
 0x78f   :  { %v533_v46 = vsel %vm529_vm13, %v532_v45, %v519_v35 }
 0x790   :  { %v544_v48 = vmul.f32 %v540_v31, %v533_v46  ;;  %v630_v31 = vxor.u32 2147483648, %v629_v29 }
 0x792   :  { %545 = vadd.xlane.f32.xlu2 %v544_v48 }
 0x796   :  { %v550_v49 = vpop.xlane.xlu0 %549 }
 0x797   :  { %v551_v50 = vsel %vm543_vm14, %v550_v49, %v537_v38 }
 0x798   :  { %v566_v51 = vmul.f32 %v558_v41, %v551_v50 }
 0x79a   :  { %567 = vadd.xlane.f32.xlu0 %v566_v51 }
 0x79e   :  { %v572_v53 = vpop.xlane.xlu1 %571 }
 0x79f   :  { %v573_v55 = vsel %vm561_vm15, %v572_v53, %v555_v43 }
 0x7a0   :  { %v588_v56 = vmul.f32 %v576_v54, %v573_v55 }
 0x7a2   :  { %589 = vadd.xlane.f32.xlu1 %v588_v56  ;;  %v665_v56 = vld [vmem:[#allocation2 + $0x17] ss:$0 sm:$0xff] }
 0x805   :  { %v546_v57 = vpop.xlane.xlu2 %545 }
 0x806   :  { %v547_v59 = vsel %vm543_vm14, %v546_v57, %v533_v46  ;;  %v50_v57 = vld [vmem:[%s2920_s0 + $0x18] sm:$0xff] }
 0x807   :  { %v562_v60 = vmul.f32 %v558_v41, %v547_v59 }
 0x809   :  { %563 = vadd.xlane.f32.xlu2 %v562_v60  ;;  %v666_v60 = vxor.u32 2147483648, %v665_v56 }
 0x80d   :  { %v568_v62 = vpop.xlane.xlu0 %567 }
 0x80e   :  { %v569_v63 = vsel %vm561_vm15, %v568_v62, %v551_v50 }
 0x80f   :  { %v584_v0 = vmul.f32 %v576_v54, %v569_v63 }
 0x811   :  { %585 = vadd.xlane.f32.xlu0 %v584_v0 }
 0x815   :  { %v590_v4 = vpop.xlane.xlu1 %589 }
 0x816   :  { %v591_v7 = vsel %vm579_vm2, %v590_v4, %v573_v55  ;;  %v155_v55 = vadd.s32 24, %v2137_v3 }
 0x817   :  { %v606_v9 = vmul.f32 %v594_v6, %v591_v7 }
 0x818   :  { %vm156_vm8 = vcmp.eq.s32.totalorder %v155_v55, %v2135_v2  ;;  %vm161_vm10 = vcmp.ge.s32.totalorder %v155_v55, %v2135_v2 }
 0x819   :  { %607 = vadd.xlane.f32.xlu1 %v606_v9  ;;  %vm162_vm13 = vmand %vm161_vm10, %vm65_vm1  ;;  %vm775_vm10 = vcmp.eq.s32.totalorder %v2135_v2, 28 }
 0x87c   :  { %v564_v10 = vpop.xlane.xlu2 %563 }
 0x87d   :  { %v565_v11 = vsel %vm561_vm15, %v564_v10, %v547_v59 }
 0x87e   :  { %v580_v12 = vmul.f32 %v576_v54, %v565_v11 }
 0x880   :  { %581 = vadd.xlane.f32.xlu2 %v580_v12 }
 0x884   :  { %v586_v13 = vpop.xlane.xlu0 %585 }
 0x885   :  { %v587_v14 = vsel %vm579_vm2, %v586_v13, %v569_v63  ;;  %v158_v63 = vsel %vm156_vm8, %v50_v57, 0.0  ;;  %vm731_vm8 = vcmp.eq.s32.totalorder %v2135_v2, 26 }
 0x886   :  { %v602_v15 = vmul.f32 %v594_v6, %v587_v14 }
 0x888   :  { %603 = vadd.xlane.f32.xlu0 %v602_v15 }
 0x88c   :  { %v608_v18 = vpop.xlane.xlu1 %607 }
 0x88d   :  { %v609_v21 = vsel %vm597_vm3, %v608_v18, %v591_v7 }
 0x88e   :  { %v624_v22 = vmul.f32 %v612_v19, %v609_v21 }
 0x890   :  { %625 = vadd.xlane.f32.xlu1 %v624_v22  ;;  %v163_v22 = vsel %vm162_vm13, %v50_v57, 0.0 }
 0x8f3   :  { %v582_v23 = vpop.xlane.xlu2 %581 }
 0x8f4   :  { %v583_v24 = vsel %vm579_vm2, %v582_v23, %v565_v11  ;;  %vm669_vm2 = vcmp.eq.s32.totalorder %v2135_v2, 23 }
 0x8f5   :  { %v598_v25 = vmul.f32 %v594_v6, %v583_v24 }
 0x8f7   :  { %599 = vadd.xlane.f32.xlu2 %v598_v25 }
 0x8fb   :  { %v604_v26 = vpop.xlane.xlu0 %603 }
 0x8fc   :  { %v605_v27 = vsel %vm597_vm3, %v604_v26, %v587_v14 }
 0x8fd   :  { %v620_v28 = vmul.f32 %v612_v19, %v605_v27 }
 0x8ff   :  { %621 = vadd.xlane.f32.xlu0 %v620_v28 }
 0x903   :  { %v626_v30 = vpop.xlane.xlu1 %625 }
 0x904   :  { %v627_v32 = vsel %vm615_vm4, %v626_v30, %v609_v21 }
 0x905   :  { %v642_v33 = vmul.f32 %v630_v31, %v627_v32 }
 0x907   :  { %643 = vadd.xlane.f32.xlu1 %v642_v33 }
 0x96a   :  { %v600_v34 = vpop.xlane.xlu2 %599 }
 0x96b   :  { %v601_v35 = vsel %vm597_vm3, %v600_v34, %v583_v24  ;;  %vm326_vm3 = vcmp.eq.s32.totalorder %v2135_v2, %v155_v55 }
 0x96c   :  { %v616_v36 = vmul.f32 %v612_v19, %v601_v35 }
 0x96e   :  { %617 = vadd.xlane.f32.xlu2 %v616_v36 }
 0x972   :  { %v622_v37 = vpop.xlane.xlu0 %621 }
 0x973   :  { %v623_v38 = vsel %vm615_vm4, %v622_v37, %v605_v27  ;;  %v327_v37 = vsel %vm326_vm3, -1.0, %v2121_v61 }
 0x974   :  { %v638_v39 = vmul.f32 %v630_v31, %v623_v38 }
 0x976   :  { %639 = vadd.xlane.f32.xlu0 %v638_v39 }
 0x97a   :  { %v644_v41 = vpop.xlane.xlu1 %643 }
 0x97b   :  { %v645_v43 = vsel %vm633_vm7, %v644_v41, %v627_v32 }
 0x97c   :  { %v660_v44 = vmul.f32 %v648_v42, %v645_v43 }
 0x97e   :  { %661 = vadd.xlane.f32.xlu1 %v660_v44 }
 0x9e1   :  { %v618_v45 = vpop.xlane.xlu2 %617 }
 0x9e2   :  { %v619_v46 = vsel %vm615_vm4, %v618_v45, %v601_v35  ;;  %vm687_vm4 = vcmp.eq.s32.totalorder %v2135_v2, 24 }
 0x9e3   :  { %v634_v48 = vmul.f32 %v630_v31, %v619_v46 }
 0x9e5   :  { %635 = vadd.xlane.f32.xlu2 %v634_v48 }
 0x9e9   :  { %v640_v49 = vpop.xlane.xlu0 %639 }
 0x9ea   :  { %v641_v50 = vsel %vm633_vm7, %v640_v49, %v623_v38 }
 0x9eb   :  { %v656_v51 = vmul.f32 %v648_v42, %v641_v50 }
 0x9ed   :  { %657 = vadd.xlane.f32.xlu0 %v656_v51 }
 0x9f1   :  { %v662_v1 = vpop.xlane.xlu1 %661 }
 0x9f2   :  { %v663_v4 = vsel %vm651_vm9, %v662_v1, %v645_v43 }
 0x9f3   :  { %v678_v6 = vmul.f32 %v666_v60, %v663_v4 }
 0xa58   :  { %v636_v52 = vpop.xlane.xlu2 %635 }
 0xa59   :  { %v637_v53 = vsel %vm633_vm7, %v636_v52, %v619_v46  ;;  %vm709_vm7 = vcmp.eq.s32.totalorder %v2135_v2, 25 }
 0xa5a   :  { %v652_v54 = vmul.f32 %v648_v42, %v637_v53 }
 0xa5c   :  { %653 = vadd.xlane.f32.xlu2 %v652_v54 }
 0xa60   :  { %v658_v59 = vpop.xlane.xlu0 %657 }
 0xa61   :  { %v659_v62 = vsel %vm651_vm9, %v658_v59, %v641_v50 }
 0xa62   :  { %v674_v0 = vmul.f32 %v666_v60, %v659_v62 }
 0xa64   :  { %159 = vadd.xlane.f32.xlu2 %v158_v63  ;;  %675 = vadd.xlane.f32.xlu1 %v674_v0 }
 0xa6c   :  { %679 = vadd.xlane.f32.xlu2 %v678_v6 }
 0xacf   :  { %v654_v7 = vpop.xlane.xlu2 %653 }
 0xad0   :  { %v655_v9 = vsel %vm651_vm9, %v654_v7, %v637_v53  ;;  %vm753_vm9 = vcmp.eq.s32.totalorder %v2135_v2, 27 }
 0xad1   :  { %v670_v10 = vmul.f32 %v666_v60, %v655_v9 }
 0xad3   :  { %671 = vadd.xlane.f32.xlu0 %v670_v10 }
 0xad7   :  { %v2266_v11 = vpop.xlane.xlu2 %159  ;;  %v676_v26 = vpop.xlane.xlu1 %675 }
 0xad8   :  { %2110 = vrcp.f32 %v2266_v11  ;;  %v175_v14 = vand.u32 2147483648, %v2266_v11  ;;  %vm169_vm11 = vweird.f32 %v2266_v11  ;;  %v173_v17 = vand.u32 2147483647, %v2266_v11 }
 0xad9   :  { %v677_v30 = vsel %vm669_vm2, %v676_v26, %v659_v62 }
 0xada   :  { %v176_v19 = vor.u32 1.1754944e-38, %v175_v14  ;;  %vm174_vm15 = vcmp.eq.f32.partialorder %v173_v17, 8.507059e+37 }
 0xade   :  { %v2111_v12 = vpop.eup %2110 }
 0xadf   :  { %v165_v13 = vmul.f32 %v2111_v12, %v2266_v11  ;;  %vm170_vm12 = vweird.f32 %v2111_v12  ;;  %v680_v27 = vpop.xlane.xlu2 %679 }
 0xae0   :  { %vm171_vm14 = vmor %vm169_vm11, %vm170_vm12  ;;  %v681_v31 = vsel %vm669_vm2, %v680_v27, %v663_v4  ;;  %vm797_vm12 = vcmp.eq.s32.totalorder %v2135_v2, 29 }
 0xae1   :  { %v166_v15 = vsub.f32 1.0, %v165_v13 }
 0xae3   :  { %v167_v18 = vmul.f32 %v2111_v12, %v166_v15 }
 0xae5   :  { %v168_v21 = vadd.f32 %v2111_v12, %v167_v18 }
 0xae7   :  { %v172_v23 = vsel %vm171_vm14, %v2111_v12, %v168_v21  ;;  %vm819_vm14 = vcmp.eq.s32.totalorder %v2135_v2, 30 }
 0xae8   :  { %v2278_v24 = vsel %vm174_vm15, %v176_v19, %v172_v23 }
 0xae9   :  { %v178_v25 = vmul.f32 %v2278_v24, %v163_v22 }
 0xaeb   :  { %179 = vst [vmem:[#allocation2 + $0x18] sm:$0xff] %v178_v25 }
 0xaf2   :  { %v683_v28 = vld [vmem:[#allocation2 + $0x18] ss:$0 sm:$0xff]  ;;  %v705_v39 = vld [vmem:[#allocation2 + $0x19] ss:$0 sm:$0xff]  ;;  %v727_v54 = vld [vmem:[#allocation2 + $0x1a] ss:$0 sm:$0xff] }
 0xaf3   :  { %v684_v29 = vxor.u32 2147483648, %v683_v28  ;;  %v706_v42 = vxor.u32 2147483648, %v705_v39  ;;  %v728_v57 = vxor.u32 2147483648, %v727_v54  ;;  %v749_v10 = vld [vmem:[#allocation2 + $0x1b] ss:$0 sm:$0xff] }
 0xaf4   :  { %v750_v14 = vxor.u32 2147483648, %v749_v10  ;;  %v771_v28 = vld [vmem:[#allocation2 + $0x1c] ss:$0 sm:$0xff] }
 0xaf5   :  { %v696_v32 = vmul.f32 %v684_v29, %v681_v31  ;;  %v692_v33 = vmul.f32 %v684_v29, %v677_v30  ;;  %v700_v38 = vmul.f32 %v684_v29, %v327_v37 }
 0xaf7   :  { %697 = vadd.xlane.f32.xlu2 %v696_v32  ;;  %693 = vadd.xlane.f32.xlu1 %v692_v33 }
 0xb46   :  { %v672_v34 = vpop.xlane.xlu0 %671 }
 0xb47   :  { %v673_v35 = vsel %vm669_vm2, %v672_v34, %v655_v9 }
 0xb48   :  { %v688_v36 = vmul.f32 %v684_v29, %v673_v35 }
 0xb4a   :  { %689 = vadd.xlane.f32.xlu0 %v688_v36 }
 0xb52   :  { %701 = vadd.xlane.f32.xlu0 %v700_v38 }
 0xb6a   :  { %v698_v40 = vpop.xlane.xlu2 %697  ;;  %v694_v41 = vpop.xlane.xlu1 %693 }
 0xb6b   :  { %v699_v43 = vsel %vm687_vm4, %v698_v40, %v681_v31  ;;  %v695_v44 = vsel %vm687_vm4, %v694_v41, %v677_v30  ;;  %v772_v31 = vxor.u32 2147483648, %v771_v28 }
 0xb6c   :  { %v714_v45 = vmul.f32 %v706_v42, %v695_v44  ;;  %v718_v46 = vmul.f32 %v706_v42, %v699_v43 }
 0xb6e   :  { %715 = vadd.xlane.f32.xlu2 %v714_v45  ;;  %719 = vadd.xlane.f32.xlu0 %v718_v46 }
 0xbbd   :  { %v690_v48 = vpop.xlane.xlu0 %689 }
 0xbbe   :  { %v691_v49 = vsel %vm687_vm4, %v690_v48, %v673_v35 }
 0xbbf   :  { %v710_v50 = vmul.f32 %v706_v42, %v691_v49 }
 0xbc1   :  { %711 = vadd.xlane.f32.xlu1 %v710_v50 }
 0xbc5   :  { %v702_v51 = vpop.xlane.xlu0 %701 }
 0xbc6   :  { %v703_v52 = vsel %vm687_vm4, %v702_v51, %v327_v37 }
 0xbc7   :  { %v722_v53 = vmul.f32 %v706_v42, %v703_v52  ;;  %v793_v42 = vld [vmem:[#allocation2 + $0x1d] ss:$0 sm:$0xff] }
 0xbc8   :  { %v794_v45 = vxor.u32 2147483648, %v793_v42 }
 0xbc9   :  { %723 = vadd.xlane.f32.xlu1 %v722_v53 }
 0xbe1   :  { %v716_v55 = vpop.xlane.xlu2 %715  ;;  %v720_v56 = vpop.xlane.xlu0 %719 }
 0xbe2   :  { %v717_v59 = vsel %vm709_vm7, %v716_v55, %v695_v44  ;;  %v721_v60 = vsel %vm709_vm7, %v720_v56, %v699_v43 }
 0xbe3   :  { %v736_v62 = vmul.f32 %v728_v57, %v717_v59  ;;  %v740_v63 = vmul.f32 %v728_v57, %v721_v60 }
 0xbe5   :  { %737 = vadd.xlane.f32.xlu0 %v736_v62  ;;  %741 = vadd.xlane.f32.xlu1 %v740_v63 }
 0xc34   :  { %v712_v0 = vpop.xlane.xlu1 %711 }
 0xc35   :  { %v713_v1 = vsel %vm709_vm7, %v712_v0, %v691_v49 }
 0xc36   :  { %v732_v4 = vmul.f32 %v728_v57, %v713_v1 }
 0xc38   :  { %733 = vadd.xlane.f32.xlu2 %v732_v4 }
 0xc3c   :  { %v724_v6 = vpop.xlane.xlu1 %723 }
 0xc3d   :  { %v725_v7 = vsel %vm709_vm7, %v724_v6, %v703_v52  ;;  %v2295_v6 = vadd.s32 32, %v2137_v3 }
 0xc3e   :  { %v744_v9 = vmul.f32 %v728_v57, %v725_v7  ;;  %v815_v57 = vld [vmem:[#allocation2 + $0x1e] ss:$0 sm:$0xff] }
 0xc3f   :  { %v816_v62 = vxor.u32 2147483648, %v815_v57  ;;  %vm185_vm13 = vcmp.eq.s32.totalorder %v2295_v6, %v2135_v2  ;;  %vm190_vm15 = vcmp.ge.s32.totalorder %v2295_v6, %v2135_v2 }
 0xc40   :  { %745 = vadd.xlane.f32.xlu2 %v744_v9  ;;  %vm191_vm4 = vmand %vm190_vm15, %vm65_vm1  ;;  %vm941_vm15 = vcmp.eq.s32.totalorder %v2135_v2, 35 }
 0xc58   :  { %v742_v12 = vpop.xlane.xlu1 %741  ;;  %v738_v13 = vpop.xlane.xlu0 %737 }
 0xc59   :  { %v743_v15 = vsel %vm731_vm8, %v742_v12, %v721_v60  ;;  %v739_v17 = vsel %vm731_vm8, %v738_v13, %v717_v59 }
 0xc5a   :  { %v762_v18 = vmul.f32 %v750_v14, %v743_v15  ;;  %v758_v19 = vmul.f32 %v750_v14, %v739_v17 }
 0xc5c   :  { %763 = vadd.xlane.f32.xlu2 %v762_v18  ;;  %759 = vadd.xlane.f32.xlu1 %v758_v19  ;;  %v837_v18 = vld [vmem:[#allocation2 + $0x1f] ss:$0 sm:$0xff] }
 0xcab   :  { %v734_v21 = vpop.xlane.xlu2 %733 }
 0xcac   :  { %v735_v22 = vsel %vm731_vm8, %v734_v21, %v713_v1 }
 0xcad   :  { %v754_v23 = vmul.f32 %v750_v14, %v735_v22 }
 0xcaf   :  { %755 = vadd.xlane.f32.xlu0 %v754_v23 }
 0xcb3   :  { %v746_v25 = vpop.xlane.xlu2 %745 }
 0xcb4   :  { %v747_v26 = vsel %vm731_vm8, %v746_v25, %v725_v7  ;;  %v52_v7 = vld [vmem:[%s2920_s0 + $0x20] sm:$0xff] }
 0xcb5   :  { %v766_v27 = vmul.f32 %v750_v14, %v747_v26  ;;  %v187_v9 = vsel %vm185_vm13, %v52_v7, 0.0  ;;  %vm889_vm13 = vcmp.eq.s32.totalorder %v2135_v2, 33 }
 0xcb7   :  { %767 = vadd.xlane.f32.xlu0 %v766_v27 }
 0xccf   :  { %v764_v29 = vpop.xlane.xlu2 %763  ;;  %v760_v30 = vpop.xlane.xlu1 %759 }
 0xcd0   :  { %v765_v32 = vsel %vm753_vm9, %v764_v29, %v743_v15  ;;  %v761_v33 = vsel %vm753_vm9, %v760_v30, %v739_v17 }
 0xcd1   :  { %v784_v34 = vmul.f32 %v772_v31, %v765_v32  ;;  %v780_v35 = vmul.f32 %v772_v31, %v761_v33 }
 0xcd3   :  { %785 = vadd.xlane.f32.xlu0 %v784_v34  ;;  %781 = vadd.xlane.f32.xlu2 %v780_v35 }
 0xd22   :  { %v756_v36 = vpop.xlane.xlu0 %755 }
 0xd23   :  { %v757_v37 = vsel %vm753_vm9, %v756_v36, %v735_v22  ;;  %v838_v22 = vxor.u32 2147483648, %v837_v18 }
 0xd24   :  { %v776_v38 = vmul.f32 %v772_v31, %v757_v37 }
 0xd26   :  { %777 = vadd.xlane.f32.xlu1 %v776_v38 }
 0xd2a   :  { %v768_v39 = vpop.xlane.xlu0 %767 }
 0xd2b   :  { %v769_v40 = vsel %vm753_vm9, %v768_v39, %v747_v26  ;;  %vm841_vm9 = vcmp.eq.s32.totalorder %v2135_v2, 31 }
 0xd2c   :  { %v788_v41 = vmul.f32 %v772_v31, %v769_v40 }
 0xd2e   :  { %789 = vadd.xlane.f32.xlu1 %v788_v41 }
 0xd46   :  { %v782_v43 = vpop.xlane.xlu2 %781  ;;  %v786_v44 = vpop.xlane.xlu0 %785 }
 0xd47   :  { %v783_v46 = vsel %vm775_vm10, %v782_v43, %v761_v33  ;;  %v787_v48 = vsel %vm775_vm10, %v786_v44, %v765_v32 }
 0xd48   :  { %v802_v49 = vmul.f32 %v794_v45, %v783_v46  ;;  %v806_v50 = vmul.f32 %v794_v45, %v787_v48 }
 0xd4a   :  { %803 = vadd.xlane.f32.xlu0 %v802_v49  ;;  %807 = vadd.xlane.f32.xlu1 %v806_v50 }
 0xd99   :  { %v778_v51 = vpop.xlane.xlu1 %777 }
 0xd9a   :  { %v779_v52 = vsel %vm775_vm10, %v778_v51, %v757_v37  ;;  %v192_v37 = vsel %vm191_vm4, %v52_v7, 0.0  ;;  %vm993_vm4 = vcmp.eq.s32.totalorder %v2135_v2, 37 }
 0xd9b   :  { %v798_v53 = vmul.f32 %v794_v45, %v779_v52 }
 0xd9d   :  { %799 = vadd.xlane.f32.xlu2 %v798_v53 }
 0xda1   :  { %v790_v54 = vpop.xlane.xlu1 %789 }
 0xda2   :  { %v791_v55 = vsel %vm775_vm10, %v790_v54, %v769_v40  ;;  %vm333_vm10 = vcmp.eq.s32.totalorder %v2135_v2, %v2295_v6 }
 0xda3   :  { %v810_v56 = vmul.f32 %v794_v45, %v791_v55 }
 0xda5   :  { %811 = vadd.xlane.f32.xlu2 %v810_v56  ;;  %v334_v56 = vsel %vm333_vm10, -1.0, %v2121_v61 }
 0xdbd   :  { %v808_v59 = vpop.xlane.xlu1 %807  ;;  %v804_v60 = vpop.xlane.xlu0 %803 }
 0xdbe   :  { %v809_v63 = vsel %vm797_vm12, %v808_v59, %v787_v48  ;;  %v805_v0 = vsel %vm797_vm12, %v804_v60, %v783_v46 }
 0xdbf   :  { %v828_v1 = vmul.f32 %v816_v62, %v809_v63  ;;  %v824_v4 = vmul.f32 %v816_v62, %v805_v0 }
 0xdc1   :  { %829 = vadd.xlane.f32.xlu2 %v828_v1  ;;  %825 = vadd.xlane.f32.xlu1 %v824_v4 }
 0xdc9   :  { %188 = vadd.xlane.f32.xlu1 %v187_v9 }
 0xe10   :  { %v800_v10 = vpop.xlane.xlu2 %799 }
 0xe11   :  { %v801_v12 = vsel %vm797_vm12, %v800_v10, %v779_v52 }
 0xe12   :  { %v820_v13 = vmul.f32 %v816_v62, %v801_v12 }
 0xe14   :  { %821 = vadd.xlane.f32.xlu0 %v820_v13 }
 0xe18   :  { %v812_v14 = vpop.xlane.xlu2 %811 }
 0xe19   :  { %v813_v15 = vsel %vm797_vm12, %v812_v14, %v791_v55  ;;  %vm863_vm12 = vcmp.eq.s32.totalorder %v2135_v2, 32 }
 0xe1a   :  { %v832_v17 = vmul.f32 %v816_v62, %v813_v15 }
 0xe1c   :  { %833 = vadd.xlane.f32.xlu0 %v832_v17 }
 0xe34   :  { %v830_v19 = vpop.xlane.xlu2 %829  ;;  %v826_v21 = vpop.xlane.xlu1 %825 }
 0xe35   :  { %v831_v23 = vsel %vm819_vm14, %v830_v19, %v809_v63  ;;  %v827_v25 = vsel %vm819_vm14, %v826_v21, %v805_v0 }
 0xe36   :  { %v850_v26 = vmul.f32 %v838_v22, %v831_v23  ;;  %v846_v27 = vmul.f32 %v838_v22, %v827_v25 }
 0xe38   :  { %851 = vadd.xlane.f32.xlu1 %v850_v26  ;;  %847 = vadd.xlane.f32.xlu0 %v846_v27 }
 0xe3c   :  { %v2311_v28 = vpop.xlane.xlu1 %188 }
 0xe3d   :  { %2112 = vrcp.f32 %v2311_v28  ;;  %v204_v31 = vand.u32 2147483648, %v2311_v28  ;;  %vm198_vm2 = vweird.f32 %v2311_v28  ;;  %v202_v33 = vand.u32 2147483647, %v2311_v28 }
 0xe3f   :  { %v205_v35 = vor.u32 1.1754944e-38, %v204_v31  ;;  %vm203_vm8 = vcmp.eq.f32.partialorder %v202_v33, 8.507059e+37 }
 0xe43   :  { %v2113_v29 = vpop.eup %2112 }
 0xe44   :  { %v194_v30 = vmul.f32 %v2113_v29, %v2311_v28  ;;  %vm199_vm3 = vweird.f32 %v2113_v29 }
 0xe45   :  { %vm200_vm7 = vmor %vm198_vm2, %vm199_vm3  ;;  %vm967_vm3 = vcmp.eq.s32.totalorder %v2135_v2, 36 }
 0xe46   :  { %v195_v32 = vsub.f32 1.0, %v194_v30 }
 0xe48   :  { %v196_v34 = vmul.f32 %v2113_v29, %v195_v32 }
 0xe4a   :  { %v197_v36 = vadd.f32 %v2113_v29, %v196_v34 }
 0xe4c   :  { %v201_v38 = vsel %vm200_vm7, %v2113_v29, %v197_v36 }
 0xe4d   :  { %v2324_v39 = vsel %vm203_vm8, %v205_v35, %v201_v38  ;;  %vm1019_vm8 = vcmp.eq.s32.totalorder %v2135_v2, 38 }
 0xe4e   :  { %v207_v40 = vmul.f32 %v2324_v39, %v192_v37 }
 0xe50   :  { %208 = vst [vmem:[#allocation2 + $0x20] sm:$0xff] %v207_v40 }
 0xe57   :  { %v859_v48 = vld [vmem:[#allocation2 + $0x20] ss:$0 sm:$0xff]  ;;  %v885_v4 = vld [vmem:[#allocation2 + $0x21] ss:$0 sm:$0xff]  ;;  %v911_v27 = vld [vmem:[#allocation2 + $0x22] ss:$0 sm:$0xff] }
 0xe58   :  { %v860_v49 = vxor.u32 2147483648, %v859_v48  ;;  %v886_v9 = vxor.u32 2147483648, %v885_v4  ;;  %v912_v31 = vxor.u32 2147483648, %v911_v27  ;;  %v963_v4 = vld [vmem:[#allocation2 + $0x24] ss:$0 sm:$0xff] }
 0xe59   :  { %v989_v27 = vld [vmem:[#allocation2 + $0x25] ss:$0 sm:$0xff] }
 0xe5a   :  { %v880_v57 = vmul.f32 %v860_v49, %v334_v56 }
 0xe87   :  { %v822_v41 = vpop.xlane.xlu0 %821 }
 0xe88   :  { %v823_v42 = vsel %vm819_vm14, %v822_v41, %v801_v12 }
 0xe89   :  { %v842_v43 = vmul.f32 %v838_v22, %v823_v42 }
 0xe8b   :  { %843 = vadd.xlane.f32.xlu2 %v842_v43 }
 0xe8f   :  { %v834_v44 = vpop.xlane.xlu0 %833 }
 0xe90   :  { %v835_v45 = vsel %vm819_vm14, %v834_v44, %v813_v15  ;;  %vm915_vm14 = vcmp.eq.s32.totalorder %v2135_v2, 34 }
 0xe91   :  { %v854_v46 = vmul.f32 %v838_v22, %v835_v45 }
 0xe93   :  { %855 = vadd.xlane.f32.xlu2 %v854_v46  ;;  %v937_v46 = vld [vmem:[#allocation2 + $0x23] ss:$0 sm:$0xff] }
 0xeab   :  { %v852_v50 = vpop.xlane.xlu1 %851  ;;  %v848_v51 = vpop.xlane.xlu0 %847 }
 0xeac   :  { %v853_v52 = vsel %vm841_vm9, %v852_v50, %v831_v23  ;;  %v849_v53 = vsel %vm841_vm9, %v848_v51, %v827_v25  ;;  %v938_v50 = vxor.u32 2147483648, %v937_v46  ;;  %v1015_v46 = vld [vmem:[#allocation2 + $0x26] ss:$0 sm:$0xff] }
 0xead   :  { %v872_v54 = vmul.f32 %v860_v49, %v853_v52  ;;  %v868_v55 = vmul.f32 %v860_v49, %v849_v53 }
 0xeaf   :  { %873 = vadd.xlane.f32.xlu2 %v872_v54  ;;  %869 = vadd.xlane.f32.xlu1 %v868_v55 }
 0xeb7   :  { %881 = vadd.xlane.f32.xlu1 %v880_v57 }
 0xefe   :  { %v844_v59 = vpop.xlane.xlu2 %843 }
 0xeff   :  { %v845_v60 = vsel %vm841_vm9, %v844_v59, %v823_v42 }
 0xf00   :  { %v864_v62 = vmul.f32 %v860_v49, %v845_v60 }
 0xf02   :  { %865 = vadd.xlane.f32.xlu0 %v864_v62 }
 0xf06   :  { %v856_v63 = vpop.xlane.xlu2 %855 }
 0xf07   :  { %v857_v0 = vsel %vm841_vm9, %v856_v63, %v835_v45 }
 0xf08   :  { %v876_v1 = vmul.f32 %v860_v49, %v857_v0 }
 0xf0a   :  { %877 = vadd.xlane.f32.xlu0 %v876_v1 }
 0xf22   :  { %v874_v6 = vpop.xlane.xlu2 %873  ;;  %v870_v7 = vpop.xlane.xlu1 %869 }
 0xf23   :  { %v875_v10 = vsel %vm863_vm12, %v874_v6, %v853_v52  ;;  %v871_v12 = vsel %vm863_vm12, %v870_v7, %v849_v53 }
 0xf24   :  { %v898_v13 = vmul.f32 %v886_v9, %v875_v10  ;;  %v894_v14 = vmul.f32 %v886_v9, %v871_v12 }
 0xf26   :  { %899 = vadd.xlane.f32.xlu1 %v898_v13  ;;  %895 = vadd.xlane.f32.xlu0 %v894_v14 }
 0xf2a   :  { %v882_v15 = vpop.xlane.xlu1 %881 }
 0xf2b   :  { %v883_v17 = vsel %vm863_vm12, %v882_v15, %v334_v56 }
 0xf2c   :  { %v906_v18 = vmul.f32 %v886_v9, %v883_v17 }
 0xf2e   :  { %907 = vadd.xlane.f32.xlu0 %v906_v18 }
 0xf75   :  { %v866_v19 = vpop.xlane.xlu0 %865 }
 0xf76   :  { %v867_v21 = vsel %vm863_vm12, %v866_v19, %v845_v60 }
 0xf77   :  { %v890_v22 = vmul.f32 %v886_v9, %v867_v21 }
 0xf79   :  { %891 = vadd.xlane.f32.xlu2 %v890_v22 }
 0xf7d   :  { %v878_v23 = vpop.xlane.xlu0 %877 }
 0xf7e   :  { %v879_v25 = vsel %vm863_vm12, %v878_v23, %v857_v0 }
 0xf7f   :  { %v902_v26 = vmul.f32 %v886_v9, %v879_v25  ;;  %v964_v9 = vxor.u32 2147483648, %v963_v4 }
 0xf81   :  { %903 = vadd.xlane.f32.xlu2 %v902_v26 }
 0xf99   :  { %v900_v29 = vpop.xlane.xlu1 %899  ;;  %v896_v30 = vpop.xlane.xlu0 %895 }
 0xf9a   :  { %v901_v32 = vsel %vm889_vm13, %v900_v29, %v875_v10  ;;  %v897_v33 = vsel %vm889_vm13, %v896_v30, %v871_v12 }
 0xf9b   :  { %v924_v34 = vmul.f32 %v912_v31, %v901_v32  ;;  %v920_v35 = vmul.f32 %v912_v31, %v897_v33 }
 0xf9d   :  { %925 = vadd.xlane.f32.xlu0 %v924_v34  ;;  %921 = vadd.xlane.f32.xlu2 %v920_v35 }
 0xfa1   :  { %v908_v36 = vpop.xlane.xlu0 %907 }
 0xfa2   :  { %v909_v37 = vsel %vm889_vm13, %v908_v36, %v883_v17 }
 0xfa3   :  { %v932_v38 = vmul.f32 %v912_v31, %v909_v37 }
 0xfa5   :  { %933 = vadd.xlane.f32.xlu2 %v932_v38 }
 0xfec   :  { %v892_v40 = vpop.xlane.xlu2 %891 }
 0xfed   :  { %v893_v41 = vsel %vm889_vm13, %v892_v40, %v867_v21 }
 0xfee   :  { %v916_v42 = vmul.f32 %v912_v31, %v893_v41 }
 0xff0   :  { %917 = vadd.xlane.f32.xlu1 %v916_v42 }
 0xff4   :  { %v904_v43 = vpop.xlane.xlu2 %903 }
 0xff5   :  { %v905_v44 = vsel %vm889_vm13, %v904_v43, %v879_v25 }
 0xff6   :  { %v928_v45 = vmul.f32 %v912_v31, %v905_v44  ;;  %v990_v31 = vxor.u32 2147483648, %v989_v27 }
 0xff8   :  { %929 = vadd.xlane.f32.xlu1 %v928_v45 }
0x1010   :  { %v922_v48 = vpop.xlane.xlu2 %921  ;;  %v926_v49 = vpop.xlane.xlu0 %925 }
0x1011   :  { %v923_v51 = vsel %vm915_vm14, %v922_v48, %v897_v33  ;;  %v927_v52 = vsel %vm915_vm14, %v926_v49, %v901_v32 }
0x1012   :  { %v946_v53 = vmul.f32 %v938_v50, %v923_v51  ;;  %v950_v54 = vmul.f32 %v938_v50, %v927_v52 }
0x1014   :  { %947 = vadd.xlane.f32.xlu1 %v946_v53  ;;  %951 = vadd.xlane.f32.xlu2 %v950_v54 }
0x1018   :  { %v934_v55 = vpop.xlane.xlu2 %933 }
0x1019   :  { %v935_v56 = vsel %vm915_vm14, %v934_v55, %v909_v37 }
0x101a   :  { %v958_v57 = vmul.f32 %v938_v50, %v935_v56 }
0x101c   :  { %959 = vadd.xlane.f32.xlu1 %v958_v57 }
0x1063   :  { %v918_v59 = vpop.xlane.xlu1 %917 }
0x1064   :  { %v919_v60 = vsel %vm915_vm14, %v918_v59, %v893_v41  ;;  %v2406_v59 = vadd.s32 40, %v2137_v3 }
0x1065   :  { %v942_v62 = vmul.f32 %v938_v50, %v919_v60 }
0x1066   :  { %vm214_vm7 = vcmp.eq.s32.totalorder %v2406_v59, %v2135_v2  ;;  %vm219_vm9 = vcmp.ge.s32.totalorder %v2406_v59, %v2135_v2 }
0x1067   :  { %943 = vadd.xlane.f32.xlu0 %v942_v62  ;;  %vm220_vm13 = vmand %vm219_vm9, %vm65_vm1  ;;  %vm1131_vm9 = vcmp.eq.s32.totalorder %v2135_v2, 42 }
0x106b   :  { %v930_v63 = vpop.xlane.xlu1 %929 }
0x106c   :  { %v931_v0 = vsel %vm915_vm14, %v930_v63, %v905_v44 }
0x106d   :  { %v954_v1 = vmul.f32 %v938_v50, %v931_v0  ;;  %v1016_v50 = vxor.u32 2147483648, %v1015_v46 }
0x106f   :  { %955 = vadd.xlane.f32.xlu0 %v954_v1 }
0x1087   :  { %v948_v6 = vpop.xlane.xlu1 %947  ;;  %v952_v7 = vpop.xlane.xlu2 %951 }
0x1088   :  { %v949_v10 = vsel %vm941_vm15, %v948_v6, %v923_v51  ;;  %v953_v12 = vsel %vm941_vm15, %v952_v7, %v927_v52 }
0x1089   :  { %v972_v13 = vmul.f32 %v964_v9, %v949_v10  ;;  %v976_v14 = vmul.f32 %v964_v9, %v953_v12 }
0x108b   :  { %973 = vadd.xlane.f32.xlu0 %v972_v13  ;;  %977 = vadd.xlane.f32.xlu1 %v976_v14 }
0x108f   :  { %v960_v15 = vpop.xlane.xlu1 %959 }
0x1090   :  { %v961_v17 = vsel %vm941_vm15, %v960_v15, %v935_v56 }
0x1091   :  { %v984_v18 = vmul.f32 %v964_v9, %v961_v17 }
0x1093   :  { %985 = vadd.xlane.f32.xlu0 %v984_v18 }
0x10da   :  { %v944_v19 = vpop.xlane.xlu0 %943 }
0x10db   :  { %v945_v21 = vsel %vm941_vm15, %v944_v19, %v919_v60  ;;  %v54_v60 = vld [vmem:[%s2920_s0 + $0x28] sm:$0xff] }
0x10dc   :  { %v968_v22 = vmul.f32 %v964_v9, %v945_v21  ;;  %v216_v62 = vsel %vm214_vm7, %v54_v60, 0.0  ;;  %vm1071_vm7 = vcmp.eq.s32.totalorder %v2135_v2, 40 }
0x10de   :  { %969 = vadd.xlane.f32.xlu2 %v968_v22 }
0x10e2   :  { %v956_v23 = vpop.xlane.xlu0 %955 }
0x10e3   :  { %v957_v25 = vsel %vm941_vm15, %v956_v23, %v931_v0 }
0x10e4   :  { %v980_v26 = vmul.f32 %v964_v9, %v957_v25  ;;  %v1041_v9 = vld [vmem:[#allocation2 + $0x27] ss:$0 sm:$0xff] }
0x10e5   :  { %v1042_v13 = vxor.u32 2147483648, %v1041_v9 }
0x10e6   :  { %981 = vadd.xlane.f32.xlu2 %v980_v26 }
0x10fe   :  { %v978_v29 = vpop.xlane.xlu1 %977  ;;  %v974_v30 = vpop.xlane.xlu0 %973 }
0x10ff   :  { %v979_v32 = vsel %vm967_vm3, %v978_v29, %v953_v12  ;;  %v975_v33 = vsel %vm967_vm3, %v974_v30, %v949_v10 }
0x1100   :  { %v1002_v34 = vmul.f32 %v990_v31, %v979_v32  ;;  %v998_v35 = vmul.f32 %v990_v31, %v975_v33 }
0x1102   :  { %1003 = vadd.xlane.f32.xlu0 %v1002_v34  ;;  %999 = vadd.xlane.f32.xlu2 %v998_v35  ;;  %v221_v34 = vsel %vm220_vm13, %v54_v60, 0.0  ;;  %vm1191_vm13 = vcmp.eq.s32.totalorder %v2135_v2, 44 }
0x1106   :  { %v986_v36 = vpop.xlane.xlu0 %985 }
0x1107   :  { %v987_v37 = vsel %vm967_vm3, %v986_v36, %v961_v17 }
0x1108   :  { %v1010_v38 = vmul.f32 %v990_v31, %v987_v37 }
0x110a   :  { %1011 = vadd.xlane.f32.xlu2 %v1010_v38 }
0x1151   :  { %v970_v40 = vpop.xlane.xlu2 %969 }
0x1152   :  { %v971_v41 = vsel %vm967_vm3, %v970_v40, %v945_v21 }
0x1153   :  { %v994_v42 = vmul.f32 %v990_v31, %v971_v41 }
0x1155   :  { %995 = vadd.xlane.f32.xlu1 %v994_v42 }
0x1159   :  { %v982_v43 = vpop.xlane.xlu2 %981 }
0x115a   :  { %v983_v44 = vsel %vm967_vm3, %v982_v43, %v957_v25  ;;  %vm1045_vm3 = vcmp.eq.s32.totalorder %v2135_v2, 39 }
0x115b   :  { %v1006_v45 = vmul.f32 %v990_v31, %v983_v44 }
0x115d   :  { %1007 = vadd.xlane.f32.xlu1 %v1006_v45 }
0x1175   :  { %v1000_v48 = vpop.xlane.xlu2 %999  ;;  %v1004_v49 = vpop.xlane.xlu0 %1003 }
0x1176   :  { %v1001_v51 = vsel %vm993_vm4, %v1000_v48, %v975_v33  ;;  %v1005_v52 = vsel %vm993_vm4, %v1004_v49, %v979_v32 }
0x1177   :  { %v1024_v53 = vmul.f32 %v1016_v50, %v1001_v51  ;;  %v1028_v54 = vmul.f32 %v1016_v50, %v1005_v52 }
0x1179   :  { %1025 = vadd.xlane.f32.xlu1 %v1024_v53  ;;  %1029 = vadd.xlane.f32.xlu2 %v1028_v54 }
0x117d   :  { %v1012_v55 = vpop.xlane.xlu2 %1011 }
0x117e   :  { %v1013_v56 = vsel %vm993_vm4, %v1012_v55, %v987_v37 }
0x117f   :  { %v1036_v57 = vmul.f32 %v1016_v50, %v1013_v56 }
0x1181   :  { %1037 = vadd.xlane.f32.xlu1 %v1036_v57  ;;  %217 = vadd.xlane.f32.xlu2 %v216_v62 }
0x11c8   :  { %v996_v63 = vpop.xlane.xlu1 %995 }
0x11c9   :  { %v997_v0 = vsel %vm993_vm4, %v996_v63, %v971_v41 }
0x11ca   :  { %v1020_v1 = vmul.f32 %v1016_v50, %v997_v0 }
0x11cc   :  { %1021 = vadd.xlane.f32.xlu0 %v1020_v1 }
0x11d0   :  { %v1008_v4 = vpop.xlane.xlu1 %1007 }
0x11d1   :  { %v1009_v6 = vsel %vm993_vm4, %v1008_v4, %v983_v44  ;;  %vm340_vm4 = vcmp.eq.s32.totalorder %v2135_v2, %v2406_v59 }
0x11d2   :  { %v1032_v7 = vmul.f32 %v1016_v50, %v1009_v6  ;;  %v341_v54 = vsel %vm340_vm4, -1.0, %v2121_v61 }
0x11d4   :  { %1033 = vadd.xlane.f32.xlu0 %v1032_v7 }
0x11ec   :  { %v1026_v10 = vpop.xlane.xlu1 %1025  ;;  %v1030_v12 = vpop.xlane.xlu2 %1029 }
0x11ed   :  { %v1027_v14 = vsel %vm1019_vm8, %v1026_v10, %v1001_v51  ;;  %v1031_v15 = vsel %vm1019_vm8, %v1030_v12, %v1005_v52 }
0x11ee   :  { %v1050_v17 = vmul.f32 %v1042_v13, %v1027_v14  ;;  %v1054_v18 = vmul.f32 %v1042_v13, %v1031_v15 }
0x11f0   :  { %1051 = vadd.xlane.f32.xlu1 %v1050_v17  ;;  %1055 = vadd.xlane.f32.xlu2 %v1054_v18 }
0x11f4   :  { %v1038_v19 = vpop.xlane.xlu1 %1037  ;;  %v2424_v23 = vpop.xlane.xlu2 %217 }
0x11f5   :  { %v1039_v21 = vsel %vm1019_vm8, %v1038_v19, %v1013_v56  ;;  %2114 = vrcp.f32 %v2424_v23  ;;  %v233_v27 = vand.u32 2147483648, %v2424_v23  ;;  %vm227_vm10 = vweird.f32 %v2424_v23 }
0x11f6   :  { %v1062_v22 = vmul.f32 %v1042_v13, %v1039_v21  ;;  %v231_v30 = vand.u32 2147483647, %v2424_v23 }
0x11f7   :  { %v234_v32 = vor.u32 1.1754944e-38, %v233_v27 }
0x11f8   :  { %1063 = vadd.xlane.f32.xlu1 %v1062_v22  ;;  %vm232_vm15 = vcmp.eq.f32.partialorder %v231_v30, 8.507059e+37 }
0x11fb   :  { %v2115_v25 = vpop.eup %2114 }
0x11fc   :  { %v223_v26 = vmul.f32 %v2115_v25, %v2424_v23  ;;  %vm228_vm12 = vweird.f32 %v2115_v25 }
0x11fd   :  { %vm229_vm14 = vmor %vm227_vm10, %vm228_vm12  ;;  %vm1161_vm12 = vcmp.eq.s32.totalorder %v2135_v2, 43 }
0x11fe   :  { %v224_v29 = vsub.f32 1.0, %v223_v26 }
0x1200   :  { %v225_v31 = vmul.f32 %v2115_v25, %v224_v29 }
0x1202   :  { %v226_v33 = vadd.f32 %v2115_v25, %v225_v31 }
0x1204   :  { %v230_v35 = vsel %vm229_vm14, %v2115_v25, %v226_v33  ;;  %vm1221_vm14 = vcmp.eq.s32.totalorder %v2135_v2, 45 }
0x1205   :  { %v2437_v36 = vsel %vm232_vm15, %v234_v32, %v230_v35 }
0x1206   :  { %v236_v37 = vmul.f32 %v2437_v36, %v221_v34 }
0x1208   :  { %237 = vst [vmem:[#allocation2 + $0x28] sm:$0xff] %v236_v37 }
0x120f   :  { %v1067_v45 = vld [vmem:[#allocation2 + $0x28] ss:$0 sm:$0xff]  ;;  %v1127_v33 = vld [vmem:[#allocation2 + $0x2a] ss:$0 sm:$0xff] }
0x1210   :  { %v1068_v46 = vxor.u32 2147483648, %v1067_v45  ;;  %v1128_v37 = vxor.u32 2147483648, %v1127_v33 }
0x1212   :  { %v1092_v56 = vmul.f32 %v1068_v46, %v341_v54 }
0x123f   :  { %v1022_v38 = vpop.xlane.xlu0 %1021 }
0x1240   :  { %v1023_v40 = vsel %vm1019_vm8, %v1022_v38, %v997_v0 }
0x1241   :  { %v1046_v41 = vmul.f32 %v1042_v13, %v1023_v40 }
0x1243   :  { %1047 = vadd.xlane.f32.xlu0 %v1046_v41 }
0x1247   :  { %v1034_v42 = vpop.xlane.xlu0 %1033 }
0x1248   :  { %v1035_v43 = vsel %vm1019_vm8, %v1034_v42, %v1009_v6  ;;  %v1097_v6 = vld [vmem:[#allocation2 + $0x29] ss:$0 sm:$0xff]  ;;  %vm1101_vm8 = vcmp.eq.s32.totalorder %v2135_v2, 41 }
0x1249   :  { %v1058_v44 = vmul.f32 %v1042_v13, %v1035_v43  ;;  %v1098_v10 = vxor.u32 2147483648, %v1097_v6 }
0x124b   :  { %1059 = vadd.xlane.f32.xlu0 %v1058_v44 }
0x1263   :  { %v1052_v48 = vpop.xlane.xlu1 %1051  ;;  %v1056_v49 = vpop.xlane.xlu2 %1055 }
0x1264   :  { %v1053_v50 = vsel %vm1045_vm3, %v1052_v48, %v1027_v14  ;;  %v1057_v51 = vsel %vm1045_vm3, %v1056_v49, %v1031_v15 }
0x1265   :  { %v1080_v52 = vmul.f32 %v1068_v46, %v1057_v51  ;;  %v1076_v53 = vmul.f32 %v1068_v46, %v1053_v50 }
0x1267   :  { %1081 = vadd.xlane.f32.xlu1 %v1080_v52  ;;  %1077 = vadd.xlane.f32.xlu0 %v1076_v53 }
0x126b   :  { %v1064_v55 = vpop.xlane.xlu1 %1063 }
0x126c   :  { %v1065_v57 = vsel %vm1045_vm3, %v1064_v55, %v1039_v21 }
0x126d   :  { %v1088_v60 = vmul.f32 %v1068_v46, %v1065_v57 }
0x126f   :  { %1093 = vadd.xlane.f32.xlu1 %v1092_v56  ;;  %1089 = vadd.xlane.f32.xlu0 %v1088_v60  ;;  %v1157_v56 = vld [vmem:[#allocation2 + $0x2b] ss:$0 sm:$0xff] }
0x12b6   :  { %v1048_v62 = vpop.xlane.xlu0 %1047 }
0x12b7   :  { %v1049_v63 = vsel %vm1045_vm3, %v1048_v62, %v1023_v40  ;;  %v1158_v62 = vxor.u32 2147483648, %v1157_v56 }
0x12b8   :  { %v1072_v0 = vmul.f32 %v1068_v46, %v1049_v63 }
0x12ba   :  { %1073 = vadd.xlane.f32.xlu2 %v1072_v0 }
0x12be   :  { %v1060_v1 = vpop.xlane.xlu0 %1059 }
0x12bf   :  { %v1061_v59 = vsel %vm1045_vm3, %v1060_v1, %v1035_v43  ;;  %vm1251_vm3 = vcmp.eq.s32.totalorder %v2135_v2, 46 }
0x12c0   :  { %v1084_v4 = vmul.f32 %v1068_v46, %v1061_v59 }
0x12c2   :  { %1085 = vadd.xlane.f32.xlu2 %v1084_v4 }
0x12da   :  { %v1082_v7 = vpop.xlane.xlu1 %1081  ;;  %v1078_v9 = vpop.xlane.xlu0 %1077 }
0x12db   :  { %v1083_v12 = vsel %vm1071_vm7, %v1082_v7, %v1057_v51  ;;  %v1079_v13 = vsel %vm1071_vm7, %v1078_v9, %v1053_v50 }
0x12dc   :  { %v1110_v14 = vmul.f32 %v1098_v10, %v1083_v12  ;;  %v1106_v15 = vmul.f32 %v1098_v10, %v1079_v13 }
0x12de   :  { %1111 = vadd.xlane.f32.xlu1 %v1110_v14  ;;  %1107 = vadd.xlane.f32.xlu0 %v1106_v15 }
0x12e2   :  { %v1094_v17 = vpop.xlane.xlu1 %1093  ;;  %v1090_v18 = vpop.xlane.xlu0 %1089 }
0x12e3   :  { %v1095_v19 = vsel %vm1071_vm7, %v1094_v17, %v341_v54  ;;  %v1091_v21 = vsel %vm1071_vm7, %v1090_v18, %v1065_v57 }
0x12e4   :  { %v1122_v22 = vmul.f32 %v1098_v10, %v1095_v19  ;;  %v1118_v25 = vmul.f32 %v1098_v10, %v1091_v21 }
0x12e6   :  { %1123 = vadd.xlane.f32.xlu1 %v1122_v22  ;;  %1119 = vadd.xlane.f32.xlu0 %v1118_v25 }
0x132d   :  { %v1074_v26 = vpop.xlane.xlu2 %1073 }
0x132e   :  { %v1075_v27 = vsel %vm1071_vm7, %v1074_v26, %v1049_v63 }
0x132f   :  { %v1102_v29 = vmul.f32 %v1098_v10, %v1075_v27 }
0x1331   :  { %1103 = vadd.xlane.f32.xlu2 %v1102_v29 }
0x1335   :  { %v1086_v30 = vpop.xlane.xlu2 %1085 }
0x1336   :  { %v1087_v31 = vsel %vm1071_vm7, %v1086_v30, %v1061_v59 }
0x1337   :  { %v1114_v32 = vmul.f32 %v1098_v10, %v1087_v31 }
0x1339   :  { %1115 = vadd.xlane.f32.xlu2 %v1114_v32 }
0x1351   :  { %v1112_v34 = vpop.xlane.xlu1 %1111  ;;  %v1108_v35 = vpop.xlane.xlu0 %1107 }
0x1352   :  { %v1113_v38 = vsel %vm1101_vm8, %v1112_v34, %v1083_v12  ;;  %v1109_v40 = vsel %vm1101_vm8, %v1108_v35, %v1079_v13 }
0x1353   :  { %v1140_v41 = vmul.f32 %v1128_v37, %v1113_v38  ;;  %v1136_v42 = vmul.f32 %v1128_v37, %v1109_v40 }
0x1355   :  { %1141 = vadd.xlane.f32.xlu1 %v1140_v41  ;;  %1137 = vadd.xlane.f32.xlu0 %v1136_v42 }
0x1359   :  { %v1124_v43 = vpop.xlane.xlu1 %1123  ;;  %v1120_v44 = vpop.xlane.xlu0 %1119 }
0x135a   :  { %v1125_v45 = vsel %vm1101_vm8, %v1124_v43, %v1095_v19  ;;  %v1121_v46 = vsel %vm1101_vm8, %v1120_v44, %v1091_v21  ;;  %v1187_v21 = vld [vmem:[#allocation2 + $0x2c] ss:$0 sm:$0xff] }
0x135b   :  { %v1152_v48 = vmul.f32 %v1128_v37, %v1125_v45  ;;  %v1148_v49 = vmul.f32 %v1128_v37, %v1121_v46  ;;  %v1188_v22 = vxor.u32 2147483648, %v1187_v21 }
0x135d   :  { %1153 = vadd.xlane.f32.xlu1 %v1152_v48  ;;  %1149 = vadd.xlane.f32.xlu0 %v1148_v49 }
0x13a4   :  { %v1104_v50 = vpop.xlane.xlu2 %1103 }
0x13a5   :  { %v1105_v51 = vsel %vm1101_vm8, %v1104_v50, %v1075_v27 }
0x13a6   :  { %v1132_v52 = vmul.f32 %v1128_v37, %v1105_v51 }
0x13a8   :  { %1133 = vadd.xlane.f32.xlu2 %v1132_v52 }
0x13ac   :  { %v1116_v53 = vpop.xlane.xlu2 %1115 }
0x13ad   :  { %v1117_v54 = vsel %vm1101_vm8, %v1116_v53, %v1087_v31 }
0x13ae   :  { %v1144_v55 = vmul.f32 %v1128_v37, %v1117_v54 }
0x13b0   :  { %1145 = vadd.xlane.f32.xlu2 %v1144_v55 }
0x13c8   :  { %v1142_v57 = vpop.xlane.xlu1 %1141  ;;  %v1138_v60 = vpop.xlane.xlu0 %1137 }
0x13c9   :  { %v1143_v63 = vsel %vm1131_vm9, %v1142_v57, %v1113_v38  ;;  %v1139_v0 = vsel %vm1131_vm9, %v1138_v60, %v1109_v40 }
0x13ca   :  { %v1170_v1 = vmul.f32 %v1158_v62, %v1143_v63  ;;  %v1166_v59 = vmul.f32 %v1158_v62, %v1139_v0 }
0x13cc   :  { %1171 = vadd.xlane.f32.xlu1 %v1170_v1  ;;  %1167 = vadd.xlane.f32.xlu0 %v1166_v59 }
0x13d0   :  { %v1154_v4 = vpop.xlane.xlu1 %1153  ;;  %v1150_v6 = vpop.xlane.xlu0 %1149 }
0x13d1   :  { %v1155_v7 = vsel %vm1131_vm9, %v1154_v4, %v1125_v45  ;;  %v1151_v9 = vsel %vm1131_vm9, %v1150_v6, %v1121_v46  ;;  %v1217_v46 = vld [vmem:[#allocation2 + $0x2d] ss:$0 sm:$0xff] }
0x13d2   :  { %v1182_v10 = vmul.f32 %v1158_v62, %v1155_v7  ;;  %v1178_v12 = vmul.f32 %v1158_v62, %v1151_v9  ;;  %v1218_v48 = vxor.u32 2147483648, %v1217_v46 }
0x13d4   :  { %1183 = vadd.xlane.f32.xlu1 %v1182_v10  ;;  %1179 = vadd.xlane.f32.xlu0 %v1178_v12 }
0x141b   :  { %v1134_v13 = vpop.xlane.xlu2 %1133 }
0x141c   :  { %v1135_v14 = vsel %vm1131_vm9, %v1134_v13, %v1105_v51 }
0x141d   :  { %v1162_v15 = vmul.f32 %v1158_v62, %v1135_v14 }
0x141f   :  { %1163 = vadd.xlane.f32.xlu2 %v1162_v15 }
0x1423   :  { %v1146_v17 = vpop.xlane.xlu2 %1145 }
0x1424   :  { %v1147_v18 = vsel %vm1131_vm9, %v1146_v17, %v1117_v54 }
0x1425   :  { %v1174_v19 = vmul.f32 %v1158_v62, %v1147_v18 }
0x1427   :  { %1175 = vadd.xlane.f32.xlu2 %v1174_v19 }
0x143f   :  { %v1172_v25 = vpop.xlane.xlu1 %1171  ;;  %v1168_v26 = vpop.xlane.xlu0 %1167 }
0x1440   :  { %v1173_v27 = vsel %vm1161_vm12, %v1172_v25, %v1143_v63  ;;  %v1169_v29 = vsel %vm1161_vm12, %v1168_v26, %v1139_v0 }
0x1441   :  { %v1200_v30 = vmul.f32 %v1188_v22, %v1173_v27  ;;  %v1196_v31 = vmul.f32 %v1188_v22, %v1169_v29 }
0x1443   :  { %1201 = vadd.xlane.f32.xlu1 %v1200_v30  ;;  %1197 = vadd.xlane.f32.xlu0 %v1196_v31 }
0x1447   :  { %v1184_v32 = vpop.xlane.xlu1 %1183  ;;  %v1180_v33 = vpop.xlane.xlu0 %1179 }
0x1448   :  { %v1185_v34 = vsel %vm1161_vm12, %v1184_v32, %v1155_v7  ;;  %v1181_v35 = vsel %vm1161_vm12, %v1180_v33, %v1151_v9  ;;  %v1247_v9 = vld [vmem:[#allocation2 + $0x2e] ss:$0 sm:$0xff] }
0x1449   :  { %v1212_v37 = vmul.f32 %v1188_v22, %v1185_v34  ;;  %v1208_v38 = vmul.f32 %v1188_v22, %v1181_v35  ;;  %v1248_v10 = vxor.u32 2147483648, %v1247_v9 }
0x144b   :  { %1213 = vadd.xlane.f32.xlu1 %v1212_v37  ;;  %1209 = vadd.xlane.f32.xlu0 %v1208_v38  ;;  %v56_v37 = vld [vmem:[%s2920_s0 + $0x30] sm:$0xff] }
0x1492   :  { %v1164_v40 = vpop.xlane.xlu2 %1163 }
0x1493   :  { %v1165_v41 = vsel %vm1161_vm12, %v1164_v40, %v1135_v14  ;;  %v1277_v40 = vld [vmem:[#allocation2 + $0x2f] ss:$0 sm:$0xff] }
0x1494   :  { %v1192_v42 = vmul.f32 %v1188_v22, %v1165_v41 }
0x1496   :  { %1193 = vadd.xlane.f32.xlu2 %v1192_v42 }
0x149a   :  { %v1176_v43 = vpop.xlane.xlu2 %1175 }
0x149b   :  { %v1177_v44 = vsel %vm1161_vm12, %v1176_v43, %v1147_v18 }
0x149c   :  { %v1204_v45 = vmul.f32 %v1188_v22, %v1177_v44 }
0x149e   :  { %1205 = vadd.xlane.f32.xlu2 %v1204_v45 }
0x14b6   :  { %v1202_v49 = vpop.xlane.xlu1 %1201  ;;  %v1198_v50 = vpop.xlane.xlu0 %1197 }
0x14b7   :  { %v1203_v51 = vsel %vm1191_vm13, %v1202_v49, %v1173_v27  ;;  %v1199_v52 = vsel %vm1191_vm13, %v1198_v50, %v1169_v29 }
0x14b8   :  { %v1230_v53 = vmul.f32 %v1218_v48, %v1203_v51  ;;  %v1226_v54 = vmul.f32 %v1218_v48, %v1199_v52 }
0x14ba   :  { %1231 = vadd.xlane.f32.xlu1 %v1230_v53  ;;  %1227 = vadd.xlane.f32.xlu0 %v1226_v54 }
0x14be   :  { %v1214_v55 = vpop.xlane.xlu1 %1213  ;;  %v1210_v56 = vpop.xlane.xlu0 %1209 }
0x14bf   :  { %v1215_v57 = vsel %vm1191_vm13, %v1214_v55, %v1185_v34  ;;  %v1211_v60 = vsel %vm1191_vm13, %v1210_v56, %v1181_v35  ;;  %v2537_v35 = vadd.s32 48, %v2137_v3 }
0x14c0   :  { %v1242_v62 = vmul.f32 %v1218_v48, %v1215_v57  ;;  %v1238_v63 = vmul.f32 %v1218_v48, %v1211_v60 }
0x14c1   :  { %vm243_vm15 = vcmp.eq.s32.totalorder %v2537_v35, %v2135_v2  ;;  %vm248_vm4 = vcmp.ge.s32.totalorder %v2537_v35, %v2135_v2 }
0x14c2   :  { %1243 = vadd.xlane.f32.xlu1 %v1242_v62  ;;  %1239 = vadd.xlane.f32.xlu0 %v1238_v63  ;;  %v245_v38 = vsel %vm243_vm15, %v56_v37, 0.0  ;;  %vm249_vm9 = vmand %vm248_vm4, %vm65_vm1  ;;  %vm347_vm15 = vcmp.eq.s32.totalorder %v2135_v2, %v2537_v35  ;;  %vm1345_vm4 = vcmp.eq.s32.totalorder %v2135_v2, 49 }
0x1509   :  { %v1194_v0 = vpop.xlane.xlu2 %1193 }
0x150a   :  { %v1195_v1 = vsel %vm1191_vm13, %v1194_v0, %v1165_v41  ;;  %v1278_v41 = vxor.u32 2147483648, %v1277_v40 }
0x150b   :  { %v1222_v59 = vmul.f32 %v1218_v48, %v1195_v1 }
0x150d   :  { %1223 = vadd.xlane.f32.xlu2 %v1222_v59 }
0x1511   :  { %v1206_v4 = vpop.xlane.xlu2 %1205 }
0x1512   :  { %v1207_v6 = vsel %vm1191_vm13, %v1206_v4, %v1177_v44 }
0x1513   :  { %v1234_v7 = vmul.f32 %v1218_v48, %v1207_v6 }
0x1515   :  { %1235 = vadd.xlane.f32.xlu2 %v1234_v7 }
0x152d   :  { %v1232_v12 = vpop.xlane.xlu1 %1231  ;;  %v1228_v13 = vpop.xlane.xlu0 %1227 }
0x152e   :  { %v1233_v14 = vsel %vm1221_vm14, %v1232_v12, %v1203_v51  ;;  %v1229_v15 = vsel %vm1221_vm14, %v1228_v13, %v1199_v52  ;;  %v250_v13 = vsel %vm249_vm9, %v56_v37, 0.0  ;;  %vm1413_vm9 = vcmp.eq.s32.totalorder %v2135_v2, 51 }
0x152f   :  { %v1260_v17 = vmul.f32 %v1248_v10, %v1233_v14  ;;  %v1256_v18 = vmul.f32 %v1248_v10, %v1229_v15 }
0x1531   :  { %1261 = vadd.xlane.f32.xlu1 %v1260_v17  ;;  %1257 = vadd.xlane.f32.xlu0 %v1256_v18 }
0x1535   :  { %v1244_v19 = vpop.xlane.xlu1 %1243  ;;  %v1240_v21 = vpop.xlane.xlu0 %1239 }
0x1536   :  { %v1245_v22 = vsel %vm1221_vm14, %v1244_v19, %v1215_v57  ;;  %v1241_v25 = vsel %vm1221_vm14, %v1240_v21, %v1211_v60 }
0x1537   :  { %v1272_v26 = vmul.f32 %v1248_v10, %v1245_v22  ;;  %v1268_v27 = vmul.f32 %v1248_v10, %v1241_v25 }
0x1539   :  { %1273 = vadd.xlane.f32.xlu1 %v1272_v26  ;;  %1269 = vadd.xlane.f32.xlu0 %v1268_v27 }
0x1580   :  { %v1224_v29 = vpop.xlane.xlu2 %1223 }
0x1581   :  { %v1225_v30 = vsel %vm1221_vm14, %v1224_v29, %v1195_v1 }
0x1582   :  { %v1252_v31 = vmul.f32 %v1248_v10, %v1225_v30 }
0x1584   :  { %1253 = vadd.xlane.f32.xlu2 %v1252_v31 }
0x1588   :  { %v1236_v32 = vpop.xlane.xlu2 %1235 }
0x1589   :  { %v1237_v33 = vsel %vm1221_vm14, %v1236_v32, %v1207_v6  ;;  %vm1281_vm14 = vcmp.eq.s32.totalorder %v2135_v2, 47 }
0x158a   :  { %v1264_v34 = vmul.f32 %v1248_v10, %v1237_v33 }
0x158c   :  { %1265 = vadd.xlane.f32.xlu2 %v1264_v34 }
0x1594   :  { %246 = vadd.xlane.f32.xlu2 %v245_v38 }
0x15a4   :  { %v1262_v42 = vpop.xlane.xlu1 %1261  ;;  %v1258_v43 = vpop.xlane.xlu0 %1257 }
0x15a5   :  { %v1263_v44 = vsel %vm1251_vm3, %v1262_v42, %v1233_v14  ;;  %v1259_v45 = vsel %vm1251_vm3, %v1258_v43, %v1229_v15 }
0x15a6   :  { %v1290_v46 = vmul.f32 %v1278_v41, %v1263_v44  ;;  %v1286_v48 = vmul.f32 %v1278_v41, %v1259_v45 }
0x15a8   :  { %1291 = vadd.xlane.f32.xlu2 %v1290_v46  ;;  %1287 = vadd.xlane.f32.xlu1 %v1286_v48 }
0x15ac   :  { %v1274_v49 = vpop.xlane.xlu1 %1273  ;;  %v1270_v50 = vpop.xlane.xlu0 %1269 }
0x15ad   :  { %v1275_v51 = vsel %vm1251_vm3, %v1274_v49, %v1245_v22  ;;  %v1271_v52 = vsel %vm1251_vm3, %v1270_v50, %v1241_v25 }
0x15ae   :  { %v1302_v53 = vmul.f32 %v1278_v41, %v1275_v51  ;;  %v1298_v54 = vmul.f32 %v1278_v41, %v1271_v52 }
0x15b0   :  { %1303 = vadd.xlane.f32.xlu2 %v1302_v53  ;;  %1299 = vadd.xlane.f32.xlu1 %v1298_v54 }
0x15f7   :  { %v1254_v55 = vpop.xlane.xlu2 %1253 }
0x15f8   :  { %v1255_v56 = vsel %vm1251_vm3, %v1254_v55, %v1225_v30 }
0x15f9   :  { %v1282_v57 = vmul.f32 %v1278_v41, %v1255_v56 }
0x15fb   :  { %1283 = vadd.xlane.f32.xlu0 %v1282_v57 }
0x15ff   :  { %v1266_v60 = vpop.xlane.xlu2 %1265 }
0x1600   :  { %v1267_v62 = vsel %vm1251_vm3, %v1266_v60, %v1237_v33  ;;  %vm1311_vm3 = vcmp.eq.s32.totalorder %v2135_v2, 48 }
0x1601   :  { %v1294_v63 = vmul.f32 %v1278_v41, %v1267_v62 }
0x1603   :  { %1295 = vadd.xlane.f32.xlu0 %v1294_v63 }
0x1607   :  { %v2557_v0 = vpop.xlane.xlu2 %246 }
0x1608   :  { %2116 = vrcp.f32 %v2557_v0  ;;  %v262_v4 = vand.u32 2147483648, %v2557_v0  ;;  %vm256_vm7 = vweird.f32 %v2557_v0  ;;  %v260_v7 = vand.u32 2147483647, %v2557_v0 }
0x160a   :  { %v263_v10 = vor.u32 1.1754944e-38, %v262_v4  ;;  %vm261_vm13 = vcmp.eq.f32.partialorder %v260_v7, 8.507059e+37 }
0x160e   :  { %v2117_v1 = vpop.eup %2116 }
0x160f   :  { %v252_v59 = vmul.f32 %v2117_v1, %v2557_v0  ;;  %vm257_vm8 = vweird.f32 %v2117_v1 }
0x1610   :  { %vm258_vm12 = vmor %vm256_vm7, %vm257_vm8  ;;  %vm1379_vm8 = vcmp.eq.s32.totalorder %v2135_v2, 50 }
0x1611   :  { %v253_v6 = vsub.f32 1.0, %v252_v59 }
0x1613   :  { %v254_v9 = vmul.f32 %v2117_v1, %v253_v6 }
0x1615   :  { %v255_v12 = vadd.f32 %v2117_v1, %v254_v9 }
0x1617   :  { %v259_v14 = vsel %vm258_vm12, %v2117_v1, %v255_v12  ;;  %vm1447_vm12 = vcmp.eq.s32.totalorder %v2135_v2, 52 }
0x1618   :  { %v2570_v15 = vsel %vm261_vm13, %v263_v10, %v259_v14  ;;  %vm1481_vm13 = vcmp.eq.s32.totalorder %v2135_v2, 53 }
0x1619   :  { %v265_v17 = vmul.f32 %v2570_v15, %v250_v13 }
0x161b   :  { %266 = vst [vmem:[#allocation2 + $0x30] sm:$0xff] %v265_v17  ;;  %v1292_v18 = vpop.xlane.xlu2 %1291  ;;  %v1288_v19 = vpop.xlane.xlu1 %1287 }
0x161c   :  { %v1293_v25 = vsel %vm1281_vm14, %v1292_v18, %v1263_v44  ;;  %v1289_v26 = vsel %vm1281_vm14, %v1288_v19, %v1259_v45  ;;  %v348_v45 = vsel %vm347_vm15, -1.0, %v2121_v61  ;;  %vm1515_vm15 = vcmp.eq.s32.totalorder %v2135_v2, 54 }
0x1622   :  { %v1307_v21 = vld [vmem:[#allocation2 + $0x30] ss:$0 sm:$0xff]  ;;  %v1341_v48 = vld [vmem:[#allocation2 + $0x31] ss:$0 sm:$0xff]  ;;  %v1375_v14 = vld [vmem:[#allocation2 + $0x32] ss:$0 sm:$0xff] }
0x1623   :  { %v1308_v22 = vxor.u32 2147483648, %v1307_v21  ;;  %v1304_v30 = vpop.xlane.xlu2 %1303  ;;  %v1300_v31 = vpop.xlane.xlu1 %1299  ;;  %v1342_v49 = vxor.u32 2147483648, %v1341_v48  ;;  %v1376_v17 = vxor.u32 2147483648, %v1375_v14 }
0x1624   :  { %v1305_v32 = vsel %vm1281_vm14, %v1304_v30, %v1275_v51  ;;  %v1301_v33 = vsel %vm1281_vm14, %v1300_v31, %v1271_v52 }
0x1625   :  { %v1320_v27 = vmul.f32 %v1308_v22, %v1293_v25  ;;  %v1316_v29 = vmul.f32 %v1308_v22, %v1289_v26  ;;  %v1332_v34 = vmul.f32 %v1308_v22, %v1305_v32  ;;  %v1328_v37 = vmul.f32 %v1308_v22, %v1301_v33 }
0x1626   :  { %v1336_v46 = vmul.f32 %v1308_v22, %v348_v45 }
0x1627   :  { %1321 = vadd.xlane.f32.xlu2 %v1320_v27  ;;  %1317 = vadd.xlane.f32.xlu1 %v1316_v29 }
0x162f   :  { %1333 = vadd.xlane.f32.xlu2 %v1332_v34  ;;  %1329 = vadd.xlane.f32.xlu1 %v1328_v37 }
0x166e   :  { %v1284_v38 = vpop.xlane.xlu0 %1283 }
0x166f   :  { %v1285_v43 = vsel %vm1281_vm14, %v1284_v38, %v1255_v56 }
0x1670   :  { %v1312_v44 = vmul.f32 %v1308_v22, %v1285_v43 }
0x1676   :  { %v1296_v40 = vpop.xlane.xlu0 %1295 }
0x1677   :  { %v1297_v41 = vsel %vm1281_vm14, %v1296_v40, %v1267_v62 }
0x1678   :  { %v1324_v42 = vmul.f32 %v1308_v22, %v1297_v41 }
0x167a   :  { %1325 = vadd.xlane.f32.xlu0 %v1324_v42 }
0x1682   :  { %1313 = vadd.xlane.f32.xlu0 %v1312_v44 }
0x168a   :  { %1337 = vadd.xlane.f32.xlu0 %v1336_v46  ;;  %v1409_v46 = vld [vmem:[#allocation2 + $0x33] ss:$0 sm:$0xff] }
0x168b   :  { %v1410_v48 = vxor.u32 2147483648, %v1409_v46 }
0x169a   :  { %v1322_v50 = vpop.xlane.xlu2 %1321  ;;  %v1318_v51 = vpop.xlane.xlu1 %1317 }
0x169b   :  { %v1323_v52 = vsel %vm1311_vm3, %v1322_v50, %v1293_v25  ;;  %v1319_v53 = vsel %vm1311_vm3, %v1318_v51, %v1289_v26 }
0x169c   :  { %v1354_v54 = vmul.f32 %v1342_v49, %v1323_v52  ;;  %v1350_v55 = vmul.f32 %v1342_v49, %v1319_v53 }
0x169e   :  { %1351 = vadd.xlane.f32.xlu2 %v1350_v55  ;;  %1355 = vadd.xlane.f32.xlu0 %v1354_v54 }
0x16a2   :  { %v1334_v35 = vpop.xlane.xlu2 %1333  ;;  %v1330_v56 = vpop.xlane.xlu1 %1329 }
0x16a3   :  { %v1335_v57 = vsel %vm1311_vm3, %v1334_v35, %v1305_v32  ;;  %v1331_v60 = vsel %vm1311_vm3, %v1330_v56, %v1301_v33 }
0x16a4   :  { %v1366_v62 = vmul.f32 %v1342_v49, %v1335_v57  ;;  %v1362_v63 = vmul.f32 %v1342_v49, %v1331_v60 }
0x16a6   :  { %1363 = vadd.xlane.f32.xlu2 %v1362_v63  ;;  %1367 = vadd.xlane.f32.xlu0 %v1366_v62 }
0x16ed   :  { %v1326_v1 = vpop.xlane.xlu0 %1325 }
0x16ee   :  { %v1327_v59 = vsel %vm1311_vm3, %v1326_v1, %v1297_v41 }
0x16ef   :  { %v1358_v4 = vmul.f32 %v1342_v49, %v1327_v59 }
0x16f1   :  { %1359 = vadd.xlane.f32.xlu1 %v1358_v4 }
0x16f5   :  { %v1314_v6 = vpop.xlane.xlu0 %1313 }
0x16f6   :  { %v1315_v7 = vsel %vm1311_vm3, %v1314_v6, %v1285_v43 }
0x16f7   :  { %v1346_v9 = vmul.f32 %v1342_v49, %v1315_v7 }
0x16f9   :  { %1347 = vadd.xlane.f32.xlu1 %v1346_v9 }
0x16fd   :  { %v1338_v10 = vpop.xlane.xlu0 %1337 }
0x16fe   :  { %v1339_v12 = vsel %vm1311_vm3, %v1338_v10, %v348_v45 }
0x16ff   :  { %v1370_v13 = vmul.f32 %v1342_v49, %v1339_v12 }
0x1701   :  { %1371 = vadd.xlane.f32.xlu1 %v1370_v13  ;;  %v1443_v13 = vld [vmem:[#allocation2 + $0x34] ss:$0 sm:$0xff] }
0x1702   :  { %v1444_v14 = vxor.u32 2147483648, %v1443_v13 }
0x1711   :  { %v1352_v18 = vpop.xlane.xlu2 %1351  ;;  %v1356_v19 = vpop.xlane.xlu0 %1355 }
0x1712   :  { %v1353_v21 = vsel %vm1345_vm4, %v1352_v18, %v1319_v53  ;;  %v1357_v22 = vsel %vm1345_vm4, %v1356_v19, %v1323_v52 }
0x1713   :  { %v1384_v25 = vmul.f32 %v1376_v17, %v1353_v21  ;;  %v1388_v26 = vmul.f32 %v1376_v17, %v1357_v22 }
0x1715   :  { %1385 = vadd.xlane.f32.xlu0 %v1384_v25  ;;  %1389 = vadd.xlane.f32.xlu1 %v1388_v26 }
0x1719   :  { %v1364_v27 = vpop.xlane.xlu2 %1363  ;;  %v1368_v29 = vpop.xlane.xlu0 %1367 }
0x171a   :  { %v1365_v30 = vsel %vm1345_vm4, %v1364_v27, %v1331_v60  ;;  %v1369_v31 = vsel %vm1345_vm4, %v1368_v29, %v1335_v57 }
0x171b   :  { %v1396_v32 = vmul.f32 %v1376_v17, %v1365_v30  ;;  %v1400_v33 = vmul.f32 %v1376_v17, %v1369_v31 }
0x171d   :  { %1397 = vadd.xlane.f32.xlu0 %v1396_v32  ;;  %1401 = vadd.xlane.f32.xlu1 %v1400_v33 }
0x1764   :  { %v1360_v34 = vpop.xlane.xlu1 %1359 }
0x1765   :  { %v1361_v37 = vsel %vm1345_vm4, %v1360_v34, %v1327_v59 }
0x1766   :  { %v1392_v38 = vmul.f32 %v1376_v17, %v1361_v37 }
0x1768   :  { %1393 = vadd.xlane.f32.xlu2 %v1392_v38 }
0x176c   :  { %v1348_v40 = vpop.xlane.xlu1 %1347 }
0x176d   :  { %v1349_v41 = vsel %vm1345_vm4, %v1348_v40, %v1315_v7 }
0x176e   :  { %v1380_v42 = vmul.f32 %v1376_v17, %v1349_v41 }
0x1770   :  { %1381 = vadd.xlane.f32.xlu2 %v1380_v42 }
0x1774   :  { %v1372_v43 = vpop.xlane.xlu1 %1371 }
0x1775   :  { %v1373_v44 = vsel %vm1345_vm4, %v1372_v43, %v1339_v12 }
0x1776   :  { %v1404_v45 = vmul.f32 %v1376_v17, %v1373_v44 }
0x1778   :  { %1405 = vadd.xlane.f32.xlu2 %v1404_v45  ;;  %v1477_v45 = vld [vmem:[#allocation2 + $0x35] ss:$0 sm:$0xff] }
0x1779   :  { %v1478_v46 = vxor.u32 2147483648, %v1477_v45 }
0x1788   :  { %v1390_v49 = vpop.xlane.xlu1 %1389  ;;  %v1386_v50 = vpop.xlane.xlu0 %1385 }
0x1789   :  { %v1391_v51 = vsel %vm1379_vm8, %v1390_v49, %v1357_v22  ;;  %v1387_v52 = vsel %vm1379_vm8, %v1386_v50, %v1353_v21 }
0x178a   :  { %v1422_v53 = vmul.f32 %v1410_v48, %v1391_v51  ;;  %v1418_v54 = vmul.f32 %v1410_v48, %v1387_v52 }
0x178c   :  { %1423 = vadd.xlane.f32.xlu2 %v1422_v53  ;;  %1419 = vadd.xlane.f32.xlu1 %v1418_v54 }
0x1790   :  { %v1402_v55 = vpop.xlane.xlu1 %1401  ;;  %v1398_v35 = vpop.xlane.xlu0 %1397 }
0x1791   :  { %v1403_v56 = vsel %vm1379_vm8, %v1402_v55, %v1369_v31  ;;  %v1399_v57 = vsel %vm1379_vm8, %v1398_v35, %v1365_v30 }
0x1792   :  { %v1434_v60 = vmul.f32 %v1410_v48, %v1403_v56  ;;  %v1430_v62 = vmul.f32 %v1410_v48, %v1399_v57 }
0x1794   :  { %1435 = vadd.xlane.f32.xlu2 %v1434_v60  ;;  %1431 = vadd.xlane.f32.xlu1 %v1430_v62 }
0x17db   :  { %v1394_v63 = vpop.xlane.xlu2 %1393 }
0x17dc   :  { %v1395_v1 = vsel %vm1379_vm8, %v1394_v63, %v1361_v37 }
0x17dd   :  { %v1426_v59 = vmul.f32 %v1410_v48, %v1395_v1 }
0x17df   :  { %1427 = vadd.xlane.f32.xlu0 %v1426_v59 }
0x17e3   :  { %v1382_v4 = vpop.xlane.xlu2 %1381 }
0x17e4   :  { %v1383_v6 = vsel %vm1379_vm8, %v1382_v4, %v1349_v41 }
0x17e5   :  { %v1414_v7 = vmul.f32 %v1410_v48, %v1383_v6 }
0x17e7   :  { %1415 = vadd.xlane.f32.xlu0 %v1414_v7 }
0x17eb   :  { %v1406_v9 = vpop.xlane.xlu2 %1405 }
0x17ec   :  { %v1407_v10 = vsel %vm1379_vm8, %v1406_v9, %v1373_v44 }
0x17ed   :  { %v1438_v12 = vmul.f32 %v1410_v48, %v1407_v10 }
0x17ef   :  { %1439 = vadd.xlane.f32.xlu0 %v1438_v12  ;;  %v1511_v12 = vld [vmem:[#allocation2 + $0x36] ss:$0 sm:$0xff] }
0x17f0   :  { %v1512_v13 = vxor.u32 2147483648, %v1511_v12 }
0x17ff   :  { %v1424_v17 = vpop.xlane.xlu2 %1423  ;;  %v1420_v18 = vpop.xlane.xlu1 %1419 }
0x1800   :  { %v1425_v19 = vsel %vm1413_vm9, %v1424_v17, %v1391_v51  ;;  %v1421_v21 = vsel %vm1413_vm9, %v1420_v18, %v1387_v52 }
0x1801   :  { %v1456_v22 = vmul.f32 %v1444_v14, %v1425_v19  ;;  %v1452_v25 = vmul.f32 %v1444_v14, %v1421_v21 }
0x1803   :  { %1457 = vadd.xlane.f32.xlu0 %v1456_v22  ;;  %1453 = vadd.xlane.f32.xlu2 %v1452_v25 }
0x1807   :  { %v1436_v26 = vpop.xlane.xlu2 %1435  ;;  %v1432_v27 = vpop.xlane.xlu1 %1431 }
0x1808   :  { %v1437_v29 = vsel %vm1413_vm9, %v1436_v26, %v1403_v56  ;;  %v1433_v30 = vsel %vm1413_vm9, %v1432_v27, %v1399_v57 }
0x1809   :  { %v1468_v31 = vmul.f32 %v1444_v14, %v1437_v29  ;;  %v1464_v32 = vmul.f32 %v1444_v14, %v1433_v30 }
0x180b   :  { %1469 = vadd.xlane.f32.xlu0 %v1468_v31  ;;  %1465 = vadd.xlane.f32.xlu2 %v1464_v32  ;;  %v2674_v32 = vadd.s32 56, %v2137_v3 }
0x180d   :  { %vm272_vm14 = vcmp.eq.s32.totalorder %v2674_v32, %v2135_v2  ;;  %vm277_vm3 = vcmp.ge.s32.totalorder %v2674_v32, %v2135_v2 }
0x1852   :  { %v1428_v33 = vpop.xlane.xlu0 %1427 }
0x1853   :  { %v1429_v34 = vsel %vm1413_vm9, %v1428_v33, %v1395_v1  ;;  %v58_v33 = vld [vmem:[%s2920_s0 + $0x38] sm:$0xff] }
0x1854   :  { %v1460_v37 = vmul.f32 %v1444_v14, %v1429_v34 }
0x1856   :  { %1461 = vadd.xlane.f32.xlu1 %v1460_v37 }
0x185a   :  { %v1416_v38 = vpop.xlane.xlu0 %1415 }
0x185b   :  { %v1417_v40 = vsel %vm1413_vm9, %v1416_v38, %v1383_v6 }
0x185c   :  { %v1448_v41 = vmul.f32 %v1444_v14, %v1417_v40 }
0x185e   :  { %1449 = vadd.xlane.f32.xlu1 %v1448_v41 }
0x1862   :  { %v1440_v42 = vpop.xlane.xlu0 %1439 }
0x1863   :  { %v1441_v43 = vsel %vm1413_vm9, %v1440_v42, %v1407_v10  ;;  %vm278_vm9 = vmand %vm277_vm3, %vm65_vm1  ;;  %vm1549_vm1 = vcmp.eq.s32.totalorder %v2135_v2, 55  ;;  %vm1621_vm3 = vcmp.eq.s32.totalorder %v2135_v2, 57 }
0x1864   :  { %v1472_v44 = vmul.f32 %v1444_v14, %v1441_v43 }
0x1866   :  { %1473 = vadd.xlane.f32.xlu1 %v1472_v44 }
0x1876   :  { %v1454_v48 = vpop.xlane.xlu2 %1453  ;;  %v1458_v49 = vpop.xlane.xlu0 %1457 }
0x1877   :  { %v1455_v50 = vsel %vm1447_vm12, %v1454_v48, %v1421_v21  ;;  %v1459_v51 = vsel %vm1447_vm12, %v1458_v49, %v1425_v19 }
0x1878   :  { %v1486_v52 = vmul.f32 %v1478_v46, %v1455_v50  ;;  %v1490_v53 = vmul.f32 %v1478_v46, %v1459_v51 }
0x187a   :  { %1487 = vadd.xlane.f32.xlu0 %v1486_v52  ;;  %1491 = vadd.xlane.f32.xlu1 %v1490_v53 }
0x187e   :  { %v1466_v54 = vpop.xlane.xlu2 %1465  ;;  %v1470_v55 = vpop.xlane.xlu0 %1469 }
0x187f   :  { %v1467_v35 = vsel %vm1447_vm12, %v1466_v54, %v1433_v30  ;;  %v1471_v56 = vsel %vm1447_vm12, %v1470_v55, %v1437_v29 }
0x1880   :  { %v1498_v57 = vmul.f32 %v1478_v46, %v1467_v35  ;;  %v1502_v60 = vmul.f32 %v1478_v46, %v1471_v56 }
0x1882   :  { %1499 = vadd.xlane.f32.xlu0 %v1498_v57  ;;  %1503 = vadd.xlane.f32.xlu1 %v1502_v60 }
0x18c9   :  { %v1462_v62 = vpop.xlane.xlu1 %1461 }
0x18ca   :  { %v1463_v63 = vsel %vm1447_vm12, %v1462_v62, %v1429_v34  ;;  %v274_v34 = vsel %vm272_vm14, %v58_v33, 0.0  ;;  %vm354_vm14 = vcmp.eq.s32.totalorder %v2135_v2, %v2674_v32 }
0x18cb   :  { %v1494_v1 = vmul.f32 %v1478_v46, %v1463_v63 }
0x18cd   :  { %1495 = vadd.xlane.f32.xlu2 %v1494_v1 }
0x18d1   :  { %v1450_v59 = vpop.xlane.xlu1 %1449 }
0x18d2   :  { %v1451_v4 = vsel %vm1447_vm12, %v1450_v59, %v1417_v40 }
0x18d3   :  { %v1482_v6 = vmul.f32 %v1478_v46, %v1451_v4 }
0x18d5   :  { %1483 = vadd.xlane.f32.xlu2 %v1482_v6 }
0x18d9   :  { %v1474_v7 = vpop.xlane.xlu1 %1473 }
0x18da   :  { %v1475_v9 = vsel %vm1447_vm12, %v1474_v7, %v1441_v43 }
0x18db   :  { %v1506_v10 = vmul.f32 %v1478_v46, %v1475_v9  ;;  %v1545_v46 = vld [vmem:[#allocation2 + $0x37] ss:$0 sm:$0xff] }
0x18dc   :  { %v1546_v48 = vxor.u32 2147483648, %v1545_v46 }
0x18dd   :  { %1507 = vadd.xlane.f32.xlu2 %v1506_v10 }
0x18ed   :  { %v1492_v14 = vpop.xlane.xlu1 %1491  ;;  %v1488_v17 = vpop.xlane.xlu0 %1487 }
0x18ee   :  { %v1493_v18 = vsel %vm1481_vm13, %v1492_v14, %v1459_v51  ;;  %v1489_v19 = vsel %vm1481_vm13, %v1488_v17, %v1455_v50 }
0x18ef   :  { %v1524_v21 = vmul.f32 %v1512_v13, %v1493_v18  ;;  %v1520_v22 = vmul.f32 %v1512_v13, %v1489_v19 }
0x18f1   :  { %1525 = vadd.xlane.f32.xlu2 %v1524_v21  ;;  %1521 = vadd.xlane.f32.xlu1 %v1520_v22 }
0x18f5   :  { %v1504_v25 = vpop.xlane.xlu1 %1503  ;;  %v1500_v26 = vpop.xlane.xlu0 %1499 }
0x18f6   :  { %v1505_v27 = vsel %vm1481_vm13, %v1504_v25, %v1471_v56  ;;  %v1501_v29 = vsel %vm1481_vm13, %v1500_v26, %v1467_v35 }
0x18f7   :  { %v1536_v30 = vmul.f32 %v1512_v13, %v1505_v27  ;;  %v1532_v31 = vmul.f32 %v1512_v13, %v1501_v29 }
0x18f9   :  { %1537 = vadd.xlane.f32.xlu2 %v1536_v30  ;;  %1533 = vadd.xlane.f32.xlu1 %v1532_v31 }
0x1901   :  { %275 = vadd.xlane.f32.xlu1 %v274_v34 }
0x1940   :  { %v1496_v37 = vpop.xlane.xlu2 %1495 }
0x1941   :  { %v1497_v38 = vsel %vm1481_vm13, %v1496_v37, %v1463_v63 }
0x1942   :  { %v1528_v40 = vmul.f32 %v1512_v13, %v1497_v38 }
0x1944   :  { %1529 = vadd.xlane.f32.xlu0 %v1528_v40 }
0x1948   :  { %v1484_v41 = vpop.xlane.xlu2 %1483 }
0x1949   :  { %v1485_v3 = vsel %vm1481_vm13, %v1484_v41, %v1451_v4 }
0x194a   :  { %v1516_v42 = vmul.f32 %v1512_v13, %v1485_v3 }
0x194c   :  { %1517 = vadd.xlane.f32.xlu0 %v1516_v42 }
0x1950   :  { %v1508_v43 = vpop.xlane.xlu2 %1507 }
0x1951   :  { %v1509_v44 = vsel %vm1481_vm13, %v1508_v43, %v1475_v9 }
0x1952   :  { %v1540_v45 = vmul.f32 %v1512_v13, %v1509_v44  ;;  %v279_v13 = vsel %vm278_vm9, %v58_v33, 0.0  ;;  %vm1697_vm9 = vcmp.eq.s32.totalorder %v2135_v2, 59 }
0x1954   :  { %1541 = vadd.xlane.f32.xlu0 %v1540_v45 }
0x1964   :  { %v1526_v49 = vpop.xlane.xlu2 %1525  ;;  %v1522_v50 = vpop.xlane.xlu1 %1521 }
0x1965   :  { %v1527_v51 = vsel %vm1515_vm15, %v1526_v49, %v1493_v18  ;;  %v1523_v52 = vsel %vm1515_vm15, %v1522_v50, %v1489_v19  ;;  %v355_v50 = vsel %vm354_vm14, -1.0, %v2121_v61  ;;  %vm1849_vm14 = vcmp.eq.s32.totalorder %v2135_v2, 63 }
0x1966   :  { %v1558_v53 = vmul.f32 %v1546_v48, %v1527_v51  ;;  %v1554_v54 = vmul.f32 %v1546_v48, %v1523_v52 }
0x1968   :  { %1555 = vadd.xlane.f32.xlu0 %v1554_v54  ;;  %1559 = vadd.xlane.f32.xlu1 %v1558_v53 }
0x196c   :  { %v1538_v55 = vpop.xlane.xlu2 %1537  ;;  %v1534_v35 = vpop.xlane.xlu1 %1533 }
0x196d   :  { %v1539_v56 = vsel %vm1515_vm15, %v1538_v55, %v1505_v27  ;;  %v1535_v57 = vsel %vm1515_vm15, %v1534_v35, %v1501_v29 }
0x196e   :  { %v1570_v60 = vmul.f32 %v1546_v48, %v1539_v56  ;;  %v1566_v62 = vmul.f32 %v1546_v48, %v1535_v57 }
0x1970   :  { %1571 = vadd.xlane.f32.xlu1 %v1570_v60  ;;  %1567 = vadd.xlane.f32.xlu0 %v1566_v62 }
0x1974   :  { %v2696_v63 = vpop.xlane.xlu1 %275 }
0x1975   :  { %2118 = vrcp.f32 %v2696_v63  ;;  %v291_v4 = vand.u32 2147483648, %v2696_v63  ;;  %vm285_vm4 = vweird.f32 %v2696_v63  ;;  %v289_v7 = vand.u32 2147483647, %v2696_v63 }
0x1977   :  { %v292_v10 = vor.u32 1.1754944e-38, %v291_v4  ;;  %vm290_vm13 = vcmp.eq.f32.partialorder %v289_v7, 8.507059e+37 }
0x197b   :  { %v2119_v1 = vpop.eup %2118 }
0x197c   :  { %v281_v59 = vmul.f32 %v2119_v1, %v2696_v63  ;;  %vm286_vm8 = vweird.f32 %v2119_v1 }
0x197d   :  { %vm287_vm12 = vmor %vm285_vm4, %vm286_vm8  ;;  %vm1659_vm8 = vcmp.eq.s32.totalorder %v2135_v2, 58 }
0x197e   :  { %v282_v6 = vsub.f32 1.0, %v281_v59 }
0x1980   :  { %v283_v9 = vmul.f32 %v2119_v1, %v282_v6 }
0x1982   :  { %v284_v12 = vadd.f32 %v2119_v1, %v283_v9 }
0x1984   :  { %v288_v14 = vsel %vm287_vm12, %v2119_v1, %v284_v12  ;;  %vm1735_vm12 = vcmp.eq.s32.totalorder %v2135_v2, 60 }
0x1985   :  { %v2709_v17 = vsel %vm290_vm13, %v292_v10, %v288_v14  ;;  %vm1773_vm13 = vcmp.eq.s32.totalorder %v2135_v2, 61 }
0x1986   :  { %v294_v18 = vmul.f32 %v2709_v17, %v279_v13 }
0x1988   :  { %295 = vst [vmem:[#allocation2 + $0x38] sm:$0xff] %v294_v18 }
0x198f   :  { %v1579_v33 = vld [vmem:[#allocation2 + $0x38] ss:$0 sm:$0xff]  ;;  %v1617_v61 = vld [vmem:[#allocation2 + $0x39] ss:$0 sm:$0xff] }
0x1990   :  { %v1580_v34 = vxor.u32 2147483648, %v1579_v33  ;;  %v1618_v62 = vxor.u32 2147483648, %v1617_v61 }
0x19b7   :  { %v1530_v19 = vpop.xlane.xlu0 %1529 }
0x19b8   :  { %v1531_v21 = vsel %vm1515_vm15, %v1530_v19, %v1497_v38 }
0x19b9   :  { %v1562_v22 = vmul.f32 %v1546_v48, %v1531_v21 }
0x19bb   :  { %1563 = vadd.xlane.f32.xlu2 %v1562_v22 }
0x19bf   :  { %v1518_v25 = vpop.xlane.xlu0 %1517 }
0x19c0   :  { %v1519_v26 = vsel %vm1515_vm15, %v1518_v25, %v1485_v3 }
0x19c1   :  { %v1550_v27 = vmul.f32 %v1546_v48, %v1519_v26 }
0x19c3   :  { %1551 = vadd.xlane.f32.xlu2 %v1550_v27 }
0x19c7   :  { %v1542_v29 = vpop.xlane.xlu0 %1541 }
0x19c8   :  { %v1543_v30 = vsel %vm1515_vm15, %v1542_v29, %v1509_v44  ;;  %vm1583_vm15 = vcmp.eq.s32.totalorder %v2135_v2, 56 }
0x19c9   :  { %v1574_v31 = vmul.f32 %v1546_v48, %v1543_v30 }
0x19cb   :  { %1575 = vadd.xlane.f32.xlu2 %v1574_v31 }
0x19db   :  { %v1560_v37 = vpop.xlane.xlu1 %1559  ;;  %v1556_v38 = vpop.xlane.xlu0 %1555 }
0x19dc   :  { %v1561_v40 = vsel %vm1549_vm1, %v1560_v37, %v1527_v51  ;;  %v1557_v41 = vsel %vm1549_vm1, %v1556_v38, %v1523_v52  ;;  %v1612_v51 = vmul.f32 %v1580_v34, %v355_v50 }
0x19dd   :  { %v1592_v3 = vmul.f32 %v1580_v34, %v1561_v40  ;;  %v1588_v42 = vmul.f32 %v1580_v34, %v1557_v41 }
0x19df   :  { %1593 = vadd.xlane.f32.xlu2 %v1592_v3  ;;  %1589 = vadd.xlane.f32.xlu1 %v1588_v42 }
0x19e3   :  { %v1572_v43 = vpop.xlane.xlu1 %1571  ;;  %v1568_v44 = vpop.xlane.xlu0 %1567 }
0x19e4   :  { %v1573_v45 = vsel %vm1549_vm1, %v1572_v43, %v1539_v56  ;;  %v1569_v46 = vsel %vm1549_vm1, %v1568_v44, %v1535_v57 }
0x19e5   :  { %v1604_v48 = vmul.f32 %v1580_v34, %v1573_v45  ;;  %v1600_v49 = vmul.f32 %v1580_v34, %v1569_v46 }
0x19e7   :  { %1605 = vadd.xlane.f32.xlu2 %v1604_v48  ;;  %1601 = vadd.xlane.f32.xlu1 %v1600_v49 }
0x19ef   :  { %1613 = vadd.xlane.f32.xlu1 %v1612_v51 }
0x1a2e   :  { %v1564_v52 = vpop.xlane.xlu2 %1563 }
0x1a2f   :  { %v1565_v53 = vsel %vm1549_vm1, %v1564_v52, %v1531_v21 }
0x1a30   :  { %v1596_v54 = vmul.f32 %v1580_v34, %v1565_v53 }
0x1a32   :  { %1597 = vadd.xlane.f32.xlu0 %v1596_v54 }
0x1a36   :  { %v1552_v55 = vpop.xlane.xlu2 %1551 }
0x1a37   :  { %v1553_v35 = vsel %vm1549_vm1, %v1552_v55, %v1519_v26 }
0x1a38   :  { %v1584_v56 = vmul.f32 %v1580_v34, %v1553_v35 }
0x1a3a   :  { %1585 = vadd.xlane.f32.xlu0 %v1584_v56 }
0x1a3e   :  { %v1576_v57 = vpop.xlane.xlu2 %1575 }
0x1a3f   :  { %v1577_v32 = vsel %vm1549_vm1, %v1576_v57, %v1543_v30  ;;  %vm1811_vm1 = vcmp.eq.s32.totalorder %v2135_v2, 62 }
0x1a40   :  { %v1608_v60 = vmul.f32 %v1580_v34, %v1577_v32 }
0x1a42   :  { %1609 = vadd.xlane.f32.xlu0 %v1608_v60 }
0x1a52   :  { %v1594_v1 = vpop.xlane.xlu2 %1593  ;;  %v1590_v59 = vpop.xlane.xlu1 %1589 }
0x1a53   :  { %v1595_v4 = vsel %vm1583_vm15, %v1594_v1, %v1561_v40  ;;  %v1591_v6 = vsel %vm1583_vm15, %v1590_v59, %v1557_v41  ;;  %v1655_v40 = vld [vmem:[#allocation2 + $0x3a] ss:$0 sm:$0xff] }
0x1a54   :  { %v1630_v7 = vmul.f32 %v1618_v62, %v1595_v4  ;;  %v1626_v9 = vmul.f32 %v1618_v62, %v1591_v6  ;;  %v1656_v41 = vxor.u32 2147483648, %v1655_v40 }
0x1a56   :  { %1627 = vadd.xlane.f32.xlu0 %v1626_v9  ;;  %1631 = vadd.xlane.f32.xlu1 %v1630_v7 }
0x1a5a   :  { %v1606_v10 = vpop.xlane.xlu2 %1605  ;;  %v1602_v12 = vpop.xlane.xlu1 %1601 }
0x1a5b   :  { %v1607_v13 = vsel %vm1583_vm15, %v1606_v10, %v1573_v45  ;;  %v1603_v14 = vsel %vm1583_vm15, %v1602_v12, %v1569_v46 }
0x1a5c   :  { %v1642_v18 = vmul.f32 %v1618_v62, %v1607_v13  ;;  %v1638_v19 = vmul.f32 %v1618_v62, %v1603_v14 }
0x1a5e   :  { %1643 = vadd.xlane.f32.xlu1 %v1642_v18  ;;  %1639 = vadd.xlane.f32.xlu0 %v1638_v19 }
0x1a62   :  { %v1614_v21 = vpop.xlane.xlu1 %1613 }
0x1a63   :  { %v1615_v22 = vsel %vm1583_vm15, %v1614_v21, %v355_v50 }
0x1a64   :  { %v1650_v25 = vmul.f32 %v1618_v62, %v1615_v22 }
0x1a66   :  { %1651 = vadd.xlane.f32.xlu0 %v1650_v25 }
0x1aa5   :  { %v1598_v26 = vpop.xlane.xlu0 %1597 }
0x1aa6   :  { %v1599_v27 = vsel %vm1583_vm15, %v1598_v26, %v1565_v53 }
0x1aa7   :  { %v1634_v29 = vmul.f32 %v1618_v62, %v1599_v27 }
0x1aa9   :  { %1635 = vadd.xlane.f32.xlu2 %v1634_v29 }
0x1aad   :  { %v1586_v30 = vpop.xlane.xlu0 %1585 }
0x1aae   :  { %v1587_v31 = vsel %vm1583_vm15, %v1586_v30, %v1553_v35 }
0x1aaf   :  { %v1622_v33 = vmul.f32 %v1618_v62, %v1587_v31 }
0x1ab1   :  { %1623 = vadd.xlane.f32.xlu2 %v1622_v33 }
0x1ab5   :  { %v1610_v34 = vpop.xlane.xlu0 %1609 }
0x1ab6   :  { %v1611_v37 = vsel %vm1583_vm15, %v1610_v34, %v1577_v32 }
0x1ab7   :  { %v1646_v38 = vmul.f32 %v1618_v62, %v1611_v37 }
0x1ab9   :  { %1647 = vadd.xlane.f32.xlu2 %v1646_v38 }
0x1ac9   :  { %v1632_v3 = vpop.xlane.xlu1 %1631  ;;  %v1628_v42 = vpop.xlane.xlu0 %1627 }
0x1aca   :  { %v1633_v43 = vsel %vm1621_vm3, %v1632_v3, %v1595_v4  ;;  %v1629_v44 = vsel %vm1621_vm3, %v1628_v42, %v1591_v6  ;;  %v1693_v6 = vld [vmem:[#allocation2 + $0x3b] ss:$0 sm:$0xff] }
0x1acb   :  { %v1668_v45 = vmul.f32 %v1656_v41, %v1633_v43  ;;  %v1664_v46 = vmul.f32 %v1656_v41, %v1629_v44  ;;  %v1694_v7 = vxor.u32 2147483648, %v1693_v6 }
0x1acd   :  { %1669 = vadd.xlane.f32.xlu0 %v1668_v45  ;;  %1665 = vadd.xlane.f32.xlu2 %v1664_v46 }
0x1ad1   :  { %v1644_v48 = vpop.xlane.xlu1 %1643  ;;  %v1640_v49 = vpop.xlane.xlu0 %1639 }
0x1ad2   :  { %v1645_v50 = vsel %vm1621_vm3, %v1644_v48, %v1607_v13  ;;  %v1641_v51 = vsel %vm1621_vm3, %v1640_v49, %v1603_v14 }
0x1ad3   :  { %v1680_v52 = vmul.f32 %v1656_v41, %v1645_v50  ;;  %v1676_v53 = vmul.f32 %v1656_v41, %v1641_v51 }
0x1ad5   :  { %1681 = vadd.xlane.f32.xlu0 %v1680_v52  ;;  %1677 = vadd.xlane.f32.xlu2 %v1676_v53 }
0x1ad9   :  { %v1652_v54 = vpop.xlane.xlu0 %1651 }
0x1ada   :  { %v1653_v55 = vsel %vm1621_vm3, %v1652_v54, %v1615_v22 }
0x1adb   :  { %v1688_v35 = vmul.f32 %v1656_v41, %v1653_v55 }
0x1add   :  { %1689 = vadd.xlane.f32.xlu2 %v1688_v35 }
0x1b1c   :  { %v1636_v56 = vpop.xlane.xlu2 %1635 }
0x1b1d   :  { %v1637_v57 = vsel %vm1621_vm3, %v1636_v56, %v1599_v27 }
0x1b1e   :  { %v1672_v32 = vmul.f32 %v1656_v41, %v1637_v57 }
0x1b20   :  { %1673 = vadd.xlane.f32.xlu1 %v1672_v32 }
0x1b24   :  { %v1624_v60 = vpop.xlane.xlu2 %1623 }
0x1b25   :  { %v1625_v61 = vsel %vm1621_vm3, %v1624_v60, %v1587_v31 }
0x1b26   :  { %v1660_v62 = vmul.f32 %v1656_v41, %v1625_v61 }
0x1b28   :  { %1661 = vadd.xlane.f32.xlu1 %v1660_v62 }
0x1b2c   :  { %v1648_v1 = vpop.xlane.xlu2 %1647 }
0x1b2d   :  { %v1649_v59 = vsel %vm1621_vm3, %v1648_v1, %v1611_v37 }
0x1b2e   :  { %v1684_v4 = vmul.f32 %v1656_v41, %v1649_v59 }
0x1b30   :  { %1685 = vadd.xlane.f32.xlu1 %v1684_v4 }
0x1b40   :  { %v1666_v9 = vpop.xlane.xlu2 %1665  ;;  %v1670_v10 = vpop.xlane.xlu0 %1669 }
0x1b41   :  { %v1667_v12 = vsel %vm1659_vm8, %v1666_v9, %v1629_v44  ;;  %v1671_v13 = vsel %vm1659_vm8, %v1670_v10, %v1633_v43  ;;  %v1731_v44 = vld [vmem:[#allocation2 + $0x3c] ss:$0 sm:$0xff] }
0x1b42   :  { %v1702_v14 = vmul.f32 %v1694_v7, %v1667_v12  ;;  %v1706_v18 = vmul.f32 %v1694_v7, %v1671_v13  ;;  %v1732_v45 = vxor.u32 2147483648, %v1731_v44 }
0x1b44   :  { %1703 = vadd.xlane.f32.xlu1 %v1702_v14  ;;  %1707 = vadd.xlane.f32.xlu2 %v1706_v18 }
0x1b48   :  { %v1678_v19 = vpop.xlane.xlu2 %1677  ;;  %v1682_v21 = vpop.xlane.xlu0 %1681 }
0x1b49   :  { %v1679_v22 = vsel %vm1659_vm8, %v1678_v19, %v1641_v51  ;;  %v1683_v25 = vsel %vm1659_vm8, %v1682_v21, %v1645_v50 }
0x1b4a   :  { %v1714_v26 = vmul.f32 %v1694_v7, %v1679_v22  ;;  %v1718_v27 = vmul.f32 %v1694_v7, %v1683_v25 }
0x1b4c   :  { %1715 = vadd.xlane.f32.xlu1 %v1714_v26  ;;  %1719 = vadd.xlane.f32.xlu2 %v1718_v27 }
0x1b50   :  { %v1690_v29 = vpop.xlane.xlu2 %1689 }
0x1b51   :  { %v1691_v30 = vsel %vm1659_vm8, %v1690_v29, %v1653_v55 }
0x1b52   :  { %v1726_v31 = vmul.f32 %v1694_v7, %v1691_v30 }
0x1b54   :  { %1727 = vadd.xlane.f32.xlu1 %v1726_v31 }
0x1b93   :  { %v1674_v33 = vpop.xlane.xlu1 %1673 }
0x1b94   :  { %v1675_v34 = vsel %vm1659_vm8, %v1674_v33, %v1637_v57 }
0x1b95   :  { %v1710_v37 = vmul.f32 %v1694_v7, %v1675_v34 }
0x1b97   :  { %1711 = vadd.xlane.f32.xlu0 %v1710_v37 }
0x1b9b   :  { %v1662_v38 = vpop.xlane.xlu1 %1661 }
0x1b9c   :  { %v1663_v40 = vsel %vm1659_vm8, %v1662_v38, %v1625_v61 }
0x1b9d   :  { %v1698_v41 = vmul.f32 %v1694_v7, %v1663_v40 }
0x1b9f   :  { %1699 = vadd.xlane.f32.xlu0 %v1698_v41 }
0x1ba3   :  { %v1686_v3 = vpop.xlane.xlu1 %1685 }
0x1ba4   :  { %v1687_v42 = vsel %vm1659_vm8, %v1686_v3, %v1649_v59 }
0x1ba5   :  { %v1722_v43 = vmul.f32 %v1694_v7, %v1687_v42 }
0x1ba7   :  { %1723 = vadd.xlane.f32.xlu0 %v1722_v43 }
0x1bb7   :  { %v1704_v46 = vpop.xlane.xlu1 %1703  ;;  %v1708_v48 = vpop.xlane.xlu2 %1707 }
0x1bb8   :  { %v1705_v49 = vsel %vm1697_vm9, %v1704_v46, %v1667_v12  ;;  %v1709_v50 = vsel %vm1697_vm9, %v1708_v48, %v1671_v13  ;;  %v1769_v13 = vld [vmem:[#allocation2 + $0x3d] ss:$0 sm:$0xff] }
0x1bb9   :  { %v1740_v51 = vmul.f32 %v1732_v45, %v1705_v49  ;;  %v1744_v52 = vmul.f32 %v1732_v45, %v1709_v50  ;;  %v1770_v14 = vxor.u32 2147483648, %v1769_v13 }
0x1bbb   :  { %1741 = vadd.xlane.f32.xlu0 %v1740_v51  ;;  %1745 = vadd.xlane.f32.xlu1 %v1744_v52 }
0x1bbf   :  { %v1716_v53 = vpop.xlane.xlu1 %1715  ;;  %v1720_v54 = vpop.xlane.xlu2 %1719 }
0x1bc0   :  { %v1717_v55 = vsel %vm1697_vm9, %v1716_v53, %v1679_v22  ;;  %v1721_v35 = vsel %vm1697_vm9, %v1720_v54, %v1683_v25 }
0x1bc1   :  { %v1752_v56 = vmul.f32 %v1732_v45, %v1717_v55  ;;  %v1756_v57 = vmul.f32 %v1732_v45, %v1721_v35 }
0x1bc3   :  { %1753 = vadd.xlane.f32.xlu0 %v1752_v56  ;;  %1757 = vadd.xlane.f32.xlu1 %v1756_v57 }
0x1bc7   :  { %v1728_v32 = vpop.xlane.xlu1 %1727 }
0x1bc8   :  { %v1729_v60 = vsel %vm1697_vm9, %v1728_v32, %v1691_v30 }
0x1bc9   :  { %v1764_v61 = vmul.f32 %v1732_v45, %v1729_v60 }
0x1bcb   :  { %1765 = vadd.xlane.f32.xlu0 %v1764_v61 }
0x1c0a   :  { %v1712_v62 = vpop.xlane.xlu0 %1711 }
0x1c0b   :  { %v1713_v1 = vsel %vm1697_vm9, %v1712_v62, %v1675_v34 }
0x1c0c   :  { %v1748_v59 = vmul.f32 %v1732_v45, %v1713_v1 }
0x1c0e   :  { %1749 = vadd.xlane.f32.xlu2 %v1748_v59 }
0x1c12   :  { %v1700_v4 = vpop.xlane.xlu0 %1699 }
0x1c13   :  { %v1701_v6 = vsel %vm1697_vm9, %v1700_v4, %v1663_v40 }
0x1c14   :  { %v1736_v7 = vmul.f32 %v1732_v45, %v1701_v6 }
0x1c16   :  { %1737 = vadd.xlane.f32.xlu2 %v1736_v7 }
0x1c1a   :  { %v1724_v9 = vpop.xlane.xlu0 %1723 }
0x1c1b   :  { %v1725_v10 = vsel %vm1697_vm9, %v1724_v9, %v1687_v42 }
0x1c1c   :  { %v1760_v12 = vmul.f32 %v1732_v45, %v1725_v10 }
0x1c1e   :  { %1761 = vadd.xlane.f32.xlu2 %v1760_v12 }
0x1c2e   :  { %v1746_v18 = vpop.xlane.xlu1 %1745  ;;  %v1742_v19 = vpop.xlane.xlu0 %1741 }
0x1c2f   :  { %v1747_v21 = vsel %vm1735_vm12, %v1746_v18, %v1709_v50  ;;  %v1743_v22 = vsel %vm1735_vm12, %v1742_v19, %v1705_v49  ;;  %v1807_v50 = vld [vmem:[#allocation2 + $0x3e] ss:$0 sm:$0xff] }
0x1c30   :  { %v1782_v25 = vmul.f32 %v1770_v14, %v1747_v21  ;;  %v1778_v26 = vmul.f32 %v1770_v14, %v1743_v22  ;;  %v1808_v51 = vxor.u32 2147483648, %v1807_v50 }
0x1c32   :  { %1783 = vadd.xlane.f32.xlu0 %v1782_v25  ;;  %1779 = vadd.xlane.f32.xlu2 %v1778_v26 }
0x1c36   :  { %v1758_v27 = vpop.xlane.xlu1 %1757  ;;  %v1754_v29 = vpop.xlane.xlu0 %1753 }
0x1c37   :  { %v1759_v30 = vsel %vm1735_vm12, %v1758_v27, %v1721_v35  ;;  %v1755_v31 = vsel %vm1735_vm12, %v1754_v29, %v1717_v55 }
0x1c38   :  { %v1794_v33 = vmul.f32 %v1770_v14, %v1759_v30  ;;  %v1790_v34 = vmul.f32 %v1770_v14, %v1755_v31 }
0x1c3a   :  { %1795 = vadd.xlane.f32.xlu0 %v1794_v33  ;;  %1791 = vadd.xlane.f32.xlu2 %v1790_v34 }
0x1c3e   :  { %v1766_v37 = vpop.xlane.xlu0 %1765 }
0x1c3f   :  { %v1767_v38 = vsel %vm1735_vm12, %v1766_v37, %v1729_v60 }
0x1c40   :  { %v1802_v40 = vmul.f32 %v1770_v14, %v1767_v38 }
0x1c42   :  { %1803 = vadd.xlane.f32.xlu2 %v1802_v40 }
0x1c81   :  { %v1750_v41 = vpop.xlane.xlu2 %1749 }
0x1c82   :  { %v1751_v3 = vsel %vm1735_vm12, %v1750_v41, %v1713_v1 }
0x1c83   :  { %v1786_v42 = vmul.f32 %v1770_v14, %v1751_v3 }
0x1c85   :  { %1787 = vadd.xlane.f32.xlu1 %v1786_v42 }
0x1c89   :  { %v1738_v43 = vpop.xlane.xlu2 %1737 }
0x1c8a   :  { %v1739_v44 = vsel %vm1735_vm12, %v1738_v43, %v1701_v6 }
0x1c8b   :  { %v1774_v45 = vmul.f32 %v1770_v14, %v1739_v44 }
0x1c8d   :  { %1775 = vadd.xlane.f32.xlu1 %v1774_v45 }
0x1c91   :  { %v1762_v46 = vpop.xlane.xlu2 %1761 }
0x1c92   :  { %v1763_v48 = vsel %vm1735_vm12, %v1762_v46, %v1725_v10 }
0x1c93   :  { %v1798_v49 = vmul.f32 %v1770_v14, %v1763_v48 }
0x1c95   :  { %1799 = vadd.xlane.f32.xlu1 %v1798_v49 }
0x1ca5   :  { %v1780_v52 = vpop.xlane.xlu2 %1779  ;;  %v1784_v53 = vpop.xlane.xlu0 %1783 }
0x1ca6   :  { %v1781_v54 = vsel %vm1773_vm13, %v1780_v52, %v1743_v22  ;;  %v1785_v55 = vsel %vm1773_vm13, %v1784_v53, %v1747_v21  ;;  %v1845_v22 = vld [vmem:[#allocation2 + $0x3f] ss:$0 sm:$0xff] }
0x1ca7   :  { %v1816_v35 = vmul.f32 %v1808_v51, %v1781_v54  ;;  %v1820_v56 = vmul.f32 %v1808_v51, %v1785_v55  ;;  %v1846_v25 = vxor.u32 2147483648, %v1845_v22 }
0x1ca9   :  { %1817 = vadd.xlane.f32.xlu1 %v1816_v35  ;;  %1821 = vadd.xlane.f32.xlu2 %v1820_v56 }
0x1cad   :  { %v1792_v57 = vpop.xlane.xlu2 %1791  ;;  %v1796_v32 = vpop.xlane.xlu0 %1795 }
0x1cae   :  { %v1793_v60 = vsel %vm1773_vm13, %v1792_v57, %v1755_v31  ;;  %v1797_v61 = vsel %vm1773_vm13, %v1796_v32, %v1759_v30 }
0x1caf   :  { %v1828_v62 = vmul.f32 %v1808_v51, %v1793_v60  ;;  %v1832_v1 = vmul.f32 %v1808_v51, %v1797_v61 }
0x1cb1   :  { %1829 = vadd.xlane.f32.xlu1 %v1828_v62  ;;  %1833 = vadd.xlane.f32.xlu2 %v1832_v1 }
0x1cb5   :  { %v1804_v59 = vpop.xlane.xlu2 %1803 }
0x1cb6   :  { %v1805_v4 = vsel %vm1773_vm13, %v1804_v59, %v1767_v38 }
0x1cb7   :  { %v1840_v6 = vmul.f32 %v1808_v51, %v1805_v4 }
0x1cb9   :  { %1841 = vadd.xlane.f32.xlu1 %v1840_v6 }
0x1cf8   :  { %v1788_v7 = vpop.xlane.xlu1 %1787 }
0x1cf9   :  { %v1789_v9 = vsel %vm1773_vm13, %v1788_v7, %v1751_v3 }
0x1cfa   :  { %v1824_v10 = vmul.f32 %v1808_v51, %v1789_v9 }
0x1cfc   :  { %1825 = vadd.xlane.f32.xlu0 %v1824_v10 }
0x1d00   :  { %v1776_v12 = vpop.xlane.xlu1 %1775 }
0x1d01   :  { %v1777_v13 = vsel %vm1773_vm13, %v1776_v12, %v1739_v44 }
0x1d02   :  { %v1812_v14 = vmul.f32 %v1808_v51, %v1777_v13 }
0x1d04   :  { %1813 = vadd.xlane.f32.xlu0 %v1812_v14 }
0x1d08   :  { %v1800_v18 = vpop.xlane.xlu1 %1799 }
0x1d09   :  { %v1801_v19 = vsel %vm1773_vm13, %v1800_v18, %v1763_v48 }
0x1d0a   :  { %v1836_v21 = vmul.f32 %v1808_v51, %v1801_v19 }
0x1d0c   :  { %1837 = vadd.xlane.f32.xlu0 %v1836_v21 }
0x1d1c   :  { %v1818_v26 = vpop.xlane.xlu1 %1817  ;;  %v1822_v27 = vpop.xlane.xlu2 %1821 }
0x1d1d   :  { %v1819_v29 = vsel %vm1811_vm1, %v1818_v26, %v1781_v54  ;;  %v1823_v30 = vsel %vm1811_vm1, %v1822_v27, %v1785_v55 }
0x1d1e   :  { %v1854_v31 = vmul.f32 %v1846_v25, %v1819_v29  ;;  %v1858_v33 = vmul.f32 %v1846_v25, %v1823_v30 }
0x1d20   :  { %1855 = vadd.xlane.f32.xlu0 %v1854_v31  ;;  %1859 = vadd.xlane.f32.xlu1 %v1858_v33 }
0x1d24   :  { %v1830_v34 = vpop.xlane.xlu1 %1829  ;;  %v1834_v37 = vpop.xlane.xlu2 %1833 }
0x1d25   :  { %v1831_v38 = vsel %vm1811_vm1, %v1830_v34, %v1793_v60  ;;  %v1835_v40 = vsel %vm1811_vm1, %v1834_v37, %v1797_v61 }
0x1d26   :  { %v1866_v41 = vmul.f32 %v1846_v25, %v1831_v38  ;;  %v1870_v3 = vmul.f32 %v1846_v25, %v1835_v40 }
0x1d28   :  { %1867 = vadd.xlane.f32.xlu0 %v1866_v41  ;;  %1871 = vadd.xlane.f32.xlu1 %v1870_v3 }
0x1d2c   :  { %v1842_v42 = vpop.xlane.xlu1 %1841 }
0x1d2d   :  { %v1843_v43 = vsel %vm1811_vm1, %v1842_v42, %v1805_v4 }
0x1d2e   :  { %v1878_v44 = vmul.f32 %v1846_v25, %v1843_v43 }
0x1d30   :  { %1879 = vadd.xlane.f32.xlu0 %v1878_v44 }
0x1d6f   :  { %v1826_v45 = vpop.xlane.xlu0 %1825 }
0x1d70   :  { %v1827_v46 = vsel %vm1811_vm1, %v1826_v45, %v1789_v9 }
0x1d71   :  { %v1862_v48 = vmul.f32 %v1846_v25, %v1827_v46 }
0x1d73   :  { %1863 = vadd.xlane.f32.xlu2 %v1862_v48 }
0x1d77   :  { %v1814_v49 = vpop.xlane.xlu0 %1813 }
0x1d78   :  { %v1815_v50 = vsel %vm1811_vm1, %v1814_v49, %v1777_v13 }
0x1d79   :  { %v1850_v51 = vmul.f32 %v1846_v25, %v1815_v50 }
0x1d7b   :  { %1851 = vadd.xlane.f32.xlu2 %v1850_v51 }
0x1d7f   :  { %v1838_v52 = vpop.xlane.xlu0 %1837 }
0x1d80   :  { %v1839_v53 = vsel %vm1811_vm1, %v1838_v52, %v1801_v19 }
0x1d81   :  { %v1874_v54 = vmul.f32 %v1846_v25, %v1839_v53 }
0x1d83   :  { %1875 = vadd.xlane.f32.xlu2 %v1874_v54 }
0x1d93   :  { %v1860_v55 = vpop.xlane.xlu1 %1859  ;;  %v1856_v35 = vpop.xlane.xlu0 %1855 }
0x1d94   :  { %v1861_v56 = vsel %vm1849_vm14, %v1860_v55, %v1823_v30  ;;  %v1857_v57 = vsel %vm1849_vm14, %v1856_v35, %v1819_v29 }
0x1d95   :  { %v1933_v32 = vmul.f32 %v1861_v56, %v2215_v20  ;;  %v1914_v60 = vmul.f32 %v1857_v57, %v2182_v58 }
0x1d97   :  { %v1935_v61 = vsel %vm140_vm6, %v1861_v56, %v1933_v32  ;;  %v1916_v62 = vsel %vm111_vm0, %v1857_v57, %v1914_v60 }
0x1d98   :  { %2080 = vst [vmem:[%s2921_s1 + $0x10] sm:$0xff] %v1935_v61 }
0x1d99   :  { %2078 = vst [vmem:[%s2921_s1 + $0x8] sm:$0xff] %v1916_v62 }
0x1d9b   :  { %v1872_v1 = vpop.xlane.xlu1 %1871  ;;  %v1868_v59 = vpop.xlane.xlu0 %1867 }
0x1d9c   :  { %v1873_v20 = vsel %vm1849_vm14, %v1872_v1, %v1835_v40  ;;  %v1869_v58 = vsel %vm1849_vm14, %v1868_v59, %v1831_v38 }
0x1d9d   :  { %v1990_v8 = vmul.f32 %v1873_v20, %v2437_v36  ;;  %v1971_v47 = vmul.f32 %v1869_v58, %v2324_v39 }
0x1d9f   :  { %v1992_v4 = vsel %vm227_vm10, %v1873_v20, %v1990_v8  ;;  %v1973_v6 = vsel %vm198_vm2, %v1869_v58, %v1971_v47 }
0x1da0   :  { %2086 = vst [vmem:[%s2921_s1 + $0x28] sm:$0xff] %v1992_v4 }
0x1da1   :  { %2084 = vst [vmem:[%s2921_s1 + $0x20] sm:$0xff] %v1973_v6 }
0x1da3   :  { %v1880_v7 = vpop.xlane.xlu0 %1879 }
0x1da4   :  { %v1881_v36 = vsel %vm1849_vm14, %v1880_v7, %v1843_v43 }
0x1da5   :  { %v2028_v39 = vmul.f32 %v1881_v36, %v2709_v17 }
0x1da7   :  { %v2030_v23 = vsel %vm285_vm4, %v1881_v36, %v2028_v39 }
0x1da8   :  { %2090 = vst [vmem:[%s2921_s1 + $0x38] sm:$0xff] %v2030_v23 }
0x1de6   :  { %v1864_v28 = vpop.xlane.xlu2 %1863 }
0x1de7   :  { %v1865_v9 = vsel %vm1849_vm14, %v1864_v28, %v1827_v46 }
0x1de8   :  { %v1952_v10 = vmul.f32 %v1865_v9, %v2278_v24 }
0x1dea   :  { %v1954_v12 = vsel %vm169_vm11, %v1865_v9, %v1952_v10 }
0x1deb   :  { %2082 = vst [vmem:[%s2921_s1 + $0x18] sm:$0xff] %v1954_v12 }
0x1dee   :  { %v1852_v17 = vpop.xlane.xlu2 %1851 }
0x1def   :  { %v1853_v63 = vsel %vm1849_vm14, %v1852_v17, %v1815_v50 }
0x1df0   :  { %v1896_v13 = vmul.f32 %v1853_v63, %v2155_v16 }
0x1df2   :  { %v1898_v14 = vsel %vm82_vm5, %v1853_v63, %v1896_v13 }
0x1df3   :  { %2076 = vst [vmem:[%s2921_s1] sm:$0xff] %v1898_v14 }
0x1df6   :  { %v1876_v24 = vpop.xlane.xlu2 %1875 }
0x1df7   :  { %v1877_v11 = vsel %vm1849_vm14, %v1876_v24, %v1839_v53 }
0x1df8   :  { %v2009_v18 = vmul.f32 %v1877_v11, %v2570_v15 }
0x1dfa   :  { %v2011_v19 = vsel %vm256_vm7, %v1877_v11, %v2009_v18 }
0x1dfb   :  { %2088 = vst [vmem:[%s2921_s1 + $0x30] sm:$0xff] %v2011_v19 }

// kernel: gp_forward.2
= control target key start
LH: loop header
LB: loop body
LE: loop exit
PB: predicated region body
PF: predicated region fallthrough
CT: control target
= control target key end

     0   :  { %10 = vsyncpa [#allocation3], 0  ;;  %s687_s18 = smov [#allocation2]   ;;  %s1230_s0 = inlined_call_operand.vmem [shape: f32[3], index: 0, kind: input, shape index: {}]   ;;  %s1231_s1 = inlined_call_operand.vmem [shape: f32[64,32], index: 1, kind: input, shape index: {}]   ;;  %s1232_s2 = inlined_call_operand.vmem [shape: f32[128,32], index: 2, kind: input, shape index: {}]   ;;  %s1233_s3 = inlined_call_operand.vmem [shape: f32[64,64], index: 3, kind: output, shape index: {0}]   ;;  %s1234_s4 = inlined_call_operand.vmem [shape: f32[64,128], index: 4, kind: output, shape index: {1}]  }
   0x1   :  { %s16_s17 = sshll.u32 %s1230_s0, 4  ;;  %s17_s17 = int_to_ptr.vmem [resolvable:$true] %s16_s17 }
   0x2   :  { %19 = dma.vmem_to_smem %s17_s17, 16, %s687_s18, [#allocation3]  }
   0x3   :  { %685 = dma.done.wait [#allocation3], 16  }
   0x4   :  { %686 = vsyncadd [#allocation3], 4294967280 }
   0x5   :  { %28 = sfence }
   0x6   :  { %v719_v0 = vld [vmem:[%s1231_s1 + $0x20] sm:$0xff]  ;;  %vm64_vm0 = vcmask 261120   ;;  %v733_v4 = vld [vmem:[%s1231_s1 + $0x10] sm:$0xff]  ;;  %v738_v5 = vld [vmem:[%s1231_s1 + $0x28] sm:$0xff]  ;;  %s565_s11 = sld [smem:[#allocation2 + $0x1]]  ;;  %vm507_vm9 = vcmask 523264  }
   0x7   :  { %v724_v1 = vld [vmem:[%s1231_s1] sm:$0xff]  ;;  %v60_v2 = vmul.f32 %v719_v0, %v719_v0  ;;  %v58_v6 = vmul.f32 %v733_v4, %v733_v4  ;;  %v745_v7 = vld [vmem:[%s1231_s1 + $0x8] sm:$0xff]  ;;  %v750_v8 = vld [vmem:[%s1231_s1 + $0x38] sm:$0xff]  ;;  %v61_v13 = vmul.f32 %v738_v5, %v738_v5  ;;  %s1066_s12 = sld [smem:[#allocation2 + $0x2]] }
   0x8   :  { %v56_v3 = vmul.f32 %v724_v1, %v724_v1  ;;  %v757_v11 = vld [vmem:[%s1231_s1 + $0x18] sm:$0xff]  ;;  %567 = vmatpush.xpose.msk.msra.mxu0 %vm64_vm0, %v750_v8  ;;  %v57_v14 = vmul.f32 %v745_v7, %v745_v7  ;;  %v771_v16 = vld [vmem:[%s1231_s1 + $0x30] sm:$0xff]  ;;  %v780_v19 = vld [vmem:[%s1232_s2] sm:$0xff]  ;;  %v63_v23 = vmul.f32 %v750_v8, %v750_v8 }
   0x9   :  { %v77_v9 = vsel %vm64_vm0, %v60_v2, 0.0  ;;  %v71_v12 = vsel %vm64_vm0, %v58_v6, 0.0  ;;  %v59_v15 = vmul.f32 %v757_v11, %v757_v11  ;;  %v80_v17 = vsel %vm64_vm0, %v61_v13, 0.0  ;;  %v799_v27 = vld [vmem:[%s1232_s2 + $0x8] sm:$0xff]  ;;  %v804_v28 = vld [vmem:[%s1232_s2 + $0x18] sm:$0xff]  ;;  %v809_v29 = vld [vmem:[%s1232_s2 + $0x10] sm:$0xff] }
   0xa   :  { %v65_v10 = vsel %vm64_vm0, %v56_v3, 0.0  ;;  %78 = vadd.xlane.f32.xlu2 %v77_v9  ;;  %72 = vadd.xlane.f32.xlu1 %v71_v12  ;;  %v68_v18 = vsel %vm64_vm0, %v57_v14, 0.0  ;;  %v89_v21 = vmul.f32 %v780_v19, %v780_v19  ;;  %v62_v22 = vmul.f32 %v771_v16, %v771_v16  ;;  %v827_v36 = vld [vmem:[%s1232_s2 + $0x20] sm:$0xff]  ;;  %v832_v37 = vld [vmem:[%s1232_s2 + $0x30] sm:$0xff]  ;;  %v837_v38 = vld [vmem:[%s1232_s2 + $0x28] sm:$0xff] }
   0xb   :  { %66 = vadd.xlane.f32.xlu0 %v65_v10  ;;  %v74_v20 = vsel %vm64_vm0, %v59_v15, 0.0  ;;  %v86_v26 = vsel %vm64_vm0, %v63_v23, 0.0  ;;  %v90_v30 = vmul.f32 %v799_v27, %v799_v27  ;;  %v92_v31 = vmul.f32 %v804_v28, %v804_v28  ;;  %v848_v41 = vld [vmem:[%s1232_s2 + $0x78] sm:$0xff]  ;;  %v54_v45 = vld [vmem:[%s1232_s2 + $0x70] sm:$0xff]  ;;  %v49_v48 = vld [vmem:[%s1232_s2 + $0x48] sm:$0xff] }
   0xc   :  { %568 = vmatpush.xpose.msk.msra.mxu0 %vm64_vm0, %v771_v16  ;;  %v105_v24 = vsel %vm64_vm0, %v89_v21, 0.0  ;;  %v83_v25 = vsel %vm64_vm0, %v62_v22, 0.0  ;;  %v91_v32 = vmul.f32 %v809_v29, %v809_v29  ;;  %v93_v39 = vmul.f32 %v827_v36, %v827_v36  ;;  %608 = vmatpush.xpose.msk.msra.mxu3 %vm64_vm0, %v848_v41  ;;  %v47_v47 = vld [vmem:[%s1232_s2 + $0x38] sm:$0xff]  ;;  %v48_v49 = vld [vmem:[%s1232_s2 + $0x40] sm:$0xff]  ;;  %v53_v51 = vld [vmem:[%s1232_s2 + $0x68] sm:$0xff] }
   0xd   :  { %v108_v33 = vsel %vm64_vm0, %v90_v30, 0.0  ;;  %v114_v34 = vsel %vm64_vm0, %v92_v31, 0.0  ;;  %v95_v40 = vmul.f32 %v832_v37, %v832_v37  ;;  %v94_v42 = vmul.f32 %v837_v38, %v837_v38  ;;  %607 = vmatpush.xpose.msk.msra.mxu2 %vm64_vm0, %v848_v41  ;;  %583 = vmatpush.xpose.msk.msra.mxu1 %vm64_vm0, %v848_v41  ;;  %v52_v54 = vld [vmem:[%s1232_s2 + $0x60] sm:$0xff]  ;;  %v50_v58 = vld [vmem:[%s1232_s2 + $0x50] sm:$0xff]  ;;  %v51_v59 = vld [vmem:[%s1232_s2 + $0x58] sm:$0xff]  ;;  %s29_s2 = sld [smem:[#allocation2]] }
   0xe   :  { %v111_v35 = vsel %vm64_vm0, %v91_v32, 0.0  ;;  %v117_v43 = vsel %vm64_vm0, %v93_v39, 0.0  ;;  %v96_v50 = vmul.f32 %v47_v47, %v47_v47  ;;  %v98_v52 = vmul.f32 %v49_v48, %v49_v48 }
   0xf   :  { %v123_v44 = vsel %vm64_vm0, %v95_v40, 0.0  ;;  %v120_v46 = vsel %vm64_vm0, %v94_v42, 0.0  ;;  %v97_v53 = vmul.f32 %v48_v49, %v48_v49  ;;  %v99_v60 = vmul.f32 %v50_v58, %v50_v58 }
  0x10   :  { %569 = vmatpush.xpose.msk.msra.mxu0 %vm64_vm0, %v738_v5  ;;  %610 = vmatpush.xpose.msk.msra.mxu3 %vm64_vm0, %v54_v45  ;;  %v126_v55 = vsel %vm64_vm0, %v96_v50, 0.0  ;;  %v132_v56 = vsel %vm64_vm0, %v98_v52, 0.0  ;;  %v101_v61 = vmul.f32 %v52_v54, %v52_v54  ;;  %v100_v62 = vmul.f32 %v51_v59, %v51_v59 }
  0x11   :  { %609 = vmatpush.xpose.msk.msra.mxu2 %vm64_vm0, %v54_v45  ;;  %584 = vmatpush.xpose.msk.msra.mxu1 %vm64_vm0, %v54_v45  ;;  %v129_v57 = vsel %vm64_vm0, %v97_v53, 0.0  ;;  %v135_v63 = vsel %vm64_vm0, %v99_v60, 0.0  ;;  %v102_v6 = vmul.f32 %v53_v51, %v53_v51  ;;  %v103_v9 = vmul.f32 %v54_v45, %v54_v45 }
  0x12   :  { %81 = vadd.xlane.f32.xlu2 %v80_v17  ;;  %75 = vadd.xlane.f32.xlu1 %v74_v20  ;;  %v141_v2 = vsel %vm64_vm0, %v101_v61, 0.0  ;;  %v138_v3 = vsel %vm64_vm0, %v100_v62, 0.0  ;;  %v104_v13 = vmul.f32 %v848_v41, %v848_v41  ;;  %v437_v42 = vlaneseq }
  0x13   :  { %69 = vadd.xlane.f32.xlu0 %v68_v18  ;;  %v144_v10 = vsel %vm64_vm0, %v102_v6, 0.0  ;;  %v147_v12 = vsel %vm64_vm0, %v103_v9, 0.0 }
  0x14   :  { %570 = vmatpush.xpose.msk.msra.mxu0 %vm64_vm0, %v719_v0  ;;  %612 = vmatpush.xpose.msk.msra.mxu3 %vm64_vm0, %v53_v51  ;;  %v150_v14 = vsel %vm64_vm0, %v104_v13, 0.0  ;;  %v1033_v61 = vand.u32 127, %v437_v42 }
  0x15   :  { %611 = vmatpush.xpose.msk.msra.mxu2 %vm64_vm0, %v53_v51  ;;  %585 = vmatpush.xpose.msk.msra.mxu1 %vm64_vm0, %v53_v51 }
  0x18   :  { %571 = vmatpush.xpose.msk.msra.mxu0 %vm64_vm0, %v757_v11  ;;  %614 = vmatpush.xpose.msk.msra.mxu3 %vm64_vm0, %v52_v54 }
  0x19   :  { %613 = vmatpush.xpose.msk.msra.mxu2 %vm64_vm0, %v52_v54  ;;  %586 = vmatpush.xpose.msk.msra.mxu1 %vm64_vm0, %v52_v54 }
  0x1a   :  { %106 = vadd.xlane.f32.xlu2 %v105_v24  ;;  %87 = vadd.xlane.f32.xlu1 %v86_v26 }
  0x1b   :  { %84 = vadd.xlane.f32.xlu0 %v83_v25 }
  0x1c   :  { %572 = vmatpush.xpose.msk.msra.mxu0 %vm64_vm0, %v733_v4  ;;  %616 = vmatpush.xpose.msk.msra.mxu3 %vm64_vm0, %v51_v59 }
  0x1d   :  { %615 = vmatpush.xpose.msk.msra.mxu2 %vm64_vm0, %v51_v59  ;;  %587 = vmatpush.xpose.msk.msra.mxu1 %vm64_vm0, %v51_v59 }
  0x20   :  { %573 = vmatpush.xpose.msk.msra.mxu0 %vm64_vm0, %v745_v7  ;;  %618 = vmatpush.xpose.msk.msra.mxu3 %vm64_vm0, %v50_v58 }
  0x21   :  { %617 = vmatpush.xpose.msk.msra.mxu2 %vm64_vm0, %v50_v58  ;;  %588 = vmatpush.xpose.msk.msra.mxu1 %vm64_vm0, %v50_v58 }
  0x22   :  { %115 = vadd.xlane.f32.xlu2 %v114_v34  ;;  %112 = vadd.xlane.f32.xlu1 %v111_v35 }
  0x23   :  { %109 = vadd.xlane.f32.xlu0 %v108_v33 }
  0x24   :  { %574 = vmatpush.xpose.msk.msra.mxu0 %vm64_vm0, %v724_v1  ;;  %620 = vmatpush.xpose.msk.msra.mxu3 %vm64_vm0, %v49_v48 }
  0x25   :  { %619 = vmatpush.xpose.msk.msra.mxu2 %vm64_vm0, %v49_v48  ;;  %589 = vmatpush.xpose.msk.msra.mxu1 %vm64_vm0, %v49_v48 }
  0x27   :  { %575 = vmatmul.msk.f32.vlgmr.msra.gmra.mxu0 %vm64_vm0, %v724_v1 }
  0x28   :  { %622 = vmatpush.xpose.msk.msra.mxu3 %vm64_vm0, %v48_v49 }
  0x29   :  { %621 = vmatpush.xpose.msk.msra.mxu2 %vm64_vm0, %v48_v49  ;;  %590 = vmatpush.xpose.msk.msra.mxu1 %vm64_vm0, %v48_v49 }
  0x2a   :  { %124 = vadd.xlane.f32.xlu2 %v123_v44  ;;  %121 = vadd.xlane.f32.xlu1 %v120_v46  ;;  %v1020_v44 = vshrl.u32 %v437_v42, 7 }
  0x2b   :  { %118 = vadd.xlane.f32.xlu0 %v117_v43 }
  0x2c   :  { %624 = vmatpush.xpose.msk.msra.mxu3 %vm64_vm0, %v47_v47  ;;  %v1031_v60 = vadd.s32 8, %v1020_v44  ;;  %v1042_v6 = vadd.s32 16, %v1020_v44  ;;  %v1045_v9 = vadd.s32 24, %v1020_v44  ;;  %v1054_v13 = vadd.s32 48, %v1020_v44 }
  0x2d   :  { %623 = vmatpush.xpose.msk.msra.mxu2 %vm64_vm0, %v47_v47  ;;  %591 = vmatpush.xpose.msk.msra.mxu1 %vm64_vm0, %v47_v47  ;;  %vm482_vm1 = vcmp.eq.s32.totalorder %v1020_v44, %v1033_v61 }
  0x2e   :  { %vm483_vm2 = vcmp.eq.s32.totalorder %v1031_v60, %v1033_v61  ;;  %vm484_vm3 = vcmp.eq.s32.totalorder %v1042_v6, %v1033_v61  ;;  %vm485_vm4 = vcmp.eq.s32.totalorder %v1045_v9, %v1033_v61  ;;  %vm488_vm7 = vcmp.eq.s32.totalorder %v1054_v13, %v1033_v61 }
  0x2f   :  { %576 = vmatmul.msk.f32.gmra.mxu0 %vm64_vm0, %v745_v7 }
  0x30   :  { %626 = vmatpush.xpose.msk.msra.mxu3 %vm64_vm0, %v832_v37 }
  0x31   :  { %625 = vmatpush.xpose.msk.msra.mxu2 %vm64_vm0, %v832_v37  ;;  %592 = vmatpush.xpose.msk.msra.mxu1 %vm64_vm0, %v832_v37 }
  0x32   :  { %133 = vadd.xlane.f32.xlu2 %v132_v56  ;;  %130 = vadd.xlane.f32.xlu1 %v129_v57 }
  0x33   :  { %127 = vadd.xlane.f32.xlu0 %v126_v55  ;;  %v1024_v55 = vstv %s29_s2 }
  0x34   :  { %628 = vmatpush.xpose.msk.msra.mxu3 %vm64_vm0, %v837_v38 }
  0x35   :  { %627 = vmatpush.xpose.msk.msra.mxu2 %vm64_vm0, %v837_v38  ;;  %593 = vmatpush.xpose.msk.msra.mxu1 %vm64_vm0, %v837_v38 }
  0x37   :  { %577 = vmatmul.msk.f32.gmra.mxu0 %vm64_vm0, %v733_v4 }
  0x38   :  { %630 = vmatpush.xpose.msk.msra.mxu3 %vm64_vm0, %v827_v36 }
  0x39   :  { %629 = vmatpush.xpose.msk.msra.mxu2 %vm64_vm0, %v827_v36  ;;  %594 = vmatpush.xpose.msk.msra.mxu1 %vm64_vm0, %v827_v36 }
  0x3a   :  { %142 = vadd.xlane.f32.xlu2 %v141_v2  ;;  %139 = vadd.xlane.f32.xlu1 %v138_v3  ;;  %v1039_v3 = vstv %s565_s11 }
  0x3b   :  { %136 = vadd.xlane.f32.xlu0 %v135_v63 }
  0x3c   :  { %632 = vmatpush.xpose.msk.msra.mxu3 %vm64_vm0, %v804_v28 }
  0x3d   :  { %631 = vmatpush.xpose.msk.msra.mxu2 %vm64_vm0, %v804_v28  ;;  %595 = vmatpush.xpose.msk.msra.mxu1 %vm64_vm0, %v804_v28 }
  0x3f   :  { %578 = vmatmul.msk.f32.gmra.mxu0 %vm64_vm0, %v757_v11 }
  0x40   :  { %634 = vmatpush.xpose.msk.msra.mxu3 %vm64_vm0, %v809_v29 }
  0x41   :  { %633 = vmatpush.xpose.msk.msra.mxu2 %vm64_vm0, %v809_v29  ;;  %596 = vmatpush.xpose.msk.msra.mxu1 %vm64_vm0, %v809_v29 }
  0x42   :  { %148 = vadd.xlane.f32.xlu1 %v147_v12  ;;  %151 = vadd.xlane.f32.xlu2 %v150_v14  ;;  %v1051_v12 = vadd.s32 40, %v1020_v44  ;;  %v1057_v14 = vadd.s32 56, %v1020_v44 }
  0x43   :  { %145 = vadd.xlane.f32.xlu0 %v144_v10  ;;  %v1048_v10 = vadd.s32 32, %v1020_v44 }
  0x44   :  { %636 = vmatpush.xpose.msk.msra.mxu3 %vm64_vm0, %v799_v27  ;;  %vm487_vm6 = vcmp.eq.s32.totalorder %v1051_v12, %v1033_v61  ;;  %vm489_vm8 = vcmp.eq.s32.totalorder %v1057_v14, %v1033_v61 }
  0x45   :  { %635 = vmatpush.xpose.msk.msra.mxu2 %vm64_vm0, %v799_v27  ;;  %597 = vmatpush.xpose.msk.msra.mxu1 %vm64_vm0, %v799_v27  ;;  %vm486_vm5 = vcmp.eq.s32.totalorder %v1048_v10, %v1033_v61 }
  0x47   :  { %579 = vmatmul.msk.f32.gmra.mxu0 %vm64_vm0, %v719_v0 }
  0x48   :  { %638 = vmatpush.xpose.msk.msra.mxu3 %vm64_vm0, %v780_v19 }
  0x49   :  { %637 = vmatpush.xpose.msk.msra.mxu2 %vm64_vm0, %v780_v19  ;;  %598 = vmatpush.xpose.msk.msra.mxu1 %vm64_vm0, %v780_v19 }
  0x4b   :  { %603 = vmatmul.msk.f32.vlgmr.msra.gmra.mxu3 %vm64_vm0, %v719_v0 }
  0x4c   :  { %600 = vmatmul.msk.f32.vlgmr.msra.gmra.mxu2 %vm64_vm0, %v745_v7  ;;  %599 = vmatmul.msk.f32.vlgmr.msra.gmra.mxu1 %vm64_vm0, %v724_v1 }
  0x4f   :  { %580 = vmatmul.msk.f32.gmra.mxu0 %vm64_vm0, %v738_v5 }
  0x53   :  { %604 = vmatmul.msk.f32.gmra.mxu3 %vm64_vm0, %v738_v5 }
  0x54   :  { %601 = vmatmul.msk.f32.gmra.mxu2 %vm64_vm0, %v733_v4 }
  0x57   :  { %581 = vmatmul.msk.f32.gmra.mxu0 %vm64_vm0, %v771_v16 }
  0x5b   :  { %605 = vmatmul.msk.f32.gmra.mxu3 %vm64_vm0, %v771_v16 }
  0x5c   :  { %602 = vmatmul.msk.f32.gmra.mxu2 %vm64_vm0, %v757_v11 }
  0x5f   :  { %582 = vmatmul.msk.f32.gmra.mxu0 %vm64_vm0, %v750_v8 }
  0x63   :  { %606 = vmatmul.msk.f32.gmra.mxu3 %vm64_vm0, %v750_v8 }
  0x7d   :  { %v996_v0 = vpop.xlane.xlu2 %78  ;;  %v1001_v4 = vpop.xlane.xlu1 %72 }
  0x7e   :  { %v998_v1 = vpop.xlane.xlu0 %66 }
  0x7f   :  { %307 = vxpose.xlu0.b32.start [1/8] (short) (narrow) %v998_v1, 8 }
  0x85   :  { %v1003_v5 = vpop.xlane.xlu2 %81  ;;  %v1008_v15 = vpop.xlane.xlu1 %75 }
  0x86   :  { %v1005_v7 = vpop.xlane.xlu0 %69 }
  0x87   :  { %308 = vxpose.xlu0.b32.cont [2/8] (short) (narrow) %v1005_v7, 8 }
  0x8d   :  { %v107_v11 = vpop.xlane.xlu2 %106  ;;  %v1013_v8 = vpop.xlane.xlu1 %87 }
  0x8e   :  { %v1010_v16 = vpop.xlane.xlu0 %84  ;;  %372 = vxpose.xlu1.b32.start [1/16] (narrow) %v107_v11, 8 }
  0x8f   :  { %309 = vxpose.xlu0.b32.cont [3/8] (short) (narrow) %v1001_v4, 8 }
  0x95   :  { %v113_v18 = vpop.xlane.xlu1 %112  ;;  %v116_v19 = vpop.xlane.xlu2 %115 }
  0x96   :  { %v110_v17 = vpop.xlane.xlu0 %109 }
  0x97   :  { %310 = vxpose.xlu0.b32.cont [4/8] (short) (narrow) %v1008_v15, 8  ;;  %373 = vxpose.xlu1.b32.cont [2/16] (narrow) %v110_v17, 8 }
  0x9d   :  { %v122_v21 = vpop.xlane.xlu1 %121  ;;  %v125_v22 = vpop.xlane.xlu2 %124 }
  0x9e   :  { %v119_v20 = vpop.xlane.xlu0 %118 }
  0x9f   :  { %311 = vxpose.xlu0.b32.cont [5/8] (short) (narrow) %v996_v0, 8  ;;  %374 = vxpose.xlu1.b32.cont [3/16] (narrow) %v113_v18, 8 }
  0xa4   :  { %v194_v26 = vpop.f32.mrf.mxu0 }
  0xa5   :  { %v131_v24 = vpop.xlane.xlu1 %130  ;;  %v134_v25 = vpop.xlane.xlu2 %133  ;;  %v348_v45 = vmul.f32 2.0, %v194_v26 }
  0xa6   :  { %v128_v23 = vpop.xlane.xlu0 %127 }
  0xa7   :  { %312 = vxpose.xlu0.b32.cont [6/8] (short) (narrow) %v1003_v5, 8  ;;  %375 = vxpose.xlu1.b32.cont [4/16] (narrow) %v116_v19, 8 }
  0xac   :  { %v197_v28 = vpop.f32.mrf.mxu0 }
  0xad   :  { %v140_v29 = vpop.xlane.xlu1 %139  ;;  %v143_v30 = vpop.xlane.xlu2 %142  ;;  %v349_v46 = vmul.f32 2.0, %v197_v28 }
  0xae   :  { %v137_v27 = vpop.xlane.xlu0 %136 }
  0xaf   :  { %313 = vxpose.xlu0.b32.cont [7/8] (short) (narrow) %v1010_v16, 8  ;;  %376 = vxpose.xlu1.b32.cont [5/16] (narrow) %v119_v20, 8 }
  0xb4   :  { %v200_v31 = vpop.f32.mrf.mxu0 }
  0xb5   :  { %v149_v34 = vpop.xlane.xlu1 %148  ;;  %v152_v36 = vpop.xlane.xlu2 %151  ;;  %v350_v47 = vmul.f32 2.0, %v200_v31 }
  0xb6   :  { %v146_v32 = vpop.xlane.xlu0 %145 }
  0xb7   :  { %314 = vxpose.xlu0.b32.end [8/8] (short) (narrow) %v1013_v8, 8  ;;  %377 = vxpose.xlu1.b32.cont [6/16] (narrow) %v122_v21, 8 }
  0xbc   :  { %v203_v33 = vpop.f32.mrf.mxu0 }
  0xbd   :  { %v351_v48 = vmul.f32 2.0, %v203_v33 }
  0xbf   :  { %378 = vxpose.xlu1.b32.cont [7/16] (narrow) %v125_v22, 8 }
  0xc4   :  { %v206_v35 = vpop.f32.mrf.mxu0 }
  0xc5   :  { %v352_v51 = vmul.f32 2.0, %v206_v35 }
  0xc7   :  { %379 = vxpose.xlu1.b32.cont [8/16] (narrow) %v128_v23, 8 }
  0xcc   :  { %v209_v37 = vpop.f32.mrf.mxu0 }
  0xcd   :  { %v353_v52 = vmul.f32 2.0, %v209_v37 }
  0xce   :  { %v295_v38 = vpop.f32.mrf.mxu3 }
  0xcf   :  { %380 = vxpose.xlu1.b32.cont [9/16] (narrow) %v131_v24, 8  ;;  %v286_v40 = vpop.f32.mrf.mxu2  ;;  %v1022_v54 = vmul.f32 2.0, %v295_v38 }
  0xd0   :  { %v1026_v57 = vmul.f32 2.0, %v286_v40 }
  0xd4   :  { %v212_v39 = vpop.f32.mrf.mxu0 }
  0xd5   :  { %v354_v53 = vmul.f32 2.0, %v212_v39 }
  0xd6   :  { %v298_v41 = vpop.f32.mrf.mxu3 }
  0xd7   :  { %381 = vxpose.xlu1.b32.cont [10/16] (narrow) %v134_v25, 8  ;;  %v289_v49 = vpop.f32.mrf.mxu2  ;;  %v1028_v58 = vmul.f32 2.0, %v298_v41 }
  0xd8   :  { %v1035_v62 = vmul.f32 2.0, %v289_v49 }
  0xdc   :  { %v215_v43 = vpop.f32.mrf.mxu0 }
  0xdd   :  { %v355_v56 = vmul.f32 2.0, %v215_v43 }
  0xde   :  { %v301_v50 = vpop.f32.mrf.mxu3 }
  0xdf   :  { %382 = vxpose.xlu1.b32.cont [11/16] (narrow) %v137_v27, 8  ;;  %v1037_v63 = vmul.f32 2.0, %v301_v50 }
  0xe7   :  { %383 = vxpose.xlu1.b32.cont [12/16] (narrow) %v140_v29, 8 }
  0xef   :  { %384 = vxpose.xlu1.b32.cont [13/16] (narrow) %v143_v30, 8 }
  0xf7   :  { %385 = vxpose.xlu1.b32.cont [14/16] (narrow) %v146_v32, 8 }
  0xff   :  { %386 = vxpose.xlu1.b32.cont [15/16] (narrow) %v149_v34, 8 }
 0x107   :  { %387 = vxpose.xlu1.b32.end [16/16] (narrow) %v152_v36, 8 }
 0x123   :  { %v323_v59 = vpop.trf.xlu0 }
 0x124   :  { %v339_v2 = vperm.slane %v323_v59, 0  ;;  %v490_v59 = vstv %s1066_s12 }
 0x125   :  { %v495_v44 = vsel %vm486_vm5, %v490_v59, 0.0  ;;  %v496_v60 = vsel %vm487_vm6, %v490_v59, 0.0  ;;  %v497_v6 = vsel %vm488_vm7, %v490_v59, 0.0  ;;  %v498_v9 = vsel %vm489_vm8, %v490_v59, 0.0 }
 0x126   :  { %v340_v11 = vadd.f32 %v339_v2, %v998_v1  ;;  %v341_v17 = vadd.f32 %v339_v2, %v1005_v7  ;;  %v342_v18 = vadd.f32 %v339_v2, %v1001_v4  ;;  %v343_v19 = vadd.f32 %v339_v2, %v1008_v15 }
 0x127   :  { %v344_v20 = vadd.f32 %v339_v2, %v996_v0  ;;  %v345_v21 = vadd.f32 %v339_v2, %v1003_v5  ;;  %v346_v22 = vadd.f32 %v339_v2, %v1010_v16  ;;  %v347_v23 = vadd.f32 %v339_v2, %v1013_v8 }
 0x128   :  { %v356_v24 = vsub.f32 %v340_v11, %v348_v45  ;;  %v357_v25 = vsub.f32 %v341_v17, %v349_v46  ;;  %v358_v26 = vsub.f32 %v342_v18, %v350_v47  ;;  %v359_v27 = vsub.f32 %v343_v19, %v351_v48 }
 0x129   :  { %v360_v28 = vsub.f32 %v344_v20, %v352_v51  ;;  %v361_v29 = vsub.f32 %v345_v21, %v353_v52  ;;  %v362_v30 = vsub.f32 %v346_v22, %v354_v53  ;;  %v363_v31 = vsub.f32 %v347_v23, %v355_v56  ;;  %v283_v51 = vpop.f32.mrf.mxu1  ;;  %v292_v52 = vpop.f32.mrf.mxu2 }
 0x12a   :  { %v364_v32 = vmax.f32 %v356_v24, 0.0  ;;  %v365_v33 = vmax.f32 %v357_v25, 0.0  ;;  %v366_v34 = vmax.f32 %v358_v26, 0.0  ;;  %v367_v35 = vmax.f32 %v359_v27, 0.0  ;;  %v304_v22 = vpop.f32.mrf.mxu3 }
 0x12b   :  { %v368_v36 = vmax.f32 %v360_v28, 0.0  ;;  %v369_v37 = vmax.f32 %v361_v29, 0.0  ;;  %v370_v38 = vmax.f32 %v362_v30, 0.0  ;;  %v371_v39 = vmax.f32 %v363_v31, 0.0 }
 0x12c   :  { %v449_v40 = vmul.f32 %v1024_v55, %v364_v32  ;;  %v450_v41 = vmul.f32 %v1024_v55, %v365_v33  ;;  %v451_v42 = vmul.f32 %v1024_v55, %v366_v34  ;;  %v452_v43 = vmul.f32 %v1024_v55, %v367_v35 }
 0x12d   :  { %v453_v45 = vmul.f32 %v1024_v55, %v368_v36  ;;  %v454_v46 = vmul.f32 %v1024_v55, %v369_v37  ;;  %v455_v47 = vmul.f32 %v1024_v55, %v370_v38  ;;  %v456_v56 = vmul.f32 %v1024_v55, %v371_v39 }
 0x12e   :  { %v457_v48 = vmul.f32 1.442695, %v449_v40  ;;  %v459_v49 = vmul.f32 1.442695, %v450_v41  ;;  %v461_v50 = vmul.f32 1.442695, %v451_v42 }
 0x12f   :  { %v463_v53 = vmul.f32 1.442695, %v452_v43  ;;  %v465_v2 = vmul.f32 1.442695, %v453_v45  ;;  %v467_v11 = vmul.f32 1.442695, %v454_v46 }
 0x130   :  { %641 = vpow2.f32 %v457_v48  ;;  %v1094_v17 = vmul.f32 2.0, %v283_v51  ;;  %v1096_v18 = vmul.f32 2.0, %v292_v52  ;;  %v469_v19 = vmul.f32 1.442695, %v455_v47 }
 0x131   :  { %643 = vpow2.f32 %v459_v49  ;;  %v491_v20 = vsel %vm482_vm1, %v490_v59, 0.0  ;;  %v492_v21 = vsel %vm483_vm2, %v490_v59, 0.0  ;;  %v471_v23 = vmul.f32 1.442695, %v456_v56 }
 0x132   :  { %645 = vpow2.f32 %v461_v50  ;;  %v493_v24 = vsel %vm484_vm3, %v490_v59, 0.0  ;;  %v494_v25 = vsel %vm485_vm4, %v490_v59, 0.0  ;;  %v1124_v28 = vmul.f32 2.0, %v304_v22 }
 0x133   :  { %647 = vpow2.f32 %v463_v53  ;;  %v388_v26 = vpop.trf.xlu1 }
 0x134   :  { %649 = vpow2.f32 %v465_v2  ;;  %v1116_v27 = vperm.slane %v388_v26, 0 }
 0x135   :  { %651 = vpow2.f32 %v467_v11 }
 0x136   :  { %v642_v29 = vpop.eup %641  ;;  %653 = vpow2.f32 %v469_v19  ;;  %v406_v10 = vadd.f32 %v1116_v27, %v1005_v7  ;;  %v407_v12 = vadd.f32 %v1116_v27, %v1001_v4  ;;  %v409_v30 = vadd.f32 %v1116_v27, %v996_v0 }
 0x137   :  { %v644_v31 = vpop.eup %643  ;;  %v474_v13 = vmul.f32 %v642_v29, %v1039_v3  ;;  %655 = vpow2.f32 %v471_v23  ;;  %v410_v61 = vadd.f32 %v1116_v27, %v1003_v5  ;;  %v411_v14 = vadd.f32 %v1116_v27, %v1010_v16 }
 0x138   :  { %v646_v32 = vpop.eup %645  ;;  %v475_v33 = vmul.f32 %v644_v31, %v1039_v3  ;;  %v422_v7 = vsub.f32 %v406_v10, %v1026_v57  ;;  %v423_v4 = vsub.f32 %v407_v12, %v1035_v62  ;;  %v425_v34 = vsub.f32 %v409_v30, %v1022_v54 }
 0x139   :  { %v648_v0 = vpop.eup %647  ;;  %v476_v35 = vmul.f32 %v646_v32, %v1039_v3  ;;  %v499_v36 = vadd.f32 %v491_v20, %v474_v13  ;;  %v426_v37 = vsub.f32 %v410_v61, %v1028_v58  ;;  %v427_v5 = vsub.f32 %v411_v14, %v1037_v63 }
 0x13a   :  { %v650_v38 = vpop.eup %649  ;;  %v477_v16 = vmul.f32 %v648_v0, %v1039_v3  ;;  %v500_v39 = vadd.f32 %v492_v21, %v475_v33  ;;  %v430_v40 = vmax.f32 %v422_v7, 0.0  ;;  %v431_v41 = vmax.f32 %v423_v4, 0.0 }
 0x13b   :  { %v652_v42 = vpop.eup %651  ;;  %v478_v57 = vmul.f32 %v650_v38, %v1039_v3  ;;  %v501_v62 = vadd.f32 %v493_v24, %v476_v35  ;;  %508 = vst.msk [vmem:[%s1233_s3] sm:$0xff] %vm507_vm9, %v499_v36  ;;  %v433_v54 = vmax.f32 %v425_v34, 0.0  ;;  %v434_v43 = vmax.f32 %v426_v37, 0.0 }
 0x13c   :  { %v654_v58 = vpop.eup %653  ;;  %v479_v63 = vmul.f32 %v652_v42, %v1039_v3  ;;  %v502_v45 = vadd.f32 %v494_v25, %v477_v16  ;;  %509 = vst.msk [vmem:[%s1233_s3 + $0x8] sm:$0xff] %vm507_vm9, %v500_v39  ;;  %v435_v46 = vmax.f32 %v427_v5, 0.0  ;;  %v517_v47 = vmul.f32 %v1024_v55, %v430_v40 }
 0x13d   :  { %v656_v48 = vpop.eup %655  ;;  %v480_v49 = vmul.f32 %v654_v58, %v1039_v3  ;;  %v503_v50 = vadd.f32 %v495_v44, %v478_v57  ;;  %510 = vst.msk [vmem:[%s1233_s3 + $0x10] sm:$0xff] %vm507_vm9, %v501_v62  ;;  %v518_v51 = vmul.f32 %v1024_v55, %v431_v41  ;;  %v520_v52 = vmul.f32 %v1024_v55, %v433_v54 }
 0x13e   :  { %v481_v53 = vmul.f32 %v656_v48, %v1039_v3  ;;  %v504_v56 = vadd.f32 %v496_v60, %v479_v63  ;;  %511 = vst.msk [vmem:[%s1233_s3 + $0x18] sm:$0xff] %vm507_vm9, %v502_v45  ;;  %v521_v59 = vmul.f32 %v1024_v55, %v434_v43  ;;  %v522_v2 = vmul.f32 %v1024_v55, %v435_v46 }
 0x13f   :  { %v505_v11 = vadd.f32 %v497_v6, %v480_v49  ;;  %512 = vst.msk [vmem:[%s1233_s3 + $0x20] sm:$0xff] %vm507_vm9, %v503_v50  ;;  %v526_v19 = vmul.f32 1.442695, %v517_v47  ;;  %v528_v20 = vmul.f32 1.442695, %v518_v51  ;;  %v405_v21 = vadd.f32 %v1116_v27, %v998_v1 }
 0x140   :  { %v506_v22 = vadd.f32 %v498_v9, %v481_v53  ;;  %513 = vst.msk [vmem:[%s1233_s3 + $0x28] sm:$0xff] %vm507_vm9, %v504_v56  ;;  %v532_v23 = vmul.f32 1.442695, %v520_v52  ;;  %v534_v24 = vmul.f32 1.442695, %v521_v59  ;;  %v408_v25 = vadd.f32 %v1116_v27, %v1008_v15 }
 0x141   :  { %514 = vst.msk [vmem:[%s1233_s3 + $0x30] sm:$0xff] %vm507_vm9, %v505_v11  ;;  %657 = vpow2.f32 %v526_v19  ;;  %v536_v26 = vmul.f32 1.442695, %v522_v2  ;;  %v421_v1 = vsub.f32 %v405_v21, %v1094_v17  ;;  %v412_v44 = vadd.f32 %v1116_v27, %v1013_v8 }
 0x142   :  { %515 = vst.msk [vmem:[%s1233_s3 + $0x38] sm:$0xff] %vm507_vm9, %v506_v22  ;;  %659 = vpow2.f32 %v528_v20  ;;  %v424_v15 = vsub.f32 %v408_v25, %v1096_v18 }
 0x143   :  { %661 = vpow2.f32 %v532_v23  ;;  %v429_v60 = vmax.f32 %v421_v1, 0.0  ;;  %v428_v6 = vsub.f32 %v412_v44, %v1124_v28 }
 0x144   :  { %663 = vpow2.f32 %v534_v24  ;;  %v432_v9 = vmax.f32 %v424_v15, 0.0 }
 0x145   :  { %665 = vpow2.f32 %v536_v26  ;;  %v516_v17 = vmul.f32 %v1024_v55, %v429_v60  ;;  %v436_v29 = vmax.f32 %v428_v6, 0.0 }
 0x146   :  { %v519_v8 = vmul.f32 %v1024_v55, %v432_v9 }
 0x147   :  { %v658_v27 = vpop.eup %657  ;;  %v524_v10 = vmul.f32 1.442695, %v516_v17  ;;  %v523_v12 = vmul.f32 %v1024_v55, %v436_v29 }
 0x148   :  { %v660_v30 = vpop.eup %659  ;;  %v541_v31 = vmul.f32 %v658_v27, %v1039_v3  ;;  %v530_v18 = vmul.f32 1.442695, %v519_v8 }
 0x149   :  { %v662_v13 = vpop.eup %661  ;;  %v542_v61 = vmul.f32 %v660_v30, %v1039_v3  ;;  %667 = vpow2.f32 %v524_v10  ;;  %v538_v28 = vmul.f32 1.442695, %v523_v12 }
 0x14a   :  { %v664_v14 = vpop.eup %663  ;;  %v544_v32 = vmul.f32 %v662_v13, %v1039_v3  ;;  %549 = vst [vmem:[%s1234_s4 + $0x8] sm:$0xff] %v541_v31  ;;  %669 = vpow2.f32 %v530_v18 }
 0x14b   :  { %v666_v33 = vpop.eup %665  ;;  %v545_v55 = vmul.f32 %v664_v14, %v1039_v3  ;;  %550 = vst [vmem:[%s1234_s4 + $0x10] sm:$0xff] %v542_v61  ;;  %671 = vpow2.f32 %v538_v28 }
 0x14c   :  { %v546_v7 = vmul.f32 %v666_v33, %v1039_v3  ;;  %552 = vst [vmem:[%s1234_s4 + $0x20] sm:$0xff] %v544_v32 }
 0x14d   :  { %553 = vst [vmem:[%s1234_s4 + $0x28] sm:$0xff] %v545_v55 }
 0x14e   :  { %554 = vst [vmem:[%s1234_s4 + $0x30] sm:$0xff] %v546_v7 }
 0x14f   :  { %v668_v4 = vpop.eup %667 }
 0x150   :  { %v670_v34 = vpop.eup %669  ;;  %v540_v0 = vmul.f32 %v668_v4, %v1039_v3 }
 0x151   :  { %v672_v35 = vpop.eup %671  ;;  %v543_v36 = vmul.f32 %v670_v34, %v1039_v3 }
 0x152   :  { %548 = vst [vmem:[%s1234_s4] sm:$0xff] %v540_v0  ;;  %v547_v37 = vmul.f32 %v672_v35, %v1039_v3 }
 0x153   :  { %551 = vst [vmem:[%s1234_s4 + $0x18] sm:$0xff] %v543_v36 }
 0x154   :  { %555 = vst [vmem:[%s1234_s4 + $0x38] sm:$0xff] %v547_v37 }
 0x155   :  { %564 = vsyncpa [#allocation3], 1 }

// kernel: gp_forward.3
= control target key start
LH: loop header
LB: loop body
LE: loop exit
PB: predicated region body
PF: predicated region fallthrough
CT: control target
= control target key end

     0   :  { %vm35_vm0 = vcmask 523264   ;;  %vm89_vm1 = vcmask 1040384   ;;  %s159_s1 = inlined_call_operand.vmem [shape: f32[64,128], index: 1, kind: input, shape index: {}]   ;;  %s160_s2 = inlined_call_operand.vmem [shape: f32[1,64], index: 2, kind: input, shape index: {}]   ;;  %s161_s3 = inlined_call_operand.vmem [shape: f32[1,64], index: 3, kind: input, shape index: {}]   ;;  %s162_s0 = inlined_call_operand.<no memory space> [shape: f32[1], index: 0, kind: input, shape index: {}]   ;;  %s163_s4 = inlined_call_operand.vmem [shape: f32[2,128], index: 4, kind: output, shape index: {}]  }
   0x1   :  { %v25_v0 = vld [vmem:[%s159_s1 + $0x38] sm:$0xff]  ;;  %v24_v1 = vld [vmem:[%s159_s1 + $0x30] sm:$0xff]  ;;  %v23_v2 = vld [vmem:[%s159_s1 + $0x28] sm:$0xff]  ;;  %v84_v18 = vstv %s162_s0 }
   0x2   :  { %v33_v3 = vmul.f32 %v25_v0, %v25_v0  ;;  %v32_v4 = vmul.f32 %v24_v1, %v24_v1  ;;  %47 = vmatpush.msra.mxu0 %v25_v0  ;;  %v22_v5 = vld [vmem:[%s159_s1 + $0x20] sm:$0xff]  ;;  %v31_v6 = vmul.f32 %v23_v2, %v23_v2  ;;  %v21_v7 = vld [vmem:[%s159_s1 + $0x18] sm:$0xff]  ;;  %v20_v9 = vld [vmem:[%s159_s1 + $0x10] sm:$0xff] }
   0x3   :  { %v30_v8 = vmul.f32 %v22_v5, %v22_v5  ;;  %v29_v10 = vmul.f32 %v21_v7, %v21_v7  ;;  %v19_v11 = vld [vmem:[%s159_s1 + $0x8] sm:$0xff]  ;;  %v28_v12 = vmul.f32 %v20_v9, %v20_v9  ;;  %v18_v13 = vld [vmem:[%s159_s1] sm:$0xff] }
   0x4   :  { %71 = vmatpush.msra.mxu1 %v33_v3  ;;  %48 = vmatpush.msra.mxu0 %v24_v1  ;;  %v27_v14 = vmul.f32 %v19_v11, %v19_v11  ;;  %v26_v15 = vmul.f32 %v18_v13, %v18_v13  ;;  %v34_v16 = vld [vmem:[%s160_s2] sm:$0x1] }
   0x5   :  { %v59_v17 = vld [vmem:[%s161_s3] sm:$0x1] }
   0x6   :  { %72 = vmatpush.msra.mxu1 %v32_v4  ;;  %49 = vmatpush.msra.mxu0 %v23_v2 }
   0x8   :  { %73 = vmatpush.msra.mxu1 %v31_v6  ;;  %50 = vmatpush.msra.mxu0 %v22_v5 }
   0xa   :  { %74 = vmatpush.msra.mxu1 %v30_v8  ;;  %51 = vmatpush.msra.mxu0 %v21_v7 }
   0xc   :  { %75 = vmatpush.msra.mxu1 %v29_v10  ;;  %52 = vmatpush.msra.mxu0 %v20_v9 }
   0xe   :  { %76 = vmatpush.msra.mxu1 %v28_v12  ;;  %53 = vmatpush.msra.mxu0 %v19_v11 }
  0x10   :  { %77 = vmatpush.msra.mxu1 %v27_v14  ;;  %54 = vmatpush.msra.mxu0 %v18_v13 }
  0x11   :  { %96 = vmatmul.msk.f32.vlgmr.msra.gmra.mxu0 %vm35_vm0, %v34_v16 }
  0x12   :  { %78 = vmatpush.msra.mxu1 %v26_v15 }
  0x13   :  { %97 = vmatmul.msk.f32.vlgmr.msra.gmra.mxu1 %vm35_vm0, %v59_v17 }
  0x8e   :  { %v56_v21 = vpop.f32.mrf.mxu0 }
  0x90   :  { %v80_v19 = vpop.f32.mrf.mxu1 }
  0x91   :  { %v85_v20 = vadd.f32 %v84_v18, %v80_v19 }
  0x93   :  { %v87_v22 = vrot.slane %v85_v20, 7 }
  0x95   :  { %v90_v23 = vsel %vm89_vm1, %v56_v21, %v87_v22 }
  0x96   :  { %91 = vst [vmem:[%s163_s4] sm:$0x3] %v90_v23 }

</bundles_post_ra>
